<compile_context>
chip_gen: v7x
topology: tpu7x:2x2x1
jax: 0.10.0
libtpu: 0.0.40
codegen_flags: <defaults>
</compile_context>

<pallas_src>
import functools

import jax
import jax.numpy as jnp
from jax.experimental import pallas as pl
from jax.experimental.pallas import tpu as pltpu


# ----------------------------------------------------------------------------
# Pallas kernels
# ----------------------------------------------------------------------------
def _conv3x3_kernel(H, W, Cin, mode, xp_ref, w_ref, t_ref, o_ref):
    """3x3 conv (pad=1) on one image as 9 shifted-tap MACs from a haloed VMEM block.
      xp_ref: (H+2, W+2, Cin) bf16 padded image (halo included)
      w_ref : (9*Cin, Cout)   bf16 (f32 when Cin==1), BN scale pre-folded
      t_ref : (1, Cout) f32 shift
      o_ref : (H//2, W, Cout) for 'max2', (W, Cout) for 'mean'
    """
    Cout = w_ref.shape[-1]
    w_all = w_ref[...]
    acc = jnp.zeros((H * W, Cout), jnp.float32)
    k = 0
    for dy in range(3):
        for dx in range(3):
            tap = xp_ref[dy:dy + H, dx:dx + W, :].reshape(H * W, Cin)
            wk = w_all[k * Cin:(k + 1) * Cin, :]
            if Cin == 1:
                # K=1 outer product: run on the VPU, don't waste the MXU contraction dim.
                acc = acc + tap.astype(jnp.float32) * wk.astype(jnp.float32)
            else:
                acc = acc + jnp.dot(tap.astype(jnp.bfloat16), wk,
                                    preferred_element_type=jnp.float32)
            k += 1
    y = jnp.maximum(acc + t_ref[...], 0.0)                      # BN shift + ReLU
    if mode == "max2":
        # MaxPool2d((2,1)) over mel: one vectorized max + one dense store.
        z = y.reshape(H // 2, 2 * W, Cout)
        o_ref[...] = jnp.maximum(z[:, :W, :], z[:, W:, :])
    else:
        # AdaptiveAvgPool2d((1, None)): tree reduce over mel, one dense store.
        o_ref[...] = y.reshape(H, W, Cout).sum(axis=0) * (1.0 / H)


def _matmul_bias_kernel(x_ref, w_ref, b_ref, o_ref):
    # (tm, K) @ (K, N) + bias -> (tm, N); bf16 MXU operands, f32 accumulation.
    o_ref[...] = (jnp.dot(x_ref[...].astype(jnp.bfloat16), w_ref[...],
                          preferred_element_type=jnp.float32) + b_ref[...])


def _bilstm_kernel(g_ref, whh_ref, o_ref):
    """Fused bidirectional LSTM recurrence (time loop unrolled in-kernel).
      g_ref  : (B, T*8H) f32   precomputed x@[Wih_f|Wih_b]+b, time-major along lanes
      whh_ref: (2H, 8H)  bf16  block-diag(whh_f, whh_b)
      o_ref  : (B, T*2H) f32   [h_f(t) | h_b(t)] concatenated over t along lanes
    """
    B = g_ref.shape[0]
    H = whh_ref.shape[0] // 2
    G = 8 * H
    T = g_ref.shape[1] // G
    whh = whh_ref[...]

    def cell(pre, c):
        i = jax.nn.sigmoid(pre[:, 0:H])
        f = jax.nn.sigmoid(pre[:, H:2 * H])
        g = jnp.tanh(pre[:, 2 * H:3 * H])
        o = jax.nn.sigmoid(pre[:, 3 * H:4 * H])
        c = f * c + i * g
        return o * jnp.tanh(c), c

    z = jnp.zeros((B, H), jnp.float32)
    h_f, c_f, h_b, c_b = z, z, z, z
    hs_f = [None] * T
    hs_b = [None] * T
    # TODO(synk): for production T, chunk over T-blocks (grid axis 'arbitrary') with
    #             h/c carried in VMEM scratch so g streams instead of being resident.
    for t in range(T):
        tb = T - 1 - t
        # ONE fused recurrent matmul for both directions per step.
        r = jnp.dot(jnp.concatenate([h_f, h_b], axis=1).astype(jnp.bfloat16),
                    whh, preferred_element_type=jnp.float32)           # (B, 8H)
        g_f = g_ref[:, t * G:t * G + 4 * H] + r[:, 0:4 * H]
        g_b = g_ref[:, tb * G + 4 * H:(tb + 1) * G] + r[:, 4 * H:8 * H]
        h_f, c_f = cell(g_f, c_f)
        h_b, c_b = cell(g_b, c_b)
        hs_f[t] = h_f
        hs_b[tb] = h_b
    # Single dense lane-wide store (no per-step masked partial stores).
    o_ref[...] = jnp.concatenate(
        [jnp.concatenate([hs_f[t], hs_b[t]], axis=1) for t in range(T)], axis=1)


# ----------------------------------------------------------------------------
# Wrappers
# ----------------------------------------------------------------------------
def conv_bn_relu_fused(x, w, scale, shift, mode):
    """Conv3x3(pad=1)+BN(eval)+ReLU with a fused pooling epilogue.
    x: (B,H,W,Cin) -> (B,H//2,W,Cout) for 'max2', (B,W,Cout) for 'mean'."""
    B, H, W, Cin = x.shape
    Cout = w.shape[-1]
    assert mode in ("max2", "mean") and (mode != "max2" or H % 2 == 0)
    # Halo pad only (+2 rows/cols) instead of a 9x HBM im2col; bf16 halves the DMA.
    xpad = jnp.pad(x, ((0, 0), (1, 1), (1, 1), (0, 0))).astype(jnp.bfloat16)
    wdt = jnp.float32 if Cin == 1 else jnp.bfloat16
    wm = (w.reshape(9 * Cin, Cout) * scale[None, :]).astype(wdt)   # fold BN scale
    if mode == "max2":
        out_shape = jax.ShapeDtypeStruct((B, H // 2, W, Cout), jnp.float32)
        out_spec = pl.BlockSpec((None, H // 2, W, Cout), lambda b: (b, 0, 0, 0))
    else:
        out_shape = jax.ShapeDtypeStruct((B, W, Cout), jnp.float32)
        out_spec = pl.BlockSpec((None, W, Cout), lambda b: (b, 0, 0))
    # TODO(synk): for production sizes, add a mel-row tile axis to the grid and pad
    #             Cout up to a 128-lane multiple for fully dense stores.
    return pl.pallas_call(
        functools.partial(_conv3x3_kernel, H, W, Cin, mode),
        out_shape=out_shape,
        grid=(B,),
        in_specs=[
            pl.BlockSpec((None, H + 2, W + 2, Cin), lambda b: (b, 0, 0, 0)),
            pl.BlockSpec((9 * Cin, Cout), lambda b: (0, 0)),
            pl.BlockSpec((1, Cout), lambda b: (0, 0)),
        ],
        out_specs=out_spec,
        compiler_params=pltpu.CompilerParams(
            dimension_semantics=("parallel",),
            vmem_limit_bytes=64 * 1024 * 1024),
    )(xpad, wm, shift.reshape(1, Cout))


def matmul_bias(x, w, b, tile_m=256):
    """Row-tiled (M,K)@(K,N)+bias with resident weights; bf16 MXU operands."""
    M, K = x.shape
    N = w.shape[1]
    tm = tile_m if M % tile_m == 0 else M   # TODO(synk): pad M for ragged production sizes
    return pl.pallas_call(
        _matmul_bias_kernel,
        out_shape=jax.ShapeDtypeStruct((M, N), jnp.float32),
        grid=(M // tm,),
        in_specs=[pl.BlockSpec((tm, K), lambda i: (i, 0)),
                  pl.BlockSpec((K, N), lambda i: (0, 0)),
                  pl.BlockSpec((1, N), lambda i: (0, 0))],
        out_specs=pl.BlockSpec((tm, N), lambda i: (i, 0)),
        compiler_params=pltpu.CompilerParams(
            dimension_semantics=("parallel",),
            vmem_limit_bytes=64 * 1024 * 1024),
    )(x, w.astype(jnp.bfloat16), b.reshape(1, N))


def bilstm_layer(x_btd, p_fwd, p_bwd):
    """One bidirectional LSTM layer, batch-major: (B, T, D) -> (B, T, 2H)."""
    B, T, D = x_btd.shape
    wih_f, whh_f, b_f = p_fwd
    wih_b, whh_b, b_b = p_bwd
    H = whh_f.shape[0]
    # Hoisted input projection for BOTH directions: one lane-dense (8H-wide) matmul.
    w_cat = jnp.concatenate([wih_f, wih_b], axis=1)                 # (D, 8H)
    b_cat = jnp.concatenate([b_f, b_b], axis=0)                     # (8H,)
    g = matmul_bias(x_btd.reshape(B * T, D), w_cat, b_cat).reshape(B, T * 8 * H)
    # Block-diagonal recurrent weights -> single fused per-step matmul in the kernel.
    zhh = jnp.zeros((H, 4 * H), jnp.float32)
    whh_cat = jnp.concatenate(
        [jnp.concatenate([whh_f, zhh], axis=1),
         jnp.concatenate([zhh, whh_b], axis=1)], axis=0).astype(jnp.bfloat16)
    out = pl.pallas_call(
        _bilstm_kernel,
        out_shape=jax.ShapeDtypeStruct((B, T * 2 * H), jnp.float32),
        compiler_params=pltpu.CompilerParams(vmem_limit_bytes=64 * 1024 * 1024),
    )(g, whh_cat)
    return out.reshape(B, T, 2 * H)


def crnn_forward(x_nchw, params):
    """x_nchw: (B, 1, n_mels, T) -> (frame_logits, onset_logits), each (B, T, n_class)."""
    B, _, n_mels, T = x_nchw.shape
    x = x_nchw.reshape(B, n_mels, T, 1)   # NCHW -> NHWC is a free reshape (Cin == 1)
    x = conv_bn_relu_fused(x, params['w1'], params['s1'], params['t1'], "max2")
    x = conv_bn_relu_fused(x, params['w2'], params['s2'], params['t2'], "max2")
    seq = conv_bn_relu_fused(x, params['w3'], params['s3'], params['t3'], "mean")  # (B,T,C)

    # Batch-major end to end: no sequence transposes around the LSTM / heads.
    h = bilstm_layer(seq, params['lstm0_f'], params['lstm0_b'])
    h = bilstm_layer(h, params['lstm1_f'], params['lstm1_b'])

    Bh, Th, H2 = h.shape
    nc = params['wf'].shape[-1]
    # Fused frame/onset heads; pad N up to a 128-lane multiple for dense stores.
    w_heads = jnp.concatenate([params['wf'], params['wo']], axis=1)   # (2H, 2*nc)
    b_heads = jnp.concatenate([params['bf'], params['bo']], axis=0)
    n_pad = (-w_heads.shape[1]) % 128
    w_heads = jnp.pad(w_heads, ((0, 0), (0, n_pad)))
    b_heads = jnp.pad(b_heads, ((0, n_pad),))
    logits = matmul_bias(h.reshape(Bh * Th, H2), w_heads, b_heads)
    logits = logits.reshape(Bh, Th, -1)
    return logits[..., :nc], logits[..., nc:2 * nc]


# ----------------------------------------------------------------------------
# Deterministic parameter init (BN folded into scale/shift, eval-mode stats)
# ----------------------------------------------------------------------------
def init_params(key, n_class, c1, c2, c3, H):
    keys = iter(jax.random.split(key, 40))

    def nrm(shape, scale=0.1):
        return scale * jax.random.normal(next(keys), shape, jnp.float32)

    eps = 1e-5
    p = {}

    def conv_bn(cin, cout):
        w = nrm((3, 3, cin, cout))
        b = nrm((cout,))
        gamma = 1.0 + nrm((cout,))
        beta = nrm((cout,))
        mean = nrm((cout,))
        var = 1.0 + jnp.abs(nrm((cout,)))
        scale = gamma / jnp.sqrt(var + eps)
        shift = (b - mean) * scale + beta
        return w, scale, shift

    p['w1'], p['s1'], p['t1'] = conv_bn(1, c1)
    p['w2'], p['s2'], p['t2'] = conv_bn(c1, c2)
    p['w3'], p['s3'], p['t3'] = conv_bn(c2, c3)

    def lstm_dir(din, h):
        wih = nrm((din, 4 * h))      # = torch weight_ih.T
        whh = nrm((h, 4 * h))        # = torch weight_hh.T
        b = nrm((4 * h,))            # = bias_ih + bias_hh
        return (wih, whh, b)

    p['lstm0_f'] = lstm_dir(c3, H)
    p['lstm0_b'] = lstm_dir(c3, H)
    p['lstm1_f'] = lstm_dir(2 * H, H)
    p['lstm1_b'] = lstm_dir(2 * H, H)

    p['wf'] = nrm((2 * H, n_class)); p['bf'] = nrm((n_class,))
    p['wo'] = nrm((2 * H, n_class)); p['bo'] = nrm((n_class,))
    return p


# ----------------------------------------------------------------------------
# Pure-JAX f32 reference (same eval-mode BN folding) for a sanity check
# ----------------------------------------------------------------------------
def ref_forward(x_nchw, params):
    x = jnp.transpose(x_nchw, (0, 2, 3, 1))

    def conv(xv, w, s, t):
        B, Hh, W, Cin = xv.shape
        xp = jnp.pad(xv, ((0, 0), (1, 1), (1, 1), (0, 0)))
        acc = jnp.zeros((B, Hh, W, w.shape[-1]), jnp.float32)
        for dy in range(3):
            for dx in range(3):
                acc = acc + jnp.einsum('bhwc,cd->bhwd',
                                       xp[:, dy:dy + Hh, dx:dx + W, :], w[dy, dx])
        return jnp.maximum(acc * s + t, 0.0)

    def pool(xv):
        B, Hh, W, C = xv.shape
        return xv.reshape(B, Hh // 2, 2, W, C).max(axis=2)

    x = pool(conv(x, params['w1'], params['s1'], params['t1']))
    x = pool(conv(x, params['w2'], params['s2'], params['t2']))
    x = conv(x, params['w3'], params['s3'], params['t3'])
    seq = jnp.mean(x, axis=1)  # (B, T, C)

    def lstm_dir(xv, wih, whh, b):
        B, T, D = xv.shape
        Hh = whh.shape[0]

        def step(carry, xt):
            h, c = carry
            g = xt @ wih + h @ whh + b
            i = jax.nn.sigmoid(g[:, :Hh])
            f = jax.nn.sigmoid(g[:, Hh:2 * Hh])
            gg = jnp.tanh(g[:, 2 * Hh:3 * Hh])
            o = jax.nn.sigmoid(g[:, 3 * Hh:])
            c = f * c + i * gg
            h = o * jnp.tanh(c)
            return (h, c), h

        (_, _), hs = jax.lax.scan(step, (jnp.zeros((B, Hh)), jnp.zeros((B, Hh))),
                                  jnp.transpose(xv, (1, 0, 2)))
        return jnp.transpose(hs, (1, 0, 2))

    def bilayer(xv, pf, pb):
        hf = lstm_dir(xv, *pf)
        hb = lstm_dir(xv[:, ::-1], *pb)[:, ::-1]
        return jnp.concatenate([hf, hb], axis=-1)

    h = bilayer(seq, params['lstm0_f'], params['lstm0_b'])
    h = bilayer(h, params['lstm1_f'], params['lstm1_b'])
    frame = h @ params['wf'] + params['bf']
    onset = h @ params['wo'] + params['bo']
    return frame, onset


# ----------------------------------------------------------------------------
if __name__ == "__main__":
    key = jax.random.PRNGKey(0)
    kx, kp = jax.random.split(key)

    # small shapes consistent with the module (n_mels divisible by 4 for the two pools)
    B, n_mels, T = 2, 16, 8
    c1, c2, cnn_out = 8, 16, 32
    lstm_hidden, n_class = 32, 16

    x = jax.random.normal(kx, (B, 1, n_mels, T), jnp.float32)
    params = init_params(kp, n_class, c1, c2, cnn_out, lstm_hidden)

    fwd = jax.jit(crnn_forward)
    frame, onset = fwd(x, params)
    jax.block_until_ready((frame, onset))

    frame_r, onset_r = ref_forward(x, params)
    assert frame.shape == (B, T, n_class) and onset.shape == (B, T, n_class)
    assert bool(jnp.all(jnp.isfinite(frame))) and bool(jnp.all(jnp.isfinite(onset)))
    # bf16 MXU operands (f32 accumulation) vs the all-f32 reference.
    assert float(jnp.max(jnp.abs(frame - frame_r))) < 5e-2
    assert float(jnp.max(jnp.abs(onset - onset_r))) < 5e-2

    print("KERNEL_OK")
</pallas_src>

<mosaic_0001>
module attributes {stable_mosaic.version = 11 : i64} {
  func.func @_conv3x3_kernel(%arg0: i32, %arg1: memref<1x18x10x1xbf16, #tpu.memory_space<vmem>>, %arg2: memref<9x8xf32, #tpu.memory_space<vmem>>, %arg3: memref<1x8xf32, #tpu.memory_space<vmem>>, %arg4: memref<1x8x8x8xf32, #tpu.memory_space<vmem>>) attributes {dimension_semantics = [#tpu.dimension_semantics<parallel>], iteration_bounds = array<i64: 2>, scalar_prefetch = 0 : i64, scratch_operands = 0 : i64, tpu.core_type = #tpu.core_type<tc>, window_params = [{transform_indices = @transform_0, window_bounds = array<i64: 1, 18, 10, 1>}, {pipeline_mode = #tpu.pipeline_mode<synchronous>, transform_indices = @transform_1, window_bounds = array<i64: 9, 8>}, {pipeline_mode = #tpu.pipeline_mode<synchronous>, transform_indices = @transform_2, window_bounds = array<i64: 1, 8>}, {transform_indices = @transform_3, window_bounds = array<i64: 1, 8, 8, 8>}]} {
    %c0 = arith.constant 0 : index
    %c0_0 = arith.constant 0 : index
    %0 = vector.load %arg2[%c0, %c0_0] : memref<9x8xf32, #tpu.memory_space<vmem>>, vector<9x8xf32>
    %cst = arith.constant 0.000000e+00 : f32
    %1 = vector.broadcast %cst : f32 to vector<128x8xf32>
    %c0_1 = arith.constant 0 : index
    %c0_2 = arith.constant 0 : index
    %c0_3 = arith.constant 0 : index
    %c0_4 = arith.constant 0 : index
    %2 = vector.load %arg1[%c0_1, %c0_2, %c0_3, %c0_4] : memref<1x18x10x1xbf16, #tpu.memory_space<vmem>>, vector<1x16x8x1xbf16>
    %3 = vector.shape_cast %2 : vector<1x16x8x1xbf16> to vector<16x8x1xbf16>
    %4 = vector.shape_cast %3 : vector<16x8x1xbf16> to vector<128x1xbf16>
    %5 = vector.extract_strided_slice %0 {offsets = [0, 0], sizes = [1, 8], strides = [1, 1]} : vector<9x8xf32> to vector<1x8xf32>
    %6 = arith.extf %4 : vector<128x1xbf16> to vector<128x1xf32>
    %7 = vector.broadcast %6 : vector<128x1xf32> to vector<128x8xf32>
    %8 = vector.broadcast %5 : vector<1x8xf32> to vector<128x8xf32>
    %9 = arith.mulf %7, %8 : vector<128x8xf32>
    %10 = arith.addf %1, %9 : vector<128x8xf32>
    %c0_5 = arith.constant 0 : index
    %c0_6 = arith.constant 0 : index
    %c1 = arith.constant 1 : index
    %c0_7 = arith.constant 0 : index
    %11 = vector.load %arg1[%c0_5, %c0_6, %c1, %c0_7] : memref<1x18x10x1xbf16, #tpu.memory_space<vmem>>, vector<1x16x8x1xbf16>
    %12 = vector.shape_cast %11 : vector<1x16x8x1xbf16> to vector<16x8x1xbf16>
    %13 = vector.shape_cast %12 : vector<16x8x1xbf16> to vector<128x1xbf16>
    %14 = vector.extract_strided_slice %0 {offsets = [1, 0], sizes = [1, 8], strides = [1, 1]} : vector<9x8xf32> to vector<1x8xf32>
    %15 = arith.extf %13 : vector<128x1xbf16> to vector<128x1xf32>
    %16 = vector.broadcast %15 : vector<128x1xf32> to vector<128x8xf32>
    %17 = vector.broadcast %14 : vector<1x8xf32> to vector<128x8xf32>
    %18 = arith.mulf %16, %17 : vector<128x8xf32>
    %19 = arith.addf %10, %18 : vector<128x8xf32>
    %c0_8 = arith.constant 0 : index
    %c0_9 = arith.constant 0 : index
    %c2 = arith.constant 2 : index
    %c0_10 = arith.constant 0 : index
    %20 = vector.load %arg1[%c0_8, %c0_9, %c2, %c0_10] : memref<1x18x10x1xbf16, #tpu.memory_space<vmem>>, vector<1x16x8x1xbf16>
    %21 = vector.shape_cast %20 : vector<1x16x8x1xbf16> to vector<16x8x1xbf16>
    %22 = vector.shape_cast %21 : vector<16x8x1xbf16> to vector<128x1xbf16>
    %23 = vector.extract_strided_slice %0 {offsets = [2, 0], sizes = [1, 8], strides = [1, 1]} : vector<9x8xf32> to vector<1x8xf32>
    %24 = arith.extf %22 : vector<128x1xbf16> to vector<128x1xf32>
    %25 = vector.broadcast %24 : vector<128x1xf32> to vector<128x8xf32>
    %26 = vector.broadcast %23 : vector<1x8xf32> to vector<128x8xf32>
    %27 = arith.mulf %25, %26 : vector<128x8xf32>
    %28 = arith.addf %19, %27 : vector<128x8xf32>
    %c0_11 = arith.constant 0 : index
    %c1_12 = arith.constant 1 : index
    %c0_13 = arith.constant 0 : index
    %c0_14 = arith.constant 0 : index
    %29 = vector.load %arg1[%c0_11, %c1_12, %c0_13, %c0_14] : memref<1x18x10x1xbf16, #tpu.memory_space<vmem>>, vector<1x16x8x1xbf16>
    %30 = vector.shape_cast %29 : vector<1x16x8x1xbf16> to vector<16x8x1xbf16>
    %31 = vector.shape_cast %30 : vector<16x8x1xbf16> to vector<128x1xbf16>
    %32 = vector.extract_strided_slice %0 {offsets = [3, 0], sizes = [1, 8], strides = [1, 1]} : vector<9x8xf32> to vector<1x8xf32>
    %33 = arith.extf %31 : vector<128x1xbf16> to vector<128x1xf32>
    %34 = vector.broadcast %33 : vector<128x1xf32> to vector<128x8xf32>
    %35 = vector.broadcast %32 : vector<1x8xf32> to vector<128x8xf32>
    %36 = arith.mulf %34, %35 : vector<128x8xf32>
    %37 = arith.addf %28, %36 : vector<128x8xf32>
    %c0_15 = arith.constant 0 : index
    %c1_16 = arith.constant 1 : index
    %c1_17 = arith.constant 1 : index
    %c0_18 = arith.constant 0 : index
    %38 = vector.load %arg1[%c0_15, %c1_16, %c1_17, %c0_18] : memref<1x18x10x1xbf16, #tpu.memory_space<vmem>>, vector<1x16x8x1xbf16>
    %39 = vector.shape_cast %38 : vector<1x16x8x1xbf16> to vector<16x8x1xbf16>
    %40 = vector.shape_cast %39 : vector<16x8x1xbf16> to vector<128x1xbf16>
    %41 = vector.extract_strided_slice %0 {offsets = [4, 0], sizes = [1, 8], strides = [1, 1]} : vector<9x8xf32> to vector<1x8xf32>
    %42 = arith.extf %40 : vector<128x1xbf16> to vector<128x1xf32>
    %43 = vector.broadcast %42 : vector<128x1xf32> to vector<128x8xf32>
    %44 = vector.broadcast %41 : vector<1x8xf32> to vector<128x8xf32>
    %45 = arith.mulf %43, %44 : vector<128x8xf32>
    %46 = arith.addf %37, %45 : vector<128x8xf32>
    %c0_19 = arith.constant 0 : index
    %c1_20 = arith.constant 1 : index
    %c2_21 = arith.constant 2 : index
    %c0_22 = arith.constant 0 : index
    %47 = vector.load %arg1[%c0_19, %c1_20, %c2_21, %c0_22] : memref<1x18x10x1xbf16, #tpu.memory_space<vmem>>, vector<1x16x8x1xbf16>
    %48 = vector.shape_cast %47 : vector<1x16x8x1xbf16> to vector<16x8x1xbf16>
    %49 = vector.shape_cast %48 : vector<16x8x1xbf16> to vector<128x1xbf16>
    %50 = vector.extract_strided_slice %0 {offsets = [5, 0], sizes = [1, 8], strides = [1, 1]} : vector<9x8xf32> to vector<1x8xf32>
    %51 = arith.extf %49 : vector<128x1xbf16> to vector<128x1xf32>
    %52 = vector.broadcast %51 : vector<128x1xf32> to vector<128x8xf32>
    %53 = vector.broadcast %50 : vector<1x8xf32> to vector<128x8xf32>
    %54 = arith.mulf %52, %53 : vector<128x8xf32>
    %55 = arith.addf %46, %54 : vector<128x8xf32>
    %c0_23 = arith.constant 0 : index
    %c2_24 = arith.constant 2 : index
    %c0_25 = arith.constant 0 : index
    %c0_26 = arith.constant 0 : index
    %56 = vector.load %arg1[%c0_23, %c2_24, %c0_25, %c0_26] : memref<1x18x10x1xbf16, #tpu.memory_space<vmem>>, vector<1x16x8x1xbf16>
    %57 = vector.shape_cast %56 : vector<1x16x8x1xbf16> to vector<16x8x1xbf16>
    %58 = vector.shape_cast %57 : vector<16x8x1xbf16> to vector<128x1xbf16>
    %59 = vector.extract_strided_slice %0 {offsets = [6, 0], sizes = [1, 8], strides = [1, 1]} : vector<9x8xf32> to vector<1x8xf32>
    %60 = arith.extf %58 : vector<128x1xbf16> to vector<128x1xf32>
    %61 = vector.broadcast %60 : vector<128x1xf32> to vector<128x8xf32>
    %62 = vector.broadcast %59 : vector<1x8xf32> to vector<128x8xf32>
    %63 = arith.mulf %61, %62 : vector<128x8xf32>
    %64 = arith.addf %55, %63 : vector<128x8xf32>
    %c0_27 = arith.constant 0 : index
    %c2_28 = arith.constant 2 : index
    %c1_29 = arith.constant 1 : index
    %c0_30 = arith.constant 0 : index
    %65 = vector.load %arg1[%c0_27, %c2_28, %c1_29, %c0_30] : memref<1x18x10x1xbf16, #tpu.memory_space<vmem>>, vector<1x16x8x1xbf16>
    %66 = vector.shape_cast %65 : vector<1x16x8x1xbf16> to vector<16x8x1xbf16>
    %67 = vector.shape_cast %66 : vector<16x8x1xbf16> to vector<128x1xbf16>
    %68 = vector.extract_strided_slice %0 {offsets = [7, 0], sizes = [1, 8], strides = [1, 1]} : vector<9x8xf32> to vector<1x8xf32>
    %69 = arith.extf %67 : vector<128x1xbf16> to vector<128x1xf32>
    %70 = vector.broadcast %69 : vector<128x1xf32> to vector<128x8xf32>
    %71 = vector.broadcast %68 : vector<1x8xf32> to vector<128x8xf32>
    %72 = arith.mulf %70, %71 : vector<128x8xf32>
    %73 = arith.addf %64, %72 : vector<128x8xf32>
    %c0_31 = arith.constant 0 : index
    %c2_32 = arith.constant 2 : index
    %c2_33 = arith.constant 2 : index
    %c0_34 = arith.constant 0 : index
    %74 = vector.load %arg1[%c0_31, %c2_32, %c2_33, %c0_34] : memref<1x18x10x1xbf16, #tpu.memory_space<vmem>>, vector<1x16x8x1xbf16>
    %75 = vector.shape_cast %74 : vector<1x16x8x1xbf16> to vector<16x8x1xbf16>
    %76 = vector.shape_cast %75 : vector<16x8x1xbf16> to vector<128x1xbf16>
    %77 = vector.extract_strided_slice %0 {offsets = [8, 0], sizes = [1, 8], strides = [1, 1]} : vector<9x8xf32> to vector<1x8xf32>
    %78 = arith.extf %76 : vector<128x1xbf16> to vector<128x1xf32>
    %79 = vector.broadcast %78 : vector<128x1xf32> to vector<128x8xf32>
    %80 = vector.broadcast %77 : vector<1x8xf32> to vector<128x8xf32>
    %81 = arith.mulf %79, %80 : vector<128x8xf32>
    %82 = arith.addf %73, %81 : vector<128x8xf32>
    %c0_35 = arith.constant 0 : index
    %c0_36 = arith.constant 0 : index
    %83 = vector.load %arg3[%c0_35, %c0_36] : memref<1x8xf32, #tpu.memory_space<vmem>>, vector<1x8xf32>
    %84 = vector.broadcast %83 : vector<1x8xf32> to vector<128x8xf32>
    %85 = arith.addf %82, %84 : vector<128x8xf32>
    %cst_37 = arith.constant 0.000000e+00 : f32
    %86 = vector.broadcast %cst_37 : f32 to vector<128x8xf32>
    %87 = arith.maximumf %85, %86 : vector<128x8xf32>
    %88 = vector.shape_cast %87 : vector<128x8xf32> to vector<8x16x8xf32>
    %89 = vector.extract_strided_slice %88 {offsets = [0, 0, 0], sizes = [8, 8, 8], strides = [1, 1, 1]} : vector<8x16x8xf32> to vector<8x8x8xf32>
    %90 = vector.extract_strided_slice %88 {offsets = [0, 8, 0], sizes = [8, 8, 8], strides = [1, 1, 1]} : vector<8x16x8xf32> to vector<8x8x8xf32>
    %91 = arith.maximumf %89, %90 : vector<8x8x8xf32>
    %c0_38 = arith.constant 0 : index
    %c0_39 = arith.constant 0 : index
    %c0_40 = arith.constant 0 : index
    %c0_41 = arith.constant 0 : index
    %92 = vector.load %arg4[%c0_38, %c0_39, %c0_40, %c0_41] : memref<1x8x8x8xf32, #tpu.memory_space<vmem>>, vector<1x8x8x8xf32>
    %93 = vector.shape_cast %92 : vector<1x8x8x8xf32> to vector<8x8x8xf32>
    %94 = vector.shape_cast %91 : vector<8x8x8xf32> to vector<1x8x8x8xf32>
    tpu.vector_store %arg4[%c0_38, %c0_39, %c0_40, %c0_41], %94 {strides = array<i32>} : memref<1x8x8x8xf32, #tpu.memory_space<vmem>>, vector<1x8x8x8xf32>,
    return
  }
  func.func @transform_0(%arg0: i32) -> (i32, i32, i32, i32) {
    %c0_i32 = arith.constant 0 : i32
    %c0_i32_0 = arith.constant 0 : i32
    %c0_i32_1 = arith.constant 0 : i32
    %c0_i32_2 = arith.constant 0 : i32
    return %arg0, %c0_i32, %c0_i32_0, %c0_i32_1 : i32, i32, i32, i32
  }
  func.func @transform_1(%arg0: i32) -> (i32, i32) {
    %c0_i32 = arith.constant 0 : i32
    %c0_i32_0 = arith.constant 0 : i32
    %c0_i32_1 = arith.constant 0 : i32
    return %c0_i32, %c0_i32_0 : i32, i32
  }
  func.func @transform_2(%arg0: i32) -> (i32, i32) {
    %c0_i32 = arith.constant 0 : i32
    %c0_i32_0 = arith.constant 0 : i32
    %c0_i32_1 = arith.constant 0 : i32
    return %c0_i32, %c0_i32_0 : i32, i32
  }
  func.func @transform_3(%arg0: i32) -> (i32, i32, i32, i32) {
    %c0_i32 = arith.constant 0 : i32
    %c0_i32_0 = arith.constant 0 : i32
    %c0_i32_1 = arith.constant 0 : i32
    %c0_i32_2 = arith.constant 0 : i32
    return %arg0, %c0_i32, %c0_i32_0, %c0_i32_1 : i32, i32, i32, i32
  }
}

module attributes {stable_mosaic.version = 11 : i64} {
  func.func @_conv3x3_kernel(%arg0: i32, %arg1: memref<1x10x10x8xbf16, #tpu.memory_space<vmem>>, %arg2: memref<72x16xbf16, #tpu.memory_space<vmem>>, %arg3: memref<1x16xf32, #tpu.memory_space<vmem>>, %arg4: memref<1x4x8x16xf32, #tpu.memory_space<vmem>>) attributes {dimension_semantics = [#tpu.dimension_semantics<parallel>], iteration_bounds = array<i64: 2>, scalar_prefetch = 0 : i64, scratch_operands = 0 : i64, tpu.core_type = #tpu.core_type<tc>, window_params = [{transform_indices = @transform_0, window_bounds = array<i64: 1, 10, 10, 8>}, {pipeline_mode = #tpu.pipeline_mode<synchronous>, transform_indices = @transform_1, window_bounds = array<i64: 72, 16>}, {pipeline_mode = #tpu.pipeline_mode<synchronous>, transform_indices = @transform_2, window_bounds = array<i64: 1, 16>}, {transform_indices = @transform_3, window_bounds = array<i64: 1, 4, 8, 16>}]} {
    %c0 = arith.constant 0 : index
    %c0_0 = arith.constant 0 : index
    %0 = vector.load %arg2[%c0, %c0_0] : memref<72x16xbf16, #tpu.memory_space<vmem>>, vector<72x16xbf16>
    %cst = arith.constant 0.000000e+00 : f32
    %1 = vector.broadcast %cst : f32 to vector<64x16xf32>
    %c0_1 = arith.constant 0 : index
    %c0_2 = arith.constant 0 : index
    %c0_3 = arith.constant 0 : index
    %c0_4 = arith.constant 0 : index
    %2 = vector.load %arg1[%c0_1, %c0_2, %c0_3, %c0_4] : memref<1x10x10x8xbf16, #tpu.memory_space<vmem>>, vector<1x8x8x8xbf16>
    %3 = vector.shape_cast %2 : vector<1x8x8x8xbf16> to vector<8x8x8xbf16>
    %4 = vector.shape_cast %3 : vector<8x8x8xbf16> to vector<64x8xbf16>
    %5 = vector.extract_strided_slice %0 {offsets = [0, 0], sizes = [8, 16], strides = [1, 1]} : vector<72x16xbf16> to vector<8x16xbf16>
    %cst_5 = arith.constant dense<0.000000e+00> : vector<64x16xf32>
    %6 = tpu.matmul %4, %5, %cst_5 {dimension_numbers = #tpu.dot_dimension_numbers<[1], [0], [0], [1], [0, 0, 1, 1], [], []>} : vector<64x8xbf16>, vector<8x16xbf16>, vector<64x16xf32> -> vector<64x16xf32>
    %7 = arith.addf %1, %6 : vector<64x16xf32>
    %c0_6 = arith.constant 0 : index
    %c0_7 = arith.constant 0 : index
    %c1 = arith.constant 1 : index
    %c0_8 = arith.constant 0 : index
    %8 = vector.load %arg1[%c0_6, %c0_7, %c1, %c0_8] : memref<1x10x10x8xbf16, #tpu.memory_space<vmem>>, vector<1x8x8x8xbf16>
    %9 = vector.shape_cast %8 : vector<1x8x8x8xbf16> to vector<8x8x8xbf16>
    %10 = vector.shape_cast %9 : vector<8x8x8xbf16> to vector<64x8xbf16>
    %11 = vector.extract_strided_slice %0 {offsets = [8, 0], sizes = [8, 16], strides = [1, 1]} : vector<72x16xbf16> to vector<8x16xbf16>
    %cst_9 = arith.constant dense<0.000000e+00> : vector<64x16xf32>
    %12 = tpu.matmul %10, %11, %cst_9 {dimension_numbers = #tpu.dot_dimension_numbers<[1], [0], [0], [1], [0, 0, 1, 1], [], []>} : vector<64x8xbf16>, vector<8x16xbf16>, vector<64x16xf32> -> vector<64x16xf32>
    %13 = arith.addf %7, %12 : vector<64x16xf32>
    %c0_10 = arith.constant 0 : index
    %c0_11 = arith.constant 0 : index
    %c2 = arith.constant 2 : index
    %c0_12 = arith.constant 0 : index
    %14 = vector.load %arg1[%c0_10, %c0_11, %c2, %c0_12] : memref<1x10x10x8xbf16, #tpu.memory_space<vmem>>, vector<1x8x8x8xbf16>
    %15 = vector.shape_cast %14 : vector<1x8x8x8xbf16> to vector<8x8x8xbf16>
    %16 = vector.shape_cast %15 : vector<8x8x8xbf16> to vector<64x8xbf16>
    %17 = vector.extract_strided_slice %0 {offsets = [16, 0], sizes = [8, 16], strides = [1, 1]} : vector<72x16xbf16> to vector<8x16xbf16>
    %cst_13 = arith.constant dense<0.000000e+00> : vector<64x16xf32>
    %18 = tpu.matmul %16, %17, %cst_13 {dimension_numbers = #tpu.dot_dimension_numbers<[1], [0], [0], [1], [0, 0, 1, 1], [], []>} : vector<64x8xbf16>, vector<8x16xbf16>, vector<64x16xf32> -> vector<64x16xf32>
    %19 = arith.addf %13, %18 : vector<64x16xf32>
    %c0_14 = arith.constant 0 : index
    %c1_15 = arith.constant 1 : index
    %c0_16 = arith.constant 0 : index
    %c0_17 = arith.constant 0 : index
    %20 = vector.load %arg1[%c0_14, %c1_15, %c0_16, %c0_17] : memref<1x10x10x8xbf16, #tpu.memory_space<vmem>>, vector<1x8x8x8xbf16>
    %21 = vector.shape_cast %20 : vector<1x8x8x8xbf16> to vector<8x8x8xbf16>
    %22 = vector.shape_cast %21 : vector<8x8x8xbf16> to vector<64x8xbf16>
    %23 = vector.extract_strided_slice %0 {offsets = [24, 0], sizes = [8, 16], strides = [1, 1]} : vector<72x16xbf16> to vector<8x16xbf16>
    %cst_18 = arith.constant dense<0.000000e+00> : vector<64x16xf32>
    %24 = tpu.matmul %22, %23, %cst_18 {dimension_numbers = #tpu.dot_dimension_numbers<[1], [0], [0], [1], [0, 0, 1, 1], [], []>} : vector<64x8xbf16>, vector<8x16xbf16>, vector<64x16xf32> -> vector<64x16xf32>
    %25 = arith.addf %19, %24 : vector<64x16xf32>
    %c0_19 = arith.constant 0 : index
    %c1_20 = arith.constant 1 : index
    %c1_21 = arith.constant 1 : index
    %c0_22 = arith.constant 0 : index
    %26 = vector.load %arg1[%c0_19, %c1_20, %c1_21, %c0_22] : memref<1x10x10x8xbf16, #tpu.memory_space<vmem>>, vector<1x8x8x8xbf16>
    %27 = vector.shape_cast %26 : vector<1x8x8x8xbf16> to vector<8x8x8xbf16>
    %28 = vector.shape_cast %27 : vector<8x8x8xbf16> to vector<64x8xbf16>
    %29 = vector.extract_strided_slice %0 {offsets = [32, 0], sizes = [8, 16], strides = [1, 1]} : vector<72x16xbf16> to vector<8x16xbf16>
    %cst_23 = arith.constant dense<0.000000e+00> : vector<64x16xf32>
    %30 = tpu.matmul %28, %29, %cst_23 {dimension_numbers = #tpu.dot_dimension_numbers<[1], [0], [0], [1], [0, 0, 1, 1], [], []>} : vector<64x8xbf16>, vector<8x16xbf16>, vector<64x16xf32> -> vector<64x16xf32>
    %31 = arith.addf %25, %30 : vector<64x16xf32>
    %c0_24 = arith.constant 0 : index
    %c1_25 = arith.constant 1 : index
    %c2_26 = arith.constant 2 : index
    %c0_27 = arith.constant 0 : index
    %32 = vector.load %arg1[%c0_24, %c1_25, %c2_26, %c0_27] : memref<1x10x10x8xbf16, #tpu.memory_space<vmem>>, vector<1x8x8x8xbf16>
    %33 = vector.shape_cast %32 : vector<1x8x8x8xbf16> to vector<8x8x8xbf16>
    %34 = vector.shape_cast %33 : vector<8x8x8xbf16> to vector<64x8xbf16>
    %35 = vector.extract_strided_slice %0 {offsets = [40, 0], sizes = [8, 16], strides = [1, 1]} : vector<72x16xbf16> to vector<8x16xbf16>
    %cst_28 = arith.constant dense<0.000000e+00> : vector<64x16xf32>
    %36 = tpu.matmul %34, %35, %cst_28 {dimension_numbers = #tpu.dot_dimension_numbers<[1], [0], [0], [1], [0, 0, 1, 1], [], []>} : vector<64x8xbf16>, vector<8x16xbf16>, vector<64x16xf32> -> vector<64x16xf32>
    %37 = arith.addf %31, %36 : vector<64x16xf32>
    %c0_29 = arith.constant 0 : index
    %c2_30 = arith.constant 2 : index
    %c0_31 = arith.constant 0 : index
    %c0_32 = arith.constant 0 : index
    %38 = vector.load %arg1[%c0_29, %c2_30, %c0_31, %c0_32] : memref<1x10x10x8xbf16, #tpu.memory_space<vmem>>, vector<1x8x8x8xbf16>
    %39 = vector.shape_cast %38 : vector<1x8x8x8xbf16> to vector<8x8x8xbf16>
    %40 = vector.shape_cast %39 : vector<8x8x8xbf16> to vector<64x8xbf16>
    %41 = vector.extract_strided_slice %0 {offsets = [48, 0], sizes = [8, 16], strides = [1, 1]} : vector<72x16xbf16> to vector<8x16xbf16>
    %cst_33 = arith.constant dense<0.000000e+00> : vector<64x16xf32>
    %42 = tpu.matmul %40, %41, %cst_33 {dimension_numbers = #tpu.dot_dimension_numbers<[1], [0], [0], [1], [0, 0, 1, 1], [], []>} : vector<64x8xbf16>, vector<8x16xbf16>, vector<64x16xf32> -> vector<64x16xf32>
    %43 = arith.addf %37, %42 : vector<64x16xf32>
    %c0_34 = arith.constant 0 : index
    %c2_35 = arith.constant 2 : index
    %c1_36 = arith.constant 1 : index
    %c0_37 = arith.constant 0 : index
    %44 = vector.load %arg1[%c0_34, %c2_35, %c1_36, %c0_37] : memref<1x10x10x8xbf16, #tpu.memory_space<vmem>>, vector<1x8x8x8xbf16>
    %45 = vector.shape_cast %44 : vector<1x8x8x8xbf16> to vector<8x8x8xbf16>
    %46 = vector.shape_cast %45 : vector<8x8x8xbf16> to vector<64x8xbf16>
    %47 = vector.extract_strided_slice %0 {offsets = [56, 0], sizes = [8, 16], strides = [1, 1]} : vector<72x16xbf16> to vector<8x16xbf16>
    %cst_38 = arith.constant dense<0.000000e+00> : vector<64x16xf32>
    %48 = tpu.matmul %46, %47, %cst_38 {dimension_numbers = #tpu.dot_dimension_numbers<[1], [0], [0], [1], [0, 0, 1, 1], [], []>} : vector<64x8xbf16>, vector<8x16xbf16>, vector<64x16xf32> -> vector<64x16xf32>
    %49 = arith.addf %43, %48 : vector<64x16xf32>
    %c0_39 = arith.constant 0 : index
    %c2_40 = arith.constant 2 : index
    %c2_41 = arith.constant 2 : index
    %c0_42 = arith.constant 0 : index
    %50 = vector.load %arg1[%c0_39, %c2_40, %c2_41, %c0_42] : memref<1x10x10x8xbf16, #tpu.memory_space<vmem>>, vector<1x8x8x8xbf16>
    %51 = vector.shape_cast %50 : vector<1x8x8x8xbf16> to vector<8x8x8xbf16>
    %52 = vector.shape_cast %51 : vector<8x8x8xbf16> to vector<64x8xbf16>
    %53 = vector.extract_strided_slice %0 {offsets = [64, 0], sizes = [8, 16], strides = [1, 1]} : vector<72x16xbf16> to vector<8x16xbf16>
    %cst_43 = arith.constant dense<0.000000e+00> : vector<64x16xf32>
    %54 = tpu.matmul %52, %53, %cst_43 {dimension_numbers = #tpu.dot_dimension_numbers<[1], [0], [0], [1], [0, 0, 1, 1], [], []>} : vector<64x8xbf16>, vector<8x16xbf16>, vector<64x16xf32> -> vector<64x16xf32>
    %55 = arith.addf %49, %54 : vector<64x16xf32>
    %c0_44 = arith.constant 0 : index
    %c0_45 = arith.constant 0 : index
    %56 = vector.load %arg3[%c0_44, %c0_45] : memref<1x16xf32, #tpu.memory_space<vmem>>, vector<1x16xf32>
    %57 = vector.broadcast %56 : vector<1x16xf32> to vector<64x16xf32>
    %58 = arith.addf %55, %57 : vector<64x16xf32>
    %cst_46 = arith.constant 0.000000e+00 : f32
    %59 = vector.broadcast %cst_46 : f32 to vector<64x16xf32>
    %60 = arith.maximumf %58, %59 : vector<64x16xf32>
    %61 = vector.shape_cast %60 : vector<64x16xf32> to vector<4x16x16xf32>
    %62 = vector.extract_strided_slice %61 {offsets = [0, 0, 0], sizes = [4, 8, 16], strides = [1, 1, 1]} : vector<4x16x16xf32> to vector<4x8x16xf32>
    %63 = vector.extract_strided_slice %61 {offsets = [0, 8, 0], sizes = [4, 8, 16], strides = [1, 1, 1]} : vector<4x16x16xf32> to vector<4x8x16xf32>
    %64 = arith.maximumf %62, %63 : vector<4x8x16xf32>
    %c0_47 = arith.constant 0 : index
    %c0_48 = arith.constant 0 : index
    %c0_49 = arith.constant 0 : index
    %c0_50 = arith.constant 0 : index
    %65 = vector.load %arg4[%c0_47, %c0_48, %c0_49, %c0_50] : memref<1x4x8x16xf32, #tpu.memory_space<vmem>>, vector<1x4x8x16xf32>
    %66 = vector.shape_cast %65 : vector<1x4x8x16xf32> to vector<4x8x16xf32>
    %67 = vector.shape_cast %64 : vector<4x8x16xf32> to vector<1x4x8x16xf32>
    tpu.vector_store %arg4[%c0_47, %c0_48, %c0_49, %c0_50], %67 {strides = array<i32>} : memref<1x4x8x16xf32, #tpu.memory_space<vmem>>, vector<1x4x8x16xf32>,
    return
  }
  func.func @transform_0(%arg0: i32) -> (i32, i32, i32, i32) {
    %c0_i32 = arith.constant 0 : i32
    %c0_i32_0 = arith.constant 0 : i32
    %c0_i32_1 = arith.constant 0 : i32
    %c0_i32_2 = arith.constant 0 : i32
    return %arg0, %c0_i32, %c0_i32_0, %c0_i32_1 : i32, i32, i32, i32
  }
  func.func @transform_1(%arg0: i32) -> (i32, i32) {
    %c0_i32 = arith.constant 0 : i32
    %c0_i32_0 = arith.constant 0 : i32
    %c0_i32_1 = arith.constant 0 : i32
    return %c0_i32, %c0_i32_0 : i32, i32
  }
  func.func @transform_2(%arg0: i32) -> (i32, i32) {
    %c0_i32 = arith.constant 0 : i32
    %c0_i32_0 = arith.constant 0 : i32
    %c0_i32_1 = arith.constant 0 : i32
    return %c0_i32, %c0_i32_0 : i32, i32
  }
  func.func @transform_3(%arg0: i32) -> (i32, i32, i32, i32) {
    %c0_i32 = arith.constant 0 : i32
    %c0_i32_0 = arith.constant 0 : i32
    %c0_i32_1 = arith.constant 0 : i32
    %c0_i32_2 = arith.constant 0 : i32
    return %arg0, %c0_i32, %c0_i32_0, %c0_i32_1 : i32, i32, i32, i32
  }
}

module attributes {stable_mosaic.version = 11 : i64} {
  func.func @_conv3x3_kernel(%arg0: i32, %arg1: memref<1x6x10x16xbf16, #tpu.memory_space<vmem>>, %arg2: memref<144x32xbf16, #tpu.memory_space<vmem>>, %arg3: memref<1x32xf32, #tpu.memory_space<vmem>>, %arg4: memref<1x8x32xf32, #tpu.memory_space<vmem>>) attributes {dimension_semantics = [#tpu.dimension_semantics<parallel>], iteration_bounds = array<i64: 2>, scalar_prefetch = 0 : i64, scratch_operands = 0 : i64, tpu.core_type = #tpu.core_type<tc>, window_params = [{transform_indices = @transform_0, window_bounds = array<i64: 1, 6, 10, 16>}, {pipeline_mode = #tpu.pipeline_mode<synchronous>, transform_indices = @transform_1, window_bounds = array<i64: 144, 32>}, {pipeline_mode = #tpu.pipeline_mode<synchronous>, transform_indices = @transform_2, window_bounds = array<i64: 1, 32>}, {transform_indices = @transform_3, window_bounds = array<i64: 1, 8, 32>}]} {
    %c0 = arith.constant 0 : index
    %c0_0 = arith.constant 0 : index
    %0 = vector.load %arg2[%c0, %c0_0] : memref<144x32xbf16, #tpu.memory_space<vmem>>, vector<144x32xbf16>
    %cst = arith.constant 0.000000e+00 : f32
    %1 = vector.broadcast %cst : f32 to vector<32x32xf32>
    %c0_1 = arith.constant 0 : index
    %c0_2 = arith.constant 0 : index
    %c0_3 = arith.constant 0 : index
    %c0_4 = arith.constant 0 : index
    %2 = vector.load %arg1[%c0_1, %c0_2, %c0_3, %c0_4] : memref<1x6x10x16xbf16, #tpu.memory_space<vmem>>, vector<1x4x8x16xbf16>
    %3 = vector.shape_cast %2 : vector<1x4x8x16xbf16> to vector<4x8x16xbf16>
    %4 = vector.shape_cast %3 : vector<4x8x16xbf16> to vector<32x16xbf16>
    %5 = vector.extract_strided_slice %0 {offsets = [0, 0], sizes = [16, 32], strides = [1, 1]} : vector<144x32xbf16> to vector<16x32xbf16>
    %cst_5 = arith.constant dense<0.000000e+00> : vector<32x32xf32>
    %6 = tpu.matmul %4, %5, %cst_5 {dimension_numbers = #tpu.dot_dimension_numbers<[1], [0], [0], [1], [0, 0, 1, 1], [], []>} : vector<32x16xbf16>, vector<16x32xbf16>, vector<32x32xf32> -> vector<32x32xf32>
    %7 = arith.addf %1, %6 : vector<32x32xf32>
    %c0_6 = arith.constant 0 : index
    %c0_7 = arith.constant 0 : index
    %c1 = arith.constant 1 : index
    %c0_8 = arith.constant 0 : index
    %8 = vector.load %arg1[%c0_6, %c0_7, %c1, %c0_8] : memref<1x6x10x16xbf16, #tpu.memory_space<vmem>>, vector<1x4x8x16xbf16>
    %9 = vector.shape_cast %8 : vector<1x4x8x16xbf16> to vector<4x8x16xbf16>
    %10 = vector.shape_cast %9 : vector<4x8x16xbf16> to vector<32x16xbf16>
    %11 = vector.extract_strided_slice %0 {offsets = [16, 0], sizes = [16, 32], strides = [1, 1]} : vector<144x32xbf16> to vector<16x32xbf16>
    %cst_9 = arith.constant dense<0.000000e+00> : vector<32x32xf32>
    %12 = tpu.matmul %10, %11, %cst_9 {dimension_numbers = #tpu.dot_dimension_numbers<[1], [0], [0], [1], [0, 0, 1, 1], [], []>} : vector<32x16xbf16>, vector<16x32xbf16>, vector<32x32xf32> -> vector<32x32xf32>
    %13 = arith.addf %7, %12 : vector<32x32xf32>
    %c0_10 = arith.constant 0 : index
    %c0_11 = arith.constant 0 : index
    %c2 = arith.constant 2 : index
    %c0_12 = arith.constant 0 : index
    %14 = vector.load %arg1[%c0_10, %c0_11, %c2, %c0_12] : memref<1x6x10x16xbf16, #tpu.memory_space<vmem>>, vector<1x4x8x16xbf16>
    %15 = vector.shape_cast %14 : vector<1x4x8x16xbf16> to vector<4x8x16xbf16>
    %16 = vector.shape_cast %15 : vector<4x8x16xbf16> to vector<32x16xbf16>
    %17 = vector.extract_strided_slice %0 {offsets = [32, 0], sizes = [16, 32], strides = [1, 1]} : vector<144x32xbf16> to vector<16x32xbf16>
    %cst_13 = arith.constant dense<0.000000e+00> : vector<32x32xf32>
    %18 = tpu.matmul %16, %17, %cst_13 {dimension_numbers = #tpu.dot_dimension_numbers<[1], [0], [0], [1], [0, 0, 1, 1], [], []>} : vector<32x16xbf16>, vector<16x32xbf16>, vector<32x32xf32> -> vector<32x32xf32>
    %19 = arith.addf %13, %18 : vector<32x32xf32>
    %c0_14 = arith.constant 0 : index
    %c1_15 = arith.constant 1 : index
    %c0_16 = arith.constant 0 : index
    %c0_17 = arith.constant 0 : index
    %20 = vector.load %arg1[%c0_14, %c1_15, %c0_16, %c0_17] : memref<1x6x10x16xbf16, #tpu.memory_space<vmem>>, vector<1x4x8x16xbf16>
    %21 = vector.shape_cast %20 : vector<1x4x8x16xbf16> to vector<4x8x16xbf16>
    %22 = vector.shape_cast %21 : vector<4x8x16xbf16> to vector<32x16xbf16>
    %23 = vector.extract_strided_slice %0 {offsets = [48, 0], sizes = [16, 32], strides = [1, 1]} : vector<144x32xbf16> to vector<16x32xbf16>
    %cst_18 = arith.constant dense<0.000000e+00> : vector<32x32xf32>
    %24 = tpu.matmul %22, %23, %cst_18 {dimension_numbers = #tpu.dot_dimension_numbers<[1], [0], [0], [1], [0, 0, 1, 1], [], []>} : vector<32x16xbf16>, vector<16x32xbf16>, vector<32x32xf32> -> vector<32x32xf32>
    %25 = arith.addf %19, %24 : vector<32x32xf32>
    %c0_19 = arith.constant 0 : index
    %c1_20 = arith.constant 1 : index
    %c1_21 = arith.constant 1 : index
    %c0_22 = arith.constant 0 : index
    %26 = vector.load %arg1[%c0_19, %c1_20, %c1_21, %c0_22] : memref<1x6x10x16xbf16, #tpu.memory_space<vmem>>, vector<1x4x8x16xbf16>
    %27 = vector.shape_cast %26 : vector<1x4x8x16xbf16> to vector<4x8x16xbf16>
    %28 = vector.shape_cast %27 : vector<4x8x16xbf16> to vector<32x16xbf16>
    %29 = vector.extract_strided_slice %0 {offsets = [64, 0], sizes = [16, 32], strides = [1, 1]} : vector<144x32xbf16> to vector<16x32xbf16>
    %cst_23 = arith.constant dense<0.000000e+00> : vector<32x32xf32>
    %30 = tpu.matmul %28, %29, %cst_23 {dimension_numbers = #tpu.dot_dimension_numbers<[1], [0], [0], [1], [0, 0, 1, 1], [], []>} : vector<32x16xbf16>, vector<16x32xbf16>, vector<32x32xf32> -> vector<32x32xf32>
    %31 = arith.addf %25, %30 : vector<32x32xf32>
    %c0_24 = arith.constant 0 : index
    %c1_25 = arith.constant 1 : index
    %c2_26 = arith.constant 2 : index
    %c0_27 = arith.constant 0 : index
    %32 = vector.load %arg1[%c0_24, %c1_25, %c2_26, %c0_27] : memref<1x6x10x16xbf16, #tpu.memory_space<vmem>>, vector<1x4x8x16xbf16>
    %33 = vector.shape_cast %32 : vector<1x4x8x16xbf16> to vector<4x8x16xbf16>
    %34 = vector.shape_cast %33 : vector<4x8x16xbf16> to vector<32x16xbf16>
    %35 = vector.extract_strided_slice %0 {offsets = [80, 0], sizes = [16, 32], strides = [1, 1]} : vector<144x32xbf16> to vector<16x32xbf16>
    %cst_28 = arith.constant dense<0.000000e+00> : vector<32x32xf32>
    %36 = tpu.matmul %34, %35, %cst_28 {dimension_numbers = #tpu.dot_dimension_numbers<[1], [0], [0], [1], [0, 0, 1, 1], [], []>} : vector<32x16xbf16>, vector<16x32xbf16>, vector<32x32xf32> -> vector<32x32xf32>
    %37 = arith.addf %31, %36 : vector<32x32xf32>
    %c0_29 = arith.constant 0 : index
    %c2_30 = arith.constant 2 : index
    %c0_31 = arith.constant 0 : index
    %c0_32 = arith.constant 0 : index
    %38 = vector.load %arg1[%c0_29, %c2_30, %c0_31, %c0_32] : memref<1x6x10x16xbf16, #tpu.memory_space<vmem>>, vector<1x4x8x16xbf16>
    %39 = vector.shape_cast %38 : vector<1x4x8x16xbf16> to vector<4x8x16xbf16>
    %40 = vector.shape_cast %39 : vector<4x8x16xbf16> to vector<32x16xbf16>
    %41 = vector.extract_strided_slice %0 {offsets = [96, 0], sizes = [16, 32], strides = [1, 1]} : vector<144x32xbf16> to vector<16x32xbf16>
    %cst_33 = arith.constant dense<0.000000e+00> : vector<32x32xf32>
    %42 = tpu.matmul %40, %41, %cst_33 {dimension_numbers = #tpu.dot_dimension_numbers<[1], [0], [0], [1], [0, 0, 1, 1], [], []>} : vector<32x16xbf16>, vector<16x32xbf16>, vector<32x32xf32> -> vector<32x32xf32>
    %43 = arith.addf %37, %42 : vector<32x32xf32>
    %c0_34 = arith.constant 0 : index
    %c2_35 = arith.constant 2 : index
    %c1_36 = arith.constant 1 : index
    %c0_37 = arith.constant 0 : index
    %44 = vector.load %arg1[%c0_34, %c2_35, %c1_36, %c0_37] : memref<1x6x10x16xbf16, #tpu.memory_space<vmem>>, vector<1x4x8x16xbf16>
    %45 = vector.shape_cast %44 : vector<1x4x8x16xbf16> to vector<4x8x16xbf16>
    %46 = vector.shape_cast %45 : vector<4x8x16xbf16> to vector<32x16xbf16>
    %47 = vector.extract_strided_slice %0 {offsets = [112, 0], sizes = [16, 32], strides = [1, 1]} : vector<144x32xbf16> to vector<16x32xbf16>
    %cst_38 = arith.constant dense<0.000000e+00> : vector<32x32xf32>
    %48 = tpu.matmul %46, %47, %cst_38 {dimension_numbers = #tpu.dot_dimension_numbers<[1], [0], [0], [1], [0, 0, 1, 1], [], []>} : vector<32x16xbf16>, vector<16x32xbf16>, vector<32x32xf32> -> vector<32x32xf32>
    %49 = arith.addf %43, %48 : vector<32x32xf32>
    %c0_39 = arith.constant 0 : index
    %c2_40 = arith.constant 2 : index
    %c2_41 = arith.constant 2 : index
    %c0_42 = arith.constant 0 : index
    %50 = vector.load %arg1[%c0_39, %c2_40, %c2_41, %c0_42] : memref<1x6x10x16xbf16, #tpu.memory_space<vmem>>, vector<1x4x8x16xbf16>
    %51 = vector.shape_cast %50 : vector<1x4x8x16xbf16> to vector<4x8x16xbf16>
    %52 = vector.shape_cast %51 : vector<4x8x16xbf16> to vector<32x16xbf16>
    %53 = vector.extract_strided_slice %0 {offsets = [128, 0], sizes = [16, 32], strides = [1, 1]} : vector<144x32xbf16> to vector<16x32xbf16>
    %cst_43 = arith.constant dense<0.000000e+00> : vector<32x32xf32>
    %54 = tpu.matmul %52, %53, %cst_43 {dimension_numbers = #tpu.dot_dimension_numbers<[1], [0], [0], [1], [0, 0, 1, 1], [], []>} : vector<32x16xbf16>, vector<16x32xbf16>, vector<32x32xf32> -> vector<32x32xf32>
    %55 = arith.addf %49, %54 : vector<32x32xf32>
    %c0_44 = arith.constant 0 : index
    %c0_45 = arith.constant 0 : index
    %56 = vector.load %arg3[%c0_44, %c0_45] : memref<1x32xf32, #tpu.memory_space<vmem>>, vector<1x32xf32>
    %57 = vector.broadcast %56 : vector<1x32xf32> to vector<32x32xf32>
    %58 = arith.addf %55, %57 : vector<32x32xf32>
    %cst_46 = arith.constant 0.000000e+00 : f32
    %59 = vector.broadcast %cst_46 : f32 to vector<32x32xf32>
    %60 = arith.maximumf %58, %59 : vector<32x32xf32>
    %61 = vector.shape_cast %60 : vector<32x32xf32> to vector<4x8x32xf32>
    %cst_47 = arith.constant dense<0.000000e+00> : vector<8x32xf32>
    %62 = vector.multi_reduction <add>, %61, %cst_47 [0] : vector<4x8x32xf32> to vector<8x32xf32>
    %cst_48 = arith.constant 2.500000e-01 : f32
    %63 = vector.broadcast %cst_48 : f32 to vector<8x32xf32>
    %64 = arith.mulf %62, %63 : vector<8x32xf32>
    %c0_49 = arith.constant 0 : index
    %c0_50 = arith.constant 0 : index
    %c0_51 = arith.constant 0 : index
    %65 = vector.load %arg4[%c0_49, %c0_50, %c0_51] : memref<1x8x32xf32, #tpu.memory_space<vmem>>, vector<1x8x32xf32>
    %66 = vector.shape_cast %65 : vector<1x8x32xf32> to vector<8x32xf32>
    %67 = vector.shape_cast %64 : vector<8x32xf32> to vector<1x8x32xf32>
    tpu.vector_store %arg4[%c0_49, %c0_50, %c0_51], %67 {strides = array<i32>} : memref<1x8x32xf32, #tpu.memory_space<vmem>>, vector<1x8x32xf32>,
    return
  }
  func.func @transform_0(%arg0: i32) -> (i32, i32, i32, i32) {
    %c0_i32 = arith.constant 0 : i32
    %c0_i32_0 = arith.constant 0 : i32
    %c0_i32_1 = arith.constant 0 : i32
    %c0_i32_2 = arith.constant 0 : i32
    return %arg0, %c0_i32, %c0_i32_0, %c0_i32_1 : i32, i32, i32, i32
  }
  func.func @transform_1(%arg0: i32) -> (i32, i32) {
    %c0_i32 = arith.constant 0 : i32
    %c0_i32_0 = arith.constant 0 : i32
    %c0_i32_1 = arith.constant 0 : i32
    return %c0_i32, %c0_i32_0 : i32, i32
  }
  func.func @transform_2(%arg0: i32) -> (i32, i32) {
    %c0_i32 = arith.constant 0 : i32
    %c0_i32_0 = arith.constant 0 : i32
    %c0_i32_1 = arith.constant 0 : i32
    return %c0_i32, %c0_i32_0 : i32, i32
  }
  func.func @transform_3(%arg0: i32) -> (i32, i32, i32) {
    %c0_i32 = arith.constant 0 : i32
    %c0_i32_0 = arith.constant 0 : i32
    %c0_i32_1 = arith.constant 0 : i32
    return %arg0, %c0_i32, %c0_i32_0 : i32, i32, i32
  }
}

module attributes {stable_mosaic.version = 11 : i64} {
  func.func @_matmul_bias_kernel(%arg0: i32, %arg1: memref<16x32xf32, #tpu.memory_space<vmem>>, %arg2: memref<32x256xbf16, #tpu.memory_space<vmem>>, %arg3: memref<1x256xf32, #tpu.memory_space<vmem>>, %arg4: memref<16x256xf32, #tpu.memory_space<vmem>>) attributes {dimension_semantics = [#tpu.dimension_semantics<parallel>], iteration_bounds = array<i64: 1>, scalar_prefetch = 0 : i64, scratch_operands = 0 : i64, tpu.core_type = #tpu.core_type<tc>, window_params = [{transform_indices = @transform_0, window_bounds = array<i64: 16, 32>}, {pipeline_mode = #tpu.pipeline_mode<synchronous>, transform_indices = @transform_1, window_bounds = array<i64: 32, 256>}, {pipeline_mode = #tpu.pipeline_mode<synchronous>, transform_indices = @transform_2, window_bounds = array<i64: 1, 256>}, {transform_indices = @transform_3, window_bounds = array<i64: 16, 256>}]} {
    %c0 = arith.constant 0 : index
    %c0_0 = arith.constant 0 : index
    %0 = vector.load %arg1[%c0, %c0_0] : memref<16x32xf32, #tpu.memory_space<vmem>>, vector<16x32xf32>
    %1 = arith.truncf %0 : vector<16x32xf32> to vector<16x32xbf16>
    %c0_1 = arith.constant 0 : index
    %c0_2 = arith.constant 0 : index
    %2 = vector.load %arg2[%c0_1, %c0_2] : memref<32x256xbf16, #tpu.memory_space<vmem>>, vector<32x256xbf16>
    %cst = arith.constant dense<0.000000e+00> : vector<16x256xf32>
    %3 = tpu.matmul %1, %2, %cst {dimension_numbers = #tpu.dot_dimension_numbers<[1], [0], [0], [1], [0, 0, 1, 1], [], []>} : vector<16x32xbf16>, vector<32x256xbf16>, vector<16x256xf32> -> vector<16x256xf32>
    %c0_3 = arith.constant 0 : index
    %c0_4 = arith.constant 0 : index
    %4 = vector.load %arg3[%c0_3, %c0_4] : memref<1x256xf32, #tpu.memory_space<vmem>>, vector<1x256xf32>
    %5 = vector.broadcast %4 : vector<1x256xf32> to vector<16x256xf32>
    %6 = arith.addf %3, %5 : vector<16x256xf32>
    %c0_5 = arith.constant 0 : index
    %c0_6 = arith.constant 0 : index
    %7 = vector.load %arg4[%c0_5, %c0_6] : memref<16x256xf32, #tpu.memory_space<vmem>>, vector<16x256xf32>
    tpu.vector_store %arg4[%c0_5, %c0_6], %6 {strides = array<i32>} : memref<16x256xf32, #tpu.memory_space<vmem>>, vector<16x256xf32>,
    return
  }
  func.func @transform_0(%arg0: i32) -> (i32, i32) {
    %c0_i32 = arith.constant 0 : i32
    %c0_i32_0 = arith.constant 0 : i32
    return %arg0, %c0_i32 : i32, i32
  }
  func.func @transform_1(%arg0: i32) -> (i32, i32) {
    %c0_i32 = arith.constant 0 : i32
    %c0_i32_0 = arith.constant 0 : i32
    %c0_i32_1 = arith.constant 0 : i32
    return %c0_i32, %c0_i32_0 : i32, i32
  }
  func.func @transform_2(%arg0: i32) -> (i32, i32) {
    %c0_i32 = arith.constant 0 : i32
    %c0_i32_0 = arith.constant 0 : i32
    %c0_i32_1 = arith.constant 0 : i32
    return %c0_i32, %c0_i32_0 : i32, i32
  }
  func.func @transform_3(%arg0: i32) -> (i32, i32) {
    %c0_i32 = arith.constant 0 : i32
    %c0_i32_0 = arith.constant 0 : i32
    return %arg0, %c0_i32 : i32, i32
  }
}

module attributes {stable_mosaic.version = 11 : i64} {
  func.func @_bilstm_kernel(%arg0: memref<2x2048xf32, #tpu.memory_space<vmem>>, %arg1: memref<64x256xbf16, #tpu.memory_space<vmem>>, %arg2: memref<2x512xf32, #tpu.memory_space<vmem>>) attributes {dimension_semantics = [], scalar_prefetch = 0 : i64, scratch_operands = 0 : i64, tpu.core_type = #tpu.core_type<tc>} {
    %c0 = arith.constant 0 : index
    %c0_0 = arith.constant 0 : index
    %0 = vector.load %arg1[%c0, %c0_0] : memref<64x256xbf16, #tpu.memory_space<vmem>>, vector<64x256xbf16>
    %cst = arith.constant 0.000000e+00 : f32
    %1 = vector.broadcast %cst : f32 to vector<2x32xf32>
    %2 = tpu.concatenate %1, %1 in 1 : vector<2x32xf32>, vector<2x32xf32> -> vector<2x64xf32>
    %3 = arith.truncf %2 : vector<2x64xf32> to vector<2x64xbf16>
    %cst_1 = arith.constant dense<0.000000e+00> : vector<2x256xf32>
    %4 = tpu.matmul %3, %0, %cst_1 {dimension_numbers = #tpu.dot_dimension_numbers<[1], [0], [0], [1], [0, 0, 1, 1], [], []>} : vector<2x64xbf16>, vector<64x256xbf16>, vector<2x256xf32> -> vector<2x256xf32>
    %c0_2 = arith.constant 0 : index
    %c0_3 = arith.constant 0 : index
    %5 = vector.load %arg0[%c0_2, %c0_3] : memref<2x2048xf32, #tpu.memory_space<vmem>>, vector<2x128xf32>
    %6 = vector.extract_strided_slice %4 {offsets = [0, 0], sizes = [2, 128], strides = [1, 1]} : vector<2x256xf32> to vector<2x128xf32>
    %7 = arith.addf %5, %6 : vector<2x128xf32>
    %c0_4 = arith.constant 0 : index
    %c1920 = arith.constant 1920 : index
    %8 = vector.load %arg0[%c0_4, %c1920] : memref<2x2048xf32, #tpu.memory_space<vmem>>, vector<2x128xf32>
    %9 = vector.extract_strided_slice %4 {offsets = [0, 128], sizes = [2, 128], strides = [1, 1]} : vector<2x256xf32> to vector<2x128xf32>
    %10 = arith.addf %8, %9 : vector<2x128xf32>
    %11 = vector.extract_strided_slice %7 {offsets = [0, 0], sizes = [2, 32], strides = [1, 1]} : vector<2x128xf32> to vector<2x32xf32>
    %12 = arith.negf %11 : vector<2x32xf32>
    %13 = math.exp %12 : vector<2x32xf32>
    %cst_5 = arith.constant 1.000000e+00 : f32
    %14 = vector.broadcast %cst_5 : f32 to vector<2x32xf32>
    %15 = arith.addf %14, %13 : vector<2x32xf32>
    %16 = arith.divf %14, %15 : vector<2x32xf32>
    %17 = vector.extract_strided_slice %7 {offsets = [0, 32], sizes = [2, 32], strides = [1, 1]} : vector<2x128xf32> to vector<2x32xf32>
    %18 = arith.negf %17 : vector<2x32xf32>
    %19 = math.exp %18 : vector<2x32xf32>
    %cst_6 = arith.constant 1.000000e+00 : f32
    %20 = vector.broadcast %cst_6 : f32 to vector<2x32xf32>
    %21 = arith.addf %20, %19 : vector<2x32xf32>
    %22 = arith.divf %20, %21 : vector<2x32xf32>
    %23 = vector.extract_strided_slice %7 {offsets = [0, 64], sizes = [2, 32], strides = [1, 1]} : vector<2x128xf32> to vector<2x32xf32>
    %24 = math.tanh %23 : vector<2x32xf32>
    %25 = vector.extract_strided_slice %7 {offsets = [0, 96], sizes = [2, 32], strides = [1, 1]} : vector<2x128xf32> to vector<2x32xf32>
    %26 = arith.negf %25 : vector<2x32xf32>
    %27 = math.exp %26 : vector<2x32xf32>
    %cst_7 = arith.constant 1.000000e+00 : f32
    %28 = vector.broadcast %cst_7 : f32 to vector<2x32xf32>
    %29 = arith.addf %28, %27 : vector<2x32xf32>
    %30 = arith.divf %28, %29 : vector<2x32xf32>
    %31 = arith.mulf %22, %1 : vector<2x32xf32>
    %32 = arith.mulf %16, %24 : vector<2x32xf32>
    %33 = arith.addf %31, %32 : vector<2x32xf32>
    %34 = math.tanh %33 : vector<2x32xf32>
    %35 = arith.mulf %30, %34 : vector<2x32xf32>
    %36 = vector.extract_strided_slice %10 {offsets = [0, 0], sizes = [2, 32], strides = [1, 1]} : vector<2x128xf32> to vector<2x32xf32>
    %37 = arith.negf %36 : vector<2x32xf32>
    %38 = math.exp %37 : vector<2x32xf32>
    %cst_8 = arith.constant 1.000000e+00 : f32
    %39 = vector.broadcast %cst_8 : f32 to vector<2x32xf32>
    %40 = arith.addf %39, %38 : vector<2x32xf32>
    %41 = arith.divf %39, %40 : vector<2x32xf32>
    %42 = vector.extract_strided_slice %10 {offsets = [0, 32], sizes = [2, 32], strides = [1, 1]} : vector<2x128xf32> to vector<2x32xf32>
    %43 = arith.negf %42 : vector<2x32xf32>
    %44 = math.exp %43 : vector<2x32xf32>
    %cst_9 = arith.constant 1.000000e+00 : f32
    %45 = vector.broadcast %cst_9 : f32 to vector<2x32xf32>
    %46 = arith.addf %45, %44 : vector<2x32xf32>
    %47 = arith.divf %45, %46 : vector<2x32xf32>
    %48 = vector.extract_strided_slice %10 {offsets = [0, 64], sizes = [2, 32], strides = [1, 1]} : vector<2x128xf32> to vector<2x32xf32>
    %49 = math.tanh %48 : vector<2x32xf32>
    %50 = vector.extract_strided_slice %10 {offsets = [0, 96], sizes = [2, 32], strides = [1, 1]} : vector<2x128xf32> to vector<2x32xf32>
    %51 = arith.negf %50 : vector<2x32xf32>
    %52 = math.exp %51 : vector<2x32xf32>
    %cst_10 = arith.constant 1.000000e+00 : f32
    %53 = vector.broadcast %cst_10 : f32 to vector<2x32xf32>
    %54 = arith.addf %53, %52 : vector<2x32xf32>
    %55 = arith.divf %53, %54 : vector<2x32xf32>
    %56 = arith.mulf %47, %1 : vector<2x32xf32>
    %57 = arith.mulf %41, %49 : vector<2x32xf32>
    %58 = arith.addf %56, %57 : vector<2x32xf32>
    %59 = math.tanh %58 : vector<2x32xf32>
    %60 = arith.mulf %55, %59 : vector<2x32xf32>
    %61 = tpu.concatenate %35, %60 in 1 : vector<2x32xf32>, vector<2x32xf32> -> vector<2x64xf32>
    %62 = arith.truncf %61 : vector<2x64xf32> to vector<2x64xbf16>
    %cst_11 = arith.constant dense<0.000000e+00> : vector<2x256xf32>
    %63 = tpu.matmul %62, %0, %cst_11 {dimension_numbers = #tpu.dot_dimension_numbers<[1], [0], [0], [1], [0, 0, 1, 1], [], []>} : vector<2x64xbf16>, vector<64x256xbf16>, vector<2x256xf32> -> vector<2x256xf32>
    %c0_12 = arith.constant 0 : index
    %c256 = arith.constant 256 : index
    %64 = vector.load %arg0[%c0_12, %c256] : memref<2x2048xf32, #tpu.memory_space<vmem>>, vector<2x128xf32>
    %65 = vector.extract_strided_slice %63 {offsets = [0, 0], sizes = [2, 128], strides = [1, 1]} : vector<2x256xf32> to vector<2x128xf32>
    %66 = arith.addf %64, %65 : vector<2x128xf32>
    %c0_13 = arith.constant 0 : index
    %c1664 = arith.constant 1664 : index
    %67 = vector.load %arg0[%c0_13, %c1664] : memref<2x2048xf32, #tpu.memory_space<vmem>>, vector<2x128xf32>
    %68 = vector.extract_strided_slice %63 {offsets = [0, 128], sizes = [2, 128], strides = [1, 1]} : vector<2x256xf32> to vector<2x128xf32>
    %69 = arith.addf %67, %68 : vector<2x128xf32>
    %70 = vector.extract_strided_slice %66 {offsets = [0, 0], sizes = [2, 32], strides = [1, 1]} : vector<2x128xf32> to vector<2x32xf32>
    %71 = arith.negf %70 : vector<2x32xf32>
    %72 = math.exp %71 : vector<2x32xf32>
    %cst_14 = arith.constant 1.000000e+00 : f32
    %73 = vector.broadcast %cst_14 : f32 to vector<2x32xf32>
    %74 = arith.addf %73, %72 : vector<2x32xf32>
    %75 = arith.divf %73, %74 : vector<2x32xf32>
    %76 = vector.extract_strided_slice %66 {offsets = [0, 32], sizes = [2, 32], strides = [1, 1]} : vector<2x128xf32> to vector<2x32xf32>
    %77 = arith.negf %76 : vector<2x32xf32>
    %78 = math.exp %77 : vector<2x32xf32>
    %cst_15 = arith.constant 1.000000e+00 : f32
    %79 = vector.broadcast %cst_15 : f32 to vector<2x32xf32>
    %80 = arith.addf %79, %78 : vector<2x32xf32>
    %81 = arith.divf %79, %80 : vector<2x32xf32>
    %82 = vector.extract_strided_slice %66 {offsets = [0, 64], sizes = [2, 32], strides = [1, 1]} : vector<2x128xf32> to vector<2x32xf32>
    %83 = math.tanh %82 : vector<2x32xf32>
    %84 = vector.extract_strided_slice %66 {offsets = [0, 96], sizes = [2, 32], strides = [1, 1]} : vector<2x128xf32> to vector<2x32xf32>
    %85 = arith.negf %84 : vector<2x32xf32>
    %86 = math.exp %85 : vector<2x32xf32>
    %cst_16 = arith.constant 1.000000e+00 : f32
    %87 = vector.broadcast %cst_16 : f32 to vector<2x32xf32>
    %88 = arith.addf %87, %86 : vector<2x32xf32>
    %89 = arith.divf %87, %88 : vector<2x32xf32>
    %90 = arith.mulf %81, %33 : vector<2x32xf32>
    %91 = arith.mulf %75, %83 : vector<2x32xf32>
    %92 = arith.addf %90, %91 : vector<2x32xf32>
    %93 = math.tanh %92 : vector<2x32xf32>
    %94 = arith.mulf %89, %93 : vector<2x32xf32>
    %95 = vector.extract_strided_slice %69 {offsets = [0, 0], sizes = [2, 32], strides = [1, 1]} : vector<2x128xf32> to vector<2x32xf32>
    %96 = arith.negf %95 : vector<2x32xf32>
    %97 = math.exp %96 : vector<2x32xf32>
    %cst_17 = arith.constant 1.000000e+00 : f32
    %98 = vector.broadcast %cst_17 : f32 to vector<2x32xf32>
    %99 = arith.addf %98, %97 : vector<2x32xf32>
    %100 = arith.divf %98, %99 : vector<2x32xf32>
    %101 = vector.extract_strided_slice %69 {offsets = [0, 32], sizes = [2, 32], strides = [1, 1]} : vector<2x128xf32> to vector<2x32xf32>
    %102 = arith.negf %101 : vector<2x32xf32>
    %103 = math.exp %102 : vector<2x32xf32>
    %cst_18 = arith.constant 1.000000e+00 : f32
    %104 = vector.broadcast %cst_18 : f32 to vector<2x32xf32>
    %105 = arith.addf %104, %103 : vector<2x32xf32>
    %106 = arith.divf %104, %105 : vector<2x32xf32>
    %107 = vector.extract_strided_slice %69 {offsets = [0, 64], sizes = [2, 32], strides = [1, 1]} : vector<2x128xf32> to vector<2x32xf32>
    %108 = math.tanh %107 : vector<2x32xf32>
    %109 = vector.extract_strided_slice %69 {offsets = [0, 96], sizes = [2, 32], strides = [1, 1]} : vector<2x128xf32> to vector<2x32xf32>
    %110 = arith.negf %109 : vector<2x32xf32>
    %111 = math.exp %110 : vector<2x32xf32>
    %cst_19 = arith.constant 1.000000e+00 : f32
    %112 = vector.broadcast %cst_19 : f32 to vector<2x32xf32>
    %113 = arith.addf %112, %111 : vector<2x32xf32>
    %114 = arith.divf %112, %113 : vector<2x32xf32>
    %115 = arith.mulf %106, %58 : vector<2x32xf32>
    %116 = arith.mulf %100, %108 : vector<2x32xf32>
    %117 = arith.addf %115, %116 : vector<2x32xf32>
    %118 = math.tanh %117 : vector<2x32xf32>
    %119 = arith.mulf %114, %118 : vector<2x32xf32>
    %120 = tpu.concatenate %94, %119 in 1 : vector<2x32xf32>, vector<2x32xf32> -> vector<2x64xf32>
    %121 = arith.truncf %120 : vector<2x64xf32> to vector<2x64xbf16>
    %cst_20 = arith.constant dense<0.000000e+00> : vector<2x256xf32>
    %122 = tpu.matmul %121, %0, %cst_20 {dimension_numbers = #tpu.dot_dimension_numbers<[1], [0], [0], [1], [0, 0, 1, 1], [], []>} : vector<2x64xbf16>, vector<64x256xbf16>, vector<2x256xf32> -> vector<2x256xf32>
    %c0_21 = arith.constant 0 : index
    %c512 = arith.constant 512 : index
    %123 = vector.load %arg0[%c0_21, %c512] : memref<2x2048xf32, #tpu.memory_space<vmem>>, vector<2x128xf32>
    %124 = vector.extract_strided_slice %122 {offsets = [0, 0], sizes = [2, 128], strides = [1, 1]} : vector<2x256xf32> to vector<2x128xf32>
    %125 = arith.addf %123, %124 : vector<2x128xf32>
    %c0_22 = arith.constant 0 : index
    %c1408 = arith.constant 1408 : index
    %126 = vector.load %arg0[%c0_22, %c1408] : memref<2x2048xf32, #tpu.memory_space<vmem>>, vector<2x128xf32>
    %127 = vector.extract_strided_slice %122 {offsets = [0, 128], sizes = [2, 128], strides = [1, 1]} : vector<2x256xf32> to vector<2x128xf32>
    %128 = arith.addf %126, %127 : vector<2x128xf32>
    %129 = vector.extract_strided_slice %125 {offsets = [0, 0], sizes = [2, 32], strides = [1, 1]} : vector<2x128xf32> to vector<2x32xf32>
    %130 = arith.negf %129 : vector<2x32xf32>
    %131 = math.exp %130 : vector<2x32xf32>
    %cst_23 = arith.constant 1.000000e+00 : f32
    %132 = vector.broadcast %cst_23 : f32 to vector<2x32xf32>
    %133 = arith.addf %132, %131 : vector<2x32xf32>
    %134 = arith.divf %132, %133 : vector<2x32xf32>
    %135 = vector.extract_strided_slice %125 {offsets = [0, 32], sizes = [2, 32], strides = [1, 1]} : vector<2x128xf32> to vector<2x32xf32>
    %136 = arith.negf %135 : vector<2x32xf32>
    %137 = math.exp %136 : vector<2x32xf32>
    %cst_24 = arith.constant 1.000000e+00 : f32
    %138 = vector.broadcast %cst_24 : f32 to vector<2x32xf32>
    %139 = arith.addf %138, %137 : vector<2x32xf32>
    %140 = arith.divf %138, %139 : vector<2x32xf32>
    %141 = vector.extract_strided_slice %125 {offsets = [0, 64], sizes = [2, 32], strides = [1, 1]} : vector<2x128xf32> to vector<2x32xf32>
    %142 = math.tanh %141 : vector<2x32xf32>
    %143 = vector.extract_strided_slice %125 {offsets = [0, 96], sizes = [2, 32], strides = [1, 1]} : vector<2x128xf32> to vector<2x32xf32>
    %144 = arith.negf %143 : vector<2x32xf32>
    %145 = math.exp %144 : vector<2x32xf32>
    %cst_25 = arith.constant 1.000000e+00 : f32
    %146 = vector.broadcast %cst_25 : f32 to vector<2x32xf32>
    %147 = arith.addf %146, %145 : vector<2x32xf32>
    %148 = arith.divf %146, %147 : vector<2x32xf32>
    %149 = arith.mulf %140, %92 : vector<2x32xf32>
    %150 = arith.mulf %134, %142 : vector<2x32xf32>
    %151 = arith.addf %149, %150 : vector<2x32xf32>
    %152 = math.tanh %151 : vector<2x32xf32>
    %153 = arith.mulf %148, %152 : vector<2x32xf32>
    %154 = vector.extract_strided_slice %128 {offsets = [0, 0], sizes = [2, 32], strides = [1, 1]} : vector<2x128xf32> to vector<2x32xf32>
    %155 = arith.negf %154 : vector<2x32xf32>
    %156 = math.exp %155 : vector<2x32xf32>
    %cst_26 = arith.constant 1.000000e+00 : f32
    %157 = vector.broadcast %cst_26 : f32 to vector<2x32xf32>
    %158 = arith.addf %157, %156 : vector<2x32xf32>
    %159 = arith.divf %157, %158 : vector<2x32xf32>
    %160 = vector.extract_strided_slice %128 {offsets = [0, 32], sizes = [2, 32], strides = [1, 1]} : vector<2x128xf32> to vector<2x32xf32>
    %161 = arith.negf %160 : vector<2x32xf32>
    %162 = math.exp %161 : vector<2x32xf32>
    %cst_27 = arith.constant 1.000000e+00 : f32
    %163 = vector.broadcast %cst_27 : f32 to vector<2x32xf32>
    %164 = arith.addf %163, %162 : vector<2x32xf32>
    %165 = arith.divf %163, %164 : vector<2x32xf32>
    %166 = vector.extract_strided_slice %128 {offsets = [0, 64], sizes = [2, 32], strides = [1, 1]} : vector<2x128xf32> to vector<2x32xf32>
    %167 = math.tanh %166 : vector<2x32xf32>
    %168 = vector.extract_strided_slice %128 {offsets = [0, 96], sizes = [2, 32], strides = [1, 1]} : vector<2x128xf32> to vector<2x32xf32>
    %169 = arith.negf %168 : vector<2x32xf32>
    %170 = math.exp %169 : vector<2x32xf32>
    %cst_28 = arith.constant 1.000000e+00 : f32
    %171 = vector.broadcast %cst_28 : f32 to vector<2x32xf32>
    %172 = arith.addf %171, %170 : vector<2x32xf32>
    %173 = arith.divf %171, %172 : vector<2x32xf32>
    %174 = arith.mulf %165, %117 : vector<2x32xf32>
    %175 = arith.mulf %159, %167 : vector<2x32xf32>
    %176 = arith.addf %174, %175 : vector<2x32xf32>
    %177 = math.tanh %176 : vector<2x32xf32>
    %178 = arith.mulf %173, %177 : vector<2x32xf32>
    %179 = tpu.concatenate %153, %178 in 1 : vector<2x32xf32>, vector<2x32xf32> -> vector<2x64xf32>
    %180 = arith.truncf %179 : vector<2x64xf32> to vector<2x64xbf16>
    %cst_29 = arith.constant dense<0.000000e+00> : vector<2x256xf32>
    %181 = tpu.matmul %180, %0, %cst_29 {dimension_numbers = #tpu.dot_dimension_numbers<[1], [0], [0], [1], [0, 0, 1, 1], [], []>} : vector<2x64xbf16>, vector<64x256xbf16>, vector<2x256xf32> -> vector<2x256xf32>
    %c0_30 = arith.constant 0 : index
    %c768 = arith.constant 768 : index
    %182 = vector.load %arg0[%c0_30, %c768] : memref<2x2048xf32, #tpu.memory_space<vmem>>, vector<2x128xf32>
    %183 = vector.extract_strided_slice %181 {offsets = [0, 0], sizes = [2, 128], strides = [1, 1]} : vector<2x256xf32> to vector<2x128xf32>
    %184 = arith.addf %182, %183 : vector<2x128xf32>
    %c0_31 = arith.constant 0 : index
    %c1152 = arith.constant 1152 : index
    %185 = vector.load %arg0[%c0_31, %c1152] : memref<2x2048xf32, #tpu.memory_space<vmem>>, vector<2x128xf32>
    %186 = vector.extract_strided_slice %181 {offsets = [0, 128], sizes = [2, 128], strides = [1, 1]} : vector<2x256xf32> to vector<2x128xf32>
    %187 = arith.addf %185, %186 : vector<2x128xf32>
    %188 = vector.extract_strided_slice %184 {offsets = [0, 0], sizes = [2, 32], strides = [1, 1]} : vector<2x128xf32> to vector<2x32xf32>
    %189 = arith.negf %188 : vector<2x32xf32>
    %190 = math.exp %189 : vector<2x32xf32>
    %cst_32 = arith.constant 1.000000e+00 : f32
    %191 = vector.broadcast %cst_32 : f32 to vector<2x32xf32>
    %192 = arith.addf %191, %190 : vector<2x32xf32>
    %193 = arith.divf %191, %192 : vector<2x32xf32>
    %194 = vector.extract_strided_slice %184 {offsets = [0, 32], sizes = [2, 32], strides = [1, 1]} : vector<2x128xf32> to vector<2x32xf32>
    %195 = arith.negf %194 : vector<2x32xf32>
    %196 = math.exp %195 : vector<2x32xf32>
    %cst_33 = arith.constant 1.000000e+00 : f32
    %197 = vector.broadcast %cst_33 : f32 to vector<2x32xf32>
    %198 = arith.addf %197, %196 : vector<2x32xf32>
    %199 = arith.divf %197, %198 : vector<2x32xf32>
    %200 = vector.extract_strided_slice %184 {offsets = [0, 64], sizes = [2, 32], strides = [1, 1]} : vector<2x128xf32> to vector<2x32xf32>
    %201 = math.tanh %200 : vector<2x32xf32>
    %202 = vector.extract_strided_slice %184 {offsets = [0, 96], sizes = [2, 32], strides = [1, 1]} : vector<2x128xf32> to vector<2x32xf32>
    %203 = arith.negf %202 : vector<2x32xf32>
    %204 = math.exp %203 : vector<2x32xf32>
    %cst_34 = arith.constant 1.000000e+00 : f32
    %205 = vector.broadcast %cst_34 : f32 to vector<2x32xf32>
    %206 = arith.addf %205, %204 : vector<2x32xf32>
    %207 = arith.divf %205, %206 : vector<2x32xf32>
    %208 = arith.mulf %199, %151 : vector<2x32xf32>
    %209 = arith.mulf %193, %201 : vector<2x32xf32>
    %210 = arith.addf %208, %209 : vector<2x32xf32>
    %211 = math.tanh %210 : vector<2x32xf32>
    %212 = arith.mulf %207, %211 : vector<2x32xf32>
    %213 = vector.extract_strided_slice %187 {offsets = [0, 0], sizes = [2, 32], strides = [1, 1]} : vector<2x128xf32> to vector<2x32xf32>
    %214 = arith.negf %213 : vector<2x32xf32>
    %215 = math.exp %214 : vector<2x32xf32>
    %cst_35 = arith.constant 1.000000e+00 : f32
    %216 = vector.broadcast %cst_35 : f32 to vector<2x32xf32>
    %217 = arith.addf %216, %215 : vector<2x32xf32>
    %218 = arith.divf %216, %217 : vector<2x32xf32>
    %219 = vector.extract_strided_slice %187 {offsets = [0, 32], sizes = [2, 32], strides = [1, 1]} : vector<2x128xf32> to vector<2x32xf32>
    %220 = arith.negf %219 : vector<2x32xf32>
    %221 = math.exp %220 : vector<2x32xf32>
    %cst_36 = arith.constant 1.000000e+00 : f32
    %222 = vector.broadcast %cst_36 : f32 to vector<2x32xf32>
    %223 = arith.addf %222, %221 : vector<2x32xf32>
    %224 = arith.divf %222, %223 : vector<2x32xf32>
    %225 = vector.extract_strided_slice %187 {offsets = [0, 64], sizes = [2, 32], strides = [1, 1]} : vector<2x128xf32> to vector<2x32xf32>
    %226 = math.tanh %225 : vector<2x32xf32>
    %227 = vector.extract_strided_slice %187 {offsets = [0, 96], sizes = [2, 32], strides = [1, 1]} : vector<2x128xf32> to vector<2x32xf32>
    %228 = arith.negf %227 : vector<2x32xf32>
    %229 = math.exp %228 : vector<2x32xf32>
    %cst_37 = arith.constant 1.000000e+00 : f32
    %230 = vector.broadcast %cst_37 : f32 to vector<2x32xf32>
    %231 = arith.addf %230, %229 : vector<2x32xf32>
    %232 = arith.divf %230, %231 : vector<2x32xf32>
    %233 = arith.mulf %224, %176 : vector<2x32xf32>
    %234 = arith.mulf %218, %226 : vector<2x32xf32>
    %235 = arith.addf %233, %234 : vector<2x32xf32>
    %236 = math.tanh %235 : vector<2x32xf32>
    %237 = arith.mulf %232, %236 : vector<2x32xf32>
    %238 = tpu.concatenate %212, %237 in 1 : vector<2x32xf32>, vector<2x32xf32> -> vector<2x64xf32>
    %239 = arith.truncf %238 : vector<2x64xf32> to vector<2x64xbf16>
    %cst_38 = arith.constant dense<0.000000e+00> : vector<2x256xf32>
    %240 = tpu.matmul %239, %0, %cst_38 {dimension_numbers = #tpu.dot_dimension_numbers<[1], [0], [0], [1], [0, 0, 1, 1], [], []>} : vector<2x64xbf16>, vector<64x256xbf16>, vector<2x256xf32> -> vector<2x256xf32>
    %c0_39 = arith.constant 0 : index
    %c1024 = arith.constant 1024 : index
    %241 = vector.load %arg0[%c0_39, %c1024] : memref<2x2048xf32, #tpu.memory_space<vmem>>, vector<2x128xf32>
    %242 = vector.extract_strided_slice %240 {offsets = [0, 0], sizes = [2, 128], strides = [1, 1]} : vector<2x256xf32> to vector<2x128xf32>
    %243 = arith.addf %241, %242 : vector<2x128xf32>
    %c0_40 = arith.constant 0 : index
    %c896 = arith.constant 896 : index
    %244 = vector.load %arg0[%c0_40, %c896] : memref<2x2048xf32, #tpu.memory_space<vmem>>, vector<2x128xf32>
    %245 = vector.extract_strided_slice %240 {offsets = [0, 128], sizes = [2, 128], strides = [1, 1]} : vector<2x256xf32> to vector<2x128xf32>
    %246 = arith.addf %244, %245 : vector<2x128xf32>
    %247 = vector.extract_strided_slice %243 {offsets = [0, 0], sizes = [2, 32], strides = [1, 1]} : vector<2x128xf32> to vector<2x32xf32>
    %248 = arith.negf %247 : vector<2x32xf32>
    %249 = math.exp %248 : vector<2x32xf32>
    %cst_41 = arith.constant 1.000000e+00 : f32
    %250 = vector.broadcast %cst_41 : f32 to vector<2x32xf32>
    %251 = arith.addf %250, %249 : vector<2x32xf32>
    %252 = arith.divf %250, %251 : vector<2x32xf32>
    %253 = vector.extract_strided_slice %243 {offsets = [0, 32], sizes = [2, 32], strides = [1, 1]} : vector<2x128xf32> to vector<2x32xf32>
    %254 = arith.negf %253 : vector<2x32xf32>
    %255 = math.exp %254 : vector<2x32xf32>
    %cst_42 = arith.constant 1.000000e+00 : f32
    %256 = vector.broadcast %cst_42 : f32 to vector<2x32xf32>
    %257 = arith.addf %256, %255 : vector<2x32xf32>
    %258 = arith.divf %256, %257 : vector<2x32xf32>
    %259 = vector.extract_strided_slice %243 {offsets = [0, 64], sizes = [2, 32], strides = [1, 1]} : vector<2x128xf32> to vector<2x32xf32>
    %260 = math.tanh %259 : vector<2x32xf32>
    %261 = vector.extract_strided_slice %243 {offsets = [0, 96], sizes = [2, 32], strides = [1, 1]} : vector<2x128xf32> to vector<2x32xf32>
    %262 = arith.negf %261 : vector<2x32xf32>
    %263 = math.exp %262 : vector<2x32xf32>
    %cst_43 = arith.constant 1.000000e+00 : f32
    %264 = vector.broadcast %cst_43 : f32 to vector<2x32xf32>
    %265 = arith.addf %264, %263 : vector<2x32xf32>
    %266 = arith.divf %264, %265 : vector<2x32xf32>
    %267 = arith.mulf %258, %210 : vector<2x32xf32>
    %268 = arith.mulf %252, %260 : vector<2x32xf32>
    %269 = arith.addf %267, %268 : vector<2x32xf32>
    %270 = math.tanh %269 : vector<2x32xf32>
    %271 = arith.mulf %266, %270 : vector<2x32xf32>
    %272 = vector.extract_strided_slice %246 {offsets = [0, 0], sizes = [2, 32], strides = [1, 1]} : vector<2x128xf32> to vector<2x32xf32>
    %273 = arith.negf %272 : vector<2x32xf32>
    %274 = math.exp %273 : vector<2x32xf32>
    %cst_44 = arith.constant 1.000000e+00 : f32
    %275 = vector.broadcast %cst_44 : f32 to vector<2x32xf32>
    %276 = arith.addf %275, %274 : vector<2x32xf32>
    %277 = arith.divf %275, %276 : vector<2x32xf32>
    %278 = vector.extract_strided_slice %246 {offsets = [0, 32], sizes = [2, 32], strides = [1, 1]} : vector<2x128xf32> to vector<2x32xf32>
    %279 = arith.negf %278 : vector<2x32xf32>
    %280 = math.exp %279 : vector<2x32xf32>
    %cst_45 = arith.constant 1.000000e+00 : f32
    %281 = vector.broadcast %cst_45 : f32 to vector<2x32xf32>
    %282 = arith.addf %281, %280 : vector<2x32xf32>
    %283 = arith.divf %281, %282 : vector<2x32xf32>
    %284 = vector.extract_strided_slice %246 {offsets = [0, 64], sizes = [2, 32], strides = [1, 1]} : vector<2x128xf32> to vector<2x32xf32>
    %285 = math.tanh %284 : vector<2x32xf32>
    %286 = vector.extract_strided_slice %246 {offsets = [0, 96], sizes = [2, 32], strides = [1, 1]} : vector<2x128xf32> to vector<2x32xf32>
    %287 = arith.negf %286 : vector<2x32xf32>
    %288 = math.exp %287 : vector<2x32xf32>
    %cst_46 = arith.constant 1.000000e+00 : f32
    %289 = vector.broadcast %cst_46 : f32 to vector<2x32xf32>
    %290 = arith.addf %289, %288 : vector<2x32xf32>
    %291 = arith.divf %289, %290 : vector<2x32xf32>
    %292 = arith.mulf %283, %235 : vector<2x32xf32>
    %293 = arith.mulf %277, %285 : vector<2x32xf32>
    %294 = arith.addf %292, %293 : vector<2x32xf32>
    %295 = math.tanh %294 : vector<2x32xf32>
    %296 = arith.mulf %291, %295 : vector<2x32xf32>
    %297 = tpu.concatenate %271, %296 in 1 : vector<2x32xf32>, vector<2x32xf32> -> vector<2x64xf32>
    %298 = arith.truncf %297 : vector<2x64xf32> to vector<2x64xbf16>
    %cst_47 = arith.constant dense<0.000000e+00> : vector<2x256xf32>
    %299 = tpu.matmul %298, %0, %cst_47 {dimension_numbers = #tpu.dot_dimension_numbers<[1], [0], [0], [1], [0, 0, 1, 1], [], []>} : vector<2x64xbf16>, vector<64x256xbf16>, vector<2x256xf32> -> vector<2x256xf32>
    %c0_48 = arith.constant 0 : index
    %c1280 = arith.constant 1280 : index
    %300 = vector.load %arg0[%c0_48, %c1280] : memref<2x2048xf32, #tpu.memory_space<vmem>>, vector<2x128xf32>
    %301 = vector.extract_strided_slice %299 {offsets = [0, 0], sizes = [2, 128], strides = [1, 1]} : vector<2x256xf32> to vector<2x128xf32>
    %302 = arith.addf %300, %301 : vector<2x128xf32>
    %c0_49 = arith.constant 0 : index
    %c640 = arith.constant 640 : index
    %303 = vector.load %arg0[%c0_49, %c640] : memref<2x2048xf32, #tpu.memory_space<vmem>>, vector<2x128xf32>
    %304 = vector.extract_strided_slice %299 {offsets = [0, 128], sizes = [2, 128], strides = [1, 1]} : vector<2x256xf32> to vector<2x128xf32>
    %305 = arith.addf %303, %304 : vector<2x128xf32>
    %306 = vector.extract_strided_slice %302 {offsets = [0, 0], sizes = [2, 32], strides = [1, 1]} : vector<2x128xf32> to vector<2x32xf32>
    %307 = arith.negf %306 : vector<2x32xf32>
    %308 = math.exp %307 : vector<2x32xf32>
    %cst_50 = arith.constant 1.000000e+00 : f32
    %309 = vector.broadcast %cst_50 : f32 to vector<2x32xf32>
    %310 = arith.addf %309, %308 : vector<2x32xf32>
    %311 = arith.divf %309, %310 : vector<2x32xf32>
    %312 = vector.extract_strided_slice %302 {offsets = [0, 32], sizes = [2, 32], strides = [1, 1]} : vector<2x128xf32> to vector<2x32xf32>
    %313 = arith.negf %312 : vector<2x32xf32>
    %314 = math.exp %313 : vector<2x32xf32>
    %cst_51 = arith.constant 1.000000e+00 : f32
    %315 = vector.broadcast %cst_51 : f32 to vector<2x32xf32>
    %316 = arith.addf %315, %314 : vector<2x32xf32>
    %317 = arith.divf %315, %316 : vector<2x32xf32>
    %318 = vector.extract_strided_slice %302 {offsets = [0, 64], sizes = [2, 32], strides = [1, 1]} : vector<2x128xf32> to vector<2x32xf32>
    %319 = math.tanh %318 : vector<2x32xf32>
    %320 = vector.extract_strided_slice %302 {offsets = [0, 96], sizes = [2, 32], strides = [1, 1]} : vector<2x128xf32> to vector<2x32xf32>
    %321 = arith.negf %320 : vector<2x32xf32>
    %322 = math.exp %321 : vector<2x32xf32>
    %cst_52 = arith.constant 1.000000e+00 : f32
    %323 = vector.broadcast %cst_52 : f32 to vector<2x32xf32>
    %324 = arith.addf %323, %322 : vector<2x32xf32>
    %325 = arith.divf %323, %324 : vector<2x32xf32>
    %326 = arith.mulf %317, %269 : vector<2x32xf32>
    %327 = arith.mulf %311, %319 : vector<2x32xf32>
    %328 = arith.addf %326, %327 : vector<2x32xf32>
    %329 = math.tanh %328 : vector<2x32xf32>
    %330 = arith.mulf %325, %329 : vector<2x32xf32>
    %331 = vector.extract_strided_slice %305 {offsets = [0, 0], sizes = [2, 32], strides = [1, 1]} : vector<2x128xf32> to vector<2x32xf32>
    %332 = arith.negf %331 : vector<2x32xf32>
    %333 = math.exp %332 : vector<2x32xf32>
    %cst_53 = arith.constant 1.000000e+00 : f32
    %334 = vector.broadcast %cst_53 : f32 to vector<2x32xf32>
    %335 = arith.addf %334, %333 : vector<2x32xf32>
    %336 = arith.divf %334, %335 : vector<2x32xf32>
    %337 = vector.extract_strided_slice %305 {offsets = [0, 32], sizes = [2, 32], strides = [1, 1]} : vector<2x128xf32> to vector<2x32xf32>
    %338 = arith.negf %337 : vector<2x32xf32>
    %339 = math.exp %338 : vector<2x32xf32>
    %cst_54 = arith.constant 1.000000e+00 : f32
    %340 = vector.broadcast %cst_54 : f32 to vector<2x32xf32>
    %341 = arith.addf %340, %339 : vector<2x32xf32>
    %342 = arith.divf %340, %341 : vector<2x32xf32>
    %343 = vector.extract_strided_slice %305 {offsets = [0, 64], sizes = [2, 32], strides = [1, 1]} : vector<2x128xf32> to vector<2x32xf32>
    %344 = math.tanh %343 : vector<2x32xf32>
    %345 = vector.extract_strided_slice %305 {offsets = [0, 96], sizes = [2, 32], strides = [1, 1]} : vector<2x128xf32> to vector<2x32xf32>
    %346 = arith.negf %345 : vector<2x32xf32>
    %347 = math.exp %346 : vector<2x32xf32>
    %cst_55 = arith.constant 1.000000e+00 : f32
    %348 = vector.broadcast %cst_55 : f32 to vector<2x32xf32>
    %349 = arith.addf %348, %347 : vector<2x32xf32>
    %350 = arith.divf %348, %349 : vector<2x32xf32>
    %351 = arith.mulf %342, %294 : vector<2x32xf32>
    %352 = arith.mulf %336, %344 : vector<2x32xf32>
    %353 = arith.addf %351, %352 : vector<2x32xf32>
    %354 = math.tanh %353 : vector<2x32xf32>
    %355 = arith.mulf %350, %354 : vector<2x32xf32>
    %356 = tpu.concatenate %330, %355 in 1 : vector<2x32xf32>, vector<2x32xf32> -> vector<2x64xf32>
    %357 = arith.truncf %356 : vector<2x64xf32> to vector<2x64xbf16>
    %cst_56 = arith.constant dense<0.000000e+00> : vector<2x256xf32>
    %358 = tpu.matmul %357, %0, %cst_56 {dimension_numbers = #tpu.dot_dimension_numbers<[1], [0], [0], [1], [0, 0, 1, 1], [], []>} : vector<2x64xbf16>, vector<64x256xbf16>, vector<2x256xf32> -> vector<2x256xf32>
    %c0_57 = arith.constant 0 : index
    %c1536 = arith.constant 1536 : index
    %359 = vector.load %arg0[%c0_57, %c1536] : memref<2x2048xf32, #tpu.memory_space<vmem>>, vector<2x128xf32>
    %360 = vector.extract_strided_slice %358 {offsets = [0, 0], sizes = [2, 128], strides = [1, 1]} : vector<2x256xf32> to vector<2x128xf32>
    %361 = arith.addf %359, %360 : vector<2x128xf32>
    %c0_58 = arith.constant 0 : index
    %c384 = arith.constant 384 : index
    %362 = vector.load %arg0[%c0_58, %c384] : memref<2x2048xf32, #tpu.memory_space<vmem>>, vector<2x128xf32>
    %363 = vector.extract_strided_slice %358 {offsets = [0, 128], sizes = [2, 128], strides = [1, 1]} : vector<2x256xf32> to vector<2x128xf32>
    %364 = arith.addf %362, %363 : vector<2x128xf32>
    %365 = vector.extract_strided_slice %361 {offsets = [0, 0], sizes = [2, 32], strides = [1, 1]} : vector<2x128xf32> to vector<2x32xf32>
    %366 = arith.negf %365 : vector<2x32xf32>
    %367 = math.exp %366 : vector<2x32xf32>
    %cst_59 = arith.constant 1.000000e+00 : f32
    %368 = vector.broadcast %cst_59 : f32 to vector<2x32xf32>
    %369 = arith.addf %368, %367 : vector<2x32xf32>
    %370 = arith.divf %368, %369 : vector<2x32xf32>
    %371 = vector.extract_strided_slice %361 {offsets = [0, 32], sizes = [2, 32], strides = [1, 1]} : vector<2x128xf32> to vector<2x32xf32>
    %372 = arith.negf %371 : vector<2x32xf32>
    %373 = math.exp %372 : vector<2x32xf32>
    %cst_60 = arith.constant 1.000000e+00 : f32
    %374 = vector.broadcast %cst_60 : f32 to vector<2x32xf32>
    %375 = arith.addf %374, %373 : vector<2x32xf32>
    %376 = arith.divf %374, %375 : vector<2x32xf32>
    %377 = vector.extract_strided_slice %361 {offsets = [0, 64], sizes = [2, 32], strides = [1, 1]} : vector<2x128xf32> to vector<2x32xf32>
    %378 = math.tanh %377 : vector<2x32xf32>
    %379 = vector.extract_strided_slice %361 {offsets = [0, 96], sizes = [2, 32], strides = [1, 1]} : vector<2x128xf32> to vector<2x32xf32>
    %380 = arith.negf %379 : vector<2x32xf32>
    %381 = math.exp %380 : vector<2x32xf32>
    %cst_61 = arith.constant 1.000000e+00 : f32
    %382 = vector.broadcast %cst_61 : f32 to vector<2x32xf32>
    %383 = arith.addf %382, %381 : vector<2x32xf32>
    %384 = arith.divf %382, %383 : vector<2x32xf32>
    %385 = arith.mulf %376, %328 : vector<2x32xf32>
    %386 = arith.mulf %370, %378 : vector<2x32xf32>
    %387 = arith.addf %385, %386 : vector<2x32xf32>
    %388 = math.tanh %387 : vector<2x32xf32>
    %389 = arith.mulf %384, %388 : vector<2x32xf32>
    %390 = vector.extract_strided_slice %364 {offsets = [0, 0], sizes = [2, 32], strides = [1, 1]} : vector<2x128xf32> to vector<2x32xf32>
    %391 = arith.negf %390 : vector<2x32xf32>
    %392 = math.exp %391 : vector<2x32xf32>
    %cst_62 = arith.constant 1.000000e+00 : f32
    %393 = vector.broadcast %cst_62 : f32 to vector<2x32xf32>
    %394 = arith.addf %393, %392 : vector<2x32xf32>
    %395 = arith.divf %393, %394 : vector<2x32xf32>
    %396 = vector.extract_strided_slice %364 {offsets = [0, 32], sizes = [2, 32], strides = [1, 1]} : vector<2x128xf32> to vector<2x32xf32>
    %397 = arith.negf %396 : vector<2x32xf32>
    %398 = math.exp %397 : vector<2x32xf32>
    %cst_63 = arith.constant 1.000000e+00 : f32
    %399 = vector.broadcast %cst_63 : f32 to vector<2x32xf32>
    %400 = arith.addf %399, %398 : vector<2x32xf32>
    %401 = arith.divf %399, %400 : vector<2x32xf32>
    %402 = vector.extract_strided_slice %364 {offsets = [0, 64], sizes = [2, 32], strides = [1, 1]} : vector<2x128xf32> to vector<2x32xf32>
    %403 = math.tanh %402 : vector<2x32xf32>
    %404 = vector.extract_strided_slice %364 {offsets = [0, 96], sizes = [2, 32], strides = [1, 1]} : vector<2x128xf32> to vector<2x32xf32>
    %405 = arith.negf %404 : vector<2x32xf32>
    %406 = math.exp %405 : vector<2x32xf32>
    %cst_64 = arith.constant 1.000000e+00 : f32
    %407 = vector.broadcast %cst_64 : f32 to vector<2x32xf32>
    %408 = arith.addf %407, %406 : vector<2x32xf32>
    %409 = arith.divf %407, %408 : vector<2x32xf32>
    %410 = arith.mulf %401, %353 : vector<2x32xf32>
    %411 = arith.mulf %395, %403 : vector<2x32xf32>
    %412 = arith.addf %410, %411 : vector<2x32xf32>
    %413 = math.tanh %412 : vector<2x32xf32>
    %414 = arith.mulf %409, %413 : vector<2x32xf32>
    %415 = tpu.concatenate %389, %414 in 1 : vector<2x32xf32>, vector<2x32xf32> -> vector<2x64xf32>
    %416 = arith.truncf %415 : vector<2x64xf32> to vector<2x64xbf16>
    %cst_65 = arith.constant dense<0.000000e+00> : vector<2x256xf32>
    %417 = tpu.matmul %416, %0, %cst_65 {dimension_numbers = #tpu.dot_dimension_numbers<[1], [0], [0], [1], [0, 0, 1, 1], [], []>} : vector<2x64xbf16>, vector<64x256xbf16>, vector<2x256xf32> -> vector<2x256xf32>
    %c0_66 = arith.constant 0 : index
    %c1792 = arith.constant 1792 : index
    %418 = vector.load %arg0[%c0_66, %c1792] : memref<2x2048xf32, #tpu.memory_space<vmem>>, vector<2x128xf32>
    %419 = vector.extract_strided_slice %417 {offsets = [0, 0], sizes = [2, 128], strides = [1, 1]} : vector<2x256xf32> to vector<2x128xf32>
    %420 = arith.addf %418, %419 : vector<2x128xf32>
    %c0_67 = arith.constant 0 : index
    %c128 = arith.constant 128 : index
    %421 = vector.load %arg0[%c0_67, %c128] : memref<2x2048xf32, #tpu.memory_space<vmem>>, vector<2x128xf32>
    %422 = vector.extract_strided_slice %417 {offsets = [0, 128], sizes = [2, 128], strides = [1, 1]} : vector<2x256xf32> to vector<2x128xf32>
    %423 = arith.addf %421, %422 : vector<2x128xf32>
    %424 = vector.extract_strided_slice %420 {offsets = [0, 0], sizes = [2, 32], strides = [1, 1]} : vector<2x128xf32> to vector<2x32xf32>
    %425 = arith.negf %424 : vector<2x32xf32>
    %426 = math.exp %425 : vector<2x32xf32>
    %cst_68 = arith.constant 1.000000e+00 : f32
    %427 = vector.broadcast %cst_68 : f32 to vector<2x32xf32>
    %428 = arith.addf %427, %426 : vector<2x32xf32>
    %429 = arith.divf %427, %428 : vector<2x32xf32>
    %430 = vector.extract_strided_slice %420 {offsets = [0, 32], sizes = [2, 32], strides = [1, 1]} : vector<2x128xf32> to vector<2x32xf32>
    %431 = arith.negf %430 : vector<2x32xf32>
    %432 = math.exp %431 : vector<2x32xf32>
    %cst_69 = arith.constant 1.000000e+00 : f32
    %433 = vector.broadcast %cst_69 : f32 to vector<2x32xf32>
    %434 = arith.addf %433, %432 : vector<2x32xf32>
    %435 = arith.divf %433, %434 : vector<2x32xf32>
    %436 = vector.extract_strided_slice %420 {offsets = [0, 64], sizes = [2, 32], strides = [1, 1]} : vector<2x128xf32> to vector<2x32xf32>
    %437 = math.tanh %436 : vector<2x32xf32>
    %438 = vector.extract_strided_slice %420 {offsets = [0, 96], sizes = [2, 32], strides = [1, 1]} : vector<2x128xf32> to vector<2x32xf32>
    %439 = arith.negf %438 : vector<2x32xf32>
    %440 = math.exp %439 : vector<2x32xf32>
    %cst_70 = arith.constant 1.000000e+00 : f32
    %441 = vector.broadcast %cst_70 : f32 to vector<2x32xf32>
    %442 = arith.addf %441, %440 : vector<2x32xf32>
    %443 = arith.divf %441, %442 : vector<2x32xf32>
    %444 = arith.mulf %435, %387 : vector<2x32xf32>
    %445 = arith.mulf %429, %437 : vector<2x32xf32>
    %446 = arith.addf %444, %445 : vector<2x32xf32>
    %447 = math.tanh %446 : vector<2x32xf32>
    %448 = arith.mulf %443, %447 : vector<2x32xf32>
    %449 = vector.extract_strided_slice %423 {offsets = [0, 0], sizes = [2, 32], strides = [1, 1]} : vector<2x128xf32> to vector<2x32xf32>
    %450 = arith.negf %449 : vector<2x32xf32>
    %451 = math.exp %450 : vector<2x32xf32>
    %cst_71 = arith.constant 1.000000e+00 : f32
    %452 = vector.broadcast %cst_71 : f32 to vector<2x32xf32>
    %453 = arith.addf %452, %451 : vector<2x32xf32>
    %454 = arith.divf %452, %453 : vector<2x32xf32>
    %455 = vector.extract_strided_slice %423 {offsets = [0, 32], sizes = [2, 32], strides = [1, 1]} : vector<2x128xf32> to vector<2x32xf32>
    %456 = arith.negf %455 : vector<2x32xf32>
    %457 = math.exp %456 : vector<2x32xf32>
    %cst_72 = arith.constant 1.000000e+00 : f32
    %458 = vector.broadcast %cst_72 : f32 to vector<2x32xf32>
    %459 = arith.addf %458, %457 : vector<2x32xf32>
    %460 = arith.divf %458, %459 : vector<2x32xf32>
    %461 = vector.extract_strided_slice %423 {offsets = [0, 64], sizes = [2, 32], strides = [1, 1]} : vector<2x128xf32> to vector<2x32xf32>
    %462 = math.tanh %461 : vector<2x32xf32>
    %463 = vector.extract_strided_slice %423 {offsets = [0, 96], sizes = [2, 32], strides = [1, 1]} : vector<2x128xf32> to vector<2x32xf32>
    %464 = arith.negf %463 : vector<2x32xf32>
    %465 = math.exp %464 : vector<2x32xf32>
    %cst_73 = arith.constant 1.000000e+00 : f32
    %466 = vector.broadcast %cst_73 : f32 to vector<2x32xf32>
    %467 = arith.addf %466, %465 : vector<2x32xf32>
    %468 = arith.divf %466, %467 : vector<2x32xf32>
    %469 = arith.mulf %460, %412 : vector<2x32xf32>
    %470 = arith.mulf %454, %462 : vector<2x32xf32>
    %471 = arith.addf %469, %470 : vector<2x32xf32>
    %472 = math.tanh %471 : vector<2x32xf32>
    %473 = arith.mulf %468, %472 : vector<2x32xf32>
    %474 = tpu.concatenate %35, %473 in 1 : vector<2x32xf32>, vector<2x32xf32> -> vector<2x64xf32>
    %475 = tpu.concatenate %94, %414 in 1 : vector<2x32xf32>, vector<2x32xf32> -> vector<2x64xf32>
    %476 = tpu.concatenate %153, %355 in 1 : vector<2x32xf32>, vector<2x32xf32> -> vector<2x64xf32>
    %477 = tpu.concatenate %212, %296 in 1 : vector<2x32xf32>, vector<2x32xf32> -> vector<2x64xf32>
    %478 = tpu.concatenate %271, %237 in 1 : vector<2x32xf32>, vector<2x32xf32> -> vector<2x64xf32>
    %479 = tpu.concatenate %330, %178 in 1 : vector<2x32xf32>, vector<2x32xf32> -> vector<2x64xf32>
    %480 = tpu.concatenate %389, %119 in 1 : vector<2x32xf32>, vector<2x32xf32> -> vector<2x64xf32>
    %481 = tpu.concatenate %448, %60 in 1 : vector<2x32xf32>, vector<2x32xf32> -> vector<2x64xf32>
    %482 = tpu.concatenate %474, %475, %476, %477, %478, %479, %480, %481 in 1 : vector<2x64xf32>, vector<2x64xf32>, vector<2x64xf32>, vector<2x64xf32>, vector<2x64xf32>, vector<2x64xf32>, vector<2x64xf32>, vector<2x64xf32> -> vector<2x512xf32>
    %c0_74 = arith.constant 0 : index
    %c0_75 = arith.constant 0 : index
    %483 = vector.load %arg2[%c0_74, %c0_75] : memref<2x512xf32, #tpu.memory_space<vmem>>, vector<2x512xf32>
    tpu.vector_store %arg2[%c0_74, %c0_75], %482 {strides = array<i32>} : memref<2x512xf32, #tpu.memory_space<vmem>>, vector<2x512xf32>,
    return
  }
}

module attributes {stable_mosaic.version = 11 : i64} {
  func.func @_matmul_bias_kernel(%arg0: i32, %arg1: memref<16x64xf32, #tpu.memory_space<vmem>>, %arg2: memref<64x256xbf16, #tpu.memory_space<vmem>>, %arg3: memref<1x256xf32, #tpu.memory_space<vmem>>, %arg4: memref<16x256xf32, #tpu.memory_space<vmem>>) attributes {dimension_semantics = [#tpu.dimension_semantics<parallel>], iteration_bounds = array<i64: 1>, scalar_prefetch = 0 : i64, scratch_operands = 0 : i64, tpu.core_type = #tpu.core_type<tc>, window_params = [{transform_indices = @transform_0, window_bounds = array<i64: 16, 64>}, {pipeline_mode = #tpu.pipeline_mode<synchronous>, transform_indices = @transform_1, window_bounds = array<i64: 64, 256>}, {pipeline_mode = #tpu.pipeline_mode<synchronous>, transform_indices = @transform_2, window_bounds = array<i64: 1, 256>}, {transform_indices = @transform_3, window_bounds = array<i64: 16, 256>}]} {
    %c0 = arith.constant 0 : index
    %c0_0 = arith.constant 0 : index
    %0 = vector.load %arg1[%c0, %c0_0] : memref<16x64xf32, #tpu.memory_space<vmem>>, vector<16x64xf32>
    %1 = arith.truncf %0 : vector<16x64xf32> to vector<16x64xbf16>
    %c0_1 = arith.constant 0 : index
    %c0_2 = arith.constant 0 : index
    %2 = vector.load %arg2[%c0_1, %c0_2] : memref<64x256xbf16, #tpu.memory_space<vmem>>, vector<64x256xbf16>
    %cst = arith.constant dense<0.000000e+00> : vector<16x256xf32>
    %3 = tpu.matmul %1, %2, %cst {dimension_numbers = #tpu.dot_dimension_numbers<[1], [0], [0], [1], [0, 0, 1, 1], [], []>} : vector<16x64xbf16>, vector<64x256xbf16>, vector<16x256xf32> -> vector<16x256xf32>
    %c0_3 = arith.constant 0 : index
    %c0_4 = arith.constant 0 : index
    %4 = vector.load %arg3[%c0_3, %c0_4] : memref<1x256xf32, #tpu.memory_space<vmem>>, vector<1x256xf32>
    %5 = vector.broadcast %4 : vector<1x256xf32> to vector<16x256xf32>
    %6 = arith.addf %3, %5 : vector<16x256xf32>
    %c0_5 = arith.constant 0 : index
    %c0_6 = arith.constant 0 : index
    %7 = vector.load %arg4[%c0_5, %c0_6] : memref<16x256xf32, #tpu.memory_space<vmem>>, vector<16x256xf32>
    tpu.vector_store %arg4[%c0_5, %c0_6], %6 {strides = array<i32>} : memref<16x256xf32, #tpu.memory_space<vmem>>, vector<16x256xf32>,
    return
  }
  func.func @transform_0(%arg0: i32) -> (i32, i32) {
    %c0_i32 = arith.constant 0 : i32
    %c0_i32_0 = arith.constant 0 : i32
    return %arg0, %c0_i32 : i32, i32
  }
  func.func @transform_1(%arg0: i32) -> (i32, i32) {
    %c0_i32 = arith.constant 0 : i32
    %c0_i32_0 = arith.constant 0 : i32
    %c0_i32_1 = arith.constant 0 : i32
    return %c0_i32, %c0_i32_0 : i32, i32
  }
  func.func @transform_2(%arg0: i32) -> (i32, i32) {
    %c0_i32 = arith.constant 0 : i32
    %c0_i32_0 = arith.constant 0 : i32
    %c0_i32_1 = arith.constant 0 : i32
    return %c0_i32, %c0_i32_0 : i32, i32
  }
  func.func @transform_3(%arg0: i32) -> (i32, i32) {
    %c0_i32 = arith.constant 0 : i32
    %c0_i32_0 = arith.constant 0 : i32
    return %arg0, %c0_i32 : i32, i32
  }
}

module attributes {stable_mosaic.version = 11 : i64} {
  func.func @_matmul_bias_kernel(%arg0: i32, %arg1: memref<16x64xf32, #tpu.memory_space<vmem>>, %arg2: memref<64x128xbf16, #tpu.memory_space<vmem>>, %arg3: memref<1x128xf32, #tpu.memory_space<vmem>>, %arg4: memref<16x128xf32, #tpu.memory_space<vmem>>) attributes {dimension_semantics = [#tpu.dimension_semantics<parallel>], iteration_bounds = array<i64: 1>, scalar_prefetch = 0 : i64, scratch_operands = 0 : i64, tpu.core_type = #tpu.core_type<tc>, window_params = [{transform_indices = @transform_0, window_bounds = array<i64: 16, 64>}, {pipeline_mode = #tpu.pipeline_mode<synchronous>, transform_indices = @transform_1, window_bounds = array<i64: 64, 128>}, {pipeline_mode = #tpu.pipeline_mode<synchronous>, transform_indices = @transform_2, window_bounds = array<i64: 1, 128>}, {transform_indices = @transform_3, window_bounds = array<i64: 16, 128>}]} {
    %c0 = arith.constant 0 : index
    %c0_0 = arith.constant 0 : index
    %0 = vector.load %arg1[%c0, %c0_0] : memref<16x64xf32, #tpu.memory_space<vmem>>, vector<16x64xf32>
    %1 = arith.truncf %0 : vector<16x64xf32> to vector<16x64xbf16>
    %c0_1 = arith.constant 0 : index
    %c0_2 = arith.constant 0 : index
    %2 = vector.load %arg2[%c0_1, %c0_2] : memref<64x128xbf16, #tpu.memory_space<vmem>>, vector<64x128xbf16>
    %cst = arith.constant dense<0.000000e+00> : vector<16x128xf32>
    %3 = tpu.matmul %1, %2, %cst {dimension_numbers = #tpu.dot_dimension_numbers<[1], [0], [0], [1], [0, 0, 1, 1], [], []>} : vector<16x64xbf16>, vector<64x128xbf16>, vector<16x128xf32> -> vector<16x128xf32>
    %c0_3 = arith.constant 0 : index
    %c0_4 = arith.constant 0 : index
    %4 = vector.load %arg3[%c0_3, %c0_4] : memref<1x128xf32, #tpu.memory_space<vmem>>, vector<1x128xf32>
    %5 = vector.broadcast %4 : vector<1x128xf32> to vector<16x128xf32>
    %6 = arith.addf %3, %5 : vector<16x128xf32>
    %c0_5 = arith.constant 0 : index
    %c0_6 = arith.constant 0 : index
    %7 = vector.load %arg4[%c0_5, %c0_6] : memref<16x128xf32, #tpu.memory_space<vmem>>, vector<16x128xf32>
    tpu.vector_store %arg4[%c0_5, %c0_6], %6 {strides = array<i32>} : memref<16x128xf32, #tpu.memory_space<vmem>>, vector<16x128xf32>,
    return
  }
  func.func @transform_0(%arg0: i32) -> (i32, i32) {
    %c0_i32 = arith.constant 0 : i32
    %c0_i32_0 = arith.constant 0 : i32
    return %arg0, %c0_i32 : i32, i32
  }
  func.func @transform_1(%arg0: i32) -> (i32, i32) {
    %c0_i32 = arith.constant 0 : i32
    %c0_i32_0 = arith.constant 0 : i32
    %c0_i32_1 = arith.constant 0 : i32
    return %c0_i32, %c0_i32_0 : i32, i32
  }
  func.func @transform_2(%arg0: i32) -> (i32, i32) {
    %c0_i32 = arith.constant 0 : i32
    %c0_i32_0 = arith.constant 0 : i32
    %c0_i32_1 = arith.constant 0 : i32
    return %c0_i32, %c0_i32_0 : i32, i32
  }
  func.func @transform_3(%arg0: i32) -> (i32, i32) {
    %c0_i32 = arith.constant 0 : i32
    %c0_i32_0 = arith.constant 0 : i32
    return %arg0, %c0_i32 : i32, i32
  }
}

</mosaic_0001>

<bundles_post_ra>
// kernel: crnn_forward.11
= control target key start
LH: loop header
LB: loop body
LE: loop exit
PB: predicated region body
PF: predicated region fallthrough
CT: control target
= control target key end

     0   :  { %8 = vsyncpa [#allocation3], 0  ;;  %s361_s0 = inlined_call_operand.hbm [shape: f32[16,32], index: 0, kind: input, shape index: {}]   ;;  %s362_s1 = inlined_call_operand.hbm [shape: bf16[32,256], index: 1, kind: input, shape index: {}]   ;;  %s363_s2 = inlined_call_operand.hbm [shape: f32[1,256], index: 2, kind: input, shape index: {}]   ;;  %s364_s3 = inlined_call_operand.hbm [shape: f32[16,256], index: 3, kind: output, shape index: {}]  }
   0x1   :  { %9 = vsyncpa [#allocation6], 0 }
   0x2   :  { %10 = vsyncpa [#allocation4], 0  ;;  %s277_s12 = smov [#allocation5]   ;;  %s278_s14 = smov [#allocation2]  }
   0x3   :  { %s28_s13 = sshll.u32 %s277_s12, 4  ;;  %s16_s15 = sshll.u32 %s278_s14, 4  ;;  %s29_s13 = int_to_ptr.vmem [resolvable:$true] %s28_s13  ;;  %s306_s15 = int_to_ptr.vmem [resolvable:$true] %s16_s15 }
   0x4   :  { %s183_s18 = scalar_lea.hbm %s362_s1, 512 }
   0x5   :  { %p184_p0 = scmp.ne.s32.totalorder %s362_s1, %s183_s18  ;;  %p187_p1 = scmp.lt.u32.totalorder %s183_s18, %s362_s1 }
   0x7   :  { %p189_p2 = pnand %p187_p1, %p184_p0 }
   0x9   :  { %192 = shalt.err (!%p189_p2)
}
   0xa   :  { %s193_s23 = scalar_lea.vmem %s29_s13, 512  ;;  %p198_p4 = scmp.lt.s32.totalorder %s29_s13, %s29_s13 }
   0xb   :  { %p194_p3 = scmp.ne.s32.totalorder %s29_s13, %s193_s23  ;;  %p199_p5 = scmp.lt.s32.totalorder %s193_s23, %s193_s23 }
   0xd   :  { %p200_p6 = por %p199_p5, %p198_p4 }
   0xf   :  { %p201_p7 = pnand %p200_p6, %p194_p3 }
  0x11   :  { %204 = shalt.err (!%p201_p7)
}
  0x12   :  { %s279_s24 = smov 128   ;;  %s280_s25 = smov 8  }
  0x13   :  { %34 = dma.hbm_to_vmem [thread:$0]  %s362_s1, 512, %s29_s13, [#allocation6], %s279_s24, %s279_s24, %s280_s25  }
  0x14   :  { %s205_s30 = scalar_lea.hbm %s361_s0, 256 }
  0x15   :  { %p206_p8 = scmp.ne.s32.totalorder %s361_s0, %s205_s30  ;;  %p209_p9 = scmp.lt.u32.totalorder %s205_s30, %s361_s0 }
  0x17   :  { %p211_p10 = pnand %p209_p9, %p206_p8 }
  0x19   :  { %214 = shalt.err (!%p211_p10)
}
  0x1a   :  { %s215_s8 = scalar_lea.vmem %s306_s15, 256  ;;  %p220_p12 = scmp.lt.s32.totalorder %s306_s15, %s306_s15 }
  0x1b   :  { %p216_p11 = scmp.ne.s32.totalorder %s306_s15, %s215_s8  ;;  %p221_p13 = scmp.lt.s32.totalorder %s215_s8, %s215_s8 }
  0x1d   :  { %p222_p0 = por %p221_p13, %p220_p12 }
  0x1f   :  { %p223_p1 = pnand %p222_p0, %p216_p11 }
  0x21   :  { %226 = shalt.err (!%p223_p1)
}
  0x22   :  { %22 = dma.hbm_to_vmem [thread:$0]  %s361_s0, 256, %s306_s15, [#allocation3], %s279_s24, %s279_s24, %s280_s25  }
  0x23   :  { %s281_s10 = smov [#allocation7]   ;;  %s227_s14 = scalar_lea.hbm %s363_s2, 32 }
  0x24   :  { %s41_s11 = sshll.u32 %s281_s10, 4  ;;  %p228_p2 = scmp.ne.s32.totalorder %s363_s2, %s227_s14  ;;  %s42_s11 = int_to_ptr.vmem [resolvable:$true] %s41_s11 }
  0x25   :  { %p231_p3 = scmp.lt.u32.totalorder %s227_s14, %s363_s2 }
  0x27   :  { %p233_p4 = pnand %p231_p3, %p228_p2 }
  0x29   :  { %236 = shalt.err (!%p233_p4)
}
  0x2a   :  { %s237_s20 = scalar_lea.vmem %s42_s11, 32  ;;  %p242_p6 = scmp.lt.s32.totalorder %s42_s11, %s42_s11 }
  0x2b   :  { %p238_p5 = scmp.ne.s32.totalorder %s42_s11, %s237_s20  ;;  %p243_p7 = scmp.lt.s32.totalorder %s237_s20, %s237_s20 }
  0x2d   :  { %p244_p8 = por %p243_p7, %p242_p6 }
  0x2f   :  { %p245_p9 = pnand %p244_p8, %p238_p5 }
  0x31   :  { %248 = shalt.err (!%p245_p9)
}
  0x32   :  { %44 = dma.hbm_to_vmem [thread:$0]  %s363_s2, 32, %s42_s11, [#allocation6]  }
  0x33   :  { %271 = dma.done.wait [#allocation3], 256  }
  0x34   :  { %272 = vsyncadd [#allocation3], 4294967040 }
  0x35   :  { %273 = dma.done.wait [#allocation6], 544  }
  0x36   :  { %274 = vsyncadd [#allocation6], 4294966752  ;;  %v282_v0 = vmov 0   ;;  %v177_v1 = vld [vmem:[#allocation5 + $0x4] ss:$8 sps:$4 sm:$0xff]   ;;  %v55_v5 = vld [vmem:[#allocation2] sm:$0xff]  ;;  %v64_v8 = vlaneseq }
  0x37   :  { %130 = vmatprep.mubr.bf16.mxu0 %v282_v0  ;;  %v179_v2 = vld [vmem:[#allocation5] ss:$8 sps:$4 sm:$0xff]   ;;  %98 = vmatprep.subr.bf16.mxu0 %v177_v1  ;;  %v180_v3 = vld [vmem:[#allocation5 + $0x14] ss:$8 sps:$4 sm:$0xff]   ;;  %v182_v4 = vld [vmem:[#allocation5 + $0x10] ss:$8 sps:$4 sm:$0xff]  }
  0x38   :  { %99 = vmatpush1.bf16.msra.mxu0 %v179_v2  ;;  %v56_v6 = vld [vmem:[#allocation2 + $0x8] sm:$0xff]  ;;  %vm94_vm0 = vcmask 261120   ;;  %v65_v9 = vshrl.u32 %v64_v8, 7  ;;  %v62_v11 = vld [vmem:[#allocation7] sm:$0x3]  ;;  %s283_s2 = smov [#allocation8]  }
  0x39   :  { %100 = vmatprep.subr.bf16.mxu0 %v180_v3  ;;  %v57_v7 = vpack.c.bf16 %v56_v6, %v55_v5  ;;  %s150_s21 = sshll.u32 %s283_s2, 4  ;;  %s151_s21 = int_to_ptr.vmem [resolvable:$true] %s150_s21 }
  0x3a   :  { %v66_v10 = vsub.s32 0, %v65_v9  ;;  %v70_v12 = vsub.s32 1, %v65_v9  ;;  %s249_s22 = scalar_lea.vmem %s151_s21, 512  ;;  %p254_p11 = scmp.lt.s32.totalorder %s151_s21, %s151_s21 }
  0x3b   :  { %p250_p10 = scmp.ne.s32.totalorder %s151_s21, %s249_s22  ;;  %p255_p12 = scmp.lt.s32.totalorder %s249_s22, %s249_s22 }
  0x3c   :  { %101 = vmatpush1.bf16.msra.mxu0 %v182_v4  ;;  %v67_v13 = vrot.slane %v62_v11, %v66_v10  ;;  %v71_v14 = vrot.slane %v62_v11, %v70_v12 }
  0x3d   :  { %p256_p13 = por %p255_p12, %p254_p11 }
  0x3f   :  { %167 = vmatmul.mubr.msk.bf16.vlgmr.msra.gmra.mrb[0].mxu0 %vm94_vm0, %v57_v7  ;;  %p257_p0 = pnand %p256_p13, %p250_p10 }
 0x112   :  { %v132_v15 = vpop.f32.mrb[0].mxu0 }
 0x113   :  { %v133_v16 = vadd.f32 %v132_v15, %v67_v13  ;;  %v134_v17 = vpop.f32.mrb[1].mxu0 }
 0x114   :  { %v135_v18 = vadd.f32 %v134_v17, %v71_v14  ;;  %v136_v19 = vpop.f32.mrb[2].mxu0 }
 0x115   :  { %141 = vst [vmem:[#allocation8] sm:$0xff] %v133_v16  ;;  %v137_v20 = vadd.f32 %v136_v19, %v67_v13  ;;  %v138_v21 = vpop.f32.mrb[3].mxu0 }
 0x116   :  { %142 = vst [vmem:[#allocation8 + $0x8] sm:$0xff] %v135_v18  ;;  %v139_v22 = vadd.f32 %v138_v21, %v71_v14 }
 0x117   :  { %143 = vst [vmem:[#allocation8 + $0x10] sm:$0xff] %v137_v20 }
 0x118   :  { %144 = vst [vmem:[#allocation8 + $0x18] sm:$0xff] %v139_v22 }
 0x119   :  { %260 = shalt.err (!%p257_p0)
}
 0x11a   :  { %s261_s25 = scalar_lea.hbm %s364_s3, 512 }
 0x11b   :  { %p262_p1 = scmp.ne.s32.totalorder %s364_s3, %s261_s25  ;;  %p265_p2 = scmp.lt.u32.totalorder %s261_s25, %s364_s3 }
 0x11d   :  { %p267_p3 = pnand %p265_p2, %p262_p1 }
 0x11f   :  { %270 = shalt.err (!%p267_p3)
}
 0x120   :  { %s284_s30 = smov 256   ;;  %s285_s4 = smov 16  }
 0x121   :  { %156 = dma.vmem_to_hbm [thread:$0]  %s151_s21, 512, %s364_s3, [#allocation4], %s284_s30, %s284_s30, %s285_s4  }
 0x122   :  { %275 = dma.done.wait [#allocation4], 512  }
 0x123   :  { %276 = vsyncadd [#allocation4], 4294966784 }
 0x124   :  { %160 = vsyncpa [#allocation3], 1 }
 0x125   :  { %161 = vsyncpa [#allocation6], 1 }
 0x126   :  { %162 = vsyncpa [#allocation4], 1 }

// kernel: crnn_forward.9
= control target key start
LH: loop header
LB: loop body
LE: loop exit
PB: predicated region body
PF: predicated region fallthrough
CT: control target
= control target key end

     0   :  { %8 = vsyncpa [#allocation3], 0  ;;  %s3209_s0 = inlined_call_operand.hbm [shape: bf16[2,10,10,8], index: 0, kind: input, shape index: {}]   ;;  %s3210_s1 = inlined_call_operand.hbm [shape: bf16[72,16], index: 1, kind: input, shape index: {}]   ;;  %s3211_s2 = inlined_call_operand.hbm [shape: f32[1,16], index: 2, kind: input, shape index: {}]   ;;  %s3212_s3 = inlined_call_operand.hbm [shape: f32[2,4,8,16], index: 3, kind: output, shape index: {}]  }
   0x1   :  { %10 = vsyncpa [#allocation3 + $0x1], 0 }
   0x2   :  { %11 = vsyncpa [#allocation6], 0 }
   0x3   :  { %12 = vsyncpa [#allocation4], 0 }
   0x4   :  { %14 = vsyncpa [#allocation4 + $0x1], 0  ;;  %s2510_s12 = smov 0   ;;  %s2512_s13 = smov 0  }
   0x5   :  { %s2514_s14 = smov 0   ;;  %s2516_s15 = smov 0  }
   0x6 LB: > { %s2531_s16 = sadd.s32 4294967295, %s2480_s15   ;;  %s1850_s17 = sadd.s32 4294967294, %s2480_s15   ;;  %s2480_s15 = sphi %s2516_s15, %s3236_s15   ;;  %s2476_s14 = sphi %s2514_s14, %s3235_s14   ;;  %s2472_s13 = sphi %s2512_s13, %s3234_s13   ;;  %s2468_s12 = sphi %s2510_s12, %s3233_s12  }
   0x7   : > { %p40_p0 = scmp.ne.s32.totalorder %s2472_s13, %s2468_s12  ;;  %p3213_p1 = scmp.eq.s32.totalorder %s2531_s16, 0 }
   0x8   : > { %p112_p3 = scmp.eq.s32.totalorder %s1850_s17, 1  ;;  %p1851_p5 = scmp.ge.s32.totalorder %s2480_s15, 1 }
   0x9   : > { %p2540_p4 = por %p3213_p1, %p40_p0  ;;  %p119_p7 = scmp.lt.s32.totalorder %s2480_s15, 3 }
   0xa   : > { %p2545_p6 = por %p112_p3, %p40_p0  ;;  %s2482_s21 = smov [#allocation5]  }
   0xb   : > { %s3216_s18 = scalar_select %p2540_p4, 1, 0 }
   0xc   : > { %s3217_s19 = scalar_select %p2545_p6, 1, 0 }
   0xd   : > { %p2550_p8 = pnand %p1851_p5, %p119_p7  ;;  %s131_s22 = sshll.u32 %s2482_s21, 4  ;;  %s2554_s22 = int_to_ptr.vmem [resolvable:$true] %s131_s22 }
   0xe   : > { %s2483_s24 = smov [#allocation7]   ;;  %s2324_s28 = scalar_lea.hbm %s3210_s1, 576 }
   0xf   : > { %p2253_p9 = pneg %p2550_p8  ;;  %s145_s25 = sshll.u32 %s2483_s24, 4  ;;  %s2565_s25 = int_to_ptr.vmem [resolvable:$true] %s145_s25 }
  0x10   : > { %p2325_p12 = scmp.ne.s32.totalorder %s3210_s1, %s2324_s28  ;;  %p2331_p5 = scmp.lt.u32.totalorder %s2324_s28, %s3210_s1 }
  0x11   : > { %p2561_p11 = pnand %p2253_p9, %p3213_p1 }
  0x13   : > { %p2326_p13 = pneg %p2561_p11 }
  0x15   : > { %p2327_p0 = pnand %p2326_p13, %p2325_p12 }
  0x17   : > { %p2328_p3 = pneg %p2327_p0 }
  0x19   : > { %p2333_p7 = pnand %p2331_p5, %p2328_p3 }
  0x1b   : > { %2336 = shalt.err (!%p2333_p7)
}
  0x1c   : > { %s2337_s6 = scalar_lea.vmem %s2554_s22, 576  ;;  %p2345_p2 = scmp.lt.s32.totalorder %s2554_s22, %s2554_s22 }
  0x1d   : > { %p2338_p9 = scmp.ne.s32.totalorder %s2554_s22, %s2337_s6  ;;  %p2346_p12 = scmp.lt.s32.totalorder %s2337_s6, %s2337_s6 }
  0x1f   : > { %p2340_p10 = pnand %p2338_p9, %p2326_p13  ;;  %p2347_p0 = por %p2346_p12, %p2345_p2 }
  0x21   : > { %p2341_p1 = pneg %p2340_p10 }
  0x23   : > { %p2348_p6 = pnand %p2347_p0, %p2341_p1 }
  0x25   : > { %2351 = shalt.err (!%p2348_p6)
}
  0x26   : > { %s2484_s7 = smov 64   ;;  %s2485_s8 = smov 4  }
  0x27   : > { %2256 = dma.hbm_to_vmem [thread:$0]  (!%p2561_p11), %s3210_s1, 576, %s2554_s22, [#allocation6], %s2484_s7, %s2484_s7, %s2485_s8  }
  0x28   : > { %s2352_s21 = scalar_lea.hbm %s3211_s2, 16 }
  0x29   : > { %p2353_p1 = scmp.ne.s32.totalorder %s3211_s2, %s2352_s21  ;;  %p2359_p10 = scmp.lt.u32.totalorder %s2352_s21, %s3211_s2 }
  0x2b   : > { %p2355_p2 = pnand %p2353_p1, %p2326_p13 }
  0x2d   : > { %p2356_p6 = pneg %p2355_p2 }
  0x2f   : > { %p2361_p3 = pnand %p2359_p10, %p2356_p6 }
  0x31   : > { %2364 = shalt.err (!%p2361_p3)
}
  0x32   : > { %s2365_s22 = scalar_lea.vmem %s2565_s25, 16  ;;  %s2372_s29 = scalar_lea.vmem %s2565_s25, 32 }
  0x33   : > { %p2366_p5 = scmp.ne.s32.totalorder %s2565_s25, %s2365_s22  ;;  %p2373_p12 = scmp.lt.s32.totalorder %s2565_s25, %s2565_s25 }
  0x34   : > { %p2374_p0 = scmp.lt.s32.totalorder %s2372_s29, %s2365_s22 }
  0x35   : > { %p2368_p7 = pnand %p2366_p5, %p2326_p13 }
  0x36   : > { %p2375_p1 = por %p2374_p0, %p2373_p12 }
  0x37   : > { %p2369_p9 = pneg %p2368_p7 }
  0x39   : > { %p2376_p2 = pnand %p2375_p1, %p2369_p9 }
  0x3b   : > { %2379 = shalt.err (!%p2376_p2)
}
  0x3c   : > { %2259 = dma.hbm_to_vmem [thread:$0]  (!%p2561_p11), %s3211_s2, 16, %s2565_s25, [#allocation6]  }
  0x3d   : > { %s2624_s5 = sadd.s32 1, %s2480_s15   ;;  %s27_s23 = sadd.s32 1, %s2476_s14 }
  0x3e   : > { %s24_s6 = ssub.s32 %s2480_s15, %s2624_s5  ;;  %p34_p13 = scmp.ne.s32.totalorder %s2476_s14, %s2472_s13 }
  0x3f   : > { %p25_p6 = scmp.eq.s32.totalorder %s24_s6, 0  ;;  %p35_p10 = scmp.eq.s32.totalorder %s2480_s15, 0 }
  0x40   : > { %p3220_p3 = scmp.eq.s32.totalorder %s2531_s16, 1  ;;  %p2270_p7 = scmp.lt.s32.totalorder %s2480_s15, 2 }
  0x41   : > { %s2640_s10 = scalar_select %p25_p6, %s2476_s14, %s27_s23  }
  0x42   : > { %p2634_p5 = por %p3220_p3, %p34_p13  ;;  %p36_p9 = por %p35_p10, %p34_p13 }
  0x43   : > { %s156_s11 = sand.u32 1, %s2476_s14   ;;  %s2239_s25 = smul.u32 1280, %s2480_s15 }
  0x44   : > { %s3221_s9 = scalar_select %p2634_p5, 1, 0 }
  0x45   : > { %s2238_s17 = smul.u32 80, %s156_s11  ;;  %p2644_p11 = pnand %p2270_p7, %p36_p9 }
  0x46   : > { %s2651_s27 = scalar_lea.hbm %s3209_s0, %s2239_s25  ;;  %s2655_s29 = scalar_lea.sflag [#allocation3], %s156_s11 }
  0x47   : > { %s160_s28 = scalar_lea.vmem [#allocation2], %s2238_s17  ;;  %s2380_s30 = scalar_lea.hbm %s2651_s27, 1280 }
  0x48   : > { %s167_s22 = sshll.u32 %s160_s28, 4  ;;  %p2381_p12 = scmp.ne.s32.totalorder %s2651_s27, %s2380_s30  ;;  %s2653_s22 = int_to_ptr.vmem [resolvable:$true] %s167_s22 }
  0x49   : > { %p2382_p0 = pneg %p2644_p11  ;;  %s2385_s6 = scalar_lea.hbm %s3209_s0, 2560 }
  0x4a   : > { %p2386_p13 = scmp.lt.u32.totalorder %s2651_s27, %s3209_s0  ;;  %p2387_p6 = scmp.lt.u32.totalorder %s2385_s6, %s2380_s30 }
  0x4b   : > { %p2383_p1 = pnand %p2382_p0, %p2381_p12  ;;  %p2389_p3 = scmp.lt.u32.totalorder %s2380_s30, %s2651_s27 }
  0x4c   : > { %p2388_p10 = por %p2387_p6, %p2386_p13 }
  0x4d   : > { %p2384_p2 = pneg %p2383_p1 }
  0x4e   : > { %p2390_p7 = por %p2389_p3, %p2388_p10 }
  0x50   : > { %p2391_p9 = pnand %p2390_p7, %p2384_p2 }
  0x52   : > { %2394 = shalt.err (!%p2391_p9)
}
  0x53   : > { %s2395_s11 = scalar_lea.vmem %s2653_s22, 1280  ;;  %s2486_s17 = smov [#allocation2]  }
  0x54   : > { %p2396_p12 = scmp.ne.s32.totalorder %s2653_s22, %s2395_s11  ;;  %s2400_s26 = sshll.u32 %s2486_s17, 4  ;;  %s2401_s26 = int_to_ptr.vmem [resolvable:$false] %s2400_s26 }
  0x55   : > { %s2402_s28 = scalar_lea.vmem %s2401_s26, 2560  ;;  %p2403_p4 = scmp.lt.s32.totalorder %s2653_s22, %s2401_s26 }
  0x56   : > { %p2398_p1 = pnand %p2396_p12, %p2382_p0  ;;  %p2404_p13 = scmp.lt.s32.totalorder %s2402_s28, %s2395_s11 }
  0x58   : > { %p2399_p5 = pneg %p2398_p1  ;;  %p2405_p6 = por %p2404_p13, %p2403_p4 }
  0x5a   : > { %p2406_p10 = pnand %p2405_p6, %p2399_p5 }
  0x5c   : > { %2409 = shalt.err (!%p2406_p10)
}
  0x5d   : > { %2263 = dma.hbm_to_vmem [thread:$0]  (!%p2644_p11), %s2651_s27, 1280, %s2653_s22, %s2655_s29, %s2484_s7, %s2484_s7, %s2485_s8  }
  0x5e   : > { %179 = sbr.rel (%p2550_p8) target bundleno = 443 (0x1bb), region = 32  ;;  %s2689_s30 = sand.u32 (!%p2550_p8), 1, %s2472_s13  }
  0x5f   : > { %s2240_s4 = smul.u32 (!%p2550_p8), 80, %s2689_s30  ;;  %s182_s23 = scalar_lea.sflag (!%p2550_p8), [#allocation3], %s2689_s30 }
  0x60   : > { %p3223_p4 = scmp.ne.s32.totalorder (!%p2550_p8), %s3216_s18, 0 }
  0x61   : > { %s2693_s6 = scalar_lea.vmem (!%p2550_p8), [#allocation2], %s2240_s4 }
  0x65   : > { %2455 = dma.done.wait (%p3223_p4), %s182_s23, 1280  }
  0x66   : > { %2457 = vsyncadd (%p3223_p4), %s182_s23, 4294966016  ;;  %p3224_p5 = scmp.eq.s32.totalorder %s2531_s16, 0 }
  0x68   : > { %2459 = dma.done.wait (%p3224_p5), [#allocation6], 592   ;;  %p3225_p8 = pmov %p3224_p5 }
  0x69   : > { %vm382_vm0 = vcmask 1043456   ;;  %vm242_vm1 = vsmask.f32 3328  ;;  %v218_v0 = vld [vmem:[#allocation5 + $0x4] sm:$0xf]  ;;  %vm369_vm4 = vcmask 64512  }
  0x6a   : > { %2461 = vsyncadd (%p3225_p8), [#allocation6], 4294966704  ;;  %v2703_v1 = vld [vmem:[#allocation5 + $0x10] sm:$0xf]  ;;  %2228 = vmatprep.subr.msk.bf16.mxu1 %vm382_vm0, %v218_v0  ;;  %v384_v3 = vsel %vm382_vm0, %v218_v0, 0  ;;  %vm575_vm5 = vcmask 1042432  }
  0x6b   : > { %v2706_v2 = vld [vmem:[%s2693_s6] sm:$0xf]  ;;  %2232 = vmatprep.subr.msk.bf16.mxu0 %vm382_vm0, %v2703_v1  ;;  %v2714_v4 = vsel %vm382_vm0, %v2703_v1, 0  ;;  %v2717_v5 = vld [vmem:[%s2693_s6 + $0x8] sm:$0xf]  ;;  %2073 = vmatpush3.bf16.msra.mxu1 %v384_v3  ;;  %vm576_vm6 = vcmask 1046532  }
  0x6c   : > { %v2720_v6 = vld [vmem:[%s2693_s6 + $0x4] sm:$0x1]  ;;  %2113 = vmatpush3.bf16.msra.mxu0 %v2714_v4  ;;  %v2724_v7 = vld [vmem:[%s2693_s6 + $0xc] sm:$0x1]  ;;  %v246_v8 = vshrl.u32 %v2706_v2, 16  ;;  %v249_v9 = vshll.u32 %v2706_v2, 16  ;;  %vm2856_vm7 = vmor %vm575_vm5, %vm576_vm6 }
  0x6d   : > { %v255_v10 = vshll.u32 %v2720_v6, 16  ;;  %v260_v11 = vshrl.u32 %v2717_v5, 16  ;;  %vm243_vm2 = vsmask.f32 7440  ;;  %v263_v12 = vshll.u32 %v2717_v5, 16  ;;  %s1859_s18 = sshll.u32 %s2689_s30, 5 }
  0x6e   : > { %v269_v13 = vshll.u32 %v2724_v7, 16  ;;  %v2732_v14 = vld [vmem:[#allocation5] sm:$0xf]  ;;  %v248_v15 = vrot.slane %v246_v8, 4  ;;  %v251_v16 = vrot.slane %v249_v9, 5  ;;  %vm2747_vm3 = vmor %vm242_vm1, %vm243_vm2  ;;  %vm1739_vm8 = vcmask 130048  }
  0x6f   : > { %v257_v17 = vrot.slane %v255_v10, 5  ;;  %v262_v18 = vrot.slane %v260_v11, 4  ;;  %2229 = vmatprep.subr.msk.bf16.mxu1 %vm382_vm0, %v2732_v14  ;;  %v1908_v19 = vld [vmem:[%s2693_s6 + $0x8] sm:$0xf]  ;;  %v265_v20 = vrot.slane %v263_v12, 5  ;;  %s215_s20 = scalar_lea.vmem [#allocation8], %s1859_s18 }
  0x70   : > { %v271_v21 = vrot.slane %v269_v13, 5  ;;  %v2738_v22 = vld [vmem:[%s2693_s6 + $0xc] sm:$0x1]  ;;  %v1910_v23 = vld [vmem:[%s2693_s6 + $0x10] sm:$0xf]  ;;  %v252_v24 = vor.u32 %v251_v16, %v248_v15  ;;  %v844_v26 = vshrl.u32 %v1908_v19, 16 }
  0x71   : > { %v2742_v25 = vld [vmem:[%s2693_s6 + $0x14] sm:$0x1]  ;;  %v847_v27 = vshll.u32 %v1908_v19, 16  ;;  %v853_v28 = vshll.u32 %v2738_v22, 16  ;;  %v266_v30 = vor.u32 %v265_v20, %v262_v18  ;;  %v858_v31 = vshrl.u32 %v1910_v23, 16  ;;  %s2026_s7 = sshll.u32 %s2531_s16, 9 }
  0x72   : > { %v861_v32 = vshll.u32 %v1910_v23, 16  ;;  %v867_v33 = vshll.u32 %v2742_v25, 16  ;;  %v2752_v34 = vld [vmem:[#allocation5 + $0x14] sm:$0xf]  ;;  %v253_v35 = vrot.slane %v252_v24, 4  ;;  %v846_v36 = vrot.slane %v844_v26, 4  ;;  %s3161_s22 = scalar_lea.hbm %s3212_s3, %s2026_s7 }
  0x73   : > { %v849_v37 = vrot.slane %v847_v27, 5  ;;  %2234 = vmatprep.subr.msk.bf16.mxu0 %vm382_vm0, %v2752_v34  ;;  %v2757_v38 = vld [vmem:[%s2693_s6 + $0x10] sm:$0xf]  ;;  %v267_v39 = vrot.slane %v266_v30, 4  ;;  %v855_v40 = vrot.slane %v853_v28, 5  ;;  %v860_v41 = vrot.slane %v858_v31, 4 }
  0x74   : > { %v863_v42 = vrot.slane %v861_v32, 5  ;;  %v2760_v43 = vld [vmem:[%s2693_s6 + $0x18] sm:$0xf]  ;;  %v258_v44 = vsel %vm2747_vm3, %v253_v35, %v257_v17  ;;  %v869_v46 = vrot.slane %v867_v33, 5  ;;  %v1081_v47 = vrot.slane %v2738_v22, 5  ;;  %s1758_s8 = sshll.u32 %s215_s20, 4  ;;  %s3163_s8 = int_to_ptr.vmem [resolvable:$true] %s1758_s8 }
  0x75   : > { %v850_v45 = vor.u32 %v849_v37, %v846_v36  ;;  %v2766_v48 = vld [vmem:[%s2693_s6 + $0x14] sm:$0x1]  ;;  %v272_v49 = vsel %vm2747_vm3, %v267_v39, %v271_v21  ;;  %v2771_v51 = vld [vmem:[%s2693_s6 + $0x1c] sm:$0x1]  ;;  %v274_v52 = vshrl.u32 %v2757_v38, 16  ;;  %v277_v53 = vshll.u32 %v2757_v38, 16 }
  0x76   : > { %v864_v50 = vor.u32 %v863_v42, %v860_v41  ;;  %v1860_v54 = vcombine.low %v258_v44, %v272_v49  ;;  %v283_v56 = vshll.u32 %v2766_v48, 16  ;;  %v288_v57 = vshrl.u32 %v2760_v43, 16  ;;  %v1912_v3 = vld [vmem:[%s2693_s6 + $0x18] sm:$0xf]  ;;  %v2784_v8 = vld [vmem:[%s2693_s6 + $0x1c] sm:$0x1] }
  0x77   : > { %v851_v55 = vrot.slane %v850_v45, 4  ;;  %v276_v59 = vrot.slane %v274_v52, 4  ;;  %v279_v60 = vrot.slane %v277_v53, 5  ;;  %v291_v61 = vshll.u32 %v2760_v43, 16  ;;  %v1914_v13 = vld [vmem:[%s2693_s6 + $0x20] sm:$0xf] }
  0x78   : > { %v865_v58 = vrot.slane %v864_v50, 4  ;;  %2074 = vmatprep.mubr.msk.bf16.mxu1 %vm369_vm4, %v1860_v54  ;;  %v290_v63 = vrot.slane %v288_v57, 4  ;;  %v297_v0 = vshll.u32 %v2771_v51, 16  ;;  %v285_v11 = vrot.slane %v283_v56, 5  ;;  %v2790_v15 = vld [vmem:[%s2693_s6 + $0x24] sm:$0x1] }
  0x79   : > { %v856_v62 = vsel %vm2747_vm3, %v851_v55, %v855_v40  ;;  %v280_v10 = vor.u32 %v279_v60, %v276_v59  ;;  %v293_v12 = vrot.slane %v291_v61, 5  ;;  %v1085_v17 = vrot.slane %v2742_v25, 5  ;;  %v2799_v31 = vld [vmem:[%s2693_s6 + $0x20] sm:$0xf]  ;;  %v2804_v36 = vld [vmem:[%s2693_s6 + $0x28] sm:$0xf] }
  0x7a   : > { %v870_v9 = vsel %vm2747_vm3, %v865_v58, %v869_v46  ;;  %v299_v18 = vrot.slane %v297_v0, 5  ;;  %v484_v19 = vsel %vm382_vm0, %v2732_v14, 0  ;;  %v872_v23 = vshrl.u32 %v1912_v3, 16  ;;  %v2807_v42 = vld [vmem:[%s2693_s6 + $0x24] sm:$0x1]  ;;  %s1745_s16 = scalar_lea.sflag [#allocation4], %s2689_s30 }
  0x7b   : > { %v1924_v16 = vcombine.low %v856_v62, %v870_v9  ;;  %v281_v20 = vrot.slane %v280_v10, 4  ;;  %v294_v21 = vor.u32 %v293_v12, %v290_v63  ;;  %v875_v24 = vshll.u32 %v1912_v3, 16  ;;  %v2814_v50 = vld [vmem:[%s2693_s6 + $0x2c] sm:$0x1]  ;;  %v2820_v56 = vld [vmem:[%s2693_s6 + $0x30] sm:$0xf] }
  0x7c   : > { %v881_v26 = vshll.u32 %v2784_v8, 16  ;;  %v886_v27 = vshrl.u32 %v1914_v13, 16  ;;  %v889_v28 = vshll.u32 %v1914_v13, 16  ;;  %v895_v30 = vshll.u32 %v2790_v15, 16  ;;  %v2826_v61 = vld [vmem:[%s2693_s6 + $0x34] sm:$0x1] }
  0x7d   : > { %2114 = vmatprep.mubr.msk.bf16.mxu0 %vm369_vm4, %v1924_v16  ;;  %v286_v14 = vsel %vm2747_vm3, %v281_v20, %v285_v11  ;;  %v295_v32 = vrot.slane %v294_v21, 4  ;;  %v874_v33 = vrot.slane %v872_v23, 4  ;;  %v877_v35 = vrot.slane %v875_v24, 5  ;;  %v2831_v3 = vld [vmem:[#allocation5 + $0x8] sm:$0xf]  ;;  %s2410_s29 = scalar_lea.vmem %s3163_s8, 512 }
  0x7e   : > { %v883_v37 = vrot.slane %v881_v26, 5  ;;  %v888_v39 = vrot.slane %v886_v27, 4  ;;  %v891_v40 = vrot.slane %v889_v28, 5  ;;  %v897_v41 = vrot.slane %v895_v30, 5  ;;  %v2836_v13 = vld [vmem:[%s2693_s6 + $0x38] sm:$0xf]  ;;  %p2411_p11 = scmp.ne.s32.totalorder %s3163_s8, %s2410_s29 }
  0x7f   : > { %v300_v44 = vsel %vm2747_vm3, %v295_v32, %v299_v18  ;;  %v878_v45 = vor.u32 %v877_v35, %v874_v33  ;;  %v1089_v46 = vrot.slane %v2784_v8, 5  ;;  %v1093_v49 = vrot.slane %v2790_v15, 5  ;;  %v2841_v21 = vld [vmem:[%s2693_s6 + $0x3c] sm:$0x1]  ;;  %v1932_v28 = vld [vmem:[%s2693_s6 + $0x8] sm:$0xe] }
  0x80   : > { %v1861_v52 = vcombine.low %v286_v14, %v300_v44  ;;  %v892_v53 = vor.u32 %v891_v40, %v888_v39  ;;  %v1136_v54 = vsel %vm382_vm0, %v2752_v34, 0  ;;  %v302_v55 = vshrl.u32 %v2799_v31, 16  ;;  %v1933_v30 = vld [vmem:[%s2693_s6 + $0x10] sm:$0xe]  ;;  %v2898_v8 = vld [vmem:[%s2693_s6 + $0x3c] sm:$0x1] }
  0x81   : > { %v879_v57 = vrot.slane %v878_v45, 4  ;;  %v305_v58 = vshll.u32 %v2799_v31, 16  ;;  %v311_v59 = vshll.u32 %v2807_v42, 16  ;;  %v316_v60 = vshrl.u32 %v2804_v36, 16  ;;  %v2020_v45 = vld [vmem:[#allocation7] ss:$0 sm:$0xff] }
  0x82   : > { %2075 = vmatmul.mubr.msk.bf16.vlgmr.msra.gmra.mrb[0].mxu1 %vm369_vm4, %v1861_v52  ;;  %v893_v62 = vrot.slane %v892_v53, 4  ;;  %v304_v63 = vrot.slane %v302_v55, 4  ;;  %v319_v34 = vshll.u32 %v2804_v36, 16  ;;  %v325_v0 = vshll.u32 %v2814_v50, 16  ;;  %v1934_v52 = vld [vmem:[%s2693_s6 + $0x18] sm:$0xe] }
  0x83   : > { %2083 = vmatpush3.bf16.msra.mxu1 %v484_v19  ;;  %v884_v9 = vsel %vm2747_vm3, %v879_v57, %v883_v37  ;;  %v307_v10 = vrot.slane %v305_v58, 5  ;;  %v313_v11 = vrot.slane %v311_v59, 5  ;;  %v318_v12 = vrot.slane %v316_v60, 4  ;;  %v223_v37 = vld [vmem:[#allocation5 + $0x18] sm:$0xf]  ;;  %p3230_p0 = scmp.ne.s32.totalorder %s3221_s9, 0 }
  0x84   : > { %v898_v16 = vsel %vm2747_vm3, %v893_v62, %v897_v41  ;;  %v321_v18 = vrot.slane %v319_v34, 5  ;;  %v327_v20 = vrot.slane %v325_v0, 5  ;;  %v330_v23 = vshrl.u32 %v2820_v56, 16  ;;  %2230 = vmatprep.subr.msk.bf16.mxu1 %vm382_vm0, %v2831_v3  ;;  %v1935_v59 = vld [vmem:[%s2693_s6 + $0x20] sm:$0xe]  ;;  %s2487_s25 = smov [#allocation8]  }
  0x85   : > { %v1925_v19 = vcombine.low %v884_v9, %v898_v16  ;;  %v308_v24 = vor.u32 %v307_v10, %v304_v63  ;;  %v333_v26 = vshll.u32 %v2820_v56, 16  ;;  %v339_v27 = vshll.u32 %v2826_v61, 16  ;;  %v2866_v0 = vld [vmem:[%s2693_s6 + $0x2c] sm:$0x1]  ;;  %p2412_p2 = pnand %p2411_p11, %p3230_p0  ;;  %s2414_s24 = sshll.u32 %s2487_s25, 4  ;;  %s2415_s24 = int_to_ptr.vmem [resolvable:$false] %s2414_s24 }
  0x86   : > { %v322_v14 = vor.u32 %v321_v18, %v318_v12  ;;  %v332_v32 = vrot.slane %v330_v23, 4  ;;  %v344_v33 = vshrl.u32 %v2836_v13, 16  ;;  %v347_v35 = vshll.u32 %v2836_v13, 16  ;;  %s2416_s11 = scalar_lea.vmem %s2415_s24, 1024  ;;  %p2417_p7 = scmp.lt.s32.totalorder %s3163_s8, %s2415_s24 }
  0x87   : > { %2115 = vmatmul.mubr.msk.bf16.vlgmr.msra.gmra.mrb[0].mxu0 %vm369_vm4, %v1925_v19  ;;  %v309_v39 = vrot.slane %v308_v24, 4  ;;  %v335_v40 = vrot.slane %v333_v26, 5  ;;  %v341_v41 = vrot.slane %v339_v27, 5  ;;  %v353_v44 = vshll.u32 %v2841_v21, 16  ;;  %v1936_v19 = vld [vmem:[%s2693_s6 + $0x28] sm:$0xe]  ;;  %p2413_p3 = pneg %p2412_p2  ;;  %p2418_p9 = scmp.lt.s32.totalorder %s2416_s11, %s2410_s29 }
  0x88   : > { %2123 = vmatpush3.bf16.msra.mxu0 %v1136_v54  ;;  %v323_v53 = vrot.slane %v322_v14, 4  ;;  %v346_v55 = vrot.slane %v344_v33, 4  ;;  %v349_v57 = vrot.slane %v347_v35, 5  ;;  %v1940_v58 = vrot.slane %v1932_v28, 9  ;;  %v1937_v27 = vld [vmem:[%s2693_s6 + $0x30] sm:$0xe] }
  0x89   : > { %v314_v60 = vsel %vm2747_vm3, %v309_v39, %v313_v11  ;;  %v336_v62 = vor.u32 %v335_v40, %v332_v32  ;;  %v355_v63 = vrot.slane %v353_v44, 5  ;;  %v1941_v34 = vrot.slane %v1933_v30, 9  ;;  %2235 = vmatprep.subr.msk.bf16.mxu0 %vm382_vm0, %v223_v37  ;;  %v2875_v11 = vld [vmem:[%s2693_s6 + $0x34] sm:$0x1]  ;;  %v2901_v28 = vld [vmem:[%s2693_s6 + $0x44] sm:$0x1]  ;;  %p2419_p12 = por %p2418_p9, %p2417_p7 }
  0x8a   : > { %v328_v54 = vsel %vm2747_vm3, %v323_v53, %v327_v20  ;;  %v350_v9 = vor.u32 %v349_v57, %v346_v55  ;;  %v1082_v10 = vsel %vm2856_vm7, %v1940_v58, %v1081_v47  ;;  %v1942_v12 = vrot.slane %v1934_v52, 9  ;;  %v1939_v32 = vld [vmem:[%s2693_s6 + $0x40] sm:$0xe]  ;;  %v552_v40 = vld [vmem:[%s2693_s6 + $0x8] sm:$0xe] }
  0x8b   : > { %v1862_v16 = vcombine.low %v314_v60, %v328_v54  ;;  %v337_v18 = vrot.slane %v336_v62, 4  ;;  %v1086_v23 = vsel %vm2856_vm7, %v1941_v34, %v1085_v17  ;;  %v1943_v20 = vrot.slane %v1935_v59, 9  ;;  %v551_v39 = vld [vmem:[%s2693_s6] sm:$0xe]  ;;  %v553_v53 = vld [vmem:[%s2693_s6 + $0x10] sm:$0xe]  ;;  %p2420_p1 = pnand %p2419_p12, %p2413_p3 }
  0x8c   : > { %v580_v22 = vrot.slane %v2720_v6, 5  ;;  %v351_v24 = vrot.slane %v350_v9, 4  ;;  %v1948_v47 = vcombine.low %v1082_v10, %v1086_v23  ;;  %v1090_v26 = vsel %vm2856_vm7, %v1942_v12, %v1089_v46  ;;  %v1938_v46 = vld [vmem:[%s2693_s6 + $0x38] sm:$0xe]  ;;  %v220_v10 = vld [vmem:[#allocation5 + $0xc] sm:$0xf] }
  0x8d   : > { %2078 = vmatprep.mubr.msk.bf16.mxu1 %vm369_vm4, %v1862_v16  ;;  %v342_v25 = vsel %vm2747_vm3, %v337_v18, %v341_v41  ;;  %v1094_v6 = vsel %vm2856_vm7, %v1943_v20, %v1093_v49  ;;  %v1868_v17 = vcombine.low %v2706_v2, %v2717_v5  ;;  %v1253_v15 = vsel %vm382_vm0, %v223_v37, 0  ;;  %v554_v58 = vld [vmem:[%s2693_s6 + $0x18] sm:$0xe]  ;;  %v2940_v20 = vld [vmem:[%s2693_s6 + $0x20] sm:$0xe] }
  0x8e   : > { %v356_v30 = vsel %vm2747_vm3, %v351_v24, %v355_v63  ;;  %2124 = vmatprep.mubr.msk.bf16.mxu0 %vm369_vm4, %v1948_v47  ;;  %v1944_v14 = vrot.slane %v1936_v19, 9  ;;  %v1097_v49 = vrot.slane %v2866_v0, 5  ;;  %v1949_v2 = vcombine.low %v1090_v26, %v1094_v6  ;;  %v224_v63 = vld [vmem:[#allocation5 + $0x1c] sm:$0xf]  ;;  %v2316_v19 = vld [vmem:[%s2693_s6 + $0x10] ss:$8 sps:$4 sm:$0xff]  }
  0x8f   : > { %v1863_v33 = vcombine.low %v342_v25, %v356_v30  ;;  %v1945_v5 = vrot.slane %v1937_v27, 9  ;;  %v1101_v35 = vrot.slane %v2875_v11, 5  ;;  %v1946_v44 = vrot.slane %v1938_v46, 9  ;;  %v2961_v26 = vld [vmem:[%s2693_s6 + $0x30] sm:$0xe] }
  0x90   : > { %v1098_v41 = vsel %vm2856_vm7, %v1944_v14, %v1097_v49  ;;  %v1105_v52 = vrot.slane %v2898_v8, 5  ;;  %v1947_v55 = vrot.slane %v1939_v32, 9  ;;  %v1109_v57 = vrot.slane %v2901_v28, 5  ;;  %v1972_v27 = vld [vmem:[%s2693_s6 + $0x10] sm:$0xf] }
  0x91   : > { %2079 = vmatmul.mubr.msk.bf16.gmra.mrb[4].mxu1 %vm369_vm4, %v1863_v33  ;;  %v1102_v37 = vsel %vm2856_vm7, %v1945_v5, %v1101_v35  ;;  %v584_v59 = vrot.slane %v2724_v7, 5  ;;  %v588_v60 = vrot.slane %v2766_v48, 5  ;;  %v592_v34 = vrot.slane %v2771_v51, 5  ;;  %v2965_v25 = vld [vmem:[%s2693_s6 + $0x14] sm:$0x1] }
  0x92   : > { %2084 = vmatprep.mubr.msk.bf16.mxu1 %vm369_vm4, %v1868_v17  ;;  %v1950_v62 = vcombine.low %v1098_v41, %v1102_v37  ;;  %v1106_v54 = vsel %vm2856_vm7, %v1946_v44, %v1105_v52  ;;  %v1876_v9 = vrot.slane %v551_v39, 9  ;;  %v1110_v7 = vsel %vm2856_vm7, %v1947_v55, %v1109_v57  ;;  %v558_v30 = vld [vmem:[%s2693_s6 + $0x38] sm:$0xe]  ;;  %v2983_v14 = vld [vmem:[%s2693_s6 + $0x1c] sm:$0x1] }
  0x93   : > { %2125 = vmatmul.mubr.msk.bf16.vlgmr.msra.gmra.mrb[0].mxu0 %vm369_vm4, %v1949_v2  ;;  %v1877_v48 = vrot.slane %v552_v40, 9  ;;  %v1878_v12 = vrot.slane %v553_v53, 9  ;;  %v1879_v51 = vrot.slane %v554_v58, 9  ;;  %v1869_v16 = vcombine.low %v2757_v38, %v2760_v43  ;;  %v1976_v35 = vld [vmem:[%s2693_s6 + $0x20] sm:$0xf] }
  0x94   : > { %2133 = vmatpush3.bf16.msra.mxu0 %v1253_v15  ;;  %2128 = vmatprep.mubr.msk.bf16.mxu0 %vm369_vm4, %v1950_v62  ;;  %v635_v18 = vsel %vm382_vm0, %v2831_v3, 0  ;;  %v1870_v23 = vcombine.low %v2799_v31, %v2804_v36  ;;  %v2944_v24 = vsel %vm382_vm0, %v224_v63, 0  ;;  %v2948_v47 = vsel %vm2856_vm7, %v1876_v9, %v580_v22  ;;  %v556_v31 = vld [vmem:[%s2693_s6 + $0x28] sm:$0xe]  ;;  %v2994_v52 = vld [vmem:[%s2693_s6 + $0x24] sm:$0x1] }
  0x95   : > { %2236 = vmatprep.subr.msk.bf16.mxu0 %vm382_vm0, %v224_v63  ;;  %v2952_v38 = vsel %vm2856_vm7, %v1877_v48, %v584_v59  ;;  %v2955_v43 = vsel %vm382_vm0, %v220_v10, 0  ;;  %v1951_v36 = vcombine.low %v1106_v54, %v1110_v7  ;;  %v1871_v3 = vcombine.low %v2820_v56, %v2836_v13  ;;  %v1974_v56 = vld [vmem:[%s2693_s6 + $0x18] sm:$0xf]  ;;  %v1978_v55 = vld [vmem:[%s2693_s6 + $0x28] sm:$0xf] }
  0x96   : > { %v2969_v22 = vsel %vm2856_vm7, %v1878_v12, %v588_v60  ;;  %v2973_v6 = vsel %vm2856_vm7, %v1879_v51, %v592_v34  ;;  %v1880_v17 = vrot.slane %v2940_v20, 9  ;;  %v596_v46 = vrot.slane %v2807_v42, 5  ;;  %v2317_v58 = vld [vmem:[%s2693_s6 + $0x20] ss:$8 sps:$4 sm:$0xff]   ;;  %v3002_v62 = vld [vmem:[%s2693_s6 + $0x2c] sm:$0x1] }
  0x97   : > { %v1884_v13 = vcombine.low %v2948_v47, %v2952_v38  ;;  %v1881_v15 = vrot.slane %v556_v31, 9  ;;  %v1345_v49 = vshrl.u32 %v1972_v27, 16  ;;  %v1348_v32 = vshll.u32 %v1972_v27, 16  ;;  %v3014_v31 = vld [vmem:[#allocation5 + $0x20] sm:$0xf] }
  0x98   : > { %v600_v33 = vrot.slane %v2814_v50, 5  ;;  %v1882_v42 = vrot.slane %v2961_v26, 9  ;;  %v1354_v2 = vshll.u32 %v2965_v25, 16  ;;  %v1359_v5 = vshrl.u32 %v1974_v56, 16 }
  0x99   : > { %2085 = vmatmul.mubr.msk.bf16.vlgmr.msra.gmra.mrb[0].mxu1 %vm369_vm4, %v1869_v16  ;;  %v604_v39 = vrot.slane %v2826_v61, 5  ;;  %v1883_v40 = vrot.slane %v558_v30, 9  ;;  %v1347_v41 = vrot.slane %v1345_v49, 4  ;;  %v1350_v44 = vrot.slane %v1348_v32, 5  ;;  %v2318_v16 = vld [vmem:[%s2693_s6 + $0x30] ss:$8 sps:$4 sm:$0xff]  }
  0x9a   : > { %2093 = vmatpush3.bf16.msra.mxu1 %v635_v18  ;;  %2088 = vmatprep.mubr.msk.bf16.mxu1 %vm369_vm4, %v1870_v23  ;;  %v1361_v50 = vrot.slane %v1359_v5, 4  ;;  %v1362_v53 = vshll.u32 %v1974_v56, 16  ;;  %v1368_v37 = vshll.u32 %v2983_v14, 16  ;;  %v1373_v57 = vshrl.u32 %v1976_v35, 16  ;;  %v1984_v5 = vld [vmem:[%s2693_s6 + $0x40] sm:$0xf] }
  0x9b   : > { %2129 = vmatmul.mubr.msk.bf16.gmra.mrb[4].mxu0 %vm369_vm4, %v1951_v36  ;;  %2231 = vmatprep.subr.msk.bf16.mxu1 %vm382_vm0, %v220_v10  ;;  %v608_v59 = vrot.slane %v2841_v21, 5  ;;  %v1351_v60 = vor.u32 %v1350_v44, %v1347_v41  ;;  %v1376_v61 = vshll.u32 %v1976_v35, 16  ;;  %v1387_v63 = vshrl.u32 %v1978_v55, 16  ;;  %v2319_v35 = vld [vmem:[%s2693_s6 + $0x40] ss:$8 sps:$4 sm:$0xff]  }
  0x9c   : > { %2134 = vmatprep.mubr.msk.bf16.mxu0 %vm369_vm4, %v2316_v19  ;;  %v1356_v34 = vrot.slane %v1354_v2, 5  ;;  %v1364_v54 = vrot.slane %v1362_v53, 5  ;;  %v1375_v9 = vrot.slane %v1373_v57, 4  ;;  %v1390_v10 = vshll.u32 %v1978_v55, 16  ;;  %v3050_v44 = vld [vmem:[%s2693_s6 + $0x44] sm:$0x1] }
  0x9d   : > { %v1352_v7 = vrot.slane %v1351_v60, 4  ;;  %v1378_v48 = vrot.slane %v1376_v61, 5  ;;  %v1382_v12 = vshll.u32 %v2994_v52, 16  ;;  %v1389_v51 = vrot.slane %v1387_v63, 4  ;;  %v1986_v57 = vld [vmem:[%s2693_s6 + $0x48] sm:$0xf] }
  0x9e   : > { %v1365_v18 = vor.u32 %v1364_v54, %v1361_v50  ;;  %v1370_v23 = vrot.slane %v1368_v37, 5  ;;  %v1392_v21 = vrot.slane %v1390_v10, 5  ;;  %v1396_v20 = vshll.u32 %v3002_v62, 16 }
  0x9f   : > { %v1885_v19 = vcombine.low %v2969_v22, %v2973_v6  ;;  %v597_v47 = vsel %vm2856_vm7, %v1880_v17, %v596_v46  ;;  %v601_v38 = vsel %vm2856_vm7, %v1881_v15, %v600_v33  ;;  %v1379_v36 = vor.u32 %v1378_v48, %v1375_v9  ;;  %v1980_v6 = vld [vmem:[%s2693_s6 + $0x30] sm:$0xf]  ;;  %v3027_v17 = vld [vmem:[%s2693_s6 + $0x34] sm:$0x1] }
  0xa0   : > { %v3019_v26 = vsel %vm2856_vm7, %v1882_v42, %v604_v39  ;;  %v1366_v27 = vrot.slane %v1365_v18, 4  ;;  %v1393_v22 = vor.u32 %v1392_v21, %v1389_v51  ;;  %v1357_v46 = vsel %vm2747_vm3, %v1352_v7, %v1356_v34  ;;  %v3042_v42 = vld [vmem:[%s2693_s6 + $0x3c] sm:$0x1] }
  0xa1   : > { %2089 = vmatmul.mubr.msk.bf16.gmra.mrb[4].mxu1 %vm369_vm4, %v1871_v3  ;;  %v3023_v3 = vsel %vm2856_vm7, %v1883_v40, %v608_v59  ;;  %v3032_v30 = vrot.slane %v1379_v36, 4  ;;  %v3034_v56 = vrot.slane %v1382_v12, 5  ;;  %v1401_v15 = vshrl.u32 %v1980_v6, 16 }
  0xa2   : > { %2094 = vmatprep.mubr.msk.bf16.mxu1 %vm369_vm4, %v1884_v13  ;;  %v1982_v13 = vld [vmem:[%s2693_s6 + $0x38] sm:$0xf]  ;;  %v1886_v49 = vcombine.low %v597_v47, %v601_v38  ;;  %v1371_v32 = vsel %vm2747_vm3, %v1366_v27, %v1370_v23  ;;  %v1398_v33 = vrot.slane %v1396_v20, 5  ;;  %v1404_v2 = vshll.u32 %v1980_v6, 16 }
  0xa3   : > { %2135 = vmatmul.mubr.msk.bf16.vlgmr.msra.gmra.mrb[0].mxu0 %vm369_vm4, %v2317_v58  ;;  %v1394_v39 = vrot.slane %v1393_v22, 4  ;;  %v1403_v40 = vrot.slane %v1401_v15, 4  ;;  %v1415_v41 = vshrl.u32 %v1982_v13, 16  ;;  %v1887_v50 = vcombine.low %v3019_v26, %v3023_v3  ;;  %v3056_v58 = vld [vmem:[%s2693_s6 + $0x4c] sm:$0x1] }
  0xa4   : > { %2143 = vmatpush3.bf16.msra.mxu0 %v2944_v24  ;;  %2138 = vmatprep.mubr.msk.bf16.mxu0 %vm369_vm4, %v2318_v16  ;;  %v1410_v24 = vshll.u32 %v3027_v17, 16  ;;  %v1988_v53 = vcombine.low %v1357_v46, %v1371_v32  ;;  %v1406_v37 = vrot.slane %v1404_v2, 5  ;;  %v1418_v55 = vshll.u32 %v1982_v13, 16  ;;  %v1996_v3 = vld [vmem:[%s2693_s6 + $0x10] sm:$0xe] }
  0xa5   : > { %2237 = vmatprep.subr.msk.bf16.mxu0 %vm382_vm0, %v3014_v31  ;;  %v1385_v59 = vsel %vm2747_vm3, %v3032_v30, %v3034_v56  ;;  %v1417_v60 = vrot.slane %v1415_v41, 4  ;;  %v1424_v61 = vshll.u32 %v3042_v42, 16  ;;  %v1429_v63 = vshrl.u32 %v1984_v5, 16  ;;  %v3081_v56 = vld [vmem:[%s2693_s6 + $0x20] sm:$0xe] }
  0xa6   : > { %v1407_v34 = vor.u32 %v1406_v37, %v1403_v40  ;;  %v1420_v54 = vrot.slane %v1418_v55, 5  ;;  %v1432_v9 = vshll.u32 %v1984_v5, 16  ;;  %v1438_v10 = vshll.u32 %v3050_v44, 16  ;;  %v2320_v13 = vld [vmem:[%s2693_s6 + $0x8] ss:$8 sps:$4 sm:$0xff]  }
  0xa7   : > { %v1412_v7 = vrot.slane %v1410_v24, 5  ;;  %v1431_v48 = vrot.slane %v1429_v63, 4  ;;  %v1443_v12 = vshrl.u32 %v1986_v57, 16  ;;  %v1446_v51 = vshll.u32 %v1986_v57, 16  ;;  %v1916_v5 = vld [vmem:[%s2693_s6 + $0x28] sm:$0xf] }
  0xa8   : > { %v1408_v16 = vrot.slane %v1407_v34, 4  ;;  %v1421_v18 = vor.u32 %v1420_v54, %v1417_v60  ;;  %v1426_v23 = vrot.slane %v1424_v61, 5  ;;  %v1434_v21 = vrot.slane %v1432_v9, 5  ;;  %v1999_v40 = vld [vmem:[%s2693_s6 + $0x28] sm:$0xe] }
  0xa9   : > { %2095 = vmatmul.mubr.msk.bf16.vlgmr.msra.gmra.mrb[0].mxu1 %vm369_vm4, %v1885_v19  ;;  %v1399_v20 = vsel %vm2747_vm3, %v1394_v39, %v1398_v33  ;;  %v1445_v19 = vrot.slane %v1443_v12, 4  ;;  %v1452_v47 = vshll.u32 %v3056_v58, 16  ;;  %v1440_v26 = vrot.slane %v1438_v10, 5  ;;  %v1918_v24 = vld [vmem:[%s2693_s6 + $0x30] sm:$0xf] }
  0xaa   : > { %2103 = vmatpush3.bf16.msra.mxu1 %v2955_v43  ;;  %2098 = vmatprep.mubr.msk.bf16.mxu1 %vm369_vm4, %v1886_v49  ;;  %v1448_v43 = vrot.slane %v1446_v51, 5  ;;  %v1422_v38 = vrot.slane %v1421_v18, 4  ;;  %v1435_v36 = vor.u32 %v1434_v21, %v1431_v48  ;;  %v1582_v27 = vrot.slane %v2965_v25, 5  ;;  %v2000_v60 = vld [vmem:[%s2693_s6 + $0x30] sm:$0xe] }
  0xab   : > { %2139 = vmatmul.mubr.msk.bf16.gmra.mrb[4].mxu0 %vm369_vm4, %v2319_v35  ;;  %2233 = vmatprep.subr.msk.bf16.mxu1 %vm382_vm0, %v2703_v1  ;;  %v1413_v22 = vsel %vm2747_vm3, %v1408_v16, %v1412_v7  ;;  %v1997_v1 = vld [vmem:[%s2693_s6 + $0x18] sm:$0xe]  ;;  %v2004_v46 = vrot.slane %v1996_v3, 9  ;;  %v1586_v30 = vrot.slane %v2983_v14, 5  ;;  %v1454_v32 = vrot.slane %v1452_v47, 5 }
  0xac   : > { %2144 = vmatprep.mubr.msk.bf16.mxu0 %vm369_vm4, %v1988_v53  ;;  %v1449_v6 = vor.u32 %v1448_v43, %v1445_v19  ;;  %v1427_v15 = vsel %vm2747_vm3, %v1422_v38, %v1426_v23  ;;  %v1436_v49 = vrot.slane %v1435_v36, 4  ;;  %v2005_v33 = vrot.slane %v1997_v1, 9  ;;  %v2321_v61 = vld [vmem:[%s2693_s6 + $0x18] ss:$8 sps:$4 sm:$0xff]  }
  0xad   : > { %v1989_v25 = vcombine.low %v1385_v59, %v1399_v20  ;;  %v1637_v35 = vsel %vm382_vm0, %v3014_v31, 0  ;;  %v1990_v39 = vcombine.low %v1413_v22, %v1427_v15  ;;  %v2006_v14 = vrot.slane %v3081_v56, 9  ;;  %v1920_v9 = vld [vmem:[%s2693_s6 + $0x38] sm:$0xf]  ;;  %v1922_v12 = vld [vmem:[%s2693_s6 + $0x40] sm:$0xf] }
  0xae   : > { %v1450_v2 = vrot.slane %v1449_v6, 4  ;;  %v1583_v41 = vsel %vm2856_vm7, %v2004_v46, %v1582_v27  ;;  %v1587_v53 = vsel %vm2856_vm7, %v2005_v33, %v1586_v30  ;;  %v1590_v37 = vrot.slane %v2994_v52, 5  ;;  %v2001_v21 = vld [vmem:[%s2693_s6 + $0x38] sm:$0xe]  ;;  %v2322_v20 = vld [vmem:[%s2693_s6 + $0x28] ss:$8 sps:$4 sm:$0xff]  }
  0xaf   : > { %v900_v55 = vshrl.u32 %v1916_v5, 16  ;;  %v1441_v31 = vsel %vm2747_vm3, %v1436_v49, %v1440_v26  ;;  %v903_v59 = vshll.u32 %v1916_v5, 16  ;;  %v2007_v63 = vrot.slane %v1999_v40, 9  ;;  %v2323_v33 = vld [vmem:[%s2693_s6 + $0x38] ss:$8 sps:$4 sm:$0xff]  }
  0xb0   : > { %v1455_v57 = vsel %vm2747_vm3, %v1450_v2, %v1454_v32  ;;  %v914_v34 = vshrl.u32 %v1918_v24, 16  ;;  %v917_v54 = vshll.u32 %v1918_v24, 16  ;;  %v2012_v10 = vcombine.low %v1583_v41, %v1587_v53  ;;  %v2003_v2 = vld [vmem:[%s2693_s6 + $0x48] sm:$0xe] }
  0xb1   : > { %2099 = vmatmul.mubr.msk.bf16.gmra.mrb[4].mxu1 %vm369_vm4, %v1887_v50  ;;  %v909_v50 = vshll.u32 %v2866_v0, 16  ;;  %v902_v52 = vrot.slane %v900_v55, 4  ;;  %v1594_v7 = vrot.slane %v3002_v62, 5  ;;  %v905_v48 = vrot.slane %v903_v59, 5 }
  0xb2   : > { %2104 = vmatprep.mubr.msk.bf16.mxu1 %vm369_vm4, %v2320_v13  ;;  %v923_v0 = vshll.u32 %v2875_v11, 16  ;;  %v1991_v51 = vcombine.low %v1441_v31, %v1455_v57  ;;  %v916_v18 = vrot.slane %v914_v34, 4  ;;  %v919_v23 = vrot.slane %v917_v54, 5 }
  0xb3   : > { %2145 = vmatmul.mubr.msk.bf16.vlgmr.msra.gmra.mrb[0].mxu0 %vm369_vm4, %v1989_v25  ;;  %v911_v16 = vrot.slane %v909_v50, 5  ;;  %v906_v19 = vor.u32 %v905_v48, %v902_v52  ;;  %v2008_v43 = vrot.slane %v2000_v60, 9  ;;  %v1598_v47 = vrot.slane %v3027_v17, 5  ;;  %v2002_v25 = vld [vmem:[%s2693_s6 + $0x40] sm:$0xe] }
  0xb4   : > { %2153 = vmatpush3.bf16.msra.mxu0 %v1637_v35  ;;  %2148 = vmatprep.mubr.msk.bf16.mxu0 %vm369_vm4, %v1990_v39  ;;  %v928_v38 = vshrl.u32 %v1920_v9, 16  ;;  %v920_v36 = vor.u32 %v919_v23, %v916_v18  ;;  %v925_v26 = vrot.slane %v923_v0, 5  ;;  %v931_v3 = vshll.u32 %v1920_v9, 16 }
  0xb5   : > { %v942_v27 = vshrl.u32 %v1922_v12, 16  ;;  %v907_v62 = vrot.slane %v906_v19, 4  ;;  %v2009_v22 = vrot.slane %v2001_v21, 9  ;;  %v1602_v11 = vrot.slane %v3042_v42, 5 }
  0xb6   : > { %v945_v6 = vshll.u32 %v1922_v12, 16  ;;  %v921_v1 = vrot.slane %v920_v36, 4  ;;  %v930_v17 = vrot.slane %v928_v38, 4  ;;  %v933_v46 = vrot.slane %v931_v3, 5 }
  0xb7   : > { %v944_v30 = vrot.slane %v942_v27, 4  ;;  %v937_v13 = vshll.u32 %v2898_v8, 16  ;;  %v912_v42 = vsel %vm2747_vm3, %v907_v62, %v911_v16  ;;  %v1595_v49 = vsel %vm2856_vm7, %v2007_v63, %v1594_v7 }
  0xb8   : > { %v947_v56 = vrot.slane %v945_v6, 5  ;;  %v926_v15 = vsel %vm2747_vm3, %v921_v1, %v925_v26  ;;  %v1599_v32 = vsel %vm2856_vm7, %v2008_v43, %v1598_v47  ;;  %v1603_v8 = vsel %vm2856_vm7, %v2009_v22, %v1602_v11 }
  0xb9   : > { %2105 = vmatmul.mubr.msk.bf16.vlgmr.msra.gmra.mrb[0].mxu1 %vm369_vm4, %v2321_v61  ;;  %v951_v5 = vshll.u32 %v2901_v28, 16  ;;  %v1926_v35 = vcombine.low %v912_v42, %v926_v15  ;;  %v934_v39 = vor.u32 %v933_v46, %v930_v17  ;;  %v2014_v41 = vcombine.low %v1599_v32, %v1603_v8 }
  0xba   : > { %2163 = vmatpush3.bf16.msra.mxu1 %v2714_v4  ;;  %2108 = vmatprep.mubr.msk.bf16.mxu1 %vm369_vm4, %v2322_v20  ;;  %v1591_v4 = vsel %vm2856_vm7, %v2006_v14, %v1590_v37  ;;  %v948_v40 = vor.u32 %v947_v56, %v944_v30  ;;  %v2010_v14 = vrot.slane %v2002_v25, 9  ;;  %v1606_v53 = vrot.slane %v3050_v44, 5 }
  0xbb   : > { %2149 = vmatmul.mubr.msk.bf16.gmra.mrb[4].mxu0 %vm369_vm4, %v1991_v51  ;;  %v2013_v24 = vcombine.low %v1591_v4, %v1595_v49  ;;  %v2011_v37 = vrot.slane %v2003_v2, 9  ;;  %v1610_v55 = vrot.slane %v3056_v58, 5  ;;  %v939_v31 = vrot.slane %v937_v13, 5 }
  0xbc   : > { %2154 = vmatprep.mubr.msk.bf16.mxu0 %vm369_vm4, %v2012_v10  ;;  %v953_v57 = vrot.slane %v951_v5, 5  ;;  %v935_v59 = vrot.slane %v934_v39, 4  ;;  %v949_v50 = vrot.slane %v948_v40, 4  ;;  %v1607_v28 = vsel %vm2856_vm7, %v2010_v14, %v1606_v53 }
  0xbd   : > { %v1611_v44 = vsel %vm2856_vm7, %v2011_v37, %v1610_v55 }
  0xbe   : > { %v940_v58 = vsel %vm2747_vm3, %v935_v59, %v939_v31  ;;  %v954_v60 = vsel %vm2747_vm3, %v949_v50, %v953_v57  ;;  %v2015_v61 = vcombine.low %v1607_v28, %v1611_v44 }
  0xbf   : > { %v1927_v63 = vcombine.low %v940_v58, %v954_v60 }
  0xc1   : > { %2109 = vmatmul.mubr.msk.bf16.gmra.mrb[4].mxu1 %vm369_vm4, %v2323_v33 }
  0xc2   : > { %2118 = vmatprep.mubr.msk.bf16.mxu1 %vm369_vm4, %v1926_v35 }
  0xc3   : > { %2155 = vmatmul.mubr.msk.bf16.vlgmr.msra.gmra.mrb[0].mxu0 %vm369_vm4, %v2013_v24 }
  0xc4   : > { %2158 = vmatprep.mubr.msk.bf16.mxu0 %vm369_vm4, %v2014_v41 }
  0xcb   : > { %2159 = vmatmul.mubr.msk.bf16.gmra.mrb[4].mxu0 %vm369_vm4, %v2015_v61 }
  0xcd   : > { %2119 = vmatmul.mubr.msk.bf16.vlgmr.msra.gmra.mrb[4].mxu1 %vm369_vm4, %v1927_v63 }
 0x18c   : > { %v2106_v52 = vpop.f32.mrb[0].mxu1 }
 0x18d   : > { %v788_v34 = vpop.f32.mrb[1].mxu1 }
 0x18e   : > { %v2107_v54 = vpop.f32.mrb[2].mxu1 }
 0x18f   : > { %v791_v9 = vpop.f32.mrb[3].mxu1 }
 0x196   : > { %v2156_v10 = vpop.f32.mrb[0].mxu0 }
 0x197   : > { %v2164_v7 = vadd.f32 %v2156_v10, %v2106_v52  ;;  %v1673_v48 = vpop.f32.mrb[1].mxu0 }
 0x198   : > { %v2165_v0 = vadd.f32 %v1673_v48, %v788_v34  ;;  %v2157_v12 = vpop.f32.mrb[2].mxu0 }
 0x199   : > { %v1721_v51 = vadd.f32 %v2164_v7, %v2020_v45  ;;  %v2166_v29 = vadd.f32 %v2157_v12, %v2107_v54  ;;  %v1676_v16 = vpop.f32.mrb[3].mxu0 }
 0x19a   : > { %v1719_v18 = vadd.f32 %v2165_v0, %v2020_v45  ;;  %v2167_v23 = vadd.f32 %v1676_v16, %v791_v9 }
 0x19b   : > { %v1722_v21 = vadd.f32 %v2166_v29, %v2020_v45  ;;  %v1729_v19 = vmax.f32 %v1721_v51, 0.0 }
 0x19c   : > { %v1720_v20 = vadd.f32 %v2167_v23, %v2020_v45  ;;  %v1727_v47 = vmax.f32 %v1719_v18, 0.0 }
 0x19d   : > { %v1730_v43 = vmax.f32 %v1722_v21, 0.0 }
 0x19e   : > { %v1728_v38 = vmax.f32 %v1720_v20, 0.0  ;;  %v2160_v36 = vpop.f32.mrb[4].mxu0 }
 0x19f   : > { %v1736_v26 = vmax.f32 %v1729_v19, %v1730_v43  ;;  %v1689_v3 = vpop.f32.mrb[5].mxu0 }
 0x1a0   : > { %v1735_v27 = vmax.f32 %v1727_v47, %v1728_v38  ;;  %v2120_v62 = vpop.f32.mrb[4].mxu1  ;;  %v2161_v22 = vpop.f32.mrb[6].mxu0 }
 0x1a1   : > { %1741 = vst.msk [vmem:[%s215_s20 + $0x8] sm:$0xff] %vm1739_vm8, %v1736_v26  ;;  %v2168_v11 = vadd.f32 %v2160_v36, %v2120_v62  ;;  %v1032_v6 = vpop.f32.mrb[5].mxu1  ;;  %v1692_v1 = vpop.f32.mrb[7].mxu0 }
 0x1a2   : > { %1740 = vst.msk [vmem:[%s215_s20] sm:$0xff] %vm1739_vm8, %v1735_v27  ;;  %v2169_v17 = vadd.f32 %v1689_v3, %v1032_v6  ;;  %v2121_v46 = vpop.f32.mrb[6].mxu1 }
 0x1a3   : > { %v1725_v30 = vadd.f32 %v2168_v11, %v2020_v45  ;;  %v2170_v56 = vadd.f32 %v2161_v22, %v2121_v46  ;;  %v1035_v13 = vpop.f32.mrb[7].mxu1 }
 0x1a4   : > { %v1723_v42 = vadd.f32 %v2169_v17, %v2020_v45  ;;  %v2171_v15 = vadd.f32 %v1692_v1, %v1035_v13 }
 0x1a5   : > { %v1726_v4 = vadd.f32 %v2170_v56, %v2020_v45  ;;  %v1733_v32 = vmax.f32 %v1725_v30, 0.0 }
 0x1a6   : > { %v1724_v49 = vadd.f32 %v2171_v15, %v2020_v45  ;;  %v1731_v33 = vmax.f32 %v1723_v42, 0.0 }
 0x1a7   : > { %v1734_v8 = vmax.f32 %v1726_v4, 0.0 }
 0x1a8   : > { %v1732_v25 = vmax.f32 %v1724_v49, 0.0 }
 0x1a9   : > { %v1738_v2 = vmax.f32 %v1733_v32, %v1734_v8 }
 0x1aa   : > { %v1737_v5 = vmax.f32 %v1731_v33, %v1732_v25 }
 0x1ab   : > { %1743 = vst.msk [vmem:[%s215_s20 + $0x18] sm:$0xff] %vm1739_vm8, %v1738_v2 }
 0x1ac   : > { %1742 = vst.msk [vmem:[%s215_s20 + $0x10] sm:$0xff] %vm1739_vm8, %v1737_v5 }
 0x1ad   : > { %2423 = shalt.err (!%p2420_p1)
}
 0x1ae   : > { %s2424_s17 = scalar_lea.hbm %s3161_s22, 512  ;;  %s2428_s4 = scalar_lea.hbm %s3212_s3, 1024 }
 0x1af   : > { %p2425_p13 = scmp.ne.s32.totalorder %s3161_s22, %s2424_s17  ;;  %p2429_p4 = scmp.lt.u32.totalorder %s3161_s22, %s3212_s3 }
 0x1b0   : > { %p2430_p5 = scmp.lt.u32.totalorder %s2428_s4, %s2424_s17  ;;  %p2432_p11 = scmp.lt.u32.totalorder %s2424_s17, %s3161_s22 }
 0x1b1   : > { %p2426_p6 = pnand %p2425_p13, %p3230_p0 }
 0x1b2   : > { %p2431_p8 = por %p2430_p5, %p2429_p4 }
 0x1b3   : > { %p2427_p10 = pneg %p2426_p6 }
 0x1b4   : > { %p2433_p2 = por %p2432_p11, %p2431_p8 }
 0x1b6   : > { %p2434_p3 = pnand %p2433_p2, %p2427_p10 }
 0x1b8   : > { %2437 = shalt.err (!%p2434_p3)
}
 0x1b9   : > { %s2488_s18 = smov 128   ;;  %s2489_s20 = smov 8  }
 0x1ba   : > { %2251 = dma.vmem_to_hbm [thread:$0]  (%p3230_p0), %s3163_s8, 512, %s3161_s22, %s1745_s16, %s2488_s18, %s2488_s18, %s2489_s20  }
 0x1bb PF: > { %s1773_s7 = sand.u32 1, %s2468_s12   ;;  %p3231_p7 = scmp.ne.s32.totalorder %s3217_s19, 0 }
 0x1bc   : > { %p3232_p9 = scmp.ge.s32.totalorder %s2480_s15, 2  ;;  %s1774_s21 = scalar_lea.sflag [#allocation4], %s1773_s7 }
 0x1be   : > { %p2265_p12 = pnand %p3232_p9, %p3231_p7 }
 0x1c0   : > { %2463 = dma.done.wait (!%p2265_p12), %s1774_s21, 512  }
 0x1c1   : > { %2465 = vsyncadd (!%p2265_p12), %s1774_s21, 4294966784  ;;  %p17_p1 = scmp.ge.s32.totalorder %s2624_s5, 4   ;;  %s3233_s12 = smov %s2472_s13 }
 0x1c2   : > { %s3234_s13 = smov %s2476_s14  ;;  %s3235_s14 = smov %s2640_s10 }
 0x1c3   : > { %s3236_s15 = smov %s2624_s5  ;;  %19 = sbr.rel (!%p17_p1) target bundleno = 6 (0x6), region = 87 }
 0x1ca   :  { %1779 = vsyncpa [#allocation3], 1 }
 0x1cb   :  { %1781 = vsyncpa [#allocation3 + $0x1], 1 }
 0x1cc   :  { %1782 = vsyncpa [#allocation6], 1 }
 0x1cd   :  { %1783 = vsyncpa [#allocation4], 1 }
 0x1ce   :  { %1785 = vsyncpa [#allocation4 + $0x1], 1 }

// kernel: crnn_forward.10
= control target key start
LH: loop header
LB: loop body
LE: loop exit
PB: predicated region body
PF: predicated region fallthrough
CT: control target
= control target key end

     0   :  { %8 = vsyncpa [#allocation3], 0  ;;  %s2220_s0 = inlined_call_operand.hbm [shape: bf16[2,6,10,16], index: 0, kind: input, shape index: {}]   ;;  %s2221_s1 = inlined_call_operand.hbm [shape: bf16[144,32], index: 1, kind: input, shape index: {}]   ;;  %s2222_s2 = inlined_call_operand.hbm [shape: f32[1,32], index: 2, kind: input, shape index: {}]   ;;  %s2223_s3 = inlined_call_operand.hbm [shape: f32[2,8,32], index: 3, kind: output, shape index: {}]  }
   0x1   :  { %10 = vsyncpa [#allocation3 + $0x1], 0 }
   0x2   :  { %11 = vsyncpa [#allocation6], 0 }
   0x3   :  { %12 = vsyncpa [#allocation4], 0 }
   0x4   :  { %14 = vsyncpa [#allocation4 + $0x1], 0  ;;  %s1787_s12 = smov 0   ;;  %s1789_s13 = smov 0  }
   0x5   :  { %s1791_s14 = smov 0   ;;  %s1793_s15 = smov 0  }
   0x6 LB: > { %s1808_s16 = sadd.s32 4294967295, %s1759_s15   ;;  %s1299_s17 = sadd.s32 4294967294, %s1759_s15   ;;  %s1759_s15 = sphi %s1793_s15, %s2247_s15   ;;  %s1755_s14 = sphi %s1791_s14, %s2246_s14   ;;  %s1751_s13 = sphi %s1789_s13, %s2245_s13   ;;  %s1747_s12 = sphi %s1787_s12, %s2244_s12  }
   0x7   : > { %p40_p0 = scmp.ne.s32.totalorder %s1751_s13, %s1747_s12  ;;  %p2224_p1 = scmp.eq.s32.totalorder %s1808_s16, 0 }
   0x8   : > { %p112_p3 = scmp.eq.s32.totalorder %s1299_s17, 1  ;;  %p1300_p5 = scmp.ge.s32.totalorder %s1759_s15, 1 }
   0x9   : > { %p1817_p4 = por %p2224_p1, %p40_p0  ;;  %p119_p7 = scmp.lt.s32.totalorder %s1759_s15, 3 }
   0xa   : > { %p1822_p6 = por %p112_p3, %p40_p0  ;;  %s1761_s21 = smov [#allocation5]  }
   0xb   : > { %s2227_s18 = scalar_select %p1817_p4, 1, 0 }
   0xc   : > { %s2228_s19 = scalar_select %p1822_p6, 1, 0 }
   0xd   : > { %p1827_p8 = pnand %p1300_p5, %p119_p7  ;;  %s131_s22 = sshll.u32 %s1761_s21, 4  ;;  %s1831_s22 = int_to_ptr.vmem [resolvable:$true] %s131_s22 }
   0xe   : > { %s1762_s24 = smov [#allocation7]   ;;  %s1603_s28 = scalar_lea.hbm %s2221_s1, 1152 }
   0xf   : > { %p1531_p9 = pneg %p1827_p8  ;;  %s145_s25 = sshll.u32 %s1762_s24, 4  ;;  %s1842_s25 = int_to_ptr.vmem [resolvable:$true] %s145_s25 }
  0x10   : > { %p1604_p12 = scmp.ne.s32.totalorder %s2221_s1, %s1603_s28  ;;  %p1610_p5 = scmp.lt.u32.totalorder %s1603_s28, %s2221_s1 }
  0x11   : > { %p1838_p11 = pnand %p1531_p9, %p2224_p1 }
  0x13   : > { %p1605_p13 = pneg %p1838_p11 }
  0x15   : > { %p1606_p0 = pnand %p1605_p13, %p1604_p12 }
  0x17   : > { %p1607_p3 = pneg %p1606_p0 }
  0x19   : > { %p1612_p7 = pnand %p1610_p5, %p1607_p3 }
  0x1b   : > { %1615 = shalt.err (!%p1612_p7)
}
  0x1c   : > { %s1616_s6 = scalar_lea.vmem %s1831_s22, 1152  ;;  %p1624_p2 = scmp.lt.s32.totalorder %s1831_s22, %s1831_s22 }
  0x1d   : > { %p1617_p9 = scmp.ne.s32.totalorder %s1831_s22, %s1616_s6  ;;  %p1625_p12 = scmp.lt.s32.totalorder %s1616_s6, %s1616_s6 }
  0x1f   : > { %p1619_p10 = pnand %p1617_p9, %p1605_p13  ;;  %p1626_p0 = por %p1625_p12, %p1624_p2 }
  0x21   : > { %p1620_p1 = pneg %p1619_p10 }
  0x23   : > { %p1627_p6 = pnand %p1626_p0, %p1620_p1 }
  0x25   : > { %1630 = shalt.err (!%p1627_p6)
}
  0x26   : > { %s1763_s7 = smov 64   ;;  %s1764_s8 = smov 4  }
  0x27   : > { %1534 = dma.hbm_to_vmem [thread:$0]  (!%p1838_p11), %s2221_s1, 1152, %s1831_s22, [#allocation6], %s1763_s7, %s1763_s7, %s1764_s8  }
  0x28   : > { %s1631_s21 = scalar_lea.hbm %s2222_s2, 16 }
  0x29   : > { %p1632_p1 = scmp.ne.s32.totalorder %s2222_s2, %s1631_s21  ;;  %p1638_p10 = scmp.lt.u32.totalorder %s1631_s21, %s2222_s2 }
  0x2b   : > { %p1634_p2 = pnand %p1632_p1, %p1605_p13 }
  0x2d   : > { %p1635_p6 = pneg %p1634_p2 }
  0x2f   : > { %p1640_p3 = pnand %p1638_p10, %p1635_p6 }
  0x31   : > { %1643 = shalt.err (!%p1640_p3)
}
  0x32   : > { %s1644_s22 = scalar_lea.vmem %s1842_s25, 16  ;;  %s1651_s29 = scalar_lea.vmem %s1842_s25, 32 }
  0x33   : > { %p1645_p5 = scmp.ne.s32.totalorder %s1842_s25, %s1644_s22  ;;  %p1652_p12 = scmp.lt.s32.totalorder %s1842_s25, %s1842_s25 }
  0x34   : > { %p1653_p0 = scmp.lt.s32.totalorder %s1651_s29, %s1644_s22 }
  0x35   : > { %p1647_p7 = pnand %p1645_p5, %p1605_p13 }
  0x36   : > { %p1654_p1 = por %p1653_p0, %p1652_p12 }
  0x37   : > { %p1648_p9 = pneg %p1647_p7 }
  0x39   : > { %p1655_p2 = pnand %p1654_p1, %p1648_p9 }
  0x3b   : > { %1658 = shalt.err (!%p1655_p2)
}
  0x3c   : > { %1537 = dma.hbm_to_vmem [thread:$0]  (!%p1838_p11), %s2222_s2, 16, %s1842_s25, [#allocation6]  }
  0x3d   : > { %s1901_s5 = sadd.s32 1, %s1759_s15   ;;  %s27_s23 = sadd.s32 1, %s1755_s14 }
  0x3e   : > { %s24_s6 = ssub.s32 %s1759_s15, %s1901_s5  ;;  %p34_p13 = scmp.ne.s32.totalorder %s1755_s14, %s1751_s13 }
  0x3f   : > { %p25_p6 = scmp.eq.s32.totalorder %s24_s6, 0  ;;  %p35_p10 = scmp.eq.s32.totalorder %s1759_s15, 0 }
  0x40   : > { %p2231_p3 = scmp.eq.s32.totalorder %s1808_s16, 1  ;;  %p1548_p7 = scmp.lt.s32.totalorder %s1759_s15, 2 }
  0x41   : > { %s1917_s10 = scalar_select %p25_p6, %s1755_s14, %s27_s23  }
  0x42   : > { %p1911_p5 = por %p2231_p3, %p34_p13  ;;  %p36_p9 = por %p35_p10, %p34_p13 }
  0x43   : > { %s156_s11 = sand.u32 1, %s1755_s14   ;;  %s1517_s25 = smul.u32 768, %s1759_s15 }
  0x44   : > { %s2232_s9 = scalar_select %p1911_p5, 1, 0 }
  0x45   : > { %s1516_s17 = smul.u32 48, %s156_s11  ;;  %p1921_p11 = pnand %p1548_p7, %p36_p9 }
  0x46   : > { %s1928_s27 = scalar_lea.hbm %s2220_s0, %s1517_s25  ;;  %s1932_s29 = scalar_lea.sflag [#allocation3], %s156_s11 }
  0x47   : > { %s160_s28 = scalar_lea.vmem [#allocation2], %s1516_s17  ;;  %s1659_s30 = scalar_lea.hbm %s1928_s27, 768 }
  0x48   : > { %s167_s22 = sshll.u32 %s160_s28, 4  ;;  %p1660_p12 = scmp.ne.s32.totalorder %s1928_s27, %s1659_s30  ;;  %s1930_s22 = int_to_ptr.vmem [resolvable:$true] %s167_s22 }
  0x49   : > { %p1661_p0 = pneg %p1921_p11  ;;  %s1664_s6 = scalar_lea.hbm %s2220_s0, 1536 }
  0x4a   : > { %p1665_p13 = scmp.lt.u32.totalorder %s1928_s27, %s2220_s0  ;;  %p1666_p6 = scmp.lt.u32.totalorder %s1664_s6, %s1659_s30 }
  0x4b   : > { %p1662_p1 = pnand %p1661_p0, %p1660_p12  ;;  %p1668_p3 = scmp.lt.u32.totalorder %s1659_s30, %s1928_s27 }
  0x4c   : > { %p1667_p10 = por %p1666_p6, %p1665_p13 }
  0x4d   : > { %p1663_p2 = pneg %p1662_p1 }
  0x4e   : > { %p1669_p7 = por %p1668_p3, %p1667_p10 }
  0x50   : > { %p1670_p9 = pnand %p1669_p7, %p1663_p2 }
  0x52   : > { %1673 = shalt.err (!%p1670_p9)
}
  0x53   : > { %s1674_s11 = scalar_lea.vmem %s1930_s22, 768  ;;  %s1765_s17 = smov [#allocation2]  }
  0x54   : > { %p1675_p12 = scmp.ne.s32.totalorder %s1930_s22, %s1674_s11  ;;  %s1679_s26 = sshll.u32 %s1765_s17, 4  ;;  %s1680_s26 = int_to_ptr.vmem [resolvable:$false] %s1679_s26 }
  0x55   : > { %s1681_s28 = scalar_lea.vmem %s1680_s26, 1536  ;;  %p1682_p4 = scmp.lt.s32.totalorder %s1930_s22, %s1680_s26 }
  0x56   : > { %p1677_p1 = pnand %p1675_p12, %p1661_p0  ;;  %p1683_p13 = scmp.lt.s32.totalorder %s1681_s28, %s1674_s11 }
  0x58   : > { %p1678_p5 = pneg %p1677_p1  ;;  %p1684_p6 = por %p1683_p13, %p1682_p4 }
  0x5a   : > { %p1685_p10 = pnand %p1684_p6, %p1678_p5 }
  0x5c   : > { %1688 = shalt.err (!%p1685_p10)
}
  0x5d   : > { %1541 = dma.hbm_to_vmem [thread:$0]  (!%p1921_p11), %s1928_s27, 768, %s1930_s22, %s1932_s29, %s1763_s7, %s1763_s7, %s1764_s8  }
  0x5e   : > { %179 = sbr.rel (%p1827_p8) target bundleno = 426 (0x1aa), region = 32  ;;  %s1966_s30 = sand.u32 (!%p1827_p8), 1, %s1751_s13  }
  0x5f   : > { %s1518_s4 = smul.u32 (!%p1827_p8), 48, %s1966_s30  ;;  %s182_s23 = scalar_lea.sflag (!%p1827_p8), [#allocation3], %s1966_s30 }
  0x60   : > { %p2234_p4 = scmp.ne.s32.totalorder (!%p1827_p8), %s2227_s18, 0 }
  0x61   : > { %s1970_s6 = scalar_lea.vmem (!%p1827_p8), [#allocation2], %s1518_s4 }
  0x65   : > { %1734 = dma.done.wait (%p2234_p4), %s182_s23, 768  }
  0x66   : > { %1736 = vsyncadd (%p2234_p4), %s182_s23, 4294966528  ;;  %p2235_p5 = scmp.eq.s32.totalorder %s1808_s16, 0 }
  0x68   : > { %1738 = dma.done.wait (%p2235_p5), [#allocation6], 1168   ;;  %p2236_p8 = pmov %p2235_p5 }
  0x69   : > { %vm243_vm0 = vsmask.f32 3328  ;;  %v1588_v0 = vld [vmem:[#allocation5 + $0x20] sm:$0xff]   ;;  %v1589_v1 = vld [vmem:[#allocation5 + $0x8] sm:$0xff]   ;;  %vm244_vm1 = vsmask.f32 7440 }
  0x6a   : > { %1740 = vsyncadd (%p2236_p8), [#allocation6], 4294966128  ;;  %1454 = vmatprep.subr.bf16.mxu0 %v1588_v0  ;;  %v1981_v2 = vld [vmem:[%s1970_s6] sm:$0xf]  ;;  %v1984_v3 = vld [vmem:[%s1970_s6 + $0x8] sm:$0xf]  ;;  %1430 = vmatprep.subr.bf16.mxu1 %v1589_v1 }
  0x6b   : > { %v1987_v4 = vld [vmem:[%s1970_s6 + $0x4] sm:$0x1]  ;;  %1455 = vmatpush3.bf16.msra.mxu0 %v1588_v0  ;;  %v1990_v5 = vld [vmem:[%s1970_s6 + $0xc] sm:$0x1]  ;;  %v247_v6 = vshrl.u32 %v1981_v2, 16  ;;  %v250_v7 = vshll.u32 %v1981_v2, 16  ;;  %1431 = vmatpush3.bf16.msra.mxu1 %v1589_v1  ;;  %vm2011_vm2 = vmor %vm243_vm0, %vm244_vm1 }
  0x6c   : > { %v256_v8 = vshll.u32 %v1987_v4, 16  ;;  %v261_v9 = vshrl.u32 %v1984_v3, 16  ;;  %v264_v10 = vshll.u32 %v1984_v3, 16  ;;  %v270_v11 = vshll.u32 %v1990_v5, 16  ;;  %v1337_v12 = vld [vmem:[%s1970_s6 + $0x8] sm:$0xf] }
  0x6d   : > { %v249_v13 = vrot.slane %v247_v6, 4  ;;  %v252_v14 = vrot.slane %v250_v7, 5  ;;  %v2000_v17 = vld [vmem:[%s1970_s6 + $0xc] sm:$0x1]  ;;  %v1339_v20 = vld [vmem:[%s1970_s6 + $0x10] sm:$0xf] }
  0x6e   : > { %v258_v15 = vrot.slane %v256_v8, 5  ;;  %v263_v16 = vrot.slane %v261_v9, 4  ;;  %v266_v18 = vrot.slane %v264_v10, 5  ;;  %v272_v19 = vrot.slane %v270_v11, 5  ;;  %v2004_v21 = vld [vmem:[%s1970_s6 + $0x14] sm:$0x1] }
  0x6f   : > { %v253_v22 = vor.u32 %v252_v14, %v249_v13  ;;  %v632_v23 = vshrl.u32 %v1337_v12, 16  ;;  %v635_v24 = vshll.u32 %v1337_v12, 16  ;;  %v641_v25 = vshll.u32 %v2000_v17, 16  ;;  %v2007_v26 = vld [vmem:[#allocation5 + $0x28] sm:$0xff]   ;;  %v2016_v32 = vld [vmem:[#allocation5] sm:$0xff]   ;;  %s1308_s18 = sshll.u32 %s1966_s30, 3 }
  0x70   : > { %v267_v28 = vor.u32 %v266_v18, %v263_v16  ;;  %v646_v29 = vshrl.u32 %v1339_v20, 16  ;;  %v649_v30 = vshll.u32 %v1339_v20, 16  ;;  %v655_v31 = vshll.u32 %v2004_v21, 16  ;;  %1460 = vmatprep.subr.bf16.mxu0 %v2007_v26  ;;  %v2020_v36 = vld [vmem:[%s1970_s6 + $0x10] sm:$0xf]  ;;  %1436 = vmatprep.subr.bf16.mxu1 %v2016_v32  ;;  %s1400_s20 = sshll.u32 %s1808_s16, 7 }
  0x71   : > { %v254_v33 = vrot.slane %v253_v22, 4  ;;  %vm314_vm3 = vcmask 130048   ;;  %v634_v34 = vrot.slane %v632_v23, 4  ;;  %v637_v35 = vrot.slane %v635_v24, 5  ;;  %v2023_v40 = vld [vmem:[%s1970_s6 + $0x18] sm:$0xf]  ;;  %s2175_s22 = scalar_lea.hbm %s2223_s3, %s1400_s20 }
  0x72   : > { %v268_v37 = vrot.slane %v267_v28, 4  ;;  %v648_v38 = vrot.slane %v646_v29, 4  ;;  %v651_v39 = vrot.slane %v649_v30, 5  ;;  %vm453_vm4 = vcmask 1042432   ;;  %v2029_v45 = vld [vmem:[%s1970_s6 + $0x14] sm:$0x1] }
  0x73   : > { %v259_v41 = vsel %vm2011_vm2, %v254_v33, %v258_v15  ;;  %v638_v42 = vor.u32 %v637_v35, %v634_v34  ;;  %v643_v43 = vrot.slane %v641_v25, 5  ;;  %v657_v44 = vrot.slane %v655_v31, 5  ;;  %v2034_v48 = vld [vmem:[%s1970_s6 + $0x1c] sm:$0x1]  ;;  %v1341_v55 = vld [vmem:[%s1970_s6 + $0x18] sm:$0xf] }
  0x74   : > { %v273_v46 = vsel %vm2011_vm2, %v268_v37, %v272_v19  ;;  %v652_v47 = vor.u32 %v651_v39, %v648_v38  ;;  %v275_v49 = vshrl.u32 %v2020_v36, 16  ;;  %v278_v50 = vshll.u32 %v2020_v36, 16  ;;  %v2043_v60 = vld [vmem:[%s1970_s6 + $0x1c] sm:$0x1]  ;;  %v1343_v0 = vld [vmem:[%s1970_s6 + $0x20] sm:$0xf] }
  0x75   : > { %v1309_v51 = vcombine.low %v259_v41, %v273_v46  ;;  %v639_v52 = vrot.slane %v638_v42, 4  ;;  %v284_v53 = vshll.u32 %v2029_v45, 16  ;;  %v289_v54 = vshrl.u32 %v2023_v40, 16  ;;  %v2053_v9 = vld [vmem:[%s1970_s6 + $0x24] sm:$0x1]  ;;  %s215_s7 = scalar_lea.vmem [#allocation8], %s1308_s18 }
  0x76   : > { %v653_v56 = vrot.slane %v652_v47, 4  ;;  %v277_v57 = vrot.slane %v275_v49, 4  ;;  %v280_v58 = vrot.slane %v278_v50, 5  ;;  %v292_v59 = vshll.u32 %v2023_v40, 16  ;;  %v1350_v13 = vld [vmem:[%s1970_s6 + $0x8] sm:$0xe] }
  0x77   : > { %1432 = vmatprep.mubr.msk.bf16.mxu1 %vm314_vm3, %v1309_v51  ;;  %v644_v61 = vsel %vm2011_vm2, %v639_v52, %v643_v43  ;;  %v291_v62 = vrot.slane %v289_v54, 4  ;;  %v298_v63 = vshll.u32 %v2034_v48, 16  ;;  %v286_v7 = vrot.slane %v284_v53, 5  ;;  %v1351_v30 = vld [vmem:[%s1970_s6 + $0x10] sm:$0xe]  ;;  %s1210_s8 = sshll.u32 %s215_s7, 4  ;;  %s2177_s8 = int_to_ptr.vmem [resolvable:$true] %s1210_s8 }
  0x78   : > { %v658_v1 = vsel %vm2011_vm2, %v653_v56, %v657_v44  ;;  %v281_v6 = vor.u32 %v280_v58, %v277_v57  ;;  %v294_v8 = vrot.slane %v292_v59, 5  ;;  %v660_v12 = vshrl.u32 %v1341_v55, 16  ;;  %v1595_v46 = vld [vmem:[#allocation5 + $0x10] sm:$0xff]   ;;  %s1197_s29 = scalar_lea.sflag [#allocation4], %s1966_s30  ;;  %s1689_s25 = scalar_lea.vmem %s2177_s8, 128 }
  0x79   : > { %v1345_v10 = vcombine.low %v644_v61, %v658_v1  ;;  %v300_v11 = vrot.slane %v298_v63, 5  ;;  %vm454_vm5 = vcmask 1046532   ;;  %v663_v16 = vshll.u32 %v1341_v55, 16  ;;  %v441_v47 = vld [vmem:[%s1970_s6] sm:$0xe]  ;;  %p1690_p11 = scmp.ne.s32.totalorder %s2177_s8, %s1689_s25  ;;  %p2241_p0 = scmp.ne.s32.totalorder %s2232_s9, 0 }
  0x7a   : > { %v282_v14 = vrot.slane %v281_v6, 4  ;;  %v295_v15 = vor.u32 %v294_v8, %v291_v62  ;;  %v669_v18 = vshll.u32 %v2043_v60, 16  ;;  %v662_v19 = vrot.slane %v660_v12, 4  ;;  %vm2068_vm6 = vmor %vm453_vm4, %vm454_vm5  ;;  %v1593_v57 = vld [vmem:[#allocation5 + $0x30] sm:$0xff]   ;;  %v1352_v61 = vld [vmem:[%s1970_s6 + $0x18] sm:$0xe] }
  0x7b   : > { %1456 = vmatprep.mubr.msk.bf16.mxu0 %vm314_vm3, %v1345_v10  ;;  %v674_v20 = vshrl.u32 %v1343_v0, 16  ;;  %v677_v22 = vshll.u32 %v1343_v0, 16  ;;  %v683_v23 = vshll.u32 %v2053_v9, 16  ;;  %v772_v24 = vrot.slane %v2000_v17, 5  ;;  %v1374_v8 = vld [vmem:[%s1970_s6 + $0x18] sm:$0xf]  ;;  %p1691_p2 = pnand %p1690_p11, %p2241_p0 }
  0x7c   : > { %v287_v25 = vsel %vm2011_vm2, %v282_v14, %v286_v7  ;;  %v296_v28 = vrot.slane %v295_v15, 4  ;;  %v665_v29 = vrot.slane %v663_v16, 5  ;;  %v776_v31 = vrot.slane %v2004_v21, 5  ;;  %v1372_v7 = vld [vmem:[%s1970_s6 + $0x10] sm:$0xf]  ;;  %s1766_s16 = smov [#allocation8]  }
  0x7d   : > { %v676_v33 = vrot.slane %v674_v20, 4  ;;  %v679_v34 = vrot.slane %v677_v22, 5  ;;  %v1314_v35 = vcombine.low %v1981_v2, %v1984_v3  ;;  %v671_v39 = vrot.slane %v669_v18, 5  ;;  %v442_v3 = vld [vmem:[%s1970_s6 + $0x8] sm:$0xe]  ;;  %p1692_p3 = pneg %p1691_p2  ;;  %s1693_s24 = sshll.u32 %s1766_s16, 4  ;;  %s1694_s24 = int_to_ptr.vmem [resolvable:$false] %s1693_s24 }
  0x7e   : > { %v301_v17 = vsel %vm2011_vm2, %v296_v28, %v300_v11  ;;  %v666_v38 = vor.u32 %v665_v29, %v662_v19  ;;  %v1354_v41 = vrot.slane %v1350_v13, 9  ;;  %v685_v43 = vrot.slane %v683_v23, 5  ;;  %v1599_v13 = vld [vmem:[#allocation5 + $0x18] sm:$0xff]   ;;  %v443_v16 = vld [vmem:[%s1970_s6 + $0x10] sm:$0xe]  ;;  %s1695_s11 = scalar_lea.vmem %s1694_s24, 256  ;;  %p1696_p7 = scmp.lt.s32.totalorder %s2177_s8, %s1694_s24 }
  0x7f   : > { %v1310_v42 = vcombine.low %v287_v25, %v301_v17  ;;  %v680_v21 = vor.u32 %v679_v34, %v676_v33  ;;  %v1355_v44 = vrot.slane %v1351_v30, 9  ;;  %v458_v52 = vrot.slane %v1987_v4, 5  ;;  %v444_v18 = vld [vmem:[%s1970_s6 + $0x18] sm:$0xe]  ;;  %p1697_p9 = scmp.lt.s32.totalorder %s1695_s11, %s1689_s25 }
  0x80   : > { %v667_v49 = vrot.slane %v666_v38, 4  ;;  %v773_v2 = vsel %vm2068_vm6, %v1354_v41, %v772_v24  ;;  %v462_v53 = vrot.slane %v1990_v5, 5  ;;  %v1319_v58 = vrot.slane %v441_v47, 9  ;;  %v1353_v5 = vld [vmem:[%s1970_s6 + $0x20] sm:$0xe]  ;;  %v1597_v33 = vld [vmem:[#allocation5 + $0x38] sm:$0xff]  }
  0x81   : > { %1433 = vmatmul.mubr.msk.bf16.vlgmr.msra.gmra.mrb[0].mxu1 %vm314_vm3, %v1310_v42  ;;  %v681_v50 = vrot.slane %v680_v21, 4  ;;  %v777_v51 = vsel %vm2068_vm6, %v1355_v44, %v776_v31  ;;  %v1320_v59 = vrot.slane %v442_v3, 9  ;;  %v780_v62 = vrot.slane %v2043_v60, 5  ;;  %v2116_v24 = vld [vmem:[%s1970_s6 + $0x1c] sm:$0x1]  ;;  %p1698_p12 = por %p1697_p9, %p1696_p7 }
  0x82   : > { %v672_v54 = vsel %vm2011_vm2, %v667_v49, %v671_v39  ;;  %1437 = vmatpush3.bf16.msra.mxu1 %v2016_v32  ;;  %1438 = vmatprep.mubr.msk.bf16.mxu1 %vm314_vm3, %v1314_v35  ;;  %v1358_v56 = vcombine.low %v773_v2, %v777_v51  ;;  %v784_v32 = vrot.slane %v2053_v9, 5  ;;  %v1356_v63 = vrot.slane %v1352_v61, 9  ;;  %v1596_v31 = vld [vmem:[%s1970_s6 + $0x10] ss:$8 sps:$4 sm:$0xff]   ;;  %v1376_v38 = vld [vmem:[%s1970_s6 + $0x20] sm:$0xf] }
  0x83   : > { %v686_v55 = vsel %vm2011_vm2, %v681_v50, %v685_v43  ;;  %1442 = vmatprep.subr.bf16.mxu1 %v1595_v46  ;;  %v1357_v0 = vrot.slane %v1353_v5, 9  ;;  %v459_v1 = vsel %vm2068_vm6, %v1319_v58, %v458_v52  ;;  %v463_v6 = vsel %vm2068_vm6, %v1320_v59, %v462_v53  ;;  %v1378_v39 = vld [vmem:[%s1970_s6 + $0x28] sm:$0xf]  ;;  %v1377_v51 = vld [vmem:[%s1970_s6 + $0x24] sm:$0x1]  ;;  %p1699_p1 = pnand %p1698_p12, %p1692_p3 }
  0x84   : > { %v1346_v4 = vcombine.low %v672_v54, %v686_v55  ;;  %v946_v60 = vshrl.u32 %v1372_v7, 16  ;;  %v949_v10 = vshll.u32 %v1372_v7, 16  ;;  %v960_v9 = vshrl.u32 %v1374_v8, 16  ;;  %v1600_v50 = vld [vmem:[%s1970_s6 + $0x8] ss:$8 sps:$4 sm:$0xff]  }
  0x85   : > { %v963_v11 = vshll.u32 %v1374_v8, 16  ;;  %v1323_v12 = vcombine.low %v459_v1, %v463_v6  ;;  %v781_v14 = vsel %vm2068_vm6, %v1356_v63, %v780_v62  ;;  %v785_v15 = vsel %vm2068_vm6, %v1357_v0, %v784_v32  ;;  %v1379_v58 = vld [vmem:[%s1970_s6 + $0x2c] sm:$0x1]  ;;  %v1598_v59 = vld [vmem:[%s1970_s6 + $0x20] ss:$8 sps:$4 sm:$0xff]  }
  0x86   : > { %1457 = vmatmul.mubr.msk.bf16.vlgmr.msra.gmra.mrb[0].mxu0 %vm314_vm3, %v1346_v4  ;;  %v948_v19 = vrot.slane %v946_v60, 4  ;;  %v951_v20 = vrot.slane %v949_v10, 5  ;;  %v962_v22 = vrot.slane %v960_v9, 4  ;;  %v470_v25 = vrot.slane %v2034_v48, 5  ;;  %v1601_v63 = vld [vmem:[#allocation5 + $0x40] sm:$0xff]  }
  0x87   : > { %1461 = vmatpush3.bf16.msra.mxu0 %v2007_v26  ;;  %1462 = vmatprep.mubr.msk.bf16.mxu0 %vm314_vm3, %v1358_v56  ;;  %v1315_v26 = vcombine.low %v2020_v36, %v2023_v40  ;;  %v965_v23 = vrot.slane %v963_v11, 5  ;;  %v466_v36 = vrot.slane %v2029_v45, 5  ;;  %v2113_v40 = vld [vmem:[%s1970_s6 + $0x14] sm:$0x1]  ;;  %v1359_v28 = vcombine.low %v781_v14, %v785_v15  ;;  %v1385_v0 = vld [vmem:[%s1970_s6 + $0x10] sm:$0xe] }
  0x88   : > { %1466 = vmatprep.subr.bf16.mxu0 %v1593_v57  ;;  %v1321_v29 = vrot.slane %v443_v16, 9  ;;  %v1322_v30 = vrot.slane %v444_v18, 9  ;;  %v952_v45 = vor.u32 %v951_v20, %v948_v19  ;;  %v955_v34 = vshll.u32 %v2113_v40, 16  ;;  %v1386_v1 = vld [vmem:[%s1970_s6 + $0x18] sm:$0xe] }
  0x89   : > { %v966_v35 = vor.u32 %v965_v23, %v962_v22  ;;  %v969_v17 = vshll.u32 %v2116_v24, 16  ;;  %v974_v42 = vshrl.u32 %v1376_v38, 16  ;;  %v977_v21 = vshll.u32 %v1376_v38, 16  ;;  %v1387_v20 = vld [vmem:[%s1970_s6 + $0x20] sm:$0xe] }
  0x8a   : > { %v467_v48 = vsel %vm2068_vm6, %v1321_v29, %v466_v36  ;;  %v471_v41 = vsel %vm2068_vm6, %v1322_v30, %v470_v25  ;;  %v988_v43 = vshrl.u32 %v1378_v39, 16  ;;  %v991_v44 = vshll.u32 %v1378_v39, 16  ;;  %v1388_v22 = vld [vmem:[%s1970_s6 + $0x28] sm:$0xe] }
  0x8b   : > { %v957_v47 = vrot.slane %v955_v34, 5  ;;  %v967_v49 = vrot.slane %v966_v35, 4  ;;  %v971_v2 = vrot.slane %v969_v17, 5  ;;  %v1324_v3 = vcombine.low %v467_v48, %v471_v41  ;;  %v1398_v35 = vld [vmem:[#allocation7] ss:$0 sm:$0xff] }
  0x8c   : > { %v976_v52 = vrot.slane %v974_v42, 4  ;;  %v979_v53 = vrot.slane %v977_v21, 5  ;;  %v990_v54 = vrot.slane %v988_v43, 4  ;;  %v993_v55 = vrot.slane %v991_v44, 5 }
  0x8d   : > { %1439 = vmatmul.mubr.msk.bf16.vlgmr.msra.gmra.mrb[0].mxu1 %vm314_vm3, %v1315_v26  ;;  %v983_v4 = vshll.u32 %v1377_v51, 16  ;;  %v997_v32 = vshll.u32 %v1379_v58, 16  ;;  %v1389_v10 = vrot.slane %v1385_v0, 9  ;;  %v1086_v26 = vrot.slane %v2113_v40, 5 }
  0x8e   : > { %1443 = vmatpush3.bf16.msra.mxu1 %v1595_v46  ;;  %1444 = vmatprep.mubr.msk.bf16.mxu1 %vm314_vm3, %v1323_v12  ;;  %v953_v46 = vrot.slane %v952_v45, 4  ;;  %v980_v5 = vor.u32 %v979_v53, %v976_v52  ;;  %v994_v62 = vor.u32 %v993_v55, %v990_v54  ;;  %v1390_v9 = vrot.slane %v1386_v1, 9  ;;  %v1602_v12 = vld [vmem:[%s1970_s6 + $0x18] ss:$8 sps:$4 sm:$0xff]  }
  0x8f   : > { %1448 = vmatprep.subr.bf16.mxu1 %v1599_v13  ;;  %v985_v7 = vrot.slane %v983_v4, 5  ;;  %v999_v60 = vrot.slane %v997_v32, 5  ;;  %v1090_v11 = vrot.slane %v2116_v24, 5  ;;  %v1087_v15 = vsel %vm2068_vm6, %v1389_v10, %v1086_v26 }
  0x90   : > { %v958_v56 = vsel %vm2011_vm2, %v953_v46, %v957_v47  ;;  %v981_v6 = vrot.slane %v980_v5, 4  ;;  %v995_v8 = vrot.slane %v994_v62, 4  ;;  %v1391_v23 = vrot.slane %v1387_v20, 9 }
  0x91   : > { %v1091_v16 = vsel %vm2068_vm6, %v1390_v9, %v1090_v11  ;;  %v1094_v27 = vrot.slane %v1377_v51, 5  ;;  %v1392_v36 = vrot.slane %v1388_v22, 9  ;;  %v1098_v40 = vrot.slane %v1379_v58, 5 }
  0x92   : > { %1463 = vmatmul.mubr.msk.bf16.vlgmr.msra.gmra.mrb[0].mxu0 %vm314_vm3, %v1359_v28  ;;  %v1000_v14 = vsel %vm2011_vm2, %v995_v8, %v999_v60  ;;  %v1393_v19 = vcombine.low %v1087_v15, %v1091_v16  ;;  %vm1186_vm7 = vcmask 261120  }
  0x93   : > { %1467 = vmatpush3.bf16.msra.mxu0 %v1593_v57  ;;  %1468 = vmatprep.mubr.msk.bf16.mxu0 %vm314_vm3, %v1596_v31  ;;  %v972_v57 = vsel %vm2011_vm2, %v967_v49, %v971_v2  ;;  %v1095_v24 = vsel %vm2068_vm6, %v1391_v23, %v1094_v27  ;;  %v1099_v25 = vsel %vm2068_vm6, %v1392_v36, %v1098_v40 }
  0x94   : > { %1472 = vmatprep.subr.bf16.mxu0 %v1597_v33  ;;  %v1380_v61 = vcombine.low %v958_v56, %v972_v57  ;;  %v1394_v28 = vcombine.low %v1095_v24, %v1099_v25 }
  0x99   : > { %1445 = vmatmul.mubr.msk.bf16.vlgmr.msra.gmra.mrb[0].mxu1 %vm314_vm3, %v1324_v3 }
  0x9a   : > { %1449 = vmatpush3.bf16.msra.mxu1 %v1599_v13  ;;  %1450 = vmatprep.mubr.msk.bf16.mxu1 %vm314_vm3, %v1600_v50  ;;  %v986_v13 = vsel %vm2011_vm2, %v981_v6, %v985_v7 }
  0x9b   : > { %v1381_v18 = vcombine.low %v986_v13, %v1000_v14 }
  0x9e   : > { %1469 = vmatmul.mubr.msk.bf16.vlgmr.msra.gmra.mrb[0].mxu0 %vm314_vm3, %v1598_v59 }
  0x9f   : > { %1473 = vmatpush3.bf16.msra.mxu0 %v1597_v33  ;;  %1474 = vmatprep.mubr.msk.bf16.mxu0 %vm314_vm3, %v1380_v61 }
  0xa0   : > { %1478 = vmatprep.subr.bf16.mxu0 %v1601_v63 }
  0xa5   : > { %1451 = vmatmul.mubr.msk.bf16.vlgmr.msra.gmra.mrb[0].mxu1 %vm314_vm3, %v1602_v12 }
  0xaa   : > { %1475 = vmatmul.mubr.msk.bf16.vlgmr.msra.gmra.mrb[0].mxu0 %vm314_vm3, %v1381_v18 }
  0xab   : > { %1479 = vmatpush3.bf16.msra.mxu0 %v1601_v63  ;;  %1480 = vmatprep.mubr.msk.bf16.mxu0 %vm314_vm3, %v1393_v19 }
  0xb6   : > { %1481 = vmatmul.mubr.msk.bf16.vlgmr.msra.gmra.mrb[0].mxu0 %vm314_vm3, %v1394_v28 }
 0x178   : > { %v1452_v29 = vpop.f32.mrb[0].mxu1 }
 0x179   : > { %v604_v30 = vpop.f32.mrb[1].mxu1 }
 0x17a   : > { %v1453_v31 = vpop.f32.mrb[2].mxu1 }
 0x17b   : > { %v607_v33 = vpop.f32.mrb[3].mxu1 }
 0x189   : > { %v1482_v45 = vpop.f32.mrb[0].mxu0 }
 0x18a   : > { %v1484_v34 = vadd.f32 %v1482_v45, %v1452_v29  ;;  %v1152_v17 = vpop.f32.mrb[1].mxu0 }
 0x18b   : > { %v1485_v38 = vadd.f32 %v1152_v17, %v604_v30  ;;  %v1483_v39 = vpop.f32.mrb[2].mxu0 }
 0x18c   : > { %v1486_v48 = vadd.f32 %v1483_v39, %v1453_v31  ;;  %v1155_v41 = vpop.f32.mrb[3].mxu0  ;;  %v1180_v42 = vadd.f32 %v1484_v34, %v1398_v35 }
 0x18d   : > { %v1178_v21 = vadd.f32 %v1485_v38, %v1398_v35  ;;  %v1487_v37 = vadd.f32 %v1155_v41, %v607_v33 }
 0x18e   : > { %v1181_v44 = vadd.f32 %v1486_v48, %v1398_v35  ;;  %v1184_v47 = vmax.f32 %v1180_v42, 0.0 }
 0x18f   : > { %v1182_v43 = vmax.f32 %v1178_v21, 0.0  ;;  %v1179_v46 = vadd.f32 %v1487_v37, %v1398_v35 }
 0x190   : > { %v1185_v3 = vmax.f32 %v1181_v44, 0.0  ;;  %v1190_v52 = vsel %vm1186_vm7, %v1184_v47, 0.0 }
 0x191   : > { %v1183_v49 = vmax.f32 %v1179_v46, 0.0  ;;  %v1187_v2 = vsel %vm1186_vm7, %v1182_v43, 0.0 }
 0x192   : > { %v1192_v54 = vsel %vm1186_vm7, %v1185_v3, 0.0 }
 0x193   : > { %v1188_v50 = vsel %vm1186_vm7, %v1183_v49, 0.0 }
 0x194   : > { %v1189_v51 = vadd.f32 %v1188_v50, %v1187_v2 }
 0x196   : > { %v1191_v53 = vadd.f32 %v1190_v52, %v1189_v51 }
 0x198   : > { %v1193_v55 = vadd.f32 %v1192_v54, %v1191_v53 }
 0x19a   : > { %v1194_v56 = vmul.f32 0.25, %v1193_v55 }
 0x19c   : > { %1195 = vst.msk [vmem:[%s215_s7] sm:$0xff] %vm1186_vm7, %v1194_v56 }
 0x19d   : > { %1702 = shalt.err (!%p1699_p1)
}
 0x19e   : > { %s1703_s17 = scalar_lea.hbm %s2175_s22, 128  ;;  %s1707_s30 = scalar_lea.hbm %s2223_s3, 256 }
 0x19f   : > { %p1704_p13 = scmp.ne.s32.totalorder %s2175_s22, %s1703_s17  ;;  %p1708_p4 = scmp.lt.u32.totalorder %s2175_s22, %s2223_s3 }
 0x1a0   : > { %p1709_p5 = scmp.lt.u32.totalorder %s1707_s30, %s1703_s17  ;;  %p1711_p11 = scmp.lt.u32.totalorder %s1703_s17, %s2175_s22 }
 0x1a1   : > { %p1705_p6 = pnand %p1704_p13, %p2241_p0 }
 0x1a2   : > { %p1710_p8 = por %p1709_p5, %p1708_p4 }
 0x1a3   : > { %p1706_p10 = pneg %p1705_p6 }
 0x1a4   : > { %p1712_p2 = por %p1711_p11, %p1710_p8 }
 0x1a6   : > { %p1713_p3 = pnand %p1712_p2, %p1706_p10 }
 0x1a8   : > { %1716 = shalt.err (!%p1713_p3)
}
 0x1a9   : > { %1529 = dma.vmem_to_hbm [thread:$0]  (%p2241_p0), %s2177_s8, 128, %s2175_s22, %s1197_s29  }
 0x1aa PF: > { %s1222_s6 = sand.u32 1, %s1747_s12   ;;  %p2242_p7 = scmp.ne.s32.totalorder %s2228_s19, 0 }
 0x1ab   : > { %p2243_p9 = scmp.ge.s32.totalorder %s1759_s15, 2  ;;  %s1223_s18 = scalar_lea.sflag [#allocation4], %s1222_s6 }
 0x1ad   : > { %p1543_p12 = pnand %p2243_p9, %p2242_p7 }
 0x1af   : > { %1742 = dma.done.wait (!%p1543_p12), %s1223_s18, 128  }
 0x1b0   : > { %1744 = vsyncadd (!%p1543_p12), %s1223_s18, 4294967168  ;;  %p17_p1 = scmp.ge.s32.totalorder %s1901_s5, 4   ;;  %s2244_s12 = smov %s1751_s13 }
 0x1b1   : > { %s2245_s13 = smov %s1755_s14  ;;  %s2246_s14 = smov %s1917_s10 }
 0x1b2   : > { %s2247_s15 = smov %s1901_s5  ;;  %19 = sbr.rel (!%p17_p1) target bundleno = 6 (0x6), region = 87 }
 0x1b9   :  { %1228 = vsyncpa [#allocation3], 1 }
 0x1ba   :  { %1230 = vsyncpa [#allocation3 + $0x1], 1 }
 0x1bb   :  { %1231 = vsyncpa [#allocation6], 1 }
 0x1bc   :  { %1232 = vsyncpa [#allocation4], 1 }
 0x1bd   :  { %1234 = vsyncpa [#allocation4 + $0x1], 1 }

// kernel: crnn_forward.8
= control target key start
LH: loop header
LB: loop body
LE: loop exit
PB: predicated region body
PF: predicated region fallthrough
CT: control target
= control target key end

     0   :  { %8 = vsyncpa [#allocation3], 0  ;;  %s4969_s0 = inlined_call_operand.hbm [shape: bf16[2,18,10,1], index: 0, kind: input, shape index: {}]   ;;  %s4970_s1 = inlined_call_operand.hbm [shape: f32[9,8], index: 1, kind: input, shape index: {}]   ;;  %s4971_s2 = inlined_call_operand.hbm [shape: f32[1,8], index: 2, kind: input, shape index: {}]   ;;  %s4972_s3 = inlined_call_operand.hbm [shape: f32[2,8,8,8], index: 3, kind: output, shape index: {}]  }
   0x1   :  { %10 = vsyncpa [#allocation3 + $0x1], 0 }
   0x2   :  { %11 = vsyncpa [#allocation6], 0 }
   0x3   :  { %12 = vsyncpa [#allocation4], 0 }
   0x4   :  { %14 = vsyncpa [#allocation4 + $0x1], 0  ;;  %s3646_s12 = smov 0   ;;  %s3648_s13 = smov 0  }
   0x5   :  { %s3650_s14 = smov 0   ;;  %s3652_s15 = smov 0  }
   0x6 LB: > { %s3667_s16 = sadd.s32 4294967295, %s3613_s15   ;;  %s2824_s17 = sadd.s32 4294967294, %s3613_s15   ;;  %s3613_s15 = sphi %s3652_s15, %s4996_s15   ;;  %s3609_s14 = sphi %s3650_s14, %s4995_s14   ;;  %s3605_s13 = sphi %s3648_s13, %s4994_s13   ;;  %s3601_s12 = sphi %s3646_s12, %s4993_s12  }
   0x7   : > { %p40_p0 = scmp.ne.s32.totalorder %s3605_s13, %s3601_s12  ;;  %p4973_p1 = scmp.eq.s32.totalorder %s3667_s16, 0 }
   0x8   : > { %p112_p3 = scmp.eq.s32.totalorder %s2824_s17, 1  ;;  %p2825_p5 = scmp.ge.s32.totalorder %s3613_s15, 1 }
   0x9   : > { %p3676_p4 = por %p4973_p1, %p40_p0  ;;  %p119_p7 = scmp.lt.s32.totalorder %s3613_s15, 3 }
   0xa   : > { %p3681_p6 = por %p112_p3, %p40_p0  ;;  %s3615_s21 = smov [#allocation5]  }
   0xb   : > { %s4976_s18 = scalar_select %p3676_p4, 1, 0 }
   0xc   : > { %s4977_s19 = scalar_select %p3681_p6, 1, 0 }
   0xd   : > { %p3686_p8 = pnand %p2825_p5, %p119_p7  ;;  %s131_s22 = sshll.u32 %s3615_s21, 4  ;;  %s3690_s22 = int_to_ptr.vmem [resolvable:$true] %s131_s22 }
   0xe   : > { %s3616_s24 = smov [#allocation7]   ;;  %s3457_s28 = scalar_lea.hbm %s4970_s1, 256 }
   0xf   : > { %p3033_p9 = pneg %p3686_p8  ;;  %s145_s25 = sshll.u32 %s3616_s24, 4  ;;  %s3701_s25 = int_to_ptr.vmem [resolvable:$true] %s145_s25 }
  0x10   : > { %p3458_p12 = scmp.ne.s32.totalorder %s4970_s1, %s3457_s28  ;;  %p3464_p5 = scmp.lt.u32.totalorder %s3457_s28, %s4970_s1 }
  0x11   : > { %p3697_p11 = pnand %p3033_p9, %p4973_p1 }
  0x13   : > { %p3459_p13 = pneg %p3697_p11 }
  0x15   : > { %p3460_p0 = pnand %p3459_p13, %p3458_p12 }
  0x17   : > { %p3461_p3 = pneg %p3460_p0 }
  0x19   : > { %p3466_p7 = pnand %p3464_p5, %p3461_p3 }
  0x1b   : > { %3469 = shalt.err (!%p3466_p7)
}
  0x1c   : > { %s3470_s6 = scalar_lea.vmem %s3690_s22, 256  ;;  %p3478_p2 = scmp.lt.s32.totalorder %s3690_s22, %s3690_s22 }
  0x1d   : > { %p3471_p9 = scmp.ne.s32.totalorder %s3690_s22, %s3470_s6  ;;  %p3479_p12 = scmp.lt.s32.totalorder %s3470_s6, %s3470_s6 }
  0x1f   : > { %p3473_p10 = pnand %p3471_p9, %p3459_p13  ;;  %p3480_p0 = por %p3479_p12, %p3478_p2 }
  0x21   : > { %p3474_p1 = pneg %p3473_p10 }
  0x23   : > { %p3481_p6 = pnand %p3480_p0, %p3474_p1 }
  0x25   : > { %3484 = shalt.err (!%p3481_p6)
}
  0x26   : > { %s3617_s7 = smov 128   ;;  %s3618_s8 = smov 8  }
  0x27   : > { %3036 = dma.hbm_to_vmem [thread:$0]  (!%p3697_p11), %s4970_s1, 256, %s3690_s22, [#allocation6], %s3617_s7, %s3617_s7, %s3618_s8  }
  0x28   : > { %s3485_s21 = scalar_lea.hbm %s4971_s2, 16 }
  0x29   : > { %p3486_p2 = scmp.ne.s32.totalorder %s4971_s2, %s3485_s21  ;;  %p3492_p10 = scmp.lt.u32.totalorder %s3485_s21, %s4971_s2 }
  0x2b   : > { %p3488_p1 = pnand %p3486_p2, %p3459_p13 }
  0x2d   : > { %p3489_p6 = pneg %p3488_p1 }
  0x2f   : > { %p3494_p3 = pnand %p3492_p10, %p3489_p6 }
  0x31   : > { %3497 = shalt.err (!%p3494_p3)
}
  0x32   : > { %s3498_s22 = scalar_lea.vmem %s3701_s25, 16  ;;  %s3505_s29 = scalar_lea.vmem %s3701_s25, 32 }
  0x33   : > { %p3499_p5 = scmp.ne.s32.totalorder %s3701_s25, %s3498_s22  ;;  %p3506_p12 = scmp.lt.s32.totalorder %s3701_s25, %s3701_s25 }
  0x34   : > { %p3507_p0 = scmp.lt.s32.totalorder %s3505_s29, %s3498_s22 }
  0x35   : > { %p3501_p7 = pnand %p3499_p5, %p3459_p13 }
  0x36   : > { %p3508_p2 = por %p3507_p0, %p3506_p12 }
  0x37   : > { %p3502_p9 = pneg %p3501_p7 }
  0x39   : > { %p3509_p1 = pnand %p3508_p2, %p3502_p9 }
  0x3b   : > { %3512 = shalt.err (!%p3509_p1)
}
  0x3c   : > { %3039 = dma.hbm_to_vmem [thread:$0]  (!%p3697_p11), %s4971_s2, 16, %s3701_s25, [#allocation6]  }
  0x3d   : > { %s3757_s5 = sadd.s32 1, %s3613_s15   ;;  %s27_s23 = sadd.s32 1, %s3609_s14 }
  0x3e   : > { %s24_s6 = ssub.s32 %s3613_s15, %s3757_s5  ;;  %p34_p13 = scmp.ne.s32.totalorder %s3609_s14, %s3605_s13 }
  0x3f   : > { %p25_p6 = scmp.eq.s32.totalorder %s24_s6, 0  ;;  %p35_p10 = scmp.eq.s32.totalorder %s3613_s15, 0 }
  0x40   : > { %p4980_p3 = scmp.eq.s32.totalorder %s3667_s16, 1  ;;  %p3050_p7 = scmp.lt.s32.totalorder %s3613_s15, 2 }
  0x41   : > { %s3773_s8 = scalar_select %p25_p6, %s3609_s14, %s27_s23  }
  0x42   : > { %p3767_p5 = por %p4980_p3, %p34_p13  ;;  %p36_p9 = por %p35_p10, %p34_p13 }
  0x43   : > { %s156_s9 = sand.u32 1, %s3609_s14   ;;  %s3019_s25 = smul.u32 2304, %s3613_s15 }
  0x44   : > { %s4981_s7 = scalar_select %p3767_p5, 1, 0 }
  0x45   : > { %s3018_s10 = smul.u32 144, %s156_s9  ;;  %p3777_p11 = pnand %p3050_p7, %p36_p9 }
  0x46   : > { %s3784_s24 = scalar_lea.hbm %s4969_s0, %s3019_s25  ;;  %s3788_s28 = scalar_lea.sflag [#allocation3], %s156_s9 }
  0x47   : > { %s160_s26 = scalar_lea.vmem [#allocation2], %s3018_s10  ;;  %s3513_s22 = scalar_lea.hbm %s3784_s24, 2304 }
  0x48   : > { %s167_s27 = sshll.u32 %s160_s26, 4  ;;  %p3514_p12 = scmp.ne.s32.totalorder %s3784_s24, %s3513_s22  ;;  %s3786_s27 = int_to_ptr.vmem [resolvable:$true] %s167_s27 }
  0x49   : > { %p3515_p0 = pneg %p3777_p11  ;;  %s3518_s4 = scalar_lea.hbm %s4969_s0, 4608 }
  0x4a   : > { %p3519_p13 = scmp.lt.u32.totalorder %s3784_s24, %s4969_s0  ;;  %p3520_p6 = scmp.lt.u32.totalorder %s3518_s4, %s3513_s22 }
  0x4b   : > { %p3516_p2 = pnand %p3515_p0, %p3514_p12  ;;  %p3522_p3 = scmp.lt.u32.totalorder %s3513_s22, %s3784_s24 }
  0x4c   : > { %p3521_p10 = por %p3520_p6, %p3519_p13 }
  0x4d   : > { %p3517_p1 = pneg %p3516_p2 }
  0x4e   : > { %p3523_p7 = por %p3522_p3, %p3521_p10 }
  0x50   : > { %p3524_p9 = pnand %p3523_p7, %p3517_p1 }
  0x52   : > { %3527 = shalt.err (!%p3524_p9)
}
  0x53   : > { %s3528_s9 = scalar_lea.vmem %s3786_s27, 2304  ;;  %s3619_s10 = smov [#allocation2]  }
  0x54   : > { %p3529_p12 = scmp.ne.s32.totalorder %s3786_s27, %s3528_s9  ;;  %s3533_s25 = sshll.u32 %s3619_s10, 4  ;;  %s3534_s25 = int_to_ptr.vmem [resolvable:$false] %s3533_s25 }
  0x55   : > { %s3535_s17 = scalar_lea.vmem %s3534_s25, 4608  ;;  %p3536_p4 = scmp.lt.s32.totalorder %s3786_s27, %s3534_s25 }
  0x56   : > { %p3531_p2 = pnand %p3529_p12, %p3515_p0  ;;  %p3537_p13 = scmp.lt.s32.totalorder %s3535_s17, %s3528_s9 }
  0x58   : > { %p3532_p5 = pneg %p3531_p2  ;;  %p3538_p6 = por %p3537_p13, %p3536_p4 }
  0x5a   : > { %p3539_p10 = pnand %p3538_p6, %p3532_p5 }
  0x5c   : > { %3542 = shalt.err (!%p3539_p10)
}
  0x5d   : > { %s3620_s21 = smov 64   ;;  %s3621_s26 = smov 4  }
  0x5e   : > { %3043 = dma.hbm_to_vmem [thread:$0]  (!%p3777_p11), %s3784_s24, 2304, %s3786_s27, %s3788_s28, %s3620_s21, %s3620_s21, %s3621_s26  }
  0x5f   : > { %179 = sbr.rel (%p3686_p8) target bundleno = 475 (0x1db), region = 32  ;;  %s3819_s22 = sand.u32 (!%p3686_p8), 1, %s3605_s13  }
  0x60   : > { %s3020_s29 = smul.u32 (!%p3686_p8), 144, %s3819_s22  ;;  %s182_s30 = scalar_lea.sflag (!%p3686_p8), [#allocation3], %s3819_s22 }
  0x61   : > { %p4983_p4 = scmp.ne.s32.totalorder (!%p3686_p8), %s4976_s18, 0 }
  0x62   : > { %s3823_s4 = scalar_lea.vmem (!%p3686_p8), [#allocation2], %s3020_s29 }
  0x66   : > { %3588 = dma.done.wait (%p4983_p4), %s182_s30, 2304  }
  0x67   : > { %3590 = vsyncadd (%p4983_p4), %s182_s30, 4294964992  ;;  %p4984_p5 = scmp.eq.s32.totalorder %s3667_s16, 0 }
  0x69   : > { %3592 = dma.done.wait (%p4984_p5), [#allocation6], 272   ;;  %p4985_p8 = pmov %p4984_p5 }
  0x6a   : > { %v3622_v0 = vmov 0   ;;  %v222_v1 = vld [vmem:[%s3823_s4 + $0x20] ss:$8 sps:$4 sm:$0xff]   ;;  %v224_v3 = vld [vmem:[%s3823_s4 + $0x30] ss:$8 sps:$4 sm:$0xff]   ;;  %vm821_vm3 = vcmask 1042432  }
  0x6b   : > { %3594 = vsyncadd (%p4985_p8), [#allocation6], 4294967024  ;;  %3106 = vset.pattern.permute.xlu1 %v3622_v0  ;;  %3095 = vset.pattern.permute.xlu0 %v3622_v0  ;;  %v218_v2 = vld [vmem:[%s3823_s4] ss:$8 sps:$4 sm:$0xff]   ;;  %vm398_vm0 = vsmask.f32 3328  ;;  %v238_v4 = vunpack.c.l.bf16 %v222_v1  ;;  %v239_v5 = vunpack.c.h.bf16 %v222_v1  ;;  %v240_v11 = vunpack.c.l.bf16 %v224_v3 }
  0x6c   : > { %vm399_vm1 = vsmask.f32 7440  ;;  %v234_v6 = vunpack.c.l.bf16 %v218_v2  ;;  %v235_v7 = vunpack.c.h.bf16 %v218_v2  ;;  %v220_v8 = vld [vmem:[%s3823_s4 + $0x10] ss:$8 sps:$4 sm:$0xff]   ;;  %v226_v10 = vld [vmem:[%s3823_s4 + $0x40] ss:$8 sps:$4 sm:$0xff]   ;;  %v241_v12 = vunpack.c.h.bf16 %v224_v3 }
  0x6d   : > { %v228_v9 = vld [vmem:[%s3823_s4 + $0x50] ss:$8 sps:$4 sm:$0xff]   ;;  %v236_v13 = vunpack.c.l.bf16 %v220_v8  ;;  %v237_v14 = vunpack.c.h.bf16 %v220_v8  ;;  %v230_v16 = vld [vmem:[%s3823_s4 + $0x60] ss:$8 sps:$4 sm:$0xff]   ;;  %v3107_v17 = vpack.i.bf16 %v239_v5, %v238_v4  ;;  %v242_v24 = vunpack.c.l.bf16 %v226_v10  ;;  %v3843_v26 = vld [vmem:[%s3823_s4 + $0x14] sm:$0x1] }
  0x6e   : > { %v232_v15 = vld [vmem:[%s3823_s4 + $0x70] ss:$8 sps:$4 sm:$0xff]   ;;  %v3096_v18 = vpack.i.bf16 %v235_v7, %v234_v6  ;;  %v244_v19 = vunpack.c.l.bf16 %v228_v9  ;;  %v245_v20 = vunpack.c.h.bf16 %v228_v9  ;;  %v3112_v22 = vpack.i.bf16 %v241_v12, %v240_v11  ;;  %v3847_v32 = vld [vmem:[%s3823_s4 + $0x1c] sm:$0x1]  ;;  %v366_v37 = vld [vmem:[%s3823_s4] sm:$0xf] }
  0x6f   : > { %v370_v21 = vld [vmem:[%s3823_s4 + $0x10] sm:$0xf]  ;;  %v3101_v23 = vpack.i.bf16 %v237_v14, %v236_v13  ;;  %v243_v25 = vunpack.c.h.bf16 %v226_v10  ;;  %v372_v27 = vld [vmem:[%s3823_s4 + $0x18] sm:$0xf]  ;;  %3108 = vperm.xlu1 %3106, %v3107_v17   ;;  %v248_v29 = vunpack.c.l.bf16 %v232_v15  ;;  %v249_v30 = vunpack.c.h.bf16 %v232_v15  ;;  %v3852_v42 = vld [vmem:[%s3823_s4 + $0x4] sm:$0x1] }
  0x70   : > { %3097 = vperm.xlu0 %3095, %v3096_v18   ;;  %v3122_v28 = vpack.i.bf16 %v245_v20, %v244_v19  ;;  %v246_v31 = vunpack.c.l.bf16 %v230_v16  ;;  %v247_v34 = vunpack.c.h.bf16 %v230_v16  ;;  %v430_v35 = vshrl.u32 %v370_v21, 16  ;;  %v368_v47 = vld [vmem:[%s3823_s4 + $0x8] sm:$0xf]  ;;  %v3857_v51 = vld [vmem:[%s3823_s4 + $0xc] sm:$0x1]  ;;  %vm3863_vm2 = vmor %vm398_vm0, %vm399_vm1  ;;  %s2833_s18 = sshll.u32 %s3819_s22, 6 }
  0x71   : > { %v3117_v33 = vpack.i.bf16 %v243_v25, %v242_v24  ;;  %v433_v36 = vshll.u32 %v370_v21, 16  ;;  %v3132_v38 = vpack.i.bf16 %v249_v30, %v248_v29  ;;  %v439_v39 = vshll.u32 %v3843_v26, 16  ;;  %v378_v57 = vld [vmem:[%s3823_s4 + $0x30] sm:$0xf]  ;;  %v3869_v6 = vld [vmem:[%s3823_s4 + $0x34] sm:$0x1] }
  0x72   : > { %v444_v40 = vshrl.u32 %v372_v27, 16  ;;  %v447_v41 = vshll.u32 %v372_v27, 16  ;;  %v3127_v43 = vpack.i.bf16 %v247_v34, %v246_v31  ;;  %v432_v44 = vrot.slane %v430_v35, 4  ;;  %v380_v11 = vld [vmem:[%s3823_s4 + $0x38] sm:$0xf]  ;;  %s4869_s20 = scalar_lea.vmem [#allocation8], %s2833_s18 }
  0x73   : > { %v435_v45 = vrot.slane %v433_v36, 5  ;;  %v453_v46 = vshll.u32 %v3847_v32, 16  ;;  %3113 = vperm.xlu1 %3106, %v3112_v22   ;;  %v441_v48 = vrot.slane %v439_v39, 5  ;;  %v402_v52 = vshrl.u32 %v366_v37, 16  ;;  %v3875_v12 = vld [vmem:[%s3823_s4 + $0x3c] sm:$0x1] }
  0x74   : > { %3102 = vperm.xlu0 %3095, %v3101_v23   ;;  %v446_v49 = vrot.slane %v444_v40, 4  ;;  %v449_v50 = vrot.slane %v447_v41, 5  ;;  %v405_v55 = vshll.u32 %v366_v37, 16  ;;  %v411_v56 = vshll.u32 %v3852_v42, 16  ;;  %v374_v27 = vld [vmem:[%s3823_s4 + $0x20] sm:$0xf] }
  0x75   : > { %v436_v53 = vor.u32 %v435_v45, %v432_v44  ;;  %v455_v54 = vrot.slane %v453_v46, 5  ;;  %v404_v60 = vrot.slane %v402_v52, 4  ;;  %v416_v61 = vshrl.u32 %v368_v47, 16  ;;  %v376_v34 = vld [vmem:[%s3823_s4 + $0x28] sm:$0xf]  ;;  %s3017_s11 = sshll.u32 %s3667_s16, 10 }
  0x76   : > { %v450_v59 = vor.u32 %v449_v50, %v446_v49  ;;  %v419_v62 = vshll.u32 %v368_v47, 16  ;;  %v407_v0 = vrot.slane %v405_v55, 5  ;;  %v413_v1 = vrot.slane %v411_v56, 5  ;;  %v386_v49 = vld [vmem:[%s3823_s4 + $0x50] sm:$0xf]  ;;  %s2732_s24 = sshll.u32 %s4869_s20, 4  ;;  %s4921_s23 = scalar_lea.hbm %s4972_s3, %s3017_s11  ;;  %s4923_s24 = int_to_ptr.vmem [resolvable:$true] %s2732_s24 }
  0x77   : > { %v437_v63 = vrot.slane %v436_v53, 4  ;;  %v425_v2 = vshll.u32 %v3857_v51, 16  ;;  %3123 = vperm.xlu1 %3106, %v3122_v28   ;;  %v418_v4 = vrot.slane %v416_v61, 4  ;;  %v486_v7 = vshrl.u32 %v378_v57, 16  ;;  %v3898_v55 = vld [vmem:[%s3823_s4 + $0x54] sm:$0x1] }
  0x78   : > { %3118 = vperm.xlu0 %3095, %v3117_v33   ;;  %v451_v3 = vrot.slane %v450_v59, 4  ;;  %v421_v5 = vrot.slane %v419_v62, 5  ;;  %v408_v9 = vor.u32 %v407_v0, %v404_v60  ;;  %v489_v13 = vshll.u32 %v378_v57, 16  ;;  %v3885_v33 = vld [vmem:[%s3823_s4 + $0x24] sm:$0x1]  ;;  %s2719_s16 = scalar_lea.sflag [#allocation4], %s3819_s22 }
  0x79   : > { %v442_v8 = vsel %vm3863_vm2, %v437_v63, %v441_v48  ;;  %v427_v10 = vrot.slane %v425_v2, 5  ;;  %v488_v17 = vrot.slane %v486_v7, 4  ;;  %v495_v21 = vshll.u32 %v3869_v6, 16  ;;  %v388_v0 = vld [vmem:[%s3823_s4 + $0x58] sm:$0xf]  ;;  %s3543_s6 = scalar_lea.vmem %s4923_s24, 1024 }
  0x7a   : > { %v456_v14 = vsel %vm3863_vm2, %v451_v3, %v455_v54  ;;  %v643_v15 = vunpack.c.l.bf16 %v442_v8  ;;  %v422_v16 = vor.u32 %v421_v5, %v418_v4  ;;  %v409_v19 = vrot.slane %v408_v9, 4  ;;  %v3905_v4 = vld [vmem:[%s3823_s4 + $0x5c] sm:$0x1]  ;;  %p3544_p11 = scmp.ne.s32.totalorder %s4923_s24, %s3543_s6  ;;  %p4990_p0 = scmp.ne.s32.totalorder %s4981_s7, 0 }
  0x7b   : > { %v644_v18 = vunpack.c.l.bf16 %v456_v14  ;;  %v491_v20 = vrot.slane %v489_v13, 5  ;;  %3133 = vperm.xlu1 %3106, %v3132_v38   ;;  %v500_v23 = vshrl.u32 %v380_v11, 16  ;;  %v503_v24 = vshll.u32 %v380_v11, 16  ;;  %v382_v13 = vld [vmem:[%s3823_s4 + $0x40] sm:$0xf]  ;;  %s3623_s9 = smov [#allocation8]  }
  0x7c   : > { %3128 = vperm.xlu0 %3095, %v3127_v43   ;;  %v423_v22 = vrot.slane %v422_v16, 4  ;;  %v509_v25 = vshll.u32 %v3875_v12, 16  ;;  %v414_v29 = vsel %vm3863_vm2, %v409_v19, %v413_v1  ;;  %v497_v31 = vrot.slane %v495_v21, 5  ;;  %v3891_v43 = vld [vmem:[%s3823_s4 + $0x2c] sm:$0x1]  ;;  %p3545_p1 = pnand %p3544_p11, %p4990_p0  ;;  %s3547_s10 = sshll.u32 %s3623_s9, 4  ;;  %s3548_s10 = int_to_ptr.vmem [resolvable:$false] %s3547_s10 }
  0x7d   : > { %v3142_v28 = vpack.i.bf16 %v644_v18, %v643_v15  ;;  %v492_v30 = vor.u32 %v491_v20, %v488_v17  ;;  %v641_v36 = vunpack.c.l.bf16 %v414_v29  ;;  %v502_v37 = vrot.slane %v500_v23, 4  ;;  %s3549_s25 = scalar_lea.vmem %s3548_s10, 2048  ;;  %p3550_p7 = scmp.lt.s32.totalorder %s4923_s24, %s3548_s10 }
  0x7e   : > { %v428_v35 = vsel %vm3863_vm2, %v423_v22, %v427_v10  ;;  %v505_v38 = vrot.slane %v503_v24, 5  ;;  %v511_v41 = vrot.slane %v509_v25, 5  ;;  %v458_v44 = vshrl.u32 %v374_v27, 16  ;;  %v3913_v25 = vld [vmem:[%s3823_s4 + $0x44] sm:$0x1]  ;;  %p3546_p3 = pneg %p3545_p1  ;;  %p3551_p9 = scmp.lt.s32.totalorder %s3549_s25, %s3543_s6 }
  0x7f   : > { %v642_v39 = vunpack.c.l.bf16 %v428_v35  ;;  %v493_v40 = vrot.slane %v492_v30, 4  ;;  %3143 = vperm.xlu1 %3106, %v3142_v28   ;;  %v461_v46 = vshll.u32 %v374_v27, 16  ;;  %v467_v47 = vshll.u32 %v3885_v33, 16  ;;  %v384_v27 = vld [vmem:[%s3823_s4 + $0x48] sm:$0xf] }
  0x80   : > { %v506_v45 = vor.u32 %v505_v38, %v502_v37  ;;  %v472_v48 = vshrl.u32 %v376_v34, 16  ;;  %v460_v53 = vrot.slane %v458_v44, 4  ;;  %v475_v54 = vshll.u32 %v376_v34, 16  ;;  %v3919_v35 = vld [vmem:[%s3823_s4 + $0x4c] sm:$0x1]  ;;  %p3552_p12 = por %p3551_p9, %p3550_p7 }
  0x81   : > { %v3137_v50 = vpack.i.bf16 %v642_v39, %v641_v36  ;;  %v498_v52 = vsel %vm3863_vm2, %v493_v40, %v497_v31  ;;  %v463_v59 = vrot.slane %v461_v46, 5  ;;  %v469_v60 = vrot.slane %v467_v47, 5  ;;  %v394_v46 = vld [vmem:[%s3823_s4 + $0x70] sm:$0xf] }
  0x82   : > { %v507_v56 = vrot.slane %v506_v45, 4  ;;  %v647_v57 = vunpack.c.l.bf16 %v498_v52  ;;  %v474_v61 = vrot.slane %v472_v48, 4  ;;  %v477_v62 = vrot.slane %v475_v54, 5  ;;  %v3927_v52 = vld [vmem:[%s3823_s4 + $0x74] sm:$0x1]  ;;  %p3553_p2 = pnand %p3552_p12, %p3546_p3 }
  0x83   : > { %3138 = vperm.xlu0 %3095, %v3137_v50   ;;  %v481_v63 = vshll.u32 %v3891_v43, 16  ;;  %v542_v1 = vshrl.u32 %v386_v49, 16  ;;  %v464_v3 = vor.u32 %v463_v59, %v460_v53  ;;  %v545_v5 = vshll.u32 %v386_v49, 16  ;;  %v396_v53 = vld [vmem:[%s3823_s4 + $0x78] sm:$0xf] }
  0x84   : > { %v512_v2 = vsel %vm3863_vm2, %v507_v56, %v511_v41  ;;  %v551_v7 = vshll.u32 %v3898_v55, 16  ;;  %v478_v9 = vor.u32 %v477_v62, %v474_v61  ;;  %v556_v17 = vshrl.u32 %v388_v0, 16 }
  0x85   : > { %v648_v8 = vunpack.c.l.bf16 %v512_v2  ;;  %v483_v10 = vrot.slane %v481_v63, 5  ;;  %v544_v11 = vrot.slane %v542_v1, 4  ;;  %v465_v14 = vrot.slane %v464_v3, 4  ;;  %v3933_v1 = vld [vmem:[%s3823_s4 + $0x7c] sm:$0x1] }
  0x86   : > { %v547_v15 = vrot.slane %v545_v5, 5  ;;  %v553_v16 = vrot.slane %v551_v7, 5  ;;  %v479_v19 = vrot.slane %v478_v9, 4  ;;  %v559_v20 = vshll.u32 %v388_v0, 16 }
  0x87   : > { %v3152_v18 = vpack.i.bf16 %v648_v8, %v647_v57  ;;  %v565_v21 = vshll.u32 %v3905_v4, 16  ;;  %v470_v22 = vsel %vm3863_vm2, %v465_v14, %v469_v60  ;;  %v558_v24 = vrot.slane %v556_v17, 4  ;;  %v3938_v17 = vld [vmem:[%s3823_s4 + $0x64] sm:$0x1] }
  0x88   : > { %v548_v23 = vor.u32 %v547_v15, %v544_v11  ;;  %v514_v28 = vshrl.u32 %v382_v13, 16  ;;  %v484_v29 = vsel %vm3863_vm2, %v479_v19, %v483_v10  ;;  %v645_v30 = vunpack.c.l.bf16 %v470_v22  ;;  %v390_v11 = vld [vmem:[%s3823_s4 + $0x60] sm:$0xf] }
  0x89   : > { %3153 = vperm.xlu1 %3106, %v3152_v18   ;;  %v561_v31 = vrot.slane %v559_v20, 5  ;;  %v567_v34 = vrot.slane %v565_v21, 5  ;;  %v646_v36 = vunpack.c.l.bf16 %v484_v29  ;;  %v517_v39 = vshll.u32 %v382_v13, 16 }
  0x8a   : > { %v549_v37 = vrot.slane %v548_v23, 4  ;;  %v516_v38 = vrot.slane %v514_v28, 4  ;;  %v523_v41 = vshll.u32 %v3913_v25, 16  ;;  %v528_v44 = vshrl.u32 %v384_v27, 16 }
  0x8b   : > { %v562_v40 = vor.u32 %v561_v31, %v558_v24  ;;  %v531_v45 = vshll.u32 %v384_v27, 16  ;;  %v3147_v47 = vpack.i.bf16 %v646_v36, %v645_v30  ;;  %v519_v49 = vrot.slane %v517_v39, 5  ;;  %v392_v27 = vld [vmem:[%s3823_s4 + $0x68] sm:$0xf]  ;;  %v3947_v31 = vld [vmem:[%s3823_s4 + $0x6c] sm:$0x1] }
  0x8c   : > { %v554_v48 = vsel %vm3863_vm2, %v549_v37, %v553_v16  ;;  %v537_v50 = vshll.u32 %v3919_v35, 16  ;;  %v525_v57 = vrot.slane %v523_v41, 5  ;;  %v530_v59 = vrot.slane %v528_v44, 4 }
  0x8d   : > { %v563_v54 = vrot.slane %v562_v40, 4  ;;  %v651_v56 = vunpack.c.l.bf16 %v554_v48  ;;  %vm822_vm4 = vcmask 1046532   ;;  %3148 = vperm.xlu0 %3095, %v3147_v47   ;;  %v520_v60 = vor.u32 %v519_v49, %v516_v38  ;;  %v775_v47 = vld [vmem:[%s3823_s4 + $0x10] sm:$0xe] }
  0x8e   : > { %v533_v61 = vrot.slane %v531_v45, 5  ;;  %v539_v62 = vrot.slane %v537_v50, 5  ;;  %v598_v63 = vshrl.u32 %v394_v46, 16  ;;  %v601_v2 = vshll.u32 %v394_v46, 16  ;;  %vm3957_vm5 = vmor %vm821_vm3, %vm822_vm4 }
  0x8f   : > { %v568_v0 = vsel %vm3863_vm2, %v563_v54, %v567_v34  ;;  %v607_v3 = vshll.u32 %v3927_v52, 16  ;;  %v612_v5 = vshrl.u32 %v396_v53, 16  ;;  %v521_v8 = vrot.slane %v520_v60, 4  ;;  %v776_v54 = vld [vmem:[%s3823_s4 + $0x18] sm:$0xe] }
  0x90   : > { %v652_v7 = vunpack.c.l.bf16 %v568_v0  ;;  %v534_v9 = vor.u32 %v533_v61, %v530_v59  ;;  %v600_v10 = vrot.slane %v598_v63, 4  ;;  %v603_v13 = vrot.slane %v601_v2, 5 }
  0x91   : > { %v609_v14 = vrot.slane %v607_v3, 5  ;;  %v614_v15 = vrot.slane %v612_v5, 4  ;;  %v615_v16 = vshll.u32 %v396_v53, 16  ;;  %v526_v19 = vsel %vm3863_vm2, %v521_v8, %v525_v57 }
  0x92   : > { %v3162_v18 = vpack.i.bf16 %v652_v7, %v651_v56  ;;  %v535_v20 = vrot.slane %v534_v9, 4  ;;  %v621_v21 = vshll.u32 %v3933_v1, 16  ;;  %v649_v22 = vunpack.c.l.bf16 %v526_v19 }
  0x93   : > { %v604_v23 = vor.u32 %v603_v13, %v600_v10  ;;  %v617_v24 = vrot.slane %v615_v16, 5  ;;  %v570_v28 = vshrl.u32 %v390_v11, 16  ;;  %v573_v34 = vshll.u32 %v390_v11, 16  ;;  %v774_v10 = vld [vmem:[%s3823_s4 + $0x8] sm:$0xe] }
  0x94   : > { %3163 = vperm.xlu1 %3106, %v3162_v18   ;;  %v540_v29 = vsel %vm3863_vm2, %v535_v20, %v539_v62  ;;  %v623_v30 = vrot.slane %v621_v21, 5  ;;  %v579_v36 = vshll.u32 %v3938_v17, 16  ;;  %v584_v45 = vshrl.u32 %v392_v27, 16  ;;  %v773_v62 = vld [vmem:[%s3823_s4] sm:$0xe] }
  0x95   : > { %v650_v37 = vunpack.c.l.bf16 %v540_v29  ;;  %v605_v38 = vrot.slane %v604_v23, 4  ;;  %v618_v39 = vor.u32 %v617_v24, %v614_v15  ;;  %v572_v40 = vrot.slane %v570_v28, 4  ;;  %v779_v20 = vld [vmem:[%s3823_s4 + $0x30] sm:$0xe]  ;;  %v780_v21 = vld [vmem:[%s3823_s4 + $0x38] sm:$0xe] }
  0x96   : > { %v575_v41 = vrot.slane %v573_v34, 5  ;;  %v581_v44 = vrot.slane %v579_v36, 5  ;;  %v587_v46 = vshll.u32 %v392_v27, 16  ;;  %v593_v53 = vshll.u32 %v3947_v31, 16  ;;  %v777_v27 = vld [vmem:[%s3823_s4 + $0x20] sm:$0xe] }
  0x97   : > { %v3157_v48 = vpack.i.bf16 %v650_v37, %v649_v22  ;;  %v610_v49 = vsel %vm3863_vm2, %v605_v38, %v609_v14  ;;  %v619_v50 = vrot.slane %v618_v39, 4  ;;  %v586_v59 = vrot.slane %v584_v45, 4  ;;  %v778_v39 = vld [vmem:[%s3823_s4 + $0x28] sm:$0xe] }
  0x98   : > { %v655_v56 = vunpack.c.l.bf16 %v610_v49  ;;  %v576_v57 = vor.u32 %v575_v41, %v572_v40  ;;  %v589_v60 = vrot.slane %v587_v46, 5  ;;  %v595_v0 = vrot.slane %v593_v53, 5  ;;  %v783_v46 = vld [vmem:[%s3823_s4 + $0x50] sm:$0xe] }
  0x99   : > { %3158 = vperm.xlu0 %3095, %v3157_v48   ;;  %v624_v63 = vsel %vm3863_vm2, %v619_v50, %v623_v30  ;;  %v2836_v2 = vrot.slane %v775_v47, 9  ;;  %v834_v3 = vrot.slane %v3843_v26, 5  ;;  %v2837_v9 = vrot.slane %v776_v54, 9 }
  0x9a   : > { %v656_v5 = vunpack.c.l.bf16 %v624_v63  ;;  %v577_v7 = vrot.slane %v576_v57, 4  ;;  %v590_v8 = vor.u32 %v589_v60, %v586_v59  ;;  %v838_v13 = vrot.slane %v3847_v32, 5 }
  0x9b   : > { %v835_v11 = vsel %vm3957_vm5, %v2836_v2, %v834_v3  ;;  %v2834_v14 = vrot.slane %v773_v62, 9  ;;  %v826_v15 = vrot.slane %v3852_v42, 5  ;;  %v2835_v32 = vrot.slane %v774_v10, 9 }
  0x9c   : > { %v3172_v16 = vpack.i.bf16 %v656_v5, %v655_v56  ;;  %v582_v18 = vsel %vm3863_vm2, %v577_v7, %v581_v44  ;;  %v591_v19 = vrot.slane %v590_v8, 4  ;;  %v906_v26 = vunpack.c.l.bf16 %v835_v11  ;;  %v781_v56 = vld [vmem:[%s3823_s4 + $0x40] sm:$0xe]  ;;  %v787_v5 = vld [vmem:[%s3823_s4 + $0x70] sm:$0xe] }
  0x9d   : > { %v653_v22 = vunpack.c.l.bf16 %v582_v18  ;;  %v839_v23 = vsel %vm3957_vm5, %v2837_v9, %v838_v13  ;;  %v827_v24 = vsel %vm3957_vm5, %v2834_v14, %v826_v15  ;;  %v830_v29 = vrot.slane %v3857_v51, 5  ;;  %v788_v15 = vld [vmem:[%s3823_s4 + $0x78] sm:$0xe] }
  0x9e   : > { %3173 = vperm.xlu1 %3106, %v3172_v16   ;;  %v596_v42 = vsel %vm3863_vm2, %v591_v19, %v595_v0  ;;  %v907_v28 = vunpack.c.l.bf16 %v839_v23  ;;  %v904_v30 = vunpack.c.l.bf16 %v827_v24  ;;  %v2840_v36 = vrot.slane %v779_v20, 9  ;;  %v785_v19 = vld [vmem:[%s3823_s4 + $0x60] sm:$0xe] }
  0x9f   : > { %v654_v34 = vunpack.c.l.bf16 %v596_v42  ;;  %v850_v37 = vrot.slane %v3869_v6, 5  ;;  %v2841_v38 = vrot.slane %v780_v21, 9  ;;  %v831_v41 = vsel %vm3957_vm5, %v2835_v32, %v830_v29  ;;  %v784_v6 = vld [vmem:[%s3823_s4 + $0x58] sm:$0xe]  ;;  %v786_v21 = vld [vmem:[%s3823_s4 + $0x68] sm:$0xe] }
  0xa0   : > { %v3182_v40 = vpack.i.bf16 %v907_v28, %v906_v26  ;;  %v854_v44 = vrot.slane %v3875_v12, 5  ;;  %v2838_v45 = vrot.slane %v777_v27, 9  ;;  %v905_v51 = vunpack.c.l.bf16 %v831_v41  ;;  %v2852_v27 = vld [vmem:[%s3823_s4 + $0x18] ss:$8 sps:$4 sm:$0xff]  }
  0xa1   : > { %v3167_v47 = vpack.i.bf16 %v654_v34, %v653_v22  ;;  %v851_v48 = vsel %vm3957_vm5, %v2840_v36, %v850_v37  ;;  %v842_v49 = vrot.slane %v3885_v33, 5  ;;  %v2839_v54 = vrot.slane %v778_v39, 9  ;;  %v782_v33 = vld [vmem:[%s3823_s4 + $0x48] sm:$0xe]  ;;  %v2856_v39 = vld [vmem:[%s3823_s4 + $0x38] ss:$8 sps:$4 sm:$0xff]  }
  0xa2   : > { %3183 = vperm.xlu1 %3106, %v3182_v40   ;;  %v855_v50 = vsel %vm3957_vm5, %v2841_v38, %v854_v44  ;;  %v910_v53 = vunpack.c.l.bf16 %v851_v48  ;;  %v846_v12 = vrot.slane %v3891_v43, 5  ;;  %v3177_v57 = vpack.i.bf16 %v905_v51, %v904_v30  ;;  %v2850_v34 = vld [vmem:[%s3823_s4 + $0x8] ss:$8 sps:$4 sm:$0xff]   ;;  %v2860_v48 = vld [vmem:[%s3823_s4 + $0x58] ss:$8 sps:$4 sm:$0xff]  }
  0xa3   : > { %3168 = vperm.xlu0 %3095, %v3167_v47   ;;  %v911_v59 = vunpack.c.l.bf16 %v855_v50  ;;  %v843_v60 = vsel %vm3957_vm5, %v2838_v45, %v842_v49  ;;  %v2844_v62 = vrot.slane %v783_v46, 9  ;;  %v866_v2 = vrot.slane %v3898_v55, 5  ;;  %v2854_v44 = vld [vmem:[%s3823_s4 + $0x28] ss:$8 sps:$4 sm:$0xff]  }
  0xa4   : > { %v847_v63 = vsel %vm3957_vm5, %v2839_v54, %v846_v12  ;;  %v908_v0 = vunpack.c.l.bf16 %v843_v60  ;;  %v2845_v3 = vrot.slane %v784_v6, 9  ;;  %v870_v8 = vrot.slane %v3905_v4, 5  ;;  %v2858_v54 = vld [vmem:[%s3823_s4 + $0x48] ss:$8 sps:$4 sm:$0xff]   ;;  %v2864_v12 = vld [vmem:[%s3823_s4 + $0x78] ss:$8 sps:$4 sm:$0xff]  }
  0xa5   : > { %v3192_v43 = vpack.i.bf16 %v911_v59, %v910_v53  ;;  %v909_v7 = vunpack.c.l.bf16 %v847_v63  ;;  %v2842_v9 = vrot.slane %v781_v56, 9  ;;  %v867_v10 = vsel %vm3957_vm5, %v2844_v62, %v866_v2  ;;  %v2862_v60 = vld [vmem:[%s3823_s4 + $0x68] ss:$8 sps:$4 sm:$0xff]   ;;  %v2870_v2 = vld [vmem:[%s3823_s4 + $0x18] sm:$0xf] }
  0xa6   : > { %v858_v11 = vrot.slane %v3913_v25, 5  ;;  %v2843_v13 = vrot.slane %v782_v33, 9  ;;  %v862_v14 = vrot.slane %v3919_v35, 5  ;;  %v871_v16 = vsel %vm3957_vm5, %v2845_v3, %v870_v8  ;;  %v4039_v8 = vld [vmem:[%s3823_s4 + $0x1c] sm:$0x1] }
  0xa7   : > { %3178 = vperm.xlu0 %3095, %v3177_v57   ;;  %3193 = vperm.xlu1 %3106, %v3192_v43   ;;  %v3187_v55 = vpack.i.bf16 %v909_v7, %v908_v0  ;;  %v914_v18 = vunpack.c.l.bf16 %v867_v10  ;;  %v2848_v4 = vrot.slane %v787_v5, 9  ;;  %v915_v26 = vunpack.c.l.bf16 %v871_v16 }
  0xa8   : > { %v859_v20 = vsel %vm3957_vm5, %v2842_v9, %v858_v11  ;;  %v863_v25 = vsel %vm3957_vm5, %v2843_v13, %v862_v14  ;;  %v882_v35 = vrot.slane %v3927_v52, 5  ;;  %v2849_v24 = vrot.slane %v788_v15, 9  ;;  %v2872_v9 = vld [vmem:[%s3823_s4 + $0x20] sm:$0xf]  ;;  %v4043_v15 = vld [vmem:[%s3823_s4 + $0x24] sm:$0x1] }
  0xa9   : > { %v912_v22 = vunpack.c.l.bf16 %v859_v20  ;;  %v913_v23 = vunpack.c.l.bf16 %v863_v25  ;;  %v886_v32 = vrot.slane %v3933_v1, 5  ;;  %v3202_v42 = vpack.i.bf16 %v915_v26, %v914_v18 }
  0xaa   : > { %v883_v28 = vsel %vm3957_vm5, %v2848_v4, %v882_v35  ;;  %v2846_v29 = vrot.slane %v785_v19, 9  ;;  %v874_v30 = vrot.slane %v3938_v17, 5  ;;  %v2847_v38 = vrot.slane %v786_v21, 9  ;;  %v2866_v19 = vld [vmem:[%s3823_s4 + $0x8] sm:$0xf] }
  0xab   : > { %3188 = vperm.xlu0 %3095, %v3187_v55   ;;  %v3197_v52 = vpack.i.bf16 %v913_v23, %v912_v22  ;;  %v887_v36 = vsel %vm3957_vm5, %v2849_v24, %v886_v32  ;;  %v918_v37 = vunpack.c.l.bf16 %v883_v28  ;;  %3203 = vperm.xlu1 %3106, %v3202_v42   ;;  %v878_v41 = vrot.slane %v3947_v31, 5  ;;  %v4048_v21 = vld [vmem:[%s3823_s4 + $0xc] sm:$0x1] }
  0xac   : > { %v919_v1 = vunpack.c.l.bf16 %v887_v36  ;;  %v875_v40 = vsel %vm3957_vm5, %v2846_v29, %v874_v30  ;;  %v1055_v17 = vunpack.c.l.bf16 %v2852_v27  ;;  %v1056_v46 = vunpack.c.h.bf16 %v2852_v27  ;;  %v2868_v27 = vld [vmem:[%s3823_s4 + $0x10] sm:$0xf]  ;;  %v4055_v30 = vld [vmem:[%s3823_s4 + $0x14] sm:$0x1] }
  0xad   : > { %v916_v45 = vunpack.c.l.bf16 %v875_v40  ;;  %v1053_v47 = vunpack.c.l.bf16 %v2850_v34  ;;  %v1054_v51 = vunpack.c.h.bf16 %v2850_v34  ;;  %v879_v6 = vsel %vm3957_vm5, %v2847_v38, %v878_v41 }
  0xae   : > { %v3212_v49 = vpack.i.bf16 %v919_v1, %v918_v37  ;;  %v1059_v50 = vunpack.c.l.bf16 %v2856_v39  ;;  %v1060_v53 = vunpack.c.h.bf16 %v2856_v39  ;;  %v917_v31 = vunpack.c.l.bf16 %v879_v6  ;;  %v2878_v39 = vld [vmem:[%s3823_s4 + $0x38] sm:$0xf]  ;;  %v4061_v6 = vld [vmem:[%s3823_s4 + $0x3c] sm:$0x1] }
  0xaf   : > { %3198 = vperm.xlu0 %3095, %v3197_v52   ;;  %v3222_v56 = vpack.i.bf16 %v1056_v46, %v1055_v17  ;;  %v3217_v57 = vpack.i.bf16 %v1054_v51, %v1053_v47  ;;  %v1057_v59 = vunpack.c.l.bf16 %v2854_v44  ;;  %v1058_v33 = vunpack.c.h.bf16 %v2854_v44 }
  0xb0   : > { %3213 = vperm.xlu1 %3106, %v3212_v49   ;;  %v3232_v62 = vpack.i.bf16 %v1060_v53, %v1059_v50  ;;  %v1063_v63 = vunpack.c.l.bf16 %v2860_v48  ;;  %v1064_v0 = vunpack.c.h.bf16 %v2860_v48  ;;  %v3207_v3 = vpack.i.bf16 %v917_v31, %v916_v45  ;;  %v2880_v31 = vld [vmem:[%s3823_s4 + $0x40] sm:$0xf] }
  0xb1   : > { %v1061_v5 = vunpack.c.l.bf16 %v2858_v54  ;;  %v1062_v43 = vunpack.c.h.bf16 %v2858_v54  ;;  %v1067_v7 = vunpack.c.l.bf16 %v2864_v12  ;;  %v3227_v10 = vpack.i.bf16 %v1058_v33, %v1057_v59 }
  0xb2   : > { %v3242_v11 = vpack.i.bf16 %v1064_v0, %v1063_v63  ;;  %v1068_v13 = vunpack.c.h.bf16 %v2864_v12  ;;  %v1065_v14 = vunpack.c.l.bf16 %v2862_v60  ;;  %v1066_v16 = vunpack.c.h.bf16 %v2862_v60 }
  0xb3   : > { %3208 = vperm.xlu0 %3095, %v3207_v3   ;;  %v3237_v55 = vpack.i.bf16 %v1062_v43, %v1061_v5  ;;  %v1246_v18 = vshrl.u32 %v2870_v2, 16  ;;  %v1249_v4 = vshll.u32 %v2870_v2, 16  ;;  %v1255_v20 = vshll.u32 %v4039_v8, 16 }
  0xb4   : > { %3223 = vperm.xlu1 %3106, %v3222_v56   ;;  %v3252_v26 = vpack.i.bf16 %v1068_v13, %v1067_v7  ;;  %v1260_v25 = vshrl.u32 %v2872_v9, 16  ;;  %v1263_v35 = vshll.u32 %v2872_v9, 16  ;;  %v4050_v22 = vpack.i.bf16 %v1066_v16, %v1065_v14  ;;  %v4067_v56 = vld [vmem:[%s3823_s4 + $0x44] sm:$0x1] }
  0xb5   : > { %v1248_v23 = vrot.slane %v1246_v18, 4  ;;  %v1251_v24 = vrot.slane %v1249_v4, 5  ;;  %v1269_v32 = vshll.u32 %v4043_v15, 16  ;;  %v1257_v42 = vrot.slane %v1255_v20, 5  ;;  %v4077_v18 = vld [vmem:[%s3823_s4 + $0x2c] sm:$0x1] }
  0xb6   : > { %v1262_v28 = vrot.slane %v1260_v25, 4  ;;  %v1265_v29 = vrot.slane %v1263_v35, 5  ;;  %v1218_v34 = vshrl.u32 %v2866_v19, 16  ;;  %v1221_v37 = vshll.u32 %v2866_v19, 16  ;;  %v2876_v4 = vld [vmem:[%s3823_s4 + $0x30] sm:$0xf] }
  0xb7   : > { %3218 = vperm.xlu0 %3095, %v3217_v57   ;;  %v1252_v52 = vor.u32 %v1251_v24, %v1248_v23  ;;  %v1271_v36 = vrot.slane %v1269_v32, 5  ;;  %v1227_v38 = vshll.u32 %v4048_v21, 16  ;;  %v1232_v41 = vshrl.u32 %v2868_v27, 16  ;;  %v4083_v32 = vld [vmem:[%s3823_s4 + $0x34] sm:$0x1] }
  0xb8   : > { %3233 = vperm.xlu1 %3106, %v3232_v62   ;;  %v1266_v1 = vor.u32 %v1265_v29, %v1262_v28  ;;  %v1220_v40 = vrot.slane %v1218_v34, 4  ;;  %v1235_v17 = vshll.u32 %v2868_v27, 16  ;;  %v1223_v45 = vrot.slane %v1221_v37, 5 }
  0xb9   : > { %v1253_v44 = vrot.slane %v1252_v52, 4  ;;  %v1229_v46 = vrot.slane %v1227_v38, 5  ;;  %v1241_v47 = vshll.u32 %v4055_v30, 16  ;;  %v1234_v48 = vrot.slane %v1232_v41, 4 }
  0xba   : > { %v1267_v51 = vrot.slane %v1266_v1, 4  ;;  %v1237_v49 = vrot.slane %v1235_v17, 5  ;;  %v1302_v50 = vshrl.u32 %v2878_v39, 16  ;;  %v1224_v54 = vor.u32 %v1223_v45, %v1220_v40 }
  0xbb   : > { %3228 = vperm.xlu0 %3095, %v3227_v10   ;;  %v1258_v53 = vsel %vm3863_vm2, %v1253_v44, %v1257_v42  ;;  %v1243_v12 = vrot.slane %v1241_v47, 5  ;;  %v1305_v57 = vshll.u32 %v2878_v39, 16  ;;  %v1311_v3 = vshll.u32 %v4061_v6, 16  ;;  %v2874_v10 = vld [vmem:[%s3823_s4 + $0x28] sm:$0xf] }
  0xbc   : > { %3243 = vperm.xlu1 %3106, %v3242_v11   ;;  %v1272_v59 = vsel %vm3863_vm2, %v1267_v51, %v1271_v36  ;;  %v1459_v60 = vunpack.c.l.bf16 %v1258_v53  ;;  %v1238_v62 = vor.u32 %v1237_v49, %v1234_v48  ;;  %v1304_v33 = vrot.slane %v1302_v50, 4  ;;  %v4091_v39 = vld [vmem:[%s3823_s4 + $0x5c] sm:$0x1]  ;;  %v4098_v49 = vld [vmem:[%s3823_s4 + $0x64] sm:$0x1] }
  0xbd   : > { %v1460_v63 = vunpack.c.l.bf16 %v1272_v59  ;;  %v1225_v0 = vrot.slane %v1224_v54, 4  ;;  %v1307_v2 = vrot.slane %v1305_v57, 5  ;;  %v1316_v43 = vshrl.u32 %v2880_v31, 16  ;;  %v2882_v59 = vld [vmem:[%s3823_s4 + $0x48] sm:$0xf] }
  0xbe   : > { %v1239_v5 = vrot.slane %v1238_v62, 4  ;;  %v1319_v7 = vshll.u32 %v2880_v31, 16  ;;  %v1325_v9 = vshll.u32 %v4067_v56, 16  ;;  %v1313_v16 = vrot.slane %v1311_v3, 5 }
  0xbf   : > { %3238 = vperm.xlu0 %3095, %v3237_v55   ;;  %v3262_v11 = vpack.i.bf16 %v1460_v63, %v1459_v60  ;;  %v1230_v13 = vsel %vm3863_vm2, %v1225_v0, %v1229_v46  ;;  %v1308_v14 = vor.u32 %v1307_v2, %v1304_v33  ;;  %v1318_v25 = vrot.slane %v1316_v43, 4 }
  0xc0   : > { %3253 = vperm.xlu1 %3106, %v3252_v26   ;;  %v1244_v19 = vsel %vm3863_vm2, %v1239_v5, %v1243_v12  ;;  %v1457_v20 = vunpack.c.l.bf16 %v1230_v13  ;;  %v1321_v35 = vrot.slane %v1319_v7, 5  ;;  %v1327_v24 = vrot.slane %v1325_v9, 5  ;;  %v2886_v26 = vld [vmem:[%s3823_s4 + $0x58] sm:$0xf] }
  0xc1   : > { %v1458_v23 = vunpack.c.l.bf16 %v1244_v19  ;;  %v1309_v55 = vrot.slane %v1308_v14, 4  ;;  %v1274_v27 = vshrl.u32 %v2874_v10, 16  ;;  %v1277_v28 = vshll.u32 %v2874_v10, 16  ;;  %v4106_v10 = vld [vmem:[%s3823_s4 + $0x4c] sm:$0x1] }
  0xc2   : > { %v1322_v42 = vor.u32 %v1321_v35, %v1318_v25  ;;  %v1283_v29 = vshll.u32 %v4077_v18, 16  ;;  %v1288_v34 = vshrl.u32 %v2876_v4, 16  ;;  %v1291_v38 = vshll.u32 %v2876_v4, 16 }
  0xc3   : > { %3248 = vperm.xlu0 %3095, %v4050_v22   ;;  %v3257_v52 = vpack.i.bf16 %v1458_v23, %v1457_v20  ;;  %v1314_v36 = vsel %vm3863_vm2, %v1309_v55, %v1313_v16  ;;  %v1276_v37 = vrot.slane %v1274_v27, 4  ;;  %v1279_v41 = vrot.slane %v1277_v28, 5  ;;  %v2888_v22 = vld [vmem:[%s3823_s4 + $0x60] sm:$0xf]  ;;  %v4112_v20 = vld [vmem:[%s3823_s4 + $0x54] sm:$0x1] }
  0xc4   : > { %3263 = vperm.xlu1 %3106, %v3262_v11   ;;  %v1323_v1 = vrot.slane %v1322_v42, 4  ;;  %v1463_v40 = vunpack.c.l.bf16 %v1314_v36  ;;  %v1285_v17 = vrot.slane %v1283_v29, 5  ;;  %v1290_v44 = vrot.slane %v1288_v34, 4  ;;  %v2884_v11 = vld [vmem:[%s3823_s4 + $0x50] sm:$0xf] }
  0xc5   : > { %v1293_v45 = vrot.slane %v1291_v38, 5  ;;  %v1297_v46 = vshll.u32 %v4083_v32, 16  ;;  %v1358_v47 = vshrl.u32 %v2886_v26, 16  ;;  %v1280_v48 = vor.u32 %v1279_v41, %v1276_v37  ;;  %v2894_v29 = vld [vmem:[%s3823_s4 + $0x78] sm:$0xf] }
  0xc6   : > { %v1328_v51 = vsel %vm3863_vm2, %v1323_v1, %v1327_v24  ;;  %v1361_v50 = vshll.u32 %v2886_v26, 16  ;;  %v1367_v53 = vshll.u32 %v4091_v39, 16  ;;  %v1372_v63 = vshrl.u32 %v2888_v22, 16  ;;  %v4120_v37 = vld [vmem:[%s3823_s4 + $0x7c] sm:$0x1] }
  0xc7   : > { %3258 = vperm.xlu0 %3095, %v3257_v52   ;;  %v1464_v54 = vunpack.c.l.bf16 %v1328_v51  ;;  %v1294_v12 = vor.u32 %v1293_v45, %v1290_v44  ;;  %v1299_v31 = vrot.slane %v1297_v46, 5  ;;  %v1360_v57 = vrot.slane %v1358_v47, 4  ;;  %v2896_v38 = vld [vmem:[%s3823_s4 + $0x80] sm:$0xf]  ;;  %v4126_v51 = vld [vmem:[%s3823_s4 + $0x84] sm:$0x1] }
  0xc8   : > { %v1281_v60 = vrot.slane %v1280_v48, 4  ;;  %v1363_v62 = vrot.slane %v1361_v50, 5  ;;  %v1369_v33 = vrot.slane %v1367_v53, 5  ;;  %v1375_v3 = vshll.u32 %v2888_v22, 16 }
  0xc9   : > { %v3272_v0 = vpack.i.bf16 %v1464_v54, %v1463_v40  ;;  %v1295_v2 = vrot.slane %v1294_v12, 4  ;;  %v1381_v5 = vshll.u32 %v4098_v49, 16  ;;  %v1374_v9 = vrot.slane %v1372_v63, 4 }
  0xca   : > { %v1286_v43 = vsel %vm3863_vm2, %v1281_v60, %v1285_v17  ;;  %v1364_v7 = vor.u32 %v1363_v62, %v1360_v57  ;;  %v1330_v13 = vshrl.u32 %v2882_v59, 16  ;;  %v1377_v4 = vrot.slane %v1375_v3, 5 }
  0xcb   : > { %3273 = vperm.xlu1 %3106, %v3272_v0   ;;  %v1300_v14 = vsel %vm3863_vm2, %v1295_v2, %v1299_v31  ;;  %v1461_v16 = vunpack.c.l.bf16 %v1286_v43  ;;  %v1383_v19 = vrot.slane %v1381_v5, 5  ;;  %v1333_v55 = vshll.u32 %v2882_v59, 16  ;;  %v2890_v59 = vld [vmem:[%s3823_s4 + $0x68] sm:$0xf]  ;;  %v4131_v0 = vld [vmem:[%s3823_s4 + $0x6c] sm:$0x1] }
  0xcc   : > { %v1462_v25 = vunpack.c.l.bf16 %v1300_v14  ;;  %v1365_v35 = vrot.slane %v1364_v7, 4  ;;  %v1332_v23 = vrot.slane %v1330_v13, 4  ;;  %v1378_v24 = vor.u32 %v1377_v4, %v1374_v9  ;;  %v2892_v13 = vld [vmem:[%s3823_s4 + $0x70] sm:$0xf] }
  0xcd   : > { %v1339_v27 = vshll.u32 %v4106_v10, 16  ;;  %v1344_v42 = vshrl.u32 %v2884_v11, 16  ;;  %v1347_v28 = vshll.u32 %v2884_v11, 16  ;;  %v1335_v52 = vrot.slane %v1333_v55, 5 }
  0xce   : > { %v3267_v34 = vpack.i.bf16 %v1462_v25, %v1461_v16  ;;  %v1370_v26 = vsel %vm3863_vm2, %v1365_v35, %v1369_v33  ;;  %v1353_v36 = vshll.u32 %v4112_v20, 16  ;;  %v1379_v1 = vrot.slane %v1378_v24, 4 }
  0xcf   : > { %v1467_v40 = vunpack.c.l.bf16 %v1370_v26  ;;  %v1341_v41 = vrot.slane %v1339_v27, 5  ;;  %v1346_v17 = vrot.slane %v1344_v42, 4  ;;  %v1336_v44 = vor.u32 %v1335_v52, %v1332_v23  ;;  %v2900_v26 = vld [vmem:[%s3823_s4 + $0x18] sm:$0xe] }
  0xd0   : > { %3268 = vperm.xlu0 %3095, %v3267_v34   ;;  %v1349_v45 = vrot.slane %v1347_v28, 5  ;;  %v1355_v46 = vrot.slane %v1353_v36, 5  ;;  %v1414_v22 = vshrl.u32 %v2894_v29, 16  ;;  %v1384_v47 = vsel %vm3863_vm2, %v1379_v1, %v1383_v19  ;;  %v4140_v19 = vld [vmem:[%s3823_s4 + $0x74] sm:$0x1] }
  0xd1   : > { %v1417_v48 = vshll.u32 %v2894_v29, 16  ;;  %v1423_v50 = vshll.u32 %v4120_v37, 16  ;;  %v1428_v53 = vshrl.u32 %v2896_v38, 16  ;;  %v1468_v54 = vunpack.c.l.bf16 %v1384_v47 }
  0xd2   : > { %v1337_v12 = vrot.slane %v1336_v44, 4  ;;  %v1350_v31 = vor.u32 %v1349_v45, %v1346_v17  ;;  %v1416_v57 = vrot.slane %v1414_v22, 4  ;;  %v1431_v63 = vshll.u32 %v2896_v38, 16 }
  0xd3   : > { %v1419_v60 = vrot.slane %v1417_v48, 5  ;;  %v1425_v62 = vrot.slane %v1423_v50, 5  ;;  %v1430_v33 = vrot.slane %v1428_v53, 4  ;;  %v3282_v2 = vpack.i.bf16 %v1468_v54, %v1467_v40  ;;  %v2901_v40 = vld [vmem:[%s3823_s4 + $0x20] sm:$0xe] }
  0xd4   : > { %v1342_v3 = vsel %vm3863_vm2, %v1337_v12, %v1341_v41  ;;  %v1351_v5 = vrot.slane %v1350_v31, 4  ;;  %v1437_v43 = vshll.u32 %v4126_v51, 16  ;;  %v1433_v11 = vrot.slane %v1431_v63, 5 }
  0xd5   : > { %v1465_v7 = vunpack.c.l.bf16 %v1342_v3  ;;  %v1420_v9 = vor.u32 %v1419_v60, %v1416_v57  ;;  %v1386_v14 = vshrl.u32 %v2890_v59, 16  ;;  %3283 = vperm.xlu1 %3106, %v3282_v2   ;;  %v1389_v25 = vshll.u32 %v2890_v59, 16  ;;  %v2899_v57 = vld [vmem:[%s3823_s4 + $0x10] sm:$0xe] }
  0xd6   : > { %v1356_v16 = vsel %vm3863_vm2, %v1351_v5, %v1355_v46  ;;  %v1439_v4 = vrot.slane %v1437_v43, 5  ;;  %v1395_v35 = vshll.u32 %v4131_v0, 16  ;;  %v1434_v24 = vor.u32 %v1433_v11, %v1430_v33  ;;  %v2898_v46 = vld [vmem:[%s3823_s4 + $0x8] sm:$0xe]  ;;  %v2904_v5 = vld [vmem:[%s3823_s4 + $0x38] sm:$0xe] }
  0xd7   : > { %v1466_v23 = vunpack.c.l.bf16 %v1356_v16  ;;  %v1421_v55 = vrot.slane %v1420_v9, 4  ;;  %v1388_v27 = vrot.slane %v1386_v14, 4  ;;  %v1391_v42 = vrot.slane %v1389_v25, 5  ;;  %v2905_v43 = vld [vmem:[%s3823_s4 + $0x40] sm:$0xe] }
  0xd8   : > { %v1397_v28 = vrot.slane %v1395_v35, 5  ;;  %v1400_v29 = vshrl.u32 %v2892_v13, 16  ;;  %v1403_v34 = vshll.u32 %v2892_v13, 16  ;;  %v1435_v38 = vrot.slane %v1434_v24, 4  ;;  %v2902_v13 = vld [vmem:[%s3823_s4 + $0x28] sm:$0xe] }
  0xd9   : > { %v3277_v52 = vpack.i.bf16 %v1466_v23, %v1465_v7  ;;  %v1426_v36 = vsel %vm3863_vm2, %v1421_v55, %v1425_v62  ;;  %v1409_v1 = vshll.u32 %v4140_v19, 16  ;;  %v1392_v17 = vor.u32 %v1391_v42, %v1388_v27  ;;  %v2903_v24 = vld [vmem:[%s3823_s4 + $0x30] sm:$0xe] }
  0xda   : > { %v1471_v41 = vunpack.c.l.bf16 %v1426_v36  ;;  %v1402_v44 = vrot.slane %v1400_v29, 4  ;;  %v1405_v45 = vrot.slane %v1403_v34, 5  ;;  %v1440_v22 = vsel %vm3863_vm2, %v1435_v38, %v1439_v4  ;;  %v2908_v34 = vld [vmem:[%s3823_s4 + $0x58] sm:$0xe] }
  0xdb   : > { %3278 = vperm.xlu0 %3095, %v3277_v52   ;;  %v1411_v47 = vrot.slane %v1409_v1, 5  ;;  %v2916_v48 = vrot.slane %v2900_v26, 9  ;;  %v1647_v50 = vrot.slane %v4039_v8, 5  ;;  %v1472_v53 = vunpack.c.l.bf16 %v1440_v22 }
  0xdc   : > { %v1393_v54 = vrot.slane %v1392_v17, 4  ;;  %v1406_v12 = vor.u32 %v1405_v45, %v1402_v44  ;;  %v2917_v31 = vrot.slane %v2901_v40, 9  ;;  %v1651_v60 = vrot.slane %v4043_v15, 5 }
  0xdd   : > { %v1648_v59 = vsel %vm3957_vm5, %v2916_v48, %v1647_v50  ;;  %v2914_v62 = vrot.slane %v2898_v46, 9  ;;  %v1639_v33 = vrot.slane %v4048_v21, 5  ;;  %v3292_v63 = vpack.i.bf16 %v1472_v53, %v1471_v41  ;;  %v2906_v41 = vld [vmem:[%s3823_s4 + $0x48] sm:$0xe]  ;;  %v2912_v53 = vld [vmem:[%s3823_s4 + $0x78] sm:$0xe] }
  0xde   : > { %v1398_v2 = vsel %vm3863_vm2, %v1393_v54, %v1397_v28  ;;  %v1407_v3 = vrot.slane %v1406_v12, 4  ;;  %v1719_v8 = vunpack.c.l.bf16 %v1648_v59  ;;  %v1652_v9 = vsel %vm3957_vm5, %v2917_v31, %v1651_v60 }
  0xdf   : > { %v1469_v7 = vunpack.c.l.bf16 %v1398_v2  ;;  %v1640_v11 = vsel %vm3957_vm5, %v2914_v62, %v1639_v33  ;;  %v2915_v15 = vrot.slane %v2899_v57, 9  ;;  %3293 = vperm.xlu1 %3106, %v3292_v63   ;;  %v1720_v14 = vunpack.c.l.bf16 %v1652_v9  ;;  %v2913_v33 = vld [vmem:[%s3823_s4 + $0x80] sm:$0xe] }
  0xe0   : > { %v1412_v21 = vsel %vm3863_vm2, %v1407_v3, %v1411_v47  ;;  %v1643_v16 = vrot.slane %v4055_v30, 5  ;;  %v1717_v4 = vunpack.c.l.bf16 %v1640_v11  ;;  %v2920_v35 = vrot.slane %v2904_v5, 9  ;;  %v2910_v3 = vld [vmem:[%s3823_s4 + $0x68] sm:$0xe] }
  0xe1   : > { %v1470_v25 = vunpack.c.l.bf16 %v1412_v21  ;;  %v1663_v23 = vrot.slane %v4061_v6, 5  ;;  %v2921_v55 = vrot.slane %v2905_v43, 9  ;;  %v3302_v27 = vpack.i.bf16 %v1720_v14, %v1719_v8  ;;  %v2909_v6 = vld [vmem:[%s3823_s4 + $0x60] sm:$0xe]  ;;  %v2911_v43 = vld [vmem:[%s3823_s4 + $0x70] sm:$0xe] }
  0xe2   : > { %v1644_v42 = vsel %vm3957_vm5, %v2915_v15, %v1643_v16  ;;  %v1667_v28 = vrot.slane %v4067_v56, 5  ;;  %v2918_v29 = vrot.slane %v2902_v13, 9  ;;  %v1655_v36 = vrot.slane %v4077_v18, 5  ;;  %v2907_v18 = vld [vmem:[%s3823_s4 + $0x50] sm:$0xe] }
  0xe3   : > { %v3287_v26 = vpack.i.bf16 %v1470_v25, %v1469_v7  ;;  %v1718_v30 = vunpack.c.l.bf16 %v1644_v42  ;;  %v1664_v52 = vsel %vm3957_vm5, %v2920_v35, %v1663_v23  ;;  %3303 = vperm.xlu1 %3106, %v3302_v27   ;;  %v2919_v40 = vrot.slane %v2903_v24, 9  ;;  %v2932_v13 = vld [vmem:[%s3823_s4 + $0x20] ss:$8 sps:$4 sm:$0xff]   ;;  %v2930_v25 = vld [vmem:[%s3823_s4 + $0x10] ss:$8 sps:$4 sm:$0xff]  }
  0xe4   : > { %v1668_v38 = vsel %vm3957_vm5, %v2921_v55, %v1667_v28  ;;  %v1723_v1 = vunpack.c.l.bf16 %v1664_v52  ;;  %v1659_v56 = vrot.slane %v4083_v32, 5  ;;  %v1656_v45 = vsel %vm3957_vm5, %v2918_v29, %v1655_v36  ;;  %v2936_v24 = vld [vmem:[%s3823_s4 + $0x40] ss:$8 sps:$4 sm:$0xff]   ;;  %v2934_v28 = vld [vmem:[%s3823_s4 + $0x30] ss:$8 sps:$4 sm:$0xff]  }
  0xe5   : > { %3288 = vperm.xlu0 %3095, %v3287_v26   ;;  %v3297_v17 = vpack.i.bf16 %v1718_v30, %v1717_v4  ;;  %v1724_v44 = vunpack.c.l.bf16 %v1668_v38  ;;  %v2924_v46 = vrot.slane %v2908_v34, 9  ;;  %v1721_v47 = vunpack.c.l.bf16 %v1656_v45  ;;  %v2940_v52 = vld [vmem:[%s3823_s4 + $0x60] ss:$8 sps:$4 sm:$0xff]   ;;  %v2942_v45 = vld [vmem:[%s3823_s4 + $0x70] ss:$8 sps:$4 sm:$0xff]  }
  0xe6   : > { %v1660_v22 = vsel %vm3957_vm5, %v2919_v40, %v1659_v56  ;;  %v1679_v48 = vrot.slane %v4091_v39, 5  ;;  %v2925_v50 = vrot.slane %v2909_v6, 9  ;;  %v1683_v12 = vrot.slane %v4098_v49, 5  ;;  %v2938_v40 = vld [vmem:[%s3823_s4 + $0x50] ss:$8 sps:$4 sm:$0xff]  }
  0xe7   : > { %v3312_v32 = vpack.i.bf16 %v1724_v44, %v1723_v1  ;;  %v1722_v54 = vunpack.c.l.bf16 %v1660_v22  ;;  %v2922_v31 = vrot.slane %v2906_v41, 9  ;;  %v1671_v59 = vrot.slane %v4106_v10, 5  ;;  %v2944_v56 = vld [vmem:[%s3823_s4 + $0x80] ss:$8 sps:$4 sm:$0xff]  }
  0xe8   : > { %v1680_v57 = vsel %vm3957_vm5, %v2924_v46, %v1679_v48  ;;  %v2923_v60 = vrot.slane %v2907_v18, 9  ;;  %v1675_v62 = vrot.slane %v4112_v20, 5  ;;  %v1684_v63 = vsel %vm3957_vm5, %v2925_v50, %v1683_v12  ;;  %v2950_v48 = vld [vmem:[%s3823_s4 + $0x20] sm:$0xf]  ;;  %v4226_v12 = vld [vmem:[%s3823_s4 + $0x24] sm:$0x1] }
  0xe9   : > { %3298 = vperm.xlu0 %3095, %v3297_v17   ;;  %3313 = vperm.xlu1 %3106, %v3312_v32   ;;  %v3307_v39 = vpack.i.bf16 %v1722_v54, %v1721_v47  ;;  %v1727_v2 = vunpack.c.l.bf16 %v1680_v57  ;;  %v2928_v49 = vrot.slane %v2912_v53, 9  ;;  %v1728_v8 = vunpack.c.l.bf16 %v1684_v63 }
  0xea   : > { %v1672_v5 = vsel %vm3957_vm5, %v2922_v31, %v1671_v59  ;;  %v1676_v10 = vsel %vm3957_vm5, %v2923_v60, %v1675_v62  ;;  %v1695_v20 = vrot.slane %v4120_v37, 5  ;;  %v2929_v11 = vrot.slane %v2913_v33, 9  ;;  %v2952_v31 = vld [vmem:[%s3823_s4 + $0x28] sm:$0xf] }
  0xeb   : > { %v1725_v7 = vunpack.c.l.bf16 %v1672_v5  ;;  %v1726_v9 = vunpack.c.l.bf16 %v1676_v10  ;;  %v1699_v15 = vrot.slane %v4126_v51, 5  ;;  %v3322_v21 = vpack.i.bf16 %v1728_v8, %v1727_v2  ;;  %v2946_v8 = vld [vmem:[%s3823_s4 + $0x10] sm:$0xf] }
  0xec   : > { %v1696_v14 = vsel %vm3957_vm5, %v2928_v49, %v1695_v20  ;;  %v2926_v16 = vrot.slane %v2910_v3, 9  ;;  %v1687_v4 = vrot.slane %v4131_v0, 5  ;;  %v2927_v55 = vrot.slane %v2911_v43, 9 }
  0xed   : > { %3308 = vperm.xlu0 %3095, %v3307_v39   ;;  %v3317_v37 = vpack.i.bf16 %v1726_v9, %v1725_v7  ;;  %v1700_v35 = vsel %vm3957_vm5, %v2929_v11, %v1699_v15  ;;  %v1731_v23 = vunpack.c.l.bf16 %v1696_v14  ;;  %3323 = vperm.xlu1 %3106, %v3322_v21   ;;  %v1691_v42 = vrot.slane %v4140_v19, 5  ;;  %v4232_v39 = vld [vmem:[%s3823_s4 + $0x2c] sm:$0x1]  ;;  %v4241_v7 = vld [vmem:[%s3823_s4 + $0x14] sm:$0x1] }
  0xee   : > { %v1732_v51 = vunpack.c.l.bf16 %v1700_v35  ;;  %v1688_v27 = vsel %vm3957_vm5, %v2926_v16, %v1687_v4  ;;  %v1868_v0 = vunpack.c.l.bf16 %v2932_v13  ;;  %v1869_v34 = vunpack.c.h.bf16 %v2932_v13  ;;  %v4229_v57 = vpop.permute.xlu1 %3108  ;;  %v2948_v21 = vld [vmem:[%s3823_s4 + $0x18] sm:$0xf] }
  0xef   : > { %v1729_v29 = vunpack.c.l.bf16 %v1688_v27  ;;  %v1866_v26 = vunpack.c.l.bf16 %v2930_v25  ;;  %v1867_v30 = vunpack.c.h.bf16 %v2930_v25  ;;  %v1692_v6 = vsel %vm3957_vm5, %v2927_v55, %v1691_v42  ;;  %v4248_v25 = vld [vmem:[%s3823_s4 + $0x1c] sm:$0x1]  ;;  %v4250_v35 = vpop.permute.xlu0 %3097  ;;  %v2958_v27 = vld [vmem:[%s3823_s4 + $0x40] sm:$0xf] }
  0xf0   : > { %v3332_v36 = vpack.i.bf16 %v1732_v51, %v1731_v23  ;;  %v1872_v38 = vunpack.c.l.bf16 %v2936_v24  ;;  %v1873_v1 = vunpack.c.h.bf16 %v2936_v24  ;;  %v1730_v19 = vunpack.c.l.bf16 %v1692_v6 }
  0xf1   : > { %3318 = vperm.xlu0 %3095, %v3317_v37   ;;  %v3342_v41 = vpack.i.bf16 %v1869_v34, %v1868_v0  ;;  %v3337_v17 = vpack.i.bf16 %v1867_v30, %v1866_v26  ;;  %v1870_v44 = vunpack.c.l.bf16 %v2934_v28  ;;  %v1871_v18 = vunpack.c.h.bf16 %v2934_v28 }
  0xf2   : > { %3333 = vperm.xlu1 %3106, %v3332_v36   ;;  %v3352_v46 = vpack.i.bf16 %v1873_v1, %v1872_v38  ;;  %v1876_v22 = vunpack.c.l.bf16 %v2940_v52  ;;  %v1877_v47 = vunpack.c.h.bf16 %v2940_v52  ;;  %v3327_v50 = vpack.i.bf16 %v1730_v19, %v1729_v29  ;;  %v4254_v42 = vpop.permute.xlu1 %3113 }
  0xf3   : > { %v1874_v53 = vunpack.c.l.bf16 %v2938_v40  ;;  %v1875_v32 = vunpack.c.h.bf16 %v2938_v40  ;;  %v1880_v54 = vunpack.c.l.bf16 %v2944_v56  ;;  %v3347_v59 = vpack.i.bf16 %v1871_v18, %v1870_v44  ;;  %v4258_v40 = vld [vmem:[%s3823_s4 + $0x44] sm:$0x1]  ;;  %v2960_v44 = vld [vmem:[%s3823_s4 + $0x48] sm:$0xf] }
  0xf4   : > { %v3362_v60 = vpack.i.bf16 %v1877_v47, %v1876_v22  ;;  %v1881_v62 = vunpack.c.h.bf16 %v2944_v56  ;;  %v1878_v33 = vunpack.c.l.bf16 %v2942_v45  ;;  %v1879_v2 = vunpack.c.h.bf16 %v2942_v45  ;;  %v4264_v45 = vld [vmem:[%s3823_s4 + $0x4c] sm:$0x1] }
  0xf5   : > { %3328 = vperm.xlu0 %3095, %v3327_v50   ;;  %v4234_v63 = vpack.i.bf16 %v1875_v32, %v1874_v53  ;;  %v2059_v49 = vshrl.u32 %v2950_v48, 16  ;;  %v2062_v3 = vshll.u32 %v2950_v48, 16  ;;  %v2068_v10 = vshll.u32 %v4226_v12, 16  ;;  %v4268_v50 = vpop.permute.xlu0 %3102 }
  0xf6   : > { %3343 = vperm.xlu1 %3106, %v3342_v41   ;;  %v4237_v5 = vpack.i.bf16 %v1881_v62, %v1880_v54  ;;  %v2073_v20 = vshrl.u32 %v2952_v31, 16  ;;  %v2076_v43 = vshll.u32 %v2952_v31, 16  ;;  %v4243_v9 = vpack.i.bf16 %v1879_v2, %v1878_v33 }
  0xf7   : > { %v2061_v11 = vrot.slane %v2059_v49, 4  ;;  %v2064_v15 = vrot.slane %v2062_v3, 5  ;;  %v2082_v13 = vshll.u32 %v4232_v39, 16  ;;  %v2070_v14 = vrot.slane %v2068_v10, 5  ;;  %v2954_v49 = vld [vmem:[%s3823_s4 + $0x30] sm:$0xf] }
  0xf8   : > { %v2075_v16 = vrot.slane %v2073_v20, 4  ;;  %v2078_v4 = vrot.slane %v2076_v43, 5  ;;  %v2031_v37 = vshrl.u32 %v2946_v8, 16  ;;  %v2034_v24 = vshll.u32 %v2946_v8, 16  ;;  %v4279_v43 = vld [vmem:[%s3823_s4 + $0x34] sm:$0x1] }
  0xf9   : > { %3338 = vperm.xlu0 %3095, %v3337_v17   ;;  %v2065_v23 = vor.u32 %v2064_v15, %v2061_v11  ;;  %v2084_v55 = vrot.slane %v2082_v13, 5  ;;  %v2040_v51 = vshll.u32 %v4241_v7, 16  ;;  %v2045_v29 = vshrl.u32 %v2948_v21, 16  ;;  %v2956_v11 = vld [vmem:[%s3823_s4 + $0x38] sm:$0xf] }
  0xfa   : > { %3353 = vperm.xlu1 %3106, %v3352_v46   ;;  %v2079_v0 = vor.u32 %v2078_v4, %v2075_v16  ;;  %v2033_v28 = vrot.slane %v2031_v37, 4  ;;  %v2048_v34 = vshll.u32 %v2948_v21, 16  ;;  %v2036_v30 = vrot.slane %v2034_v24, 5  ;;  %v4286_v37 = vld [vmem:[%s3823_s4 + $0x3c] sm:$0x1] }
  0xfb   : > { %v2066_v26 = vrot.slane %v2065_v23, 4  ;;  %v2042_v52 = vrot.slane %v2040_v51, 5  ;;  %v2054_v36 = vshll.u32 %v4248_v25, 16  ;;  %v2047_v38 = vrot.slane %v2045_v29, 4 }
  0xfc   : > { %v2080_v6 = vrot.slane %v2079_v0, 4  ;;  %v2050_v1 = vrot.slane %v2048_v34, 5  ;;  %v2115_v56 = vshrl.u32 %v2958_v27, 16  ;;  %v2037_v41 = vor.u32 %v2036_v30, %v2033_v28  ;;  %v2966_v0 = vld [vmem:[%s3823_s4 + $0x60] sm:$0xf] }
  0xfd   : > { %3348 = vperm.xlu0 %3095, %v3347_v59   ;;  %v2071_v19 = vsel %vm3863_vm2, %v2066_v26, %v2070_v14  ;;  %v2056_v17 = vrot.slane %v2054_v36, 5  ;;  %v2118_v46 = vshll.u32 %v2958_v27, 16  ;;  %v2124_v31 = vshll.u32 %v4258_v40, 16  ;;  %v4271_v59 = vpop.permute.xlu1 %3123  ;;  %v4296_v30 = vld [vmem:[%s3823_s4 + $0x64] sm:$0x1] }
  0xfe   : > { %3363 = vperm.xlu1 %3106, %v3362_v60   ;;  %v2085_v18 = vsel %vm3863_vm2, %v2080_v6, %v2084_v55  ;;  %v2272_v22 = vunpack.c.l.bf16 %v2071_v19  ;;  %v2051_v47 = vor.u32 %v2050_v1, %v2047_v38  ;;  %v2117_v48 = vrot.slane %v2115_v56, 4 }
  0xff   : > { %v2273_v53 = vunpack.c.l.bf16 %v2085_v18  ;;  %v2038_v32 = vrot.slane %v2037_v41, 4  ;;  %v2120_v54 = vrot.slane %v2118_v46, 5  ;;  %v2129_v33 = vshrl.u32 %v2960_v44, 16  ;;  %v2968_v41 = vld [vmem:[%s3823_s4 + $0x68] sm:$0xf] }
 0x100   : > { %v2052_v62 = vrot.slane %v2051_v47, 4  ;;  %v2132_v60 = vshll.u32 %v2960_v44, 16  ;;  %v2138_v2 = vshll.u32 %v4264_v45, 16  ;;  %v2126_v20 = vrot.slane %v2124_v31, 5  ;;  %v4305_v18 = vld [vmem:[%s3823_s4 + $0x6c] sm:$0x1] }
 0x101   : > { %3358 = vperm.xlu0 %3095, %v4234_v63   ;;  %v3382_v3 = vpack.i.bf16 %v2273_v53, %v2272_v22  ;;  %v2043_v8 = vsel %vm3863_vm2, %v2038_v32, %v2042_v52  ;;  %v2121_v10 = vor.u32 %v2120_v54, %v2117_v48  ;;  %v2131_v21 = vrot.slane %v2129_v33, 4  ;;  %v4298_v52 = vpop.permute.xlu1 %3133  ;;  %v2962_v31 = vld [vmem:[%s3823_s4 + $0x50] sm:$0xf] }
 0x102   : > { %3373 = vperm.xlu1 %3106, %v4237_v5   ;;  %v2057_v15 = vsel %vm3863_vm2, %v2052_v62, %v2056_v17  ;;  %v2270_v13 = vunpack.c.l.bf16 %v2043_v8  ;;  %v2134_v14 = vrot.slane %v2132_v60, 5  ;;  %v2140_v4 = vrot.slane %v2138_v2, 5  ;;  %v4290_v5 = vpop.permute.xlu0 %3118 }
 0x103   : > { %v2271_v16 = vunpack.c.l.bf16 %v2057_v15  ;;  %v2122_v63 = vrot.slane %v2121_v10, 4  ;;  %v2087_v23 = vshrl.u32 %v2954_v49, 16  ;;  %v2090_v24 = vshll.u32 %v2954_v49, 16 }
 0x104   : > { %v2135_v55 = vor.u32 %v2134_v14, %v2131_v21  ;;  %v2096_v51 = vshll.u32 %v4279_v43, 16  ;;  %v2101_v27 = vshrl.u32 %v2956_v11, 16  ;;  %v2104_v26 = vshll.u32 %v2956_v11, 16  ;;  %v4317_v14 = vld [vmem:[%s3823_s4 + $0x54] sm:$0x1] }
 0x105   : > { %3368 = vperm.xlu0 %3095, %v4243_v9   ;;  %v3377_v28 = vpack.i.bf16 %v2271_v16, %v2270_v13  ;;  %v2127_v29 = vsel %vm3863_vm2, %v2122_v63, %v2126_v20  ;;  %v2089_v34 = vrot.slane %v2087_v23, 4  ;;  %v2092_v38 = vrot.slane %v2090_v24, 5  ;;  %v4312_v11 = vpop.permute.xlu1 %3143  ;;  %v2964_v16 = vld [vmem:[%s3823_s4 + $0x58] sm:$0xf] }
 0x106   : > { %3383 = vperm.xlu1 %3106, %v3382_v3   ;;  %v2136_v36 = vrot.slane %v2135_v55, 4  ;;  %v2276_v6 = vunpack.c.l.bf16 %v2127_v29  ;;  %v2098_v1 = vrot.slane %v2096_v51, 5  ;;  %v2103_v56 = vrot.slane %v2101_v27, 4  ;;  %v4309_v49 = vpop.permute.xlu0 %3128  ;;  %v4323_v51 = vld [vmem:[%s3823_s4 + $0x5c] sm:$0x1] }
 0x107   : > { %v2106_v19 = vrot.slane %v2104_v26, 5  ;;  %v2110_v9 = vshll.u32 %v4286_v37, 16  ;;  %v2171_v17 = vshrl.u32 %v2966_v0, 16  ;;  %v2093_v46 = vor.u32 %v2092_v38, %v2089_v34  ;;  %v2974_v38 = vld [vmem:[%s3823_s4 + $0x80] sm:$0xf] }
 0x108   : > { %v2141_v44 = vsel %vm3863_vm2, %v2136_v36, %v2140_v4  ;;  %v2174_v22 = vshll.u32 %v2966_v0, 16  ;;  %v2180_v47 = vshll.u32 %v4296_v30, 16  ;;  %v2185_v2 = vshrl.u32 %v2968_v41, 16 }
 0x109   : > { %3378 = vperm.xlu0 %3095, %v3377_v28   ;;  %v2277_v48 = vunpack.c.l.bf16 %v2141_v44  ;;  %v2107_v53 = vor.u32 %v2106_v19, %v2103_v56  ;;  %v2112_v32 = vrot.slane %v2110_v9, 5  ;;  %v2173_v54 = vrot.slane %v2171_v17, 4  ;;  %v2976_v17 = vld [vmem:[%s3823_s4 + $0x88] sm:$0xf] }
 0x10a   : > { %v2094_v62 = vrot.slane %v2093_v46, 4  ;;  %v2176_v33 = vrot.slane %v2174_v22, 5  ;;  %v2182_v60 = vrot.slane %v2180_v47, 5  ;;  %v2188_v10 = vshll.u32 %v2968_v41, 16  ;;  %v4331_v41 = vld [vmem:[%s3823_s4 + $0x84] sm:$0x1]  ;;  %v4334_v44 = vpop.permute.xlu0 %3138 }
 0x10b   : > { %v3392_v3 = vpack.i.bf16 %v2277_v48, %v2276_v6  ;;  %v2108_v8 = vrot.slane %v2107_v53, 4  ;;  %v2194_v20 = vshll.u32 %v4305_v18, 16  ;;  %v2187_v21 = vrot.slane %v2185_v2, 4  ;;  %v4336_v53 = vpop.permute.xlu1 %3153 }
 0x10c   : > { %v2099_v15 = vsel %vm3863_vm2, %v2094_v62, %v2098_v1  ;;  %v2177_v13 = vor.u32 %v2176_v33, %v2173_v54  ;;  %v2143_v63 = vshrl.u32 %v2962_v31, 16  ;;  %v2190_v55 = vrot.slane %v2188_v10, 5 }
 0x10d   : > { %3393 = vperm.xlu1 %3106, %v3392_v3   ;;  %v2113_v4 = vsel %vm3863_vm2, %v2108_v8, %v2112_v32  ;;  %v2274_v23 = vunpack.c.l.bf16 %v2099_v15  ;;  %v2196_v24 = vrot.slane %v2194_v20, 5  ;;  %v2146_v29 = vshll.u32 %v2962_v31, 16 }
 0x10e   : > { %v2275_v27 = vunpack.c.l.bf16 %v2113_v4  ;;  %v2178_v0 = vrot.slane %v2177_v13, 4  ;;  %v2145_v28 = vrot.slane %v2143_v63, 4  ;;  %v2191_v34 = vor.u32 %v2190_v55, %v2187_v21  ;;  %v2970_v21 = vld [vmem:[%s3823_s4 + $0x70] sm:$0xf]  ;;  %v4346_v55 = vld [vmem:[%s3823_s4 + $0x74] sm:$0x1] }
 0x10f   : > { %v2152_v26 = vshll.u32 %v4317_v14, 16  ;;  %v2157_v36 = vshrl.u32 %v2964_v16, 16  ;;  %v2160_v6 = vshll.u32 %v2964_v16, 16  ;;  %v2148_v19 = vrot.slane %v2146_v29, 5  ;;  %v4351_v29 = vpop.permute.xlu0 %3148 }
 0x110   : > { %v3387_v1 = vpack.i.bf16 %v2275_v27, %v2274_v23  ;;  %v2183_v56 = vsel %vm3863_vm2, %v2178_v0, %v2182_v60  ;;  %v2166_v9 = vshll.u32 %v4323_v51, 16  ;;  %v2192_v46 = vrot.slane %v2191_v34, 4  ;;  %v4341_v60 = vld [vmem:[%s3823_s4 + $0x8c] sm:$0x1] }
 0x111   : > { %v2280_v22 = vunpack.c.l.bf16 %v2183_v56  ;;  %v2154_v47 = vrot.slane %v2152_v26, 5  ;;  %v2159_v48 = vrot.slane %v2157_v36, 4  ;;  %v2149_v32 = vor.u32 %v2148_v19, %v2145_v28 }
 0x112   : > { %3388 = vperm.xlu0 %3095, %v3387_v1   ;;  %v2162_v54 = vrot.slane %v2160_v6, 5  ;;  %v2168_v31 = vrot.slane %v2166_v9, 5  ;;  %v2227_v62 = vshrl.u32 %v2974_v38, 16  ;;  %v2197_v33 = vsel %vm3863_vm2, %v2192_v46, %v2196_v24  ;;  %v2972_v6 = vld [vmem:[%s3823_s4 + $0x78] sm:$0xf] }
 0x113   : > { %v2230_v2 = vshll.u32 %v2974_v38, 16  ;;  %v2236_v3 = vshll.u32 %v4331_v41, 16  ;;  %v2241_v8 = vshrl.u32 %v2976_v17, 16  ;;  %v2281_v10 = vunpack.c.l.bf16 %v2197_v33  ;;  %v4354_v1 = vpop.permute.xlu1 %3163  ;;  %v4359_v9 = vld [vmem:[%s3823_s4 + $0x7c] sm:$0x1] }
 0x114   : > { %v2150_v20 = vrot.slane %v2149_v32, 4  ;;  %v2163_v15 = vor.u32 %v2162_v54, %v2159_v48  ;;  %v2229_v13 = vrot.slane %v2227_v62, 4  ;;  %v2244_v23 = vshll.u32 %v2976_v17, 16 }
 0x115   : > { %v2232_v16 = vrot.slane %v2230_v2, 5  ;;  %v2238_v63 = vrot.slane %v2236_v3, 5  ;;  %v2243_v4 = vrot.slane %v2241_v8, 4  ;;  %v3402_v24 = vpack.i.bf16 %v2281_v10, %v2280_v22 }
 0x116   : > { %v2155_v27 = vsel %vm3863_vm2, %v2150_v20, %v2154_v47  ;;  %v2164_v0 = vrot.slane %v2163_v15, 4  ;;  %v2250_v28 = vshll.u32 %v4341_v60, 16  ;;  %v2246_v36 = vrot.slane %v2244_v23, 5 }
 0x117   : > { %v2278_v34 = vunpack.c.l.bf16 %v2155_v27  ;;  %v2233_v26 = vor.u32 %v2232_v16, %v2229_v13  ;;  %v2199_v38 = vshrl.u32 %v2970_v21, 16  ;;  %3403 = vperm.xlu1 %3106, %v3402_v24   ;;  %v2202_v17 = vshll.u32 %v2970_v21, 16  ;;  %v2980_v16 = vld [vmem:[%s3823_s4 + $0x20] sm:$0xe] }
 0x118   : > { %v2169_v56 = vsel %vm3863_vm2, %v2164_v0, %v2168_v31  ;;  %v2252_v19 = vrot.slane %v2250_v28, 5  ;;  %v2208_v46 = vshll.u32 %v4346_v55, 16  ;;  %v2247_v48 = vor.u32 %v2246_v36, %v2243_v4  ;;  %v4366_v23 = vpop.permute.xlu0 %3158 }
 0x119   : > { %v2279_v22 = vunpack.c.l.bf16 %v2169_v56  ;;  %v2234_v47 = vrot.slane %v2233_v26, 4  ;;  %v2201_v32 = vrot.slane %v2199_v38, 4  ;;  %v2204_v54 = vrot.slane %v2202_v17, 5 }
 0x11a   : > { %v2210_v62 = vrot.slane %v2208_v46, 5  ;;  %v2213_v33 = vshrl.u32 %v2972_v6, 16  ;;  %v2216_v2 = vshll.u32 %v2972_v6, 16  ;;  %v2248_v31 = vrot.slane %v2247_v48, 4  ;;  %v2981_v6 = vld [vmem:[%s3823_s4 + $0x28] sm:$0xe] }
 0x11b   : > { %v3397_v3 = vpack.i.bf16 %v2279_v22, %v2278_v34  ;;  %v2239_v8 = vsel %vm3863_vm2, %v2234_v47, %v2238_v63  ;;  %v2222_v10 = vshll.u32 %v4359_v9, 16  ;;  %v2205_v15 = vor.u32 %v2204_v54, %v2201_v32  ;;  %v2978_v46 = vld [vmem:[%s3823_s4 + $0x10] sm:$0xe] }
 0x11c   : > { %v2284_v20 = vunpack.c.l.bf16 %v2239_v8  ;;  %v2215_v13 = vrot.slane %v2213_v33, 4  ;;  %v2218_v21 = vrot.slane %v2216_v2, 5  ;;  %v2253_v4 = vsel %vm3863_vm2, %v2248_v31, %v2252_v19  ;;  %v4382_v32 = vld [vmem:[#allocation5] sm:$0xff]  ;;  %v2979_v8 = vld [vmem:[%s3823_s4 + $0x18] sm:$0xe] }
 0x11d   : > { %3398 = vperm.xlu0 %3095, %v3397_v3   ;;  %v2224_v24 = vrot.slane %v2222_v10, 5  ;;  %v330_v27 = vlaneseq  ;;  %v3111_v63 = vunpack.i.h.bf16 %v4229_v57  ;;  %v4371_v0 = vpop.permute.xlu1 %3173  ;;  %v2285_v28 = vunpack.c.l.bf16 %v2253_v4 }
 0x11e   : > { %v2206_v34 = vrot.slane %v2205_v15, 4  ;;  %v2219_v26 = vor.u32 %v2218_v21, %v2215_v13  ;;  %v3110_v36 = vunpack.i.l.bf16 %v4229_v57  ;;  %v3100_v56 = vunpack.i.h.bf16 %v4250_v35 }
 0x11f   : > { %v4375_v38 = vshrl.u32 %v330_v27, 7  ;;  %v3099_v17 = vunpack.i.l.bf16 %v4250_v35  ;;  %v2996_v19 = vrot.slane %v2980_v16, 9  ;;  %v3412_v22 = vpack.i.bf16 %v2285_v28, %v2284_v20 }
 0x120   : > { %v2211_v47 = vsel %vm3863_vm2, %v2206_v34, %v2210_v62  ;;  %v2220_v48 = vrot.slane %v2219_v26, 4  ;;  %v2460_v54 = vrot.slane %v4226_v12, 5  ;;  %v2997_v2 = vrot.slane %v2981_v6, 9  ;;  %v2984_v26 = vld [vmem:[%s3823_s4 + $0x40] sm:$0xe] }
 0x121   : > { %v2282_v57 = vunpack.c.l.bf16 %v2211_v47  ;;  %v332_v33 = vsub.s32 0, %v4375_v38  ;;  %v2464_v3 = vrot.slane %v4232_v39, 5  ;;  %v4388_v31 = vpop.permute.xlu1 %3183  ;;  %3413 = vperm.xlu1 %3106, %v3412_v22   ;;  %v2994_v10 = vrot.slane %v2978_v46, 9  ;;  %v2985_v6 = vld [vmem:[%s3823_s4 + $0x48] sm:$0xe] }
 0x122   : > { %v2225_v35 = vsel %vm3863_vm2, %v2220_v48, %v2224_v24  ;;  %v2461_v62 = vsel %vm3957_vm5, %v2996_v19, %v2460_v54  ;;  %v2452_v12 = vrot.slane %v4241_v7, 5  ;;  %v4395_v20 = vpop.permute.xlu0 %3168  ;;  %v2995_v4 = vrot.slane %v2979_v8, 9  ;;  %v2983_v8 = vld [vmem:[%s3823_s4 + $0x38] sm:$0xe] }
 0x123   : > { %v2283_v15 = vunpack.c.l.bf16 %v2225_v35  ;;  %v4398_v39 = vrot.slane %v4382_v32, %v332_v33  ;;  %v2465_v13 = vsel %vm3957_vm5, %v2997_v2, %v2464_v3  ;;  %v2532_v21 = vunpack.c.l.bf16 %v2461_v62 }
 0x124   : > { %v2533_v58 = vunpack.c.l.bf16 %v2465_v13  ;;  %v2453_v16 = vsel %vm3957_vm5, %v2994_v10, %v2452_v12  ;;  %v2456_v24 = vrot.slane %v4248_v25, 5  ;;  %v3115_v48 = vunpack.i.l.bf16 %v4254_v42 }
 0x125   : > { %v3407_v27 = vpack.i.bf16 %v2283_v15, %v2282_v57  ;;  %v4406_v7 = vmul.f32 %v3110_v36, %v4398_v39  ;;  %v4409_v28 = vmul.f32 %v3111_v63, %v4398_v39  ;;  %v4412_v34 = vmul.f32 %v3099_v17, %v4398_v39 }
 0x126   : > { %v4417_v19 = vmul.f32 %v3100_v56, %v4398_v39  ;;  %v3422_v46 = vpack.i.bf16 %v2533_v58, %v2532_v21  ;;  %v2457_v25 = vsel %vm3957_vm5, %v2995_v4, %v2456_v24  ;;  %v2530_v22 = vunpack.c.l.bf16 %v2453_v16  ;;  %v4421_v36 = vpop.permute.xlu0 %3178  ;;  %v4423_v47 = vpop.permute.xlu1 %3193  ;;  %v2982_v56 = vld [vmem:[%s3823_s4 + $0x30] sm:$0xe] }
 0x127   : > { %3408 = vperm.xlu0 %3095, %v3407_v27   ;;  %v2531_v63 = vunpack.c.l.bf16 %v2457_v25  ;;  %v3116_v17 = vunpack.i.h.bf16 %v4254_v42  ;;  %v3105_v54 = vunpack.i.h.bf16 %v4268_v50  ;;  %v3104_v57 = vunpack.i.l.bf16 %v4268_v50 }
 0x128   : > { %3423 = vperm.xlu1 %3106, %v3422_v46   ;;  %v3000_v33 = vrot.slane %v2984_v26, 9  ;;  %v2476_v2 = vrot.slane %v4258_v40, 5  ;;  %v3001_v3 = vrot.slane %v2985_v6, 9  ;;  %v4433_v62 = vmul.f32 %v3115_v48, %v4398_v39  ;;  %v2988_v46 = vld [vmem:[%s3823_s4 + $0x60] sm:$0xe] }
 0x129   : > { %v3417_v35 = vpack.i.bf16 %v2531_v63, %v2530_v22  ;;  %v4436_v10 = vmul.f32 %v3116_v17, %v4398_v39  ;;  %v4439_v42 = vmul.f32 %v3105_v54, %v4398_v39  ;;  %v4442_v12 = vmul.f32 %v3104_v57, %v4398_v39  ;;  %v2989_v63 = vld [vmem:[%s3823_s4 + $0x68] sm:$0xe]  ;;  %v2987_v57 = vld [vmem:[%s3823_s4 + $0x58] sm:$0xe] }
 0x12a   : > { %v2477_v50 = vsel %vm3957_vm5, %v3000_v33, %v2476_v2  ;;  %v2480_v40 = vrot.slane %v4264_v45, 5  ;;  %v2998_v15 = vrot.slane %v2982_v56, 9  ;;  %v4447_v13 = vpop.permute.xlu0 %3188  ;;  %v2468_v58 = vrot.slane %v4279_v43, 5  ;;  %v4451_v24 = vpop.permute.xlu1 %3203  ;;  %v2986_v56 = vld [vmem:[%s3823_s4 + $0x50] sm:$0xe] }
 0x12b   : > { %3418 = vperm.xlu0 %3095, %v3417_v35   ;;  %v2536_v21 = vunpack.c.l.bf16 %v2477_v50  ;;  %v2999_v16 = vrot.slane %v2983_v8, 9  ;;  %v2472_v4 = vrot.slane %v4286_v37, 5  ;;  %v3126_v45 = vunpack.i.h.bf16 %v4271_v59 }
 0x12c   : > { %v2481_v27 = vsel %vm3957_vm5, %v3001_v3, %v2480_v40  ;;  %v3125_v26 = vunpack.i.l.bf16 %v4271_v59  ;;  %v3121_v6 = vunpack.i.h.bf16 %v4290_v5  ;;  %v2469_v43 = vsel %vm3957_vm5, %v2998_v15, %v2468_v58 }
 0x12d   : > { %v2537_v25 = vunpack.c.l.bf16 %v2481_v27  ;;  %v2473_v37 = vsel %vm3957_vm5, %v2999_v16, %v2472_v4  ;;  %v3120_v22 = vunpack.i.l.bf16 %v4290_v5  ;;  %v2534_v17 = vunpack.c.l.bf16 %v2469_v43  ;;  %v2993_v43 = vld [vmem:[%s3823_s4 + $0x88] sm:$0xe] }
 0x12e   : > { %v2535_v48 = vunpack.c.l.bf16 %v2473_v37  ;;  %v4466_v54 = vmul.f32 %v3125_v26, %v4398_v39  ;;  %v4469_v59 = vmul.f32 %v3126_v45, %v4398_v39  ;;  %v4473_v33 = vpop.permute.xlu0 %3198  ;;  %v4479_v8 = vmul.f32 %v3121_v6, %v4398_v39  ;;  %v2992_v6 = vld [vmem:[%s3823_s4 + $0x80] sm:$0xe] }
 0x12f   : > { %v3432_v2 = vpack.i.bf16 %v2537_v25, %v2536_v21  ;;  %v4476_v3 = vmul.f32 %v3120_v22, %v4398_v39  ;;  %v3004_v5 = vrot.slane %v2988_v46, 9  ;;  %v4481_v35 = vpop.permute.xlu1 %3213  ;;  %v2492_v40 = vrot.slane %v4296_v30, 5 }
 0x130   : > { %v3427_v50 = vpack.i.bf16 %v2535_v48, %v2534_v17  ;;  %v3005_v15 = vrot.slane %v2989_v63, 9  ;;  %v2496_v58 = vrot.slane %v4305_v18, 5  ;;  %v3002_v16 = vrot.slane %v2986_v56, 9 }
 0x131   : > { %3433 = vperm.xlu1 %3106, %v3432_v2   ;;  %v2484_v21 = vrot.slane %v4317_v14, 5  ;;  %v3003_v4 = vrot.slane %v2987_v57, 9  ;;  %v2488_v27 = vrot.slane %v4323_v51, 5  ;;  %v2493_v45 = vsel %vm3957_vm5, %v3004_v5, %v2492_v40 }
 0x132   : > { %3428 = vperm.xlu0 %3095, %v3427_v50   ;;  %v2497_v26 = vsel %vm3957_vm5, %v3005_v15, %v2496_v58  ;;  %v3136_v30 = vunpack.i.h.bf16 %v4298_v52  ;;  %v3135_v18 = vunpack.i.l.bf16 %v4298_v52  ;;  %v2540_v46 = vunpack.c.l.bf16 %v2493_v45  ;;  %v2990_v52 = vld [vmem:[%s3823_s4 + $0x70] sm:$0xe]  ;;  %v4506_v48 = vpop.permute.xlu0 %3208  ;;  %v2991_v50 = vld [vmem:[%s3823_s4 + $0x78] sm:$0xe] }
 0x133   : > { %v2541_v25 = vunpack.c.l.bf16 %v2497_v26  ;;  %v2485_v14 = vsel %vm3957_vm5, %v3002_v16, %v2484_v21  ;;  %v2489_v51 = vsel %vm3957_vm5, %v3003_v4, %v2488_v27  ;;  %v3131_v57 = vunpack.i.h.bf16 %v4309_v49  ;;  %v4511_v40 = vpop.permute.xlu1 %3223 }
 0x134   : > { %v2538_v37 = vunpack.c.l.bf16 %v2485_v14  ;;  %v2539_v22 = vunpack.c.l.bf16 %v2489_v51  ;;  %v4500_v63 = vmul.f32 %v3135_v18, %v4398_v39  ;;  %v4503_v17 = vmul.f32 %v3136_v30, %v4398_v39 }
 0x135   : > { %v3442_v56 = vpack.i.bf16 %v2541_v25, %v2540_v46  ;;  %v3130_v2 = vunpack.i.l.bf16 %v4309_v49  ;;  %v3008_v5 = vrot.slane %v2992_v6, 9  ;;  %v2508_v58 = vrot.slane %v4331_v41, 5 }
 0x136   : > { %v3437_v15 = vpack.i.bf16 %v2539_v22, %v2538_v37  ;;  %v3009_v16 = vrot.slane %v2993_v43, 9  ;;  %v2512_v21 = vrot.slane %v4341_v60, 5  ;;  %v4519_v27 = vmul.f32 %v3131_v57, %v4398_v39  ;;  %v4534_v43 = vpop.permute.xlu0 %3218 }
 0x137   : > { %3443 = vperm.xlu1 %3106, %v3442_v56   ;;  %v4516_v4 = vmul.f32 %v3130_v2, %v4398_v39  ;;  %v3006_v45 = vrot.slane %v2990_v52, 9  ;;  %v2500_v49 = vrot.slane %v4346_v55, 5  ;;  %v2509_v26 = vsel %vm3957_vm5, %v3008_v5, %v2508_v58  ;;  %v4538_v56 = vpop.permute.xlu1 %3233 }
 0x138   : > { %3438 = vperm.xlu0 %3095, %v3437_v15   ;;  %v2513_v41 = vsel %vm3957_vm5, %v3009_v16, %v2512_v21  ;;  %v3007_v30 = vrot.slane %v2991_v50, 9  ;;  %v2504_v60 = vrot.slane %v4359_v9, 5  ;;  %v2544_v18 = vunpack.c.l.bf16 %v2509_v26 }
 0x139   : > { %v2545_v6 = vunpack.c.l.bf16 %v2513_v41  ;;  %v2501_v46 = vsel %vm3957_vm5, %v3006_v45, %v2500_v49  ;;  %v739_v39 = vsub.s32 1, %v4375_v38  ;;  %v3146_v14 = vunpack.i.h.bf16 %v4312_v11 }
 0x13a   : > { %v2505_v55 = vsel %vm3957_vm5, %v3007_v30, %v2504_v60  ;;  %v2542_v25 = vunpack.c.l.bf16 %v2501_v46  ;;  %v3145_v51 = vunpack.i.l.bf16 %v4312_v11  ;;  %v3141_v52 = vunpack.i.h.bf16 %v4334_v44  ;;  %v4551_v46 = vpop.permute.xlu0 %3228 }
 0x13b   : > { %v3452_v37 = vpack.i.bf16 %v2545_v6, %v2544_v18  ;;  %v2543_v22 = vunpack.c.l.bf16 %v2505_v55  ;;  %v740_v9 = vrot.slane %v4382_v32, %v739_v39  ;;  %v3140_v57 = vunpack.i.l.bf16 %v4334_v44  ;;  %v4557_v55 = vpop.permute.xlu1 %3243 }
 0x13c   : > { %v3156_v61 = vunpack.i.h.bf16 %v4336_v53  ;;  %v3155_v2 = vunpack.i.l.bf16 %v4336_v53  ;;  %v3151_v5 = vunpack.i.h.bf16 %v4351_v29  ;;  %v3150_v49 = vunpack.i.l.bf16 %v4351_v29 }
 0x13d   : > { %3453 = vperm.xlu1 %3106, %v3452_v37   ;;  %v3447_v11 = vpack.i.bf16 %v2543_v22, %v2542_v25  ;;  %v743_v50 = vmul.f32 %v3145_v51, %v740_v9  ;;  %v744_v15 = vmul.f32 %v3146_v14, %v740_v9  ;;  %v742_v58 = vmul.f32 %v3141_v52, %v740_v9 }
 0x13e   : > { %v741_v16 = vmul.f32 %v3140_v57, %v740_v9  ;;  %v747_v21 = vmul.f32 %v3155_v2, %v740_v9  ;;  %v748_v45 = vmul.f32 %v3156_v61, %v740_v9  ;;  %v746_v53 = vmul.f32 %v3151_v5, %v740_v9 }
 0x13f   : > { %3448 = vperm.xlu0 %3095, %v3447_v11   ;;  %v759_v26 = vadd.f32 %v743_v50, %v4442_v12  ;;  %v760_v44 = vadd.f32 %v744_v15, %v4439_v42  ;;  %v758_v41 = vadd.f32 %v742_v58, %v4417_v19  ;;  %v745_v6 = vmul.f32 %v3150_v49, %v740_v9  ;;  %v4571_v50 = vpop.permute.xlu0 %3238  ;;  %v4577_v58 = vpop.permute.xlu1 %3253 }
 0x140   : > { %v757_v30 = vadd.f32 %v741_v16, %v4412_v34  ;;  %v763_v60 = vadd.f32 %v747_v21, %v4433_v62  ;;  %v764_v18 = vadd.f32 %v748_v45, %v4436_v10  ;;  %v762_v39 = vadd.f32 %v746_v53, %v4409_v28 }
 0x141   : > { %v3166_v29 = vunpack.i.h.bf16 %v4354_v1  ;;  %v3165_v12 = vunpack.i.l.bf16 %v4354_v1  ;;  %v3161_v42 = vunpack.i.h.bf16 %v4366_v23  ;;  %v761_v19 = vadd.f32 %v745_v6, %v4406_v7 }
 0x142   : > { %v3160_v34 = vunpack.i.l.bf16 %v4366_v23  ;;  %v3176_v62 = vunpack.i.h.bf16 %v4371_v0  ;;  %v3175_v10 = vunpack.i.l.bf16 %v4371_v0  ;;  %v3171_v28 = vunpack.i.h.bf16 %v4395_v20 }
 0x143   : > { %v751_v25 = vmul.f32 %v3165_v12, %v740_v9  ;;  %v752_v14 = vmul.f32 %v3166_v29, %v740_v9  ;;  %v750_v51 = vmul.f32 %v3161_v42, %v740_v9  ;;  %v3170_v52 = vunpack.i.l.bf16 %v4395_v20 }
 0x144   : > { %v749_v37 = vmul.f32 %v3160_v34, %v740_v9  ;;  %v755_v22 = vmul.f32 %v3175_v10, %v740_v9  ;;  %v756_v1 = vmul.f32 %v3176_v62, %v740_v9  ;;  %v754_v61 = vmul.f32 %v3171_v28, %v740_v9  ;;  %v4591_v62 = vpop.permute.xlu0 %3248 }
 0x145   : > { %v767_v57 = vadd.f32 %v751_v25, %v4466_v54  ;;  %v768_v7 = vadd.f32 %v752_v14, %v4469_v59  ;;  %v766_v23 = vadd.f32 %v750_v51, %v4479_v8  ;;  %v753_v11 = vmul.f32 %v3170_v52, %v740_v9  ;;  %v4593_v51 = vpop.permute.xlu1 %3263 }
 0x146   : > { %v765_v2 = vadd.f32 %v749_v37, %v4476_v3  ;;  %v771_v0 = vadd.f32 %v755_v22, %v4500_v63  ;;  %v772_v5 = vadd.f32 %v756_v1, %v4503_v17  ;;  %v770_v15 = vadd.f32 %v754_v61, %v4519_v27 }
 0x147   : > { %v1002_v20 = vsub.s32 2, %v4375_v38  ;;  %v3186_v54 = vunpack.i.h.bf16 %v4388_v31  ;;  %v3185_v59 = vunpack.i.l.bf16 %v4388_v31  ;;  %v769_v8 = vadd.f32 %v753_v11, %v4516_v4 }
 0x148   : > { %v3181_v3 = vunpack.i.h.bf16 %v4421_v36  ;;  %v3180_v63 = vunpack.i.l.bf16 %v4421_v36  ;;  %v3196_v17 = vunpack.i.h.bf16 %v4423_v47  ;;  %v3195_v27 = vunpack.i.l.bf16 %v4423_v47 }
 0x149   : > { %v1003_v9 = vrot.slane %v4382_v32, %v1002_v20  ;;  %v3191_v16 = vunpack.i.h.bf16 %v4447_v13  ;;  %v3190_v21 = vunpack.i.l.bf16 %v4447_v13  ;;  %v3206_v31 = vunpack.i.h.bf16 %v4451_v24 }
 0x14a   : > { %v3205_v45 = vunpack.i.l.bf16 %v4451_v24  ;;  %v3201_v4 = vunpack.i.h.bf16 %v4473_v33  ;;  %v3200_v49 = vunpack.i.l.bf16 %v4473_v33  ;;  %v3216_v11 = vunpack.i.h.bf16 %v4481_v35 }
 0x14b   : > { %v1006_v53 = vmul.f32 %v3185_v59, %v1003_v9  ;;  %v1007_v36 = vmul.f32 %v3186_v54, %v1003_v9  ;;  %v1004_v6 = vmul.f32 %v3180_v63, %v1003_v9  ;;  %v1005_v29 = vmul.f32 %v3181_v3, %v1003_v9  ;;  %v4599_v3 = vpop.permute.xlu0 %3258 }
 0x14c   : > { %v1010_v12 = vmul.f32 %v3195_v27, %v1003_v9  ;;  %v1011_v42 = vmul.f32 %v3196_v17, %v1003_v9  ;;  %v1008_v34 = vmul.f32 %v3190_v21, %v1003_v9  ;;  %v1009_v47 = vmul.f32 %v3191_v16, %v1003_v9  ;;  %v4605_v16 = vpop.permute.xlu1 %3273 }
 0x14d   : > { %v1022_v10 = vadd.f32 %v1006_v53, %v759_v26  ;;  %v1023_v13 = vadd.f32 %v1007_v36, %v760_v44  ;;  %v1020_v25 = vadd.f32 %v1004_v6, %v757_v30  ;;  %v1021_v14 = vadd.f32 %v1005_v29, %v758_v41 }
 0x14e   : > { %v1026_v24 = vadd.f32 %v1010_v12, %v763_v60  ;;  %v1027_v28 = vadd.f32 %v1011_v42, %v764_v18  ;;  %v1024_v37 = vadd.f32 %v1008_v34, %v761_v19  ;;  %v1025_v33 = vadd.f32 %v1009_v47, %v762_v39 }
 0x14f   : > { %v1014_v22 = vmul.f32 %v3205_v45, %v1003_v9  ;;  %v1015_v1 = vmul.f32 %v3206_v31, %v1003_v9  ;;  %v1012_v52 = vmul.f32 %v3200_v49, %v1003_v9  ;;  %v1013_v61 = vmul.f32 %v3201_v4, %v1003_v9  ;;  %v4615_v29 = vpop.permute.xlu0 %3268 }
 0x150   : > { %v3215_v20 = vunpack.i.l.bf16 %v4481_v35  ;;  %v3211_v54 = vunpack.i.h.bf16 %v4506_v48  ;;  %v3210_v26 = vunpack.i.l.bf16 %v4506_v48  ;;  %v1019_v18 = vmul.f32 %v3216_v11, %v1003_v9 }
 0x151   : > { %v1030_v44 = vadd.f32 %v1014_v22, %v767_v57  ;;  %v1031_v41 = vadd.f32 %v1015_v1, %v768_v7  ;;  %v1028_v30 = vadd.f32 %v1012_v52, %v765_v2  ;;  %v1029_v59 = vadd.f32 %v1013_v61, %v766_v23 }
 0x152   : > { %v1018_v60 = vmul.f32 %v3215_v20, %v1003_v9  ;;  %v1016_v19 = vmul.f32 %v3210_v26, %v1003_v9  ;;  %v1017_v39 = vmul.f32 %v3211_v54, %v1003_v9  ;;  %v1151_v63 = vsub.s32 3, %v4375_v38 }
 0x153   : > { %v3226_v17 = vunpack.i.h.bf16 %v4511_v40  ;;  %v3225_v35 = vunpack.i.l.bf16 %v4511_v40  ;;  %v3221_v27 = vunpack.i.h.bf16 %v4534_v43  ;;  %v1035_v57 = vadd.f32 %v1019_v18, %v772_v5 }
 0x154   : > { %v1034_v48 = vadd.f32 %v1018_v60, %v771_v0  ;;  %v1032_v7 = vadd.f32 %v1016_v19, %v769_v8  ;;  %v1033_v23 = vadd.f32 %v1017_v39, %v770_v15  ;;  %v1152_v2 = vrot.slane %v4382_v32, %v1151_v63  ;;  %v4625_v34 = vpop.permute.xlu1 %3283 }
 0x155   : > { %v3220_v9 = vunpack.i.l.bf16 %v4534_v43  ;;  %v3236_v21 = vunpack.i.h.bf16 %v4538_v56  ;;  %v3235_v31 = vunpack.i.l.bf16 %v4538_v56  ;;  %v3231_v45 = vunpack.i.h.bf16 %v4551_v46 }
 0x156   : > { %v3230_v40 = vunpack.i.l.bf16 %v4551_v46  ;;  %v3246_v4 = vunpack.i.h.bf16 %v4557_v55  ;;  %v3245_v49 = vunpack.i.l.bf16 %v4557_v55  ;;  %v1155_v0 = vmul.f32 %v3225_v35, %v1152_v2 }
 0x157   : > { %v1156_v5 = vmul.f32 %v3226_v17, %v1152_v2  ;;  %v1153_v8 = vmul.f32 %v3220_v9, %v1152_v2  ;;  %v1154_v15 = vmul.f32 %v3221_v27, %v1152_v2  ;;  %v1159_v53 = vmul.f32 %v3235_v31, %v1152_v2 }
 0x158   : > { %v1160_v36 = vmul.f32 %v3236_v21, %v1152_v2  ;;  %v1157_v6 = vmul.f32 %v3230_v40, %v1152_v2  ;;  %v1158_v43 = vmul.f32 %v3231_v45, %v1152_v2  ;;  %v4617_v12 = vadd.f32 %v1155_v0, %v1022_v10 }
 0x159   : > { %v4619_v56 = vadd.f32 %v1156_v5, %v1023_v13  ;;  %v4621_v42 = vadd.f32 %v1153_v8, %v1020_v25  ;;  %v4623_v46 = vadd.f32 %v1154_v15, %v1021_v14  ;;  %v4627_v55 = vadd.f32 %v1159_v53, %v1026_v24 }
 0x15a   : > { %v4629_v47 = vadd.f32 %v1160_v36, %v1027_v28  ;;  %v4631_v22 = vadd.f32 %v1157_v6, %v1024_v37  ;;  %v4633_v1 = vadd.f32 %v1158_v43, %v1025_v33  ;;  %v1163_v52 = vmul.f32 %v3245_v49, %v1152_v2  ;;  %v4645_v19 = vpop.permute.xlu0 %3278 }
 0x15b   : > { %v1164_v61 = vmul.f32 %v3246_v4, %v1152_v2  ;;  %v3241_v10 = vunpack.i.h.bf16 %v4571_v50  ;;  %v3240_v13 = vunpack.i.l.bf16 %v4571_v50  ;;  %v3256_v25 = vunpack.i.h.bf16 %v4577_v58 }
 0x15c   : > { %v3255_v14 = vunpack.i.l.bf16 %v4577_v58  ;;  %v3251_v11 = vunpack.i.h.bf16 %v4591_v62  ;;  %v3250_v24 = vunpack.i.l.bf16 %v4591_v62  ;;  %v4641_v28 = vadd.f32 %v1163_v52, %v1030_v44 }
 0x15d   : > { %v4643_v37 = vadd.f32 %v1164_v61, %v1031_v41  ;;  %v1161_v33 = vmul.f32 %v3240_v13, %v1152_v2  ;;  %v1162_v20 = vmul.f32 %v3241_v10, %v1152_v2  ;;  %v1168_v26 = vmul.f32 %v3256_v25, %v1152_v2 }
 0x15e   : > { %v1167_v54 = vmul.f32 %v3255_v14, %v1152_v2  ;;  %v1165_v60 = vmul.f32 %v3250_v24, %v1152_v2  ;;  %v1166_v18 = vmul.f32 %v3251_v11, %v1152_v2  ;;  %v3294_v58 = vpop.permute.xlu1 %3293  ;;  %v1555_v41 = vsub.s32 4, %v4375_v38 }
 0x15f   : > { %v4647_v50 = vadd.f32 %v1161_v33, %v1028_v30  ;;  %v4649_v39 = vadd.f32 %v1162_v20, %v1029_v59  ;;  %v1184_v17 = vadd.f32 %v1168_v26, %v1035_v57  ;;  %v3296_v2 = vunpack.i.h.bf16 %v3294_v58 }
 0x160   : > { %v1183_v63 = vadd.f32 %v1167_v54, %v1034_v48  ;;  %v1181_v62 = vadd.f32 %v1165_v60, %v1032_v7  ;;  %v1182_v44 = vadd.f32 %v1166_v18, %v1033_v23  ;;  %v4655_v9 = vrot.slane %v4382_v32, %v1555_v41 }
 0x161   : > { %v3295_v21 = vunpack.i.l.bf16 %v3294_v58  ;;  %v3265_v61 = vunpack.i.l.bf16 %v4593_v51  ;;  %v3266_v10 = vunpack.i.h.bf16 %v4593_v51  ;;  %v3260_v13 = vunpack.i.l.bf16 %v4599_v3 }
 0x162   : > { %v4652_v35 = vpop.permute.xlu1 %3303  ;;  %v1572_v57 = vmul.f32 %v3296_v2, %v4655_v9  ;;  %v3261_v25 = vunpack.i.h.bf16 %v4599_v3  ;;  %v3276_v14 = vunpack.i.h.bf16 %v4605_v16  ;;  %v3275_v11 = vunpack.i.l.bf16 %v4605_v16 }
 0x163   : > { %v1571_v48 = vmul.f32 %v3295_v21, %v4655_v9  ;;  %v1559_v24 = vmul.f32 %v3265_v61, %v4655_v9  ;;  %v3271_v33 = vunpack.i.h.bf16 %v4615_v29  ;;  %v3270_v20 = vunpack.i.l.bf16 %v4615_v29 }
 0x164   : > { %v3289_v27 = vpop.permute.xlu0 %3288  ;;  %v4667_v4 = vadd.f32 %v1572_v57, %v1184_v17  ;;  %v1560_v26 = vmul.f32 %v3266_v10, %v4655_v9  ;;  %v1557_v51 = vmul.f32 %v3260_v13, %v4655_v9  ;;  %v3286_v60 = vunpack.i.h.bf16 %v4625_v34 }
 0x165   : > { %v3291_v31 = vunpack.i.h.bf16 %v3289_v27  ;;  %v3290_v30 = vunpack.i.l.bf16 %v3289_v27  ;;  %v4665_v40 = vadd.f32 %v1571_v48, %v1183_v63  ;;  %v3285_v3 = vunpack.i.l.bf16 %v4625_v34 }
 0x166   : > { %v1558_v16 = vmul.f32 %v3261_v25, %v4655_v9  ;;  %v3280_v58 = vunpack.i.l.bf16 %v4645_v19  ;;  %v1815_v63 = vsub.s32 5, %v4375_v38  ;;  %v1563_v29 = vmul.f32 %v3275_v11, %v4655_v9 }
 0x167   : > { %v1569_v7 = vmul.f32 %v3290_v30, %v4655_v9  ;;  %v1570_v23 = vmul.f32 %v3291_v31, %v4655_v9  ;;  %v1564_v17 = vmul.f32 %v3276_v14, %v4655_v9  ;;  %v1562_v41 = vmul.f32 %v3271_v33, %v4655_v9 }
 0x168   : > { %v4657_v45 = vpop.permute.xlu0 %3298  ;;  %v4659_v59 = vpop.permute.xlu1 %3313  ;;  %v3281_v34 = vunpack.i.h.bf16 %v4645_v19  ;;  %v1576_v27 = vadd.f32 %v1560_v26, %v4619_v56  ;;  %v1573_v2 = vadd.f32 %v1557_v51, %v4621_v42  ;;  %v1567_v21 = vmul.f32 %v3285_v3, %v4655_v9 }
 0x169   : > { %v4669_v49 = vadd.f32 %v1569_v7, %v1181_v62  ;;  %v4671_v0 = vadd.f32 %v1570_v23, %v1182_v44  ;;  %v1575_v62 = vadd.f32 %v1559_v24, %v4617_v12  ;;  %v1561_v44 = vmul.f32 %v3270_v20, %v4655_v9 }
 0x16a   : > { %v1568_v31 = vmul.f32 %v3286_v60, %v4655_v9  ;;  %v1574_v30 = vadd.f32 %v1558_v16, %v4623_v46  ;;  %v1565_v48 = vmul.f32 %v3280_v58, %v4655_v9  ;;  %v3305_v12 = vunpack.i.l.bf16 %v4652_v35 }
 0x16b   : > { %v1816_v57 = vrot.slane %v4382_v32, %v1815_v63  ;;  %v3306_v19 = vunpack.i.h.bf16 %v4652_v35  ;;  %v3301_v56 = vunpack.i.h.bf16 %v4657_v45  ;;  %v3300_v42 = vunpack.i.l.bf16 %v4657_v45 }
 0x16c   : > { %v4673_v5 = vpop.permute.xlu0 %3308  ;;  %v4675_v8 = vpop.permute.xlu1 %3323  ;;  %v3315_v23 = vunpack.i.l.bf16 %v4659_v59  ;;  %v1579_v46 = vadd.f32 %v1563_v29, %v4627_v55  ;;  %v1580_v10 = vadd.f32 %v1564_v17, %v4629_v47  ;;  %v1577_v13 = vadd.f32 %v1561_v44, %v4631_v22 }
 0x16d   : > { %v1566_v25 = vmul.f32 %v3281_v34, %v4655_v9  ;;  %v1578_v14 = vadd.f32 %v1562_v41, %v4633_v1  ;;  %v1583_v35 = vadd.f32 %v1567_v21, %v4641_v28  ;;  %v1584_v11 = vadd.f32 %v1568_v31, %v4643_v37 }
 0x16e   : > { %v3316_v45 = vunpack.i.h.bf16 %v4659_v59  ;;  %v1581_v24 = vadd.f32 %v1565_v48, %v4647_v50  ;;  %v1819_v33 = vmul.f32 %v3305_v12, %v1816_v57  ;;  %v3311_v20 = vunpack.i.h.bf16 %v4673_v5 }
 0x16f   : > { %v3310_v55 = vunpack.i.l.bf16 %v4673_v5  ;;  %v1820_v47 = vmul.f32 %v3306_v19, %v1816_v57  ;;  %v1817_v26 = vmul.f32 %v3300_v42, %v1816_v57  ;;  %v1818_v22 = vmul.f32 %v3301_v56, %v1816_v57 }
 0x170   : > { %v4677_v15 = vpop.permute.xlu0 %3318  ;;  %v1823_v51 = vmul.f32 %v3315_v23, %v1816_v57  ;;  %v1582_v9 = vadd.f32 %v1566_v25, %v4649_v39  ;;  %v3326_v1 = vunpack.i.h.bf16 %v4675_v8  ;;  %v3325_v28 = vunpack.i.l.bf16 %v4675_v8 }
 0x171   : > { %v4679_v53 = vpop.permute.xlu1 %3333  ;;  %v1964_v37 = vsub.s32 6, %v4375_v38  ;;  %v1824_v50 = vmul.f32 %v3316_v45, %v1816_v57  ;;  %v3321_v60 = vunpack.i.h.bf16 %v4677_v15  ;;  %v3320_v3 = vunpack.i.l.bf16 %v4677_v15 }
 0x172   : > { %v2368_v5 = vsub.s32 7, %v4375_v38  ;;  %v1835_v58 = vadd.f32 %v1819_v33, %v1575_v62  ;;  %v1821_v63 = vmul.f32 %v3310_v55, %v1816_v57  ;;  %v1822_v39 = vmul.f32 %v3311_v20, %v1816_v57 }
 0x173   : > { %v3335_v29 = vunpack.i.l.bf16 %v4679_v53  ;;  %v1836_v17 = vadd.f32 %v1820_v47, %v1576_v27  ;;  %v1833_v8 = vadd.f32 %v1817_v26, %v1573_v2  ;;  %v1834_v44 = vadd.f32 %v1818_v22, %v1574_v30 }
 0x174   : > { %v4681_v36 = vpop.permute.xlu0 %3328  ;;  %v1839_v41 = vadd.f32 %v1823_v51, %v1579_v46  ;;  %v1827_v34 = vmul.f32 %v3325_v28, %v1816_v57  ;;  %v3336_v21 = vunpack.i.h.bf16 %v4679_v53  ;;  %v1840_v48 = vadd.f32 %v1824_v50, %v1580_v10 }
 0x175   : > { %v4683_v6 = vpop.permute.xlu1 %3343  ;;  %v3331_v31 = vunpack.i.h.bf16 %v4681_v36  ;;  %v3330_v15 = vunpack.i.l.bf16 %v4681_v36  ;;  %v1828_v38 = vmul.f32 %v3326_v1, %v1816_v57  ;;  %v1825_v12 = vmul.f32 %v3320_v3, %v1816_v57 }
 0x176   : > { %v1826_v19 = vmul.f32 %v3321_v60, %v1816_v57  ;;  %v1831_v62 = vmul.f32 %v3335_v29, %v1816_v57  ;;  %v3346_v56 = vunpack.i.h.bf16 %v4683_v6  ;;  %v3345_v42 = vunpack.i.l.bf16 %v4683_v6 }
 0x177   : > { %v4760_v27 = vrot.slane %v4382_v32, %v1964_v37  ;;  %v1837_v30 = vadd.f32 %v1821_v63, %v1577_v13  ;;  %v1838_v53 = vadd.f32 %v1822_v39, %v1578_v14  ;;  %v1843_v10 = vadd.f32 %v1827_v34, %v1583_v35 }
 0x178   : > { %v4685_v43 = vpop.permute.xlu0 %3338  ;;  %v1832_v25 = vmul.f32 %v3336_v21, %v1816_v57  ;;  %v1829_v45 = vmul.f32 %v3330_v15, %v1816_v57  ;;  %v1830_v33 = vmul.f32 %v3331_v31, %v1816_v57  ;;  %v1844_v20 = vadd.f32 %v1828_v38, %v1584_v11 }
 0x179   : > { %v4687_v52 = vpop.permute.xlu1 %3353  ;;  %v3341_v23 = vunpack.i.h.bf16 %v4685_v43  ;;  %v3340_v36 = vunpack.i.l.bf16 %v4685_v43  ;;  %v1841_v55 = vadd.f32 %v1825_v12, %v1581_v24  ;;  %v1842_v26 = vadd.f32 %v1826_v19, %v1582_v9 }
 0x17a   : > { %v3356_v6 = vunpack.i.h.bf16 %v4687_v52  ;;  %v3355_v47 = vunpack.i.l.bf16 %v4687_v52  ;;  %v1847_v13 = vadd.f32 %v1831_v62, %v4665_v40  ;;  %v1968_v14 = vmul.f32 %v3345_v42, %v4760_v27 }
 0x17b   : > { %v1969_v22 = vmul.f32 %v3346_v56, %v4760_v27  ;;  %v1966_v43 = vmul.f32 %v3340_v36, %v4760_v27  ;;  %v1967_v35 = vmul.f32 %v3341_v23, %v4760_v27  ;;  %v1848_v11 = vadd.f32 %v1832_v25, %v4667_v4 }
 0x17c   : > { %v4698_v54 = vpop.permute.xlu0 %3348  ;;  %v1845_v24 = vadd.f32 %v1829_v45, %v4669_v49  ;;  %v1846_v52 = vadd.f32 %v1830_v33, %v4671_v0  ;;  %v1972_v1 = vmul.f32 %v3355_v47, %v4760_v27  ;;  %v1973_v28 = vmul.f32 %v3356_v6, %v4760_v27 }
 0x17d   : > { %v4704_v18 = vpop.permute.xlu1 %3363  ;;  %v3351_v51 = vunpack.i.h.bf16 %v4698_v54  ;;  %v3350_v57 = vunpack.i.l.bf16 %v4698_v54  ;;  %v4787_v50 = vrot.slane %v4382_v32, %v2368_v5  ;;  %v1984_v4 = vadd.f32 %v1968_v14, %v1835_v58 }
 0x17e   : > { %v3365_v40 = vunpack.i.l.bf16 %v4704_v18  ;;  %v3366_v37 = vunpack.i.h.bf16 %v4704_v18  ;;  %v1985_v60 = vadd.f32 %v1969_v22, %v1836_v17  ;;  %v1982_v3 = vadd.f32 %v1966_v43, %v1833_v8 }
 0x17f   : > { %v1983_v63 = vadd.f32 %v1967_v35, %v1834_v44  ;;  %v1970_v39 = vmul.f32 %v3350_v57, %v4760_v27  ;;  %v1971_v29 = vmul.f32 %v3351_v51, %v4760_v27  ;;  %v1988_v44 = vadd.f32 %v1972_v1, %v1839_v41  ;;  %v4839_v57 = vld [vmem:[#allocation5 + $0x8] ss:$0 sm:$0xff] }
 0x180   : > { %v4723_v7 = vpop.permute.xlu0 %3358  ;;  %v1976_v34 = vmul.f32 %v3365_v40, %v4760_v27  ;;  %v1977_v58 = vmul.f32 %v3366_v37, %v4760_v27  ;;  %v1989_v21 = vadd.f32 %v1973_v28, %v1840_v48  ;;  %vm2709_vm6 = vcmask 64512  }
 0x181   : > { %v4729_v61 = vpop.permute.xlu1 %3373  ;;  %v3361_v49 = vunpack.i.h.bf16 %v4723_v7  ;;  %v3360_v0 = vunpack.i.l.bf16 %v4723_v7  ;;  %v1986_v12 = vadd.f32 %v1970_v39, %v1837_v30 }
 0x182   : > { %v3376_v18 = vunpack.i.h.bf16 %v4729_v61  ;;  %v3375_v32 = vunpack.i.l.bf16 %v4729_v61  ;;  %v1987_v61 = vadd.f32 %v1971_v29, %v1838_v53  ;;  %v1993_v48 = vadd.f32 %v1977_v58, %v1844_v20 }
 0x183   : > { %v1974_v31 = vmul.f32 %v3360_v0, %v4760_v27  ;;  %v1975_v15 = vmul.f32 %v3361_v49, %v4760_v27 }
 0x184   : > { %v4746_v59 = vpop.permute.xlu0 %3368  ;;  %v1980_v42 = vmul.f32 %v3375_v32, %v4760_v27 }
 0x185   : > { %v4751_v16 = vpop.permute.xlu1 %3383  ;;  %v3370_v5 = vunpack.i.l.bf16 %v4746_v59  ;;  %v3371_v17 = vunpack.i.h.bf16 %v4746_v59  ;;  %v1992_v59 = vadd.f32 %v1976_v34, %v1843_v10  ;;  %v4817_v53 = vadd.f32 %v1974_v31, %v1841_v55 }
 0x186   : > { %v3386_v7 = vunpack.i.h.bf16 %v4751_v16  ;;  %v3385_v8 = vunpack.i.l.bf16 %v4751_v16  ;;  %v1981_v16 = vmul.f32 %v3376_v18, %v4760_v27  ;;  %v4819_v25 = vadd.f32 %v1975_v15, %v1842_v26 }
 0x187   : > { %v1978_v41 = vmul.f32 %v3370_v5, %v4760_v27  ;;  %v1979_v23 = vmul.f32 %v3371_v17, %v4760_v27  ;;  %v4827_v6 = vadd.f32 %v1980_v42, %v1847_v13 }
 0x188   : > { %v4762_v2 = vpop.permute.xlu0 %3378  ;;  %v2372_v36 = vmul.f32 %v3385_v8, %v4787_v50  ;;  %v2373_v30 = vmul.f32 %v3386_v7, %v4787_v50  ;;  %v4829_v47 = vadd.f32 %v1981_v16, %v1848_v11 }
 0x189   : > { %v3381_v19 = vunpack.i.h.bf16 %v4762_v2  ;;  %v3380_v62 = vunpack.i.l.bf16 %v4762_v2  ;;  %v4831_v55 = vadd.f32 %v1978_v41, %v1845_v24  ;;  %v4836_v22 = vadd.f32 %v1979_v23, %v1846_v52 }
 0x18a   : > { %v2389_v43 = vadd.f32 %v2373_v30, %v1985_v60 }
 0x18b   : > { %v2370_v45 = vmul.f32 %v3380_v62, %v4787_v50  ;;  %v2371_v33 = vmul.f32 %v3381_v19, %v4787_v50 }
 0x18c   : > { %v4766_v46 = vpop.permute.xlu1 %3393 }
 0x18d   : > { %v3396_v2 = vunpack.i.h.bf16 %v4766_v46  ;;  %v3395_v10 = vunpack.i.l.bf16 %v4766_v46  ;;  %v2388_v46 = vadd.f32 %v2372_v36, %v1984_v4  ;;  %v2387_v1 = vadd.f32 %v2371_v33, %v1983_v63  ;;  %v4851_v63 = vld [vmem:[#allocation7] ss:$0 sm:$0xff] }
 0x18f   : > { %v2376_v13 = vmul.f32 %v3395_v10, %v4787_v50  ;;  %v2377_v11 = vmul.f32 %v3396_v2, %v4787_v50 }
 0x191   : > { %v4781_v9 = vpop.permute.xlu0 %3388  ;;  %v2392_v34 = vadd.f32 %v2376_v13, %v1988_v44  ;;  %v2393_v18 = vadd.f32 %v2377_v11, %v1989_v21 }
 0x192   : > { %v3391_v20 = vunpack.i.h.bf16 %v4781_v9  ;;  %v3390_v27 = vunpack.i.l.bf16 %v4781_v9  ;;  %v2386_v9 = vadd.f32 %v2370_v45, %v1982_v3 }
 0x194   : > { %v2374_v28 = vmul.f32 %v3390_v27, %v4787_v50  ;;  %v2375_v52 = vmul.f32 %v3391_v20, %v4787_v50 }
 0x196   : > { %v4789_v54 = vpop.permute.xlu1 %3403  ;;  %v2390_v58 = vadd.f32 %v2374_v28, %v1986_v12  ;;  %v2391_v17 = vadd.f32 %v2375_v52, %v1987_v61 }
 0x197   : > { %v3405_v26 = vunpack.i.l.bf16 %v4789_v54  ;;  %v3406_v35 = vunpack.i.h.bf16 %v4789_v54 }
 0x199   : > { %v2380_v37 = vmul.f32 %v3405_v26, %v4787_v50  ;;  %v2381_v0 = vmul.f32 %v3406_v35, %v4787_v50 }
 0x19b   : > { %v2396_v31 = vadd.f32 %v2380_v37, %v1992_v59  ;;  %v2397_v62 = vadd.f32 %v2381_v0, %v1993_v48 }
 0x19c   : > { %v4805_v38 = vpop.permute.xlu0 %3398 }
 0x19d   : > { %v3400_v54 = vunpack.i.l.bf16 %v4805_v38  ;;  %v3401_v3 = vunpack.i.h.bf16 %v4805_v38 }
 0x19f   : > { %v2378_v15 = vmul.f32 %v3400_v54, %v4787_v50  ;;  %v2379_v44 = vmul.f32 %v3401_v3, %v4787_v50 }
 0x1a0   : > { %v4809_v56 = vpop.permute.xlu1 %3413 }
 0x1a1   : > { %v3416_v12 = vunpack.i.h.bf16 %v4809_v56  ;;  %v3415_v61 = vunpack.i.l.bf16 %v4809_v56  ;;  %v2394_v48 = vadd.f32 %v2378_v15, %v4817_v53 }
 0x1a3   : > { %v2384_v35 = vmul.f32 %v3415_v61, %v4787_v50  ;;  %v2385_v13 = vmul.f32 %v3416_v12, %v4787_v50 }
 0x1a6   : > { %v4834_v14 = vpop.permute.xlu0 %3408 }
 0x1a7   : > { %v3424_v51 = vpop.permute.xlu1 %3423 }
 0x1a8   : > { %v3426_v40 = vunpack.i.h.bf16 %v3424_v51  ;;  %v3425_v24 = vunpack.i.l.bf16 %v3424_v51 }
 0x1aa   : > { %v2632_v4 = vmul.f32 %v3425_v24, %v4839_v57  ;;  %v2633_v60 = vmul.f32 %v3426_v40, %v4839_v57  ;;  %v3419_v49 = vpop.permute.xlu0 %3418 }
 0x1ab   : > { %v3421_v39 = vunpack.i.h.bf16 %v3419_v49  ;;  %v3420_v29 = vunpack.i.l.bf16 %v3419_v49 }
 0x1ac   : > { %v2648_v32 = vadd.f32 %v2632_v4, %v2388_v46  ;;  %v2649_v5 = vadd.f32 %v2633_v60, %v2389_v43  ;;  %v2395_v43 = vadd.f32 %v2379_v44, %v4819_v25  ;;  %v3410_v25 = vunpack.i.l.bf16 %v4834_v14 }
 0x1ad   : > { %v2630_v7 = vmul.f32 %v3420_v29, %v4839_v57  ;;  %v2631_v8 = vmul.f32 %v3421_v39, %v4839_v57 }
 0x1ae   : > { %v2671_v38 = vadd.f32 %v4851_v63, %v2648_v32  ;;  %v2672_v19 = vadd.f32 %v4851_v63, %v2649_v5  ;;  %v2382_v44 = vmul.f32 %v3410_v25, %v4787_v50 }
 0x1af   : > { %v2646_v21 = vadd.f32 %v2630_v7, %v2386_v9  ;;  %v2647_v42 = vadd.f32 %v2631_v8, %v2387_v1  ;;  %v3411_v9 = vunpack.i.h.bf16 %v4834_v14  ;;  %v2400_v8 = vadd.f32 %v2384_v35, %v4827_v6 }
 0x1b0   : > { %v2687_v16 = vmax.f32 %v2671_v38, 0.0  ;;  %v2688_v41 = vmax.f32 %v2672_v19, 0.0  ;;  %v3434_v23 = vpop.permute.xlu1 %3433  ;;  %v2401_v6 = vadd.f32 %v2385_v13, %v4829_v47 }
 0x1b1   : > { %v2669_v59 = vadd.f32 %v4851_v63, %v2646_v21  ;;  %v2670_v36 = vadd.f32 %v4851_v63, %v2647_v42  ;;  %v3436_v30 = vunpack.i.h.bf16 %v3434_v23  ;;  %v3435_v2 = vunpack.i.l.bf16 %v3434_v23  ;;  %v3429_v10 = vpop.permute.xlu0 %3428 }
 0x1b2   : > { %v2702_v45 = vmax.f32 %v2687_v16, %v2688_v41  ;;  %v3431_v33 = vunpack.i.h.bf16 %v3429_v10  ;;  %v3430_v20 = vunpack.i.l.bf16 %v3429_v10 }
 0x1b3   : > { %v2685_v27 = vmax.f32 %v2669_v59, 0.0  ;;  %v2686_v26 = vmax.f32 %v2670_v36, 0.0  ;;  %v2636_v46 = vmul.f32 %v3435_v2, %v4839_v57  ;;  %v2637_v56 = vmul.f32 %v3436_v30, %v4839_v57 }
 0x1b4   : > { %2711 = vst.msk [vmem:[%s4869_s20 + $0x8] sm:$0xff] %vm2709_vm6, %v2702_v45  ;;  %v2634_v53 = vmul.f32 %v3430_v20, %v4839_v57  ;;  %v2635_v51 = vmul.f32 %v3431_v33, %v4839_v57  ;;  %v2383_v36 = vmul.f32 %v3411_v9, %v4787_v50  ;;  %v2398_v50 = vadd.f32 %v2382_v44, %v4831_v55 }
 0x1b5   : > { %v2701_v11 = vmax.f32 %v2685_v27, %v2686_v26  ;;  %v2652_v40 = vadd.f32 %v2636_v46, %v2392_v34  ;;  %v2653_v24 = vadd.f32 %v2637_v56, %v2393_v18 }
 0x1b6   : > { %v2650_v1 = vadd.f32 %v2634_v53, %v2390_v58  ;;  %v2651_v28 = vadd.f32 %v2635_v51, %v2391_v17  ;;  %v3444_v52 = vpop.permute.xlu1 %3443 }
 0x1b7   : > { %2710 = vst.msk [vmem:[%s4869_s20] sm:$0xff] %vm2709_vm6, %v2701_v11  ;;  %v2675_v37 = vadd.f32 %v4851_v63, %v2652_v40  ;;  %v2676_v54 = vadd.f32 %v4851_v63, %v2653_v24  ;;  %v3446_v4 = vunpack.i.h.bf16 %v3444_v52  ;;  %v3445_v60 = vunpack.i.l.bf16 %v3444_v52  ;;  %v3439_v49 = vpop.permute.xlu0 %3438 }
 0x1b8   : > { %v2673_v0 = vadd.f32 %v4851_v63, %v2650_v1  ;;  %v2674_v3 = vadd.f32 %v4851_v63, %v2651_v28  ;;  %v3441_v39 = vunpack.i.h.bf16 %v3439_v49  ;;  %v3440_v29 = vunpack.i.l.bf16 %v3439_v49 }
 0x1b9   : > { %v2691_v34 = vmax.f32 %v2675_v37, 0.0  ;;  %v2692_v14 = vmax.f32 %v2676_v54, 0.0  ;;  %v2640_v18 = vmul.f32 %v3445_v60, %v4839_v57  ;;  %v2641_v32 = vmul.f32 %v3446_v4, %v4839_v57 }
 0x1ba   : > { %v2689_v5 = vmax.f32 %v2673_v0, 0.0  ;;  %v2690_v58 = vmax.f32 %v2674_v3, 0.0  ;;  %v2638_v17 = vmul.f32 %v3440_v29, %v4839_v57  ;;  %v2639_v7 = vmul.f32 %v3441_v39, %v4839_v57 }
 0x1bb   : > { %v2704_v15 = vmax.f32 %v2691_v34, %v2692_v14  ;;  %v2656_v38 = vadd.f32 %v2640_v18, %v2396_v31  ;;  %v2657_v19 = vadd.f32 %v2641_v32, %v2397_v62 }
 0x1bc   : > { %v2703_v21 = vmax.f32 %v2689_v5, %v2690_v58  ;;  %v2654_v42 = vadd.f32 %v2638_v17, %v2394_v48  ;;  %v2655_v12 = vadd.f32 %v2639_v7, %v2395_v43  ;;  %v3454_v61 = vpop.permute.xlu1 %3453  ;;  %v2399_v43 = vadd.f32 %v2383_v36, %v4836_v22 }
 0x1bd   : > { %2713 = vst.msk [vmem:[%s4869_s20 + $0x18] sm:$0xff] %vm2709_vm6, %v2704_v15  ;;  %v2679_v16 = vadd.f32 %v4851_v63, %v2656_v38  ;;  %v2680_v41 = vadd.f32 %v4851_v63, %v2657_v19  ;;  %v3456_v23 = vunpack.i.h.bf16 %v3454_v61  ;;  %v3455_v59 = vunpack.i.l.bf16 %v3454_v61 }
 0x1be   : > { %2712 = vst.msk [vmem:[%s4869_s20 + $0x10] sm:$0xff] %vm2709_vm6, %v2703_v21  ;;  %v2677_v31 = vadd.f32 %v4851_v63, %v2654_v42  ;;  %v2678_v62 = vadd.f32 %v4851_v63, %v2655_v12  ;;  %v3449_v30 = vpop.permute.xlu0 %3448 }
 0x1bf   : > { %v2695_v2 = vmax.f32 %v2679_v16, 0.0  ;;  %v2696_v10 = vmax.f32 %v2680_v41, 0.0  ;;  %v2644_v48 = vmul.f32 %v3455_v59, %v4839_v57  ;;  %v2645_v45 = vmul.f32 %v3456_v23, %v4839_v57 }
 0x1c0   : > { %v2693_v33 = vmax.f32 %v2677_v31, 0.0  ;;  %v2694_v20 = vmax.f32 %v2678_v62, 0.0  ;;  %v3451_v47 = vunpack.i.h.bf16 %v3449_v30  ;;  %v3450_v27 = vunpack.i.l.bf16 %v3449_v30 }
 0x1c1   : > { %v2706_v26 = vmax.f32 %v2695_v2, %v2696_v10  ;;  %v2660_v46 = vadd.f32 %v2644_v48, %v2400_v8  ;;  %v2661_v56 = vadd.f32 %v2645_v45, %v2401_v6 }
 0x1c2   : > { %v2705_v35 = vmax.f32 %v2693_v33, %v2694_v20  ;;  %v2642_v53 = vmul.f32 %v3450_v27, %v4839_v57  ;;  %v2643_v51 = vmul.f32 %v3451_v47, %v4839_v57 }
 0x1c3   : > { %2715 = vst.msk [vmem:[%s4869_s20 + $0x28] sm:$0xff] %vm2709_vm6, %v2706_v26  ;;  %v2683_v13 = vadd.f32 %v4851_v63, %v2660_v46  ;;  %v2684_v11 = vadd.f32 %v4851_v63, %v2661_v56 }
 0x1c4   : > { %2714 = vst.msk [vmem:[%s4869_s20 + $0x20] sm:$0xff] %vm2709_vm6, %v2705_v35  ;;  %v2658_v55 = vadd.f32 %v2642_v53, %v2398_v50  ;;  %v2659_v40 = vadd.f32 %v2643_v51, %v2399_v43 }
 0x1c5   : > { %v2699_v24 = vmax.f32 %v2683_v13, 0.0  ;;  %v2700_v22 = vmax.f32 %v2684_v11, 0.0 }
 0x1c6   : > { %v2681_v9 = vadd.f32 %v4851_v63, %v2658_v55  ;;  %v2682_v57 = vadd.f32 %v4851_v63, %v2659_v40 }
 0x1c7   : > { %v2708_v25 = vmax.f32 %v2699_v24, %v2700_v22 }
 0x1c8   : > { %v2697_v1 = vmax.f32 %v2681_v9, 0.0  ;;  %v2698_v28 = vmax.f32 %v2682_v57, 0.0 }
 0x1c9   : > { %2717 = vst.msk [vmem:[%s4869_s20 + $0x38] sm:$0xff] %vm2709_vm6, %v2708_v25 }
 0x1ca   : > { %v2707_v52 = vmax.f32 %v2697_v1, %v2698_v28 }
 0x1cc   : > { %2716 = vst.msk [vmem:[%s4869_s20 + $0x30] sm:$0xff] %vm2709_vm6, %v2707_v52 }
 0x1cd   : > { %3556 = shalt.err (!%p3553_p2)
}
 0x1ce   : > { %s3557_s17 = scalar_lea.hbm %s4921_s23, 1024  ;;  %s3561_s29 = scalar_lea.hbm %s4972_s3, 2048 }
 0x1cf   : > { %p3558_p13 = scmp.ne.s32.totalorder %s4921_s23, %s3557_s17  ;;  %p3562_p4 = scmp.lt.u32.totalorder %s4921_s23, %s4972_s3 }
 0x1d0   : > { %p3563_p5 = scmp.lt.u32.totalorder %s3561_s29, %s3557_s17  ;;  %p3565_p11 = scmp.lt.u32.totalorder %s3557_s17, %s4921_s23 }
 0x1d1   : > { %p3559_p6 = pnand %p3558_p13, %p4990_p0 }
 0x1d2   : > { %p3564_p8 = por %p3563_p5, %p3562_p4 }
 0x1d3   : > { %p3560_p10 = pneg %p3559_p6 }
 0x1d4   : > { %p3566_p1 = por %p3565_p11, %p3564_p8 }
 0x1d6   : > { %p3567_p3 = pnand %p3566_p1, %p3560_p10 }
 0x1d8   : > { %3570 = shalt.err (!%p3567_p3)
}
 0x1d9   : > { %s3624_s18 = smov 128   ;;  %s3625_s20 = smov 8  }
 0x1da   : > { %3031 = dma.vmem_to_hbm [thread:$0]  (%p4990_p0), %s4923_s24, 1024, %s4921_s23, %s2719_s16, %s3624_s18, %s3624_s18, %s3625_s20  }
 0x1db PF: > { %s2747_s11 = sand.u32 1, %s3601_s12   ;;  %p4991_p7 = scmp.ne.s32.totalorder %s4977_s19, 0 }
 0x1dc   : > { %p4992_p9 = scmp.ge.s32.totalorder %s3613_s15, 2  ;;  %s2748_s27 = scalar_lea.sflag [#allocation4], %s2747_s11 }
 0x1de   : > { %p3045_p12 = pnand %p4992_p9, %p4991_p7 }
 0x1e0   : > { %3596 = dma.done.wait (!%p3045_p12), %s2748_s27, 1024  }
 0x1e1   : > { %3598 = vsyncadd (!%p3045_p12), %s2748_s27, 4294966272  ;;  %p17_p2 = scmp.ge.s32.totalorder %s3757_s5, 4   ;;  %s4993_s12 = smov %s3605_s13 }
 0x1e2   : > { %s4994_s13 = smov %s3609_s14  ;;  %s4995_s14 = smov %s3773_s8 }
 0x1e3   : > { %s4996_s15 = smov %s3757_s5  ;;  %19 = sbr.rel (!%p17_p2) target bundleno = 6 (0x6), region = 87 }
 0x1ea   :  { %2753 = vsyncpa [#allocation3], 1 }
 0x1eb   :  { %2755 = vsyncpa [#allocation3 + $0x1], 1 }
 0x1ec   :  { %2756 = vsyncpa [#allocation6], 1 }
 0x1ed   :  { %2757 = vsyncpa [#allocation4], 1 }
 0x1ee   :  { %2759 = vsyncpa [#allocation4 + $0x1], 1 }

// kernel: crnn_forward.13
= control target key start
LH: loop header
LB: loop body
LE: loop exit
PB: predicated region body
PF: predicated region fallthrough
CT: control target
= control target key end

     0   :  { %8 = vsyncpa [#allocation3], 0  ;;  %s395_s0 = inlined_call_operand.hbm [shape: f32[16,64], index: 0, kind: input, shape index: {}]   ;;  %s396_s1 = inlined_call_operand.hbm [shape: bf16[64,256], index: 1, kind: input, shape index: {}]   ;;  %s397_s2 = inlined_call_operand.hbm [shape: f32[1,256], index: 2, kind: input, shape index: {}]   ;;  %s398_s3 = inlined_call_operand.hbm [shape: f32[16,256], index: 3, kind: output, shape index: {}]  }
   0x1   :  { %9 = vsyncpa [#allocation6], 0 }
   0x2   :  { %10 = vsyncpa [#allocation4], 0  ;;  %s311_s12 = smov [#allocation5]   ;;  %s312_s14 = smov [#allocation2]  }
   0x3   :  { %s28_s13 = sshll.u32 %s311_s12, 4  ;;  %s16_s15 = sshll.u32 %s312_s14, 4  ;;  %s29_s13 = int_to_ptr.vmem [resolvable:$true] %s28_s13  ;;  %s340_s15 = int_to_ptr.vmem [resolvable:$true] %s16_s15 }
   0x4   :  { %s217_s18 = scalar_lea.hbm %s396_s1, 1024 }
   0x5   :  { %p218_p0 = scmp.ne.s32.totalorder %s396_s1, %s217_s18  ;;  %p221_p1 = scmp.lt.u32.totalorder %s217_s18, %s396_s1 }
   0x7   :  { %p223_p2 = pnand %p221_p1, %p218_p0 }
   0x9   :  { %226 = shalt.err (!%p223_p2)
}
   0xa   :  { %s227_s23 = scalar_lea.vmem %s29_s13, 1024  ;;  %p232_p4 = scmp.lt.s32.totalorder %s29_s13, %s29_s13 }
   0xb   :  { %p228_p3 = scmp.ne.s32.totalorder %s29_s13, %s227_s23  ;;  %p233_p5 = scmp.lt.s32.totalorder %s227_s23, %s227_s23 }
   0xd   :  { %p234_p6 = por %p233_p5, %p232_p4 }
   0xf   :  { %p235_p7 = pnand %p234_p6, %p228_p3 }
  0x11   :  { %238 = shalt.err (!%p235_p7)
}
  0x12   :  { %s313_s24 = smov 128   ;;  %s314_s25 = smov 8  }
  0x13   :  { %34 = dma.hbm_to_vmem [thread:$0]  %s396_s1, 1024, %s29_s13, [#allocation6], %s313_s24, %s313_s24, %s314_s25  }
  0x14   :  { %s239_s30 = scalar_lea.hbm %s395_s0, 256 }
  0x15   :  { %p240_p8 = scmp.ne.s32.totalorder %s395_s0, %s239_s30  ;;  %p243_p9 = scmp.lt.u32.totalorder %s239_s30, %s395_s0 }
  0x17   :  { %p245_p10 = pnand %p243_p9, %p240_p8 }
  0x19   :  { %248 = shalt.err (!%p245_p10)
}
  0x1a   :  { %s249_s8 = scalar_lea.vmem %s340_s15, 256  ;;  %p254_p12 = scmp.lt.s32.totalorder %s340_s15, %s340_s15 }
  0x1b   :  { %p250_p11 = scmp.ne.s32.totalorder %s340_s15, %s249_s8  ;;  %p255_p13 = scmp.lt.s32.totalorder %s249_s8, %s249_s8 }
  0x1d   :  { %p256_p0 = por %p255_p13, %p254_p12 }
  0x1f   :  { %p257_p1 = pnand %p256_p0, %p250_p11 }
  0x21   :  { %260 = shalt.err (!%p257_p1)
}
  0x22   :  { %22 = dma.hbm_to_vmem [thread:$0]  %s395_s0, 256, %s340_s15, [#allocation3], %s313_s24, %s313_s24, %s314_s25  }
  0x23   :  { %s315_s10 = smov [#allocation7]   ;;  %s261_s14 = scalar_lea.hbm %s397_s2, 32 }
  0x24   :  { %s41_s11 = sshll.u32 %s315_s10, 4  ;;  %p262_p2 = scmp.ne.s32.totalorder %s397_s2, %s261_s14  ;;  %s42_s11 = int_to_ptr.vmem [resolvable:$true] %s41_s11 }
  0x25   :  { %p265_p3 = scmp.lt.u32.totalorder %s261_s14, %s397_s2 }
  0x27   :  { %p267_p4 = pnand %p265_p3, %p262_p2 }
  0x29   :  { %270 = shalt.err (!%p267_p4)
}
  0x2a   :  { %s271_s20 = scalar_lea.vmem %s42_s11, 32  ;;  %p276_p6 = scmp.lt.s32.totalorder %s42_s11, %s42_s11 }
  0x2b   :  { %p272_p5 = scmp.ne.s32.totalorder %s42_s11, %s271_s20  ;;  %p277_p7 = scmp.lt.s32.totalorder %s271_s20, %s271_s20 }
  0x2d   :  { %p278_p8 = por %p277_p7, %p276_p6 }
  0x2f   :  { %p279_p9 = pnand %p278_p8, %p272_p5 }
  0x31   :  { %282 = shalt.err (!%p279_p9)
}
  0x32   :  { %44 = dma.hbm_to_vmem [thread:$0]  %s397_s2, 32, %s42_s11, [#allocation6]  }
  0x33   :  { %305 = dma.done.wait [#allocation3], 256  }
  0x34   :  { %306 = vsyncadd [#allocation3], 4294967040 }
  0x35   :  { %307 = dma.done.wait [#allocation6], 1056  }
  0x36   :  { %308 = vsyncadd [#allocation6], 4294966240  ;;  %v316_v0 = vmov 0   ;;  %v205_v1 = vld [vmem:[#allocation5 + $0x4] ss:$8 sps:$4 sm:$0xff]   ;;  %v55_v9 = vld [vmem:[#allocation2] sm:$0xff]  ;;  %v68_v12 = vlaneseq }
  0x37   :  { %154 = vmatprep.mubr.bf16.mxu0 %v316_v0  ;;  %v207_v2 = vld [vmem:[#allocation5] ss:$8 sps:$4 sm:$0xff]   ;;  %122 = vmatprep.subr.bf16.mxu0 %v205_v1  ;;  %v208_v3 = vld [vmem:[#allocation5 + $0x14] ss:$8 sps:$4 sm:$0xff]   ;;  %v210_v4 = vld [vmem:[#allocation5 + $0x10] ss:$8 sps:$4 sm:$0xff]  }
  0x38   :  { %123 = vmatpush1.bf16.msra.mxu0 %v207_v2  ;;  %v211_v5 = vld [vmem:[#allocation5 + $0x24] ss:$8 sps:$4 sm:$0xff]   ;;  %v213_v6 = vld [vmem:[#allocation5 + $0x20] ss:$8 sps:$4 sm:$0xff]   ;;  %v214_v7 = vld [vmem:[#allocation5 + $0x34] ss:$8 sps:$4 sm:$0xff]  }
  0x39   :  { %124 = vmatprep.subr.bf16.mxu0 %v208_v3  ;;  %v216_v8 = vld [vmem:[#allocation5 + $0x30] ss:$8 sps:$4 sm:$0xff]   ;;  %vm118_vm0 = vcmask 523264   ;;  %v69_v13 = vshrl.u32 %v68_v12, 7  ;;  %v66_v15 = vld [vmem:[#allocation7] sm:$0x3] }
  0x3a   :  { %v56_v10 = vld [vmem:[#allocation2 + $0x8] sm:$0xff]  ;;  %s317_s2 = smov [#allocation8]  }
  0x3b   :  { %v57_v11 = vpack.c.bf16 %v56_v10, %v55_v9  ;;  %v70_v14 = vsub.s32 0, %v69_v13  ;;  %v74_v16 = vsub.s32 1, %v69_v13  ;;  %s174_s21 = sshll.u32 %s317_s2, 4  ;;  %s175_s21 = int_to_ptr.vmem [resolvable:$true] %s174_s21 }
  0x3c   :  { %125 = vmatpush1.bf16.msra.mxu0 %v210_v4  ;;  %s283_s22 = scalar_lea.vmem %s175_s21, 512  ;;  %p288_p11 = scmp.lt.s32.totalorder %s175_s21, %s175_s21 }
  0x3d   :  { %126 = vmatprep.subr.bf16.mxu0 %v211_v5  ;;  %v71_v17 = vrot.slane %v66_v15, %v70_v14  ;;  %v75_v18 = vrot.slane %v66_v15, %v74_v16  ;;  %p284_p10 = scmp.ne.s32.totalorder %s175_s21, %s283_s22  ;;  %p289_p12 = scmp.lt.s32.totalorder %s283_s22, %s283_s22 }
  0x3f   :  { %p290_p13 = por %p289_p12, %p288_p11 }
  0x40   :  { %127 = vmatpush1.bf16.msra.mxu0 %v213_v6 }
  0x41   :  { %128 = vmatprep.subr.bf16.mxu0 %v214_v7  ;;  %p291_p0 = pnand %p290_p13, %p284_p10 }
  0x44   :  { %129 = vmatpush1.bf16.msra.mxu0 %v216_v8 }
  0x47   :  { %195 = vmatmul.mubr.msk.bf16.vlgmr.msra.gmra.mrb[0].mxu0 %vm118_vm0, %v57_v11 }
 0x11a   :  { %v156_v19 = vpop.f32.mrb[0].mxu0 }
 0x11b   :  { %v157_v20 = vadd.f32 %v156_v19, %v71_v17  ;;  %v158_v21 = vpop.f32.mrb[1].mxu0 }
 0x11c   :  { %v159_v22 = vadd.f32 %v158_v21, %v75_v18  ;;  %v160_v23 = vpop.f32.mrb[2].mxu0 }
 0x11d   :  { %165 = vst [vmem:[#allocation8] sm:$0xff] %v157_v20  ;;  %v161_v24 = vadd.f32 %v160_v23, %v71_v17  ;;  %v162_v25 = vpop.f32.mrb[3].mxu0 }
 0x11e   :  { %166 = vst [vmem:[#allocation8 + $0x8] sm:$0xff] %v159_v22  ;;  %v163_v26 = vadd.f32 %v162_v25, %v75_v18 }
 0x11f   :  { %167 = vst [vmem:[#allocation8 + $0x10] sm:$0xff] %v161_v24 }
 0x120   :  { %168 = vst [vmem:[#allocation8 + $0x18] sm:$0xff] %v163_v26 }
 0x121   :  { %294 = shalt.err (!%p291_p0)
}
 0x122   :  { %s295_s25 = scalar_lea.hbm %s398_s3, 512 }
 0x123   :  { %p296_p1 = scmp.ne.s32.totalorder %s398_s3, %s295_s25  ;;  %p299_p2 = scmp.lt.u32.totalorder %s295_s25, %s398_s3 }
 0x125   :  { %p301_p3 = pnand %p299_p2, %p296_p1 }
 0x127   :  { %304 = shalt.err (!%p301_p3)
}
 0x128   :  { %s318_s30 = smov 256   ;;  %s319_s4 = smov 16  }
 0x129   :  { %180 = dma.vmem_to_hbm [thread:$0]  %s175_s21, 512, %s398_s3, [#allocation4], %s318_s30, %s318_s30, %s319_s4  }
 0x12a   :  { %309 = dma.done.wait [#allocation4], 512  }
 0x12b   :  { %310 = vsyncadd [#allocation4], 4294966784 }
 0x12c   :  { %184 = vsyncpa [#allocation3], 1 }
 0x12d   :  { %185 = vsyncpa [#allocation6], 1 }
 0x12e   :  { %186 = vsyncpa [#allocation4], 1 }

// kernel: crnn_forward.15
= control target key start
LH: loop header
LB: loop body
LE: loop exit
PB: predicated region body
PF: predicated region fallthrough
CT: control target
= control target key end

     0   :  { %8 = vsyncpa [#allocation3], 0  ;;  %s377_s0 = inlined_call_operand.hbm [shape: f32[16,64], index: 0, kind: input, shape index: {}]   ;;  %s378_s1 = inlined_call_operand.hbm [shape: bf16[64,128], index: 1, kind: input, shape index: {}]   ;;  %s379_s2 = inlined_call_operand.hbm [shape: f32[1,128], index: 2, kind: input, shape index: {}]   ;;  %s380_s3 = inlined_call_operand.hbm [shape: f32[16,128], index: 3, kind: output, shape index: {}]  }
   0x1   :  { %9 = vsyncpa [#allocation6], 0 }
   0x2   :  { %10 = vsyncpa [#allocation4], 0  ;;  %s293_s12 = smov [#allocation5]   ;;  %s199_s16 = scalar_lea.hbm %s378_s1, 512 }
   0x3   :  { %s28_s13 = sshll.u32 %s293_s12, 4  ;;  %p200_p0 = scmp.ne.s32.totalorder %s378_s1, %s199_s16  ;;  %s29_s13 = int_to_ptr.vmem [resolvable:$true] %s28_s13 }
   0x4   :  { %p203_p1 = scmp.lt.u32.totalorder %s199_s16, %s378_s1 }
   0x6   :  { %p205_p2 = pnand %p203_p1, %p200_p0 }
   0x8   :  { %208 = shalt.err (!%p205_p2)
}
   0x9   :  { %s209_s21 = scalar_lea.vmem %s29_s13, 512  ;;  %p214_p4 = scmp.lt.s32.totalorder %s29_s13, %s29_s13 }
   0xa   :  { %p210_p3 = scmp.ne.s32.totalorder %s29_s13, %s209_s21  ;;  %p215_p5 = scmp.lt.s32.totalorder %s209_s21, %s209_s21 }
   0xc   :  { %p216_p6 = por %p215_p5, %p214_p4 }
   0xe   :  { %p217_p7 = pnand %p216_p6, %p210_p3 }
  0x10   :  { %220 = shalt.err (!%p217_p7)
}
  0x11   :  { %s294_s22 = smov 64   ;;  %s295_s23 = smov 4  }
  0x12   :  { %34 = dma.hbm_to_vmem [thread:$0]  %s378_s1, 512, %s29_s13, [#allocation6], %s294_s22, %s294_s22, %s295_s23  }
  0x13   :  { %s296_s26 = smov [#allocation2]   ;;  %s221_s30 = scalar_lea.hbm %s377_s0, 256 }
  0x14   :  { %s16_s27 = sshll.u32 %s296_s26, 4  ;;  %p222_p8 = scmp.ne.s32.totalorder %s377_s0, %s221_s30  ;;  %s17_s27 = int_to_ptr.vmem [resolvable:$true] %s16_s27 }
  0x15   :  { %p225_p9 = scmp.lt.u32.totalorder %s221_s30, %s377_s0 }
  0x17   :  { %p227_p10 = pnand %p225_p9, %p222_p8 }
  0x19   :  { %230 = shalt.err (!%p227_p10)
}
  0x1a   :  { %s231_s8 = scalar_lea.vmem %s17_s27, 256  ;;  %p236_p12 = scmp.lt.s32.totalorder %s17_s27, %s17_s27 }
  0x1b   :  { %p232_p11 = scmp.ne.s32.totalorder %s17_s27, %s231_s8  ;;  %p237_p13 = scmp.lt.s32.totalorder %s231_s8, %s231_s8 }
  0x1d   :  { %p238_p0 = por %p237_p13, %p236_p12 }
  0x1f   :  { %p239_p1 = pnand %p238_p0, %p232_p11 }
  0x21   :  { %242 = shalt.err (!%p239_p1)
}
  0x22   :  { %s297_s1 = smov 128   ;;  %s298_s9 = smov 8  }
  0x23   :  { %22 = dma.hbm_to_vmem [thread:$0]  %s377_s0, 256, %s17_s27, [#allocation3], %s297_s1, %s297_s1, %s298_s9  }
  0x24   :  { %s299_s12 = smov [#allocation7]   ;;  %s243_s16 = scalar_lea.hbm %s379_s2, 16 }
  0x25   :  { %s41_s13 = sshll.u32 %s299_s12, 4  ;;  %p244_p2 = scmp.ne.s32.totalorder %s379_s2, %s243_s16  ;;  %s42_s13 = int_to_ptr.vmem [resolvable:$true] %s41_s13 }
  0x26   :  { %p247_p3 = scmp.lt.u32.totalorder %s243_s16, %s379_s2 }
  0x28   :  { %p249_p4 = pnand %p247_p3, %p244_p2 }
  0x2a   :  { %252 = shalt.err (!%p249_p4)
}
  0x2b   :  { %s253_s21 = scalar_lea.vmem %s42_s13, 16  ;;  %s257_s0 = scalar_lea.vmem %s42_s13, 32 }
  0x2c   :  { %p254_p5 = scmp.ne.s32.totalorder %s42_s13, %s253_s21  ;;  %p258_p6 = scmp.lt.s32.totalorder %s42_s13, %s42_s13 }
  0x2d   :  { %p259_p7 = scmp.lt.s32.totalorder %s257_s0, %s253_s21 }
  0x2f   :  { %p260_p8 = por %p259_p7, %p258_p6 }
  0x31   :  { %p261_p9 = pnand %p260_p8, %p254_p5 }
  0x33   :  { %264 = shalt.err (!%p261_p9)
}
  0x34   :  { %44 = dma.hbm_to_vmem [thread:$0]  %s379_s2, 16, %s42_s13, [#allocation6]  }
  0x35   :  { %287 = dma.done.wait [#allocation3], 256  }
  0x36   :  { %288 = vsyncadd [#allocation3], 4294967040 }
  0x37   :  { %289 = dma.done.wait [#allocation6], 528  }
  0x38   :  { %290 = vsyncadd [#allocation6], 4294966768  ;;  %v300_v0 = vmov 0.0   ;;  %vm301_vm0 = vmmov 0   ;;  %v195_v1 = vld [vmem:[#allocation5] sm:$0xff]   ;;  %v196_v2 = vld [vmem:[#allocation5 + $0x8] sm:$0xff]  }
  0x39   :  { %173 = vmatprep.subr.bf16.mxu0 %v300_v0  ;;  %181 = vmatprep.mubr.msk.bf16.mxu0 %vm301_vm0, %v300_v0  ;;  %v197_v3 = vld [vmem:[#allocation5 + $0x10] sm:$0xff]   ;;  %v198_v4 = vld [vmem:[#allocation5 + $0x18] sm:$0xff]   ;;  %vm97_vm1 = vcmask 523264   ;;  %v162_v8 = vld [vmem:[#allocation7] ss:$0 sm:$0xff]  ;;  %s302_s2 = smov [#allocation8]  }
  0x3a   :  { %174 = vmatpush3.bf16.msra.mxu0 %v195_v1  ;;  %v55_v5 = vld [vmem:[#allocation2] sm:$0xff]  ;;  %v56_v6 = vld [vmem:[#allocation2 + $0x8] sm:$0xff]  ;;  %s149_s24 = sshll.u32 %s302_s2, 4  ;;  %s150_s24 = int_to_ptr.vmem [resolvable:$true] %s149_s24 }
  0x3b   :  { %175 = vmatprep.subr.bf16.mxu0 %v300_v0  ;;  %v57_v7 = vpack.c.bf16 %v56_v6, %v55_v5  ;;  %s265_s25 = scalar_lea.vmem %s150_s24, 256  ;;  %p270_p11 = scmp.lt.s32.totalorder %s150_s24, %s150_s24 }
  0x3c   :  { %p266_p10 = scmp.ne.s32.totalorder %s150_s24, %s265_s25  ;;  %p271_p12 = scmp.lt.s32.totalorder %s265_s25, %s265_s25 }
  0x3e   :  { %176 = vmatpush3.bf16.msra.mxu0 %v196_v2  ;;  %p272_p13 = por %p271_p12, %p270_p11 }
  0x3f   :  { %177 = vmatprep.subr.bf16.mxu0 %v300_v0 }
  0x40   :  { %p273_p0 = pnand %p272_p13, %p266_p10 }
  0x42   :  { %178 = vmatpush3.bf16.msra.mxu0 %v197_v3 }
  0x43   :  { %179 = vmatprep.subr.bf16.mxu0 %v300_v0 }
  0x46   :  { %180 = vmatpush3.bf16.msra.mxu0 %v198_v4 }
  0x49   :  { %182 = vmatmul.mubr.msk.bf16.vlgmr.msra.gmra.mrb[0].mxu0 %vm97_vm1, %v57_v7 }
 0x11c   :  { %v135_v9 = vpop.f32.mrb[0].mxu0 }
 0x11d   :  { %v136_v10 = vadd.f32 %v162_v8, %v135_v9  ;;  %v183_v11 = vpop.f32.mrb[1].mxu0 }
 0x11e   :  { %v138_v12 = vpop.f32.mrb[2].mxu0 }
 0x11f   :  { %142 = vst [vmem:[#allocation8] sm:$0xff] %v136_v10  ;;  %v139_v13 = vadd.f32 %v162_v8, %v138_v12  ;;  %v184_v14 = vpop.f32.mrb[3].mxu0 }
 0x121   :  { %143 = vst [vmem:[#allocation8 + $0x8] sm:$0xff] %v139_v13 }
 0x122   :  { %276 = shalt.err (!%p273_p0)
}
 0x123   :  { %s277_s28 = scalar_lea.hbm %s380_s3, 256 }
 0x124   :  { %p278_p1 = scmp.ne.s32.totalorder %s380_s3, %s277_s28  ;;  %p281_p2 = scmp.lt.u32.totalorder %s277_s28, %s380_s3 }
 0x126   :  { %p283_p3 = pnand %p281_p2, %p278_p1 }
 0x128   :  { %286 = shalt.err (!%p283_p3)
}
 0x129   :  { %155 = dma.vmem_to_hbm [thread:$0]  %s150_s24, 256, %s380_s3, [#allocation4], %s297_s1, %s297_s1, %s298_s9  }
 0x12a   :  { %291 = dma.done.wait [#allocation4], 256  }
 0x12b   :  { %292 = vsyncadd [#allocation4], 4294967040 }
 0x12c   :  { %159 = vsyncpa [#allocation3], 1 }
 0x12d   :  { %160 = vsyncpa [#allocation6], 1 }
 0x12e   :  { %161 = vsyncpa [#allocation4], 1 }

// kernel: crnn_forward.12
= control target key start
LH: loop header
LB: loop body
LE: loop exit
PB: predicated region body
PF: predicated region fallthrough
CT: control target
= control target key end

     0   :  { %7 = vsyncpa [#allocation3], 0  ;;  %s1714_s0 = inlined_call_operand.hbm [shape: f32[2,2048], index: 0, kind: input, shape index: {}]   ;;  %s1715_s1 = inlined_call_operand.hbm [shape: bf16[64,256], index: 1, kind: input, shape index: {}]   ;;  %s1716_s2 = inlined_call_operand.hbm [shape: f32[2,512], index: 2, kind: output, shape index: {}]  }
   0x1   :  { %8 = vsyncpa [#allocation6], 0 }
   0x2   :  { %9 = vsyncpa [#allocation4], 0  ;;  %s1368_s9 = smov [#allocation2]   ;;  %s1369_s11 = smov [#allocation5]  }
   0x3   :  { %s16_s10 = sshll.u32 %s1368_s9, 4  ;;  %s25_s12 = sshll.u32 %s1369_s11, 4  ;;  %s17_s10 = int_to_ptr.vmem [resolvable:$true] %s16_s10  ;;  %s1393_s12 = int_to_ptr.vmem [resolvable:$true] %s25_s12 }
   0x4   :  { %s1296_s15 = scalar_lea.hbm %s1714_s0, 512 }
   0x5   :  { %p1297_p0 = scmp.ne.s32.totalorder %s1714_s0, %s1296_s15  ;;  %p1300_p1 = scmp.lt.u32.totalorder %s1296_s15, %s1714_s0 }
   0x7   :  { %p1302_p2 = pnand %p1300_p1, %p1297_p0 }
   0x9   :  { %1305 = shalt.err (!%p1302_p2)
}
   0xa   :  { %s1306_s20 = scalar_lea.vmem %s17_s10, 512  ;;  %p1311_p4 = scmp.lt.s32.totalorder %s17_s10, %s17_s10 }
   0xb   :  { %p1307_p3 = scmp.ne.s32.totalorder %s17_s10, %s1306_s20  ;;  %p1312_p5 = scmp.lt.s32.totalorder %s1306_s20, %s1306_s20 }
   0xd   :  { %p1313_p6 = por %p1312_p5, %p1311_p4 }
   0xf   :  { %p1314_p7 = pnand %p1313_p6, %p1307_p3 }
  0x11   :  { %1317 = shalt.err (!%p1314_p7)
}
  0x12   :  { %19 = dma.hbm_to_vmem [thread:$0]  %s1714_s0, 512, %s17_s10, [#allocation3]  }
  0x13   :  { %s1318_s25 = scalar_lea.hbm %s1715_s1, 1024 }
  0x14   :  { %p1319_p8 = scmp.ne.s32.totalorder %s1715_s1, %s1318_s25  ;;  %p1322_p9 = scmp.lt.u32.totalorder %s1318_s25, %s1715_s1 }
  0x16   :  { %p1324_p10 = pnand %p1322_p9, %p1319_p8 }
  0x18   :  { %1327 = shalt.err (!%p1324_p10)
}
  0x19   :  { %s1328_s30 = scalar_lea.vmem %s1393_s12, 1024  ;;  %p1333_p12 = scmp.lt.s32.totalorder %s1393_s12, %s1393_s12 }
  0x1a   :  { %p1329_p11 = scmp.ne.s32.totalorder %s1393_s12, %s1328_s30  ;;  %p1334_p13 = scmp.lt.s32.totalorder %s1328_s30, %s1328_s30 }
  0x1c   :  { %p1335_p0 = por %p1334_p13, %p1333_p12 }
  0x1e   :  { %p1336_p1 = pnand %p1335_p0, %p1329_p11 }
  0x20   :  { %1339 = shalt.err (!%p1336_p1)
}
  0x21   :  { %s1370_s0 = smov 128   ;;  %s1371_s3 = smov 8  }
  0x22   :  { %31 = dma.hbm_to_vmem [thread:$0]  %s1715_s1, 1024, %s1393_s12, [#allocation6], %s1370_s0, %s1370_s0, %s1371_s3  }
  0x23   :  { %1362 = dma.done.wait [#allocation3], 512  }
  0x24   :  { %1363 = vsyncadd [#allocation3], 4294966784 }
  0x25   :  { %1364 = dma.done.wait [#allocation6], 1024  }
  0x26   :  { %1365 = vsyncadd [#allocation6], 4294966272  ;;  %v1372_v0 = vmov 0   ;;  %v1426_v1 = vld [vmem:[#allocation5 + $0x4] ss:$8 sps:$4 sm:$0xff]   ;;  %v1373_v9 = vmov 0.0|0.0   ;;  %v189_v42 = vlaneseq }
  0x27   :  { %124 = vmatprep.mubr.bf16.mxu0 %v1372_v0  ;;  %245 = vmatprep.mubr.bf16.mxu1 %v1372_v0  ;;  %v1428_v2 = vld [vmem:[#allocation5] ss:$8 sps:$4 sm:$0xff]   ;;  %v1431_v3 = vld [vmem:[#allocation5 + $0x14] ss:$8 sps:$4 sm:$0xff]   ;;  %v1435_v4 = vld [vmem:[#allocation5 + $0x10] ss:$8 sps:$4 sm:$0xff]  }
  0x28   :  { %92 = vmatprep.subr.bf16.mxu0 %v1426_v1  ;;  %213 = vmatprep.subr.bf16.mxu1 %v1426_v1  ;;  %v1439_v5 = vld [vmem:[#allocation5 + $0x24] ss:$8 sps:$4 sm:$0xff]   ;;  %v1443_v6 = vld [vmem:[#allocation5 + $0x20] ss:$8 sps:$4 sm:$0xff]   ;;  %v1447_v7 = vld [vmem:[#allocation5 + $0x34] ss:$8 sps:$4 sm:$0xff]  }
  0x29   :  { %93 = vmatpush1.bf16.msra.mxu0 %v1428_v2  ;;  %214 = vmatpush1.bf16.msra.mxu1 %v1428_v2  ;;  %v1451_v8 = vld [vmem:[#allocation5 + $0x30] ss:$8 sps:$4 sm:$0xff]   ;;  %v133_v10 = vld [vmem:[#allocation2] sm:$0x3]  ;;  %v135_v12 = vld [vmem:[#allocation2 + $0x1e] sm:$0x3] }
  0x2a   :  { %94 = vmatprep.subr.bf16.mxu0 %v1431_v3  ;;  %215 = vmatprep.subr.bf16.mxu1 %v1431_v3  ;;  %s1374_s1 = smov 64   ;;  %s1375_s6 = smov 32   ;;  %v1376_v40 = vmov 1983009808   ;;  %v190_v44 = vshrl.u32 %v189_v42, 7  ;;  %vm207_vm0 = vcmask 261120  }
  0x2b   :  { %v187_v41 = vunpack.c.l.s4 %v1376_v40  ;;  %vm88_vm1 = vcmask 523264   ;;  %v254_v56 = vld [vmem:[#allocation2 + $0x4] sm:$0x3]  ;;  %v256_v57 = vld [vmem:[#allocation2 + $0x1a] sm:$0x3]  ;;  %s1377_s7 = smov [#allocation7]  }
  0x2c   :  { %v376_v42 = vld [vmem:[#allocation2 + $0x16] sm:$0x3]  ;;  %s1105_s8 = sshll.u32 %s1377_s7, 4  ;;  %s1106_s8 = int_to_ptr.vmem [resolvable:$true] %s1105_s8 }
  0x2d   :  { %95 = vmatpush1.bf16.msra.mxu0 %v1435_v4  ;;  %216 = vmatpush1.bf16.msra.mxu1 %v1435_v4  ;;  %v188_v43 = vunpack.c.0.s8 %v187_v41  ;;  %v374_v41 = vld [vmem:[#allocation2 + $0x8] sm:$0x3]  ;;  %s1340_s9 = scalar_lea.vmem %s1106_s8, 128  ;;  %p1345_p3 = scmp.lt.s32.totalorder %s1106_s8, %s1106_s8 }
  0x2e   :  { %96 = vmatprep.subr.bf16.mxu0 %v1439_v5  ;;  %217 = vmatprep.subr.bf16.mxu1 %v1439_v5  ;;  %p1341_p2 = scmp.ne.s32.totalorder %s1106_s8, %s1340_s9  ;;  %p1346_p4 = scmp.lt.s32.totalorder %s1340_s9, %s1340_s9 }
  0x2f   :  { %v1481_v45 = vsub.s32 %v188_v43, %v190_v44 }
  0x30   :  { %p1347_p5 = por %p1346_p4, %p1345_p3 }
  0x31   :  { %97 = vmatpush1.bf16.msra.mxu0 %v1443_v6  ;;  %218 = vmatpush1.bf16.msra.mxu1 %v1443_v6 }
  0x32   :  { %98 = vmatprep.subr.bf16.mxu0 %v1447_v7  ;;  %219 = vmatprep.subr.bf16.mxu1 %v1447_v7  ;;  %p1348_p6 = pnand %p1347_p5, %p1341_p2 }
  0x35   :  { %99 = vmatpush1.bf16.msra.mxu0 %v1451_v8  ;;  %220 = vmatpush1.bf16.msra.mxu1 %v1451_v8 }
  0x36   :  { %333 = vmatprep.subr.bf16.mxu0 %v1426_v1  ;;  %453 = vmatprep.subr.bf16.mxu1 %v1426_v1 }
  0x38   :  { %125 = vmatmul.mubr.bf16.vlgmr.msra.gmra.mrb[0].mxu0 %v1373_v9 }
  0x39   :  { %334 = vmatpush1.bf16.msra.mxu0 %v1428_v2  ;;  %365 = vmatprep.mubr.bf16.mxu0 %v1372_v0 }
  0x3a   :  { %335 = vmatprep.subr.bf16.mxu0 %v1431_v3 }
  0x3d   :  { %336 = vmatpush1.bf16.msra.mxu0 %v1435_v4 }
  0x3e   :  { %337 = vmatprep.subr.bf16.mxu0 %v1439_v5 }
  0x41   :  { %338 = vmatpush1.bf16.msra.mxu0 %v1443_v6 }
  0x42   :  { %339 = vmatprep.subr.bf16.mxu0 %v1447_v7 }
  0x45   :  { %340 = vmatpush1.bf16.msra.mxu0 %v1451_v8 }
  0x46   :  { %573 = vmatprep.subr.bf16.mxu0 %v1426_v1 }
 0x10b   :  { %v126_v11 = vpop.f32.mrb[0].mxu0 }
 0x10c   :  { %v134_v13 = vadd.f32 %v133_v10, %v126_v11  ;;  %v128_v14 = vpop.f32.mrb[1].mxu0 }
 0x10d   :  { %v130_v15 = vpop.f32.mrb[2].mxu0  ;;  %v136_v16 = vadd.f32 %v135_v12, %v128_v14 }
 0x10e   :  { %1168 = vtanh.f32 %v134_v13  ;;  %v131_v17 = vpop.f32.mrb[3].mxu0  ;;  %v1123_v20 = vmul.f32 -1.442695, %v134_v13 }
 0x10f   :  { %1170 = vtanh.f32 %v136_v16  ;;  %v1124_v21 = vmul.f32 -1.442695, %v136_v16 }
 0x110   :  { %1172 = vpow2.f32 %v1123_v20 }
 0x111   :  { %1174 = vpow2.f32 %v1124_v21 }
 0x118   :  { %v1169_v18 = vpop.eup %1168 }
 0x119   :  { %146 = vrot.lane.b32.xlu0 %v1169_v18, %s1374_s1  ;;  %v1171_v19 = vpop.eup %1170 }
 0x11a   :  { %v1173_v22 = vpop.eup %1172 }
 0x11b   :  { %v140_v23 = vadd.f32 1.0, %v1173_v22  ;;  %v1175_v24 = vpop.eup %1174 }
 0x11c   :  { %v164_v25 = vadd.f32 1.0, %v1175_v24 }
 0x11d   :  { %170 = vrot.lane.b32.xlu0 %v1171_v19, %s1374_s1  ;;  %1176 = vrcp.f32 %v140_v23 }
 0x11e   :  { %1178 = vrcp.f32 %v164_v25 }
 0x127   :  { %v1177_v26 = vpop.eup %1176 }
 0x128   :  { %v1179_v29 = vpop.eup %1178  ;;  %v144_v32 = vmul.f32 0.0, %v1177_v26 }
 0x129   :  { %v168_v35 = vmul.f32 0.0, %v1179_v29 }
 0x18b   :  { %v147_v27 = vpop.permute.xlu0 %146 }
 0x18c   :  { %v149_v28 = vmul.f32 %v1177_v26, %v147_v27 }
 0x18e   :  { %151 = vrot.lane.b32.xlu1 %v149_v28, %s1375_s6 }
 0x18f   :  { %v171_v30 = vpop.permute.xlu0 %170 }
 0x190   :  { %v173_v31 = vmul.f32 %v1179_v29, %v171_v30 }
 0x192   :  { %175 = vrot.lane.b32.xlu1 %v173_v31, %s1375_s6 }
 0x200   :  { %v152_v33 = vpop.permute.xlu1 %151 }
 0x201   :  { %v1473_v34 = vadd.f32 %v152_v33, %v144_v32 }
 0x203   :  { %1180 = vtanh.f32 %v1473_v34 }
 0x204   :  { %v176_v36 = vpop.permute.xlu1 %175 }
 0x205   :  { %v1476_v37 = vadd.f32 %v176_v36, %v168_v35 }
 0x207   :  { %1182 = vtanh.f32 %v1476_v37 }
 0x20d   :  { %v1181_v38 = vpop.eup %1180 }
 0x20e   :  { %157 = vrot.lane.b32.xlu0 %v1181_v38, %s1374_s1 }
 0x211   :  { %v1183_v39 = vpop.eup %1182 }
 0x212   :  { %181 = vrot.lane.b32.xlu1 %v1183_v39, %s1374_s1 }
 0x280   :  { %v158_v46 = vpop.permute.xlu0 %157 }
 0x281   :  { %v160_v47 = vmul.f32 %v1177_v26, %v158_v46 }
 0x283   :  { %v192_v48 = vrot.slane %v160_v47, %v1481_v45 }
 0x284   :  { %v182_v49 = vpop.permute.xlu1 %181 }
 0x285   :  { %v184_v50 = vmul.f32 %v1179_v29, %v182_v49  ;;  %193 = vrot.lane.b32.xlu0 %v192_v48, %s1375_s6 }
 0x287   :  { %v203_v51 = vrot.slane %v184_v50, %v1481_v45 }
 0x289   :  { %204 = vrot.lane.b32.xlu1 %v203_v51, %s1374_s1 }
 0x2f7   :  { %v1487_v52 = vpop.permute.xlu0 %193 }
 0x2fb   :  { %v1489_v53 = vpop.permute.xlu1 %204 }
 0x2fc   :  { %v208_v54 = vsel %vm207_vm0, %v1487_v52, %v1489_v53 }
 0x2fd   :  { %v209_v55 = vpack.c.bf16 %v208_v54, %v208_v54 }
 0x2ff   :  { %1125 = vmatmul.mubr.msk.bf16.vlgmr.msra.gmra.mrb[0].mxu1 %vm88_vm1, %v209_v55 }
 0x300   :  { %454 = vmatpush1.bf16.msra.mxu1 %v1428_v2  ;;  %485 = vmatprep.mubr.bf16.mxu1 %v1372_v0 }
 0x301   :  { %455 = vmatprep.subr.bf16.mxu1 %v1431_v3 }
 0x304   :  { %456 = vmatpush1.bf16.msra.mxu1 %v1435_v4 }
 0x305   :  { %457 = vmatprep.subr.bf16.mxu1 %v1439_v5 }
 0x308   :  { %458 = vmatpush1.bf16.msra.mxu1 %v1443_v6 }
 0x309   :  { %459 = vmatprep.subr.bf16.mxu1 %v1447_v7 }
 0x30c   :  { %460 = vmatpush1.bf16.msra.mxu1 %v1451_v8 }
 0x30d   :  { %693 = vmatprep.subr.bf16.mxu1 %v1426_v1 }
 0x3d2   :  { %v247_v58 = vpop.f32.mrb[0].mxu1 }
 0x3d3   :  { %v255_v59 = vadd.f32 %v254_v56, %v247_v58  ;;  %v249_v60 = vpop.f32.mrb[1].mxu1 }
 0x3d4   :  { %v257_v61 = vadd.f32 %v256_v57, %v249_v60  ;;  %v251_v62 = vpop.f32.mrb[2].mxu1 }
 0x3d5   :  { %1184 = vtanh.f32 %v255_v59  ;;  %v252_v63 = vpop.f32.mrb[3].mxu1  ;;  %v1126_v11 = vmul.f32 -1.442695, %v255_v59 }
 0x3d6   :  { %1186 = vtanh.f32 %v257_v61  ;;  %v1127_v12 = vmul.f32 -1.442695, %v257_v61 }
 0x3d7   :  { %1188 = vpow2.f32 %v1126_v11 }
 0x3d8   :  { %1190 = vpow2.f32 %v1127_v12 }
 0x3df   :  { %v1185_v9 = vpop.eup %1184 }
 0x3e0   :  { %v1187_v10 = vpop.eup %1186  ;;  %267 = vrot.lane.b32.xlu0 %v1185_v9, %s1374_s1 }
 0x3e1   :  { %291 = vrot.lane.b32.xlu1 %v1187_v10, %s1374_s1  ;;  %v1189_v13 = vpop.eup %1188 }
 0x3e2   :  { %v1191_v14 = vpop.eup %1190  ;;  %v261_v15 = vadd.f32 1.0, %v1189_v13 }
 0x3e3   :  { %v285_v16 = vadd.f32 1.0, %v1191_v14 }
 0x3e4   :  { %1192 = vrcp.f32 %v261_v15 }
 0x3e5   :  { %1194 = vrcp.f32 %v285_v16 }
 0x3ee   :  { %v1193_v17 = vpop.eup %1192 }
 0x3ef   :  { %v1195_v19 = vpop.eup %1194  ;;  %v265_v23 = vmul.f32 %v1193_v17, %v1473_v34 }
 0x3f0   :  { %v289_v25 = vmul.f32 %v1195_v19, %v1476_v37 }
 0x452   :  { %v268_v18 = vpop.permute.xlu0 %267 }
 0x453   :  { %v270_v20 = vmul.f32 %v1193_v17, %v268_v18  ;;  %v292_v21 = vpop.permute.xlu1 %291 }
 0x454   :  { %v294_v22 = vmul.f32 %v1195_v19, %v292_v21 }
 0x455   :  { %272 = vrot.lane.b32.xlu0 %v270_v20, %s1375_s6 }
 0x456   :  { %296 = vrot.lane.b32.xlu1 %v294_v22, %s1375_s6 }
 0x4c7   :  { %v273_v24 = vpop.permute.xlu0 %272 }
 0x4c8   :  { %v1510_v26 = vadd.f32 %v273_v24, %v265_v23  ;;  %v297_v27 = vpop.permute.xlu1 %296 }
 0x4c9   :  { %v1512_v28 = vadd.f32 %v297_v27, %v289_v25 }
 0x4ca   :  { %1196 = vtanh.f32 %v1510_v26 }
 0x4cb   :  { %1198 = vtanh.f32 %v1512_v28 }
 0x4d4   :  { %v1197_v29 = vpop.eup %1196 }
 0x4d5   :  { %v1199_v30 = vpop.eup %1198  ;;  %278 = vrot.lane.b32.xlu0 %v1197_v29, %s1374_s1  ;;  %v494_v29 = vld [vmem:[#allocation2 + $0xc] sm:$0x3] }
 0x4d6   :  { %302 = vrot.lane.b32.xlu1 %v1199_v30, %s1374_s1  ;;  %v496_v30 = vld [vmem:[#allocation2 + $0x12] sm:$0x3] }
 0x547   :  { %v279_v31 = vpop.permute.xlu0 %278 }
 0x548   :  { %v281_v32 = vmul.f32 %v1193_v17, %v279_v31  ;;  %v303_v33 = vpop.permute.xlu1 %302 }
 0x549   :  { %v305_v34 = vmul.f32 %v1195_v19, %v303_v33 }
 0x54a   :  { %v313_v35 = vrot.slane %v281_v32, %v1481_v45 }
 0x54b   :  { %v324_v36 = vrot.slane %v305_v34, %v1481_v45 }
 0x54c   :  { %314 = vrot.lane.b32.xlu0 %v313_v35, %s1375_s6 }
 0x54d   :  { %325 = vrot.lane.b32.xlu1 %v324_v36, %s1374_s1 }
 0x5be   :  { %v1522_v37 = vpop.permute.xlu0 %314 }
 0x5bf   :  { %v1524_v38 = vpop.permute.xlu1 %325 }
 0x5c0   :  { %v328_v39 = vsel %vm207_vm0, %v1522_v37, %v1524_v38 }
 0x5c1   :  { %v329_v40 = vpack.c.bf16 %v328_v39, %v328_v39 }
 0x5c3   :  { %1128 = vmatmul.mubr.msk.bf16.vlgmr.msra.gmra.mrb[4].mxu0 %vm88_vm1, %v329_v40 }
 0x5c4   :  { %574 = vmatpush1.bf16.msra.mxu0 %v1428_v2  ;;  %605 = vmatprep.mubr.bf16.mxu0 %v1372_v0 }
 0x5c5   :  { %575 = vmatprep.subr.bf16.mxu0 %v1431_v3 }
 0x5c8   :  { %576 = vmatpush1.bf16.msra.mxu0 %v1435_v4 }
 0x5c9   :  { %577 = vmatprep.subr.bf16.mxu0 %v1439_v5 }
 0x5cc   :  { %578 = vmatpush1.bf16.msra.mxu0 %v1443_v6 }
 0x5cd   :  { %579 = vmatprep.subr.bf16.mxu0 %v1447_v7 }
 0x5d0   :  { %580 = vmatpush1.bf16.msra.mxu0 %v1451_v8 }
 0x5d1   :  { %813 = vmatprep.subr.bf16.mxu0 %v1426_v1 }
 0x696   :  { %v367_v43 = vpop.f32.mrb[4].mxu0 }
 0x697   :  { %v375_v44 = vadd.f32 %v374_v41, %v367_v43  ;;  %v369_v46 = vpop.f32.mrb[5].mxu0 }
 0x698   :  { %v377_v47 = vadd.f32 %v376_v42, %v369_v46  ;;  %v371_v48 = vpop.f32.mrb[6].mxu0 }
 0x699   :  { %1200 = vtanh.f32 %v375_v44  ;;  %v372_v49 = vpop.f32.mrb[7].mxu0  ;;  %v1129_v54 = vmul.f32 -1.442695, %v375_v44 }
 0x69a   :  { %1202 = vtanh.f32 %v377_v47  ;;  %v1130_v55 = vmul.f32 -1.442695, %v377_v47 }
 0x69b   :  { %1204 = vpow2.f32 %v1129_v54 }
 0x69c   :  { %1206 = vpow2.f32 %v1130_v55 }
 0x6a3   :  { %v1201_v50 = vpop.eup %1200 }
 0x6a4   :  { %v1203_v51 = vpop.eup %1202  ;;  %387 = vrot.lane.b32.xlu0 %v1201_v50, %s1374_s1 }
 0x6a5   :  { %411 = vrot.lane.b32.xlu1 %v1203_v51, %s1374_s1  ;;  %v1205_v56 = vpop.eup %1204 }
 0x6a6   :  { %v1207_v57 = vpop.eup %1206  ;;  %v381_v58 = vadd.f32 1.0, %v1205_v56 }
 0x6a7   :  { %v405_v59 = vadd.f32 1.0, %v1207_v57 }
 0x6a8   :  { %1208 = vrcp.f32 %v381_v58 }
 0x6a9   :  { %1210 = vrcp.f32 %v405_v59 }
 0x6b2   :  { %v1209_v60 = vpop.eup %1208 }
 0x6b3   :  { %v1211_v62 = vpop.eup %1210  ;;  %v385_v11 = vmul.f32 %v1209_v60, %v1510_v26 }
 0x6b4   :  { %v409_v13 = vmul.f32 %v1211_v62, %v1512_v28 }
 0x716   :  { %v388_v61 = vpop.permute.xlu0 %387 }
 0x717   :  { %v390_v63 = vmul.f32 %v1209_v60, %v388_v61  ;;  %v412_v9 = vpop.permute.xlu1 %411 }
 0x718   :  { %v414_v10 = vmul.f32 %v1211_v62, %v412_v9 }
 0x719   :  { %392 = vrot.lane.b32.xlu0 %v390_v63, %s1375_s6 }
 0x71a   :  { %416 = vrot.lane.b32.xlu1 %v414_v10, %s1375_s6 }
 0x78b   :  { %v393_v12 = vpop.permute.xlu0 %392 }
 0x78c   :  { %v1545_v14 = vadd.f32 %v393_v12, %v385_v11  ;;  %v417_v15 = vpop.permute.xlu1 %416 }
 0x78d   :  { %v1547_v16 = vadd.f32 %v417_v15, %v409_v13 }
 0x78e   :  { %1212 = vtanh.f32 %v1545_v14 }
 0x78f   :  { %1214 = vtanh.f32 %v1547_v16 }
 0x798   :  { %v1213_v17 = vpop.eup %1212 }
 0x799   :  { %v1215_v18 = vpop.eup %1214  ;;  %398 = vrot.lane.b32.xlu0 %v1213_v17, %s1374_s1 }
 0x79a   :  { %422 = vrot.lane.b32.xlu1 %v1215_v18, %s1374_s1  ;;  %v614_v18 = vld [vmem:[#allocation2 + $0x10] sm:$0x3] }
 0x80b   :  { %v399_v19 = vpop.permute.xlu0 %398 }
 0x80c   :  { %v401_v20 = vmul.f32 %v1209_v60, %v399_v19  ;;  %v423_v21 = vpop.permute.xlu1 %422  ;;  %v616_v19 = vld [vmem:[#allocation2 + $0xe] sm:$0x3] }
 0x80d   :  { %v425_v22 = vmul.f32 %v1211_v62, %v423_v21 }
 0x80e   :  { %v433_v23 = vrot.slane %v401_v20, %v1481_v45 }
 0x80f   :  { %v444_v24 = vrot.slane %v425_v22, %v1481_v45 }
 0x810   :  { %434 = vrot.lane.b32.xlu0 %v433_v23, %s1375_s6 }
 0x811   :  { %445 = vrot.lane.b32.xlu1 %v444_v24, %s1374_s1 }
 0x882   :  { %v1557_v25 = vpop.permute.xlu0 %434 }
 0x883   :  { %v1559_v26 = vpop.permute.xlu1 %445 }
 0x884   :  { %v448_v27 = vsel %vm207_vm0, %v1557_v25, %v1559_v26 }
 0x885   :  { %v449_v28 = vpack.c.bf16 %v448_v27, %v448_v27 }
 0x887   :  { %1131 = vmatmul.mubr.msk.bf16.vlgmr.msra.gmra.mrb[4].mxu1 %vm88_vm1, %v449_v28 }
 0x888   :  { %694 = vmatpush1.bf16.msra.mxu1 %v1428_v2  ;;  %725 = vmatprep.mubr.bf16.mxu1 %v1372_v0 }
 0x889   :  { %695 = vmatprep.subr.bf16.mxu1 %v1431_v3 }
 0x88c   :  { %696 = vmatpush1.bf16.msra.mxu1 %v1435_v4 }
 0x88d   :  { %697 = vmatprep.subr.bf16.mxu1 %v1439_v5 }
 0x890   :  { %698 = vmatpush1.bf16.msra.mxu1 %v1443_v6 }
 0x891   :  { %699 = vmatprep.subr.bf16.mxu1 %v1447_v7 }
 0x894   :  { %700 = vmatpush1.bf16.msra.mxu1 %v1451_v8 }
 0x895   :  { %933 = vmatprep.subr.bf16.mxu1 %v1426_v1 }
 0x95a   :  { %v487_v31 = vpop.f32.mrb[4].mxu1 }
 0x95b   :  { %v495_v32 = vadd.f32 %v494_v29, %v487_v31  ;;  %v489_v33 = vpop.f32.mrb[5].mxu1 }
 0x95c   :  { %v497_v34 = vadd.f32 %v496_v30, %v489_v33  ;;  %v491_v35 = vpop.f32.mrb[6].mxu1 }
 0x95d   :  { %1216 = vtanh.f32 %v495_v32  ;;  %v492_v36 = vpop.f32.mrb[7].mxu1  ;;  %v1132_v41 = vmul.f32 -1.442695, %v495_v32 }
 0x95e   :  { %1218 = vtanh.f32 %v497_v34  ;;  %v1133_v42 = vmul.f32 -1.442695, %v497_v34 }
 0x95f   :  { %1220 = vpow2.f32 %v1132_v41 }
 0x960   :  { %1222 = vpow2.f32 %v1133_v42 }
 0x967   :  { %v1217_v39 = vpop.eup %1216 }
 0x968   :  { %v1219_v40 = vpop.eup %1218  ;;  %507 = vrot.lane.b32.xlu0 %v1217_v39, %s1374_s1 }
 0x969   :  { %531 = vrot.lane.b32.xlu1 %v1219_v40, %s1374_s1  ;;  %v1221_v1 = vpop.eup %1220 }
 0x96a   :  { %v1223_v43 = vpop.eup %1222  ;;  %v501_v44 = vadd.f32 1.0, %v1221_v1 }
 0x96b   :  { %v525_v46 = vadd.f32 1.0, %v1223_v43 }
 0x96c   :  { %1224 = vrcp.f32 %v501_v44 }
 0x96d   :  { %1226 = vrcp.f32 %v525_v46 }
 0x976   :  { %v1225_v47 = vpop.eup %1224 }
 0x977   :  { %v1227_v49 = vpop.eup %1226  ;;  %v505_v55 = vmul.f32 %v1225_v47, %v1545_v14 }
 0x978   :  { %v529_v57 = vmul.f32 %v1227_v49, %v1547_v16 }
 0x9da   :  { %v508_v48 = vpop.permute.xlu0 %507 }
 0x9db   :  { %v510_v50 = vmul.f32 %v1225_v47, %v508_v48  ;;  %v532_v51 = vpop.permute.xlu1 %531 }
 0x9dc   :  { %v534_v54 = vmul.f32 %v1227_v49, %v532_v51 }
 0x9dd   :  { %512 = vrot.lane.b32.xlu0 %v510_v50, %s1375_s6 }
 0x9de   :  { %536 = vrot.lane.b32.xlu1 %v534_v54, %s1375_s6 }
 0xa4f   :  { %v513_v56 = vpop.permute.xlu0 %512 }
 0xa50   :  { %v515_v58 = vadd.f32 %v513_v56, %v505_v55  ;;  %v537_v59 = vpop.permute.xlu1 %536 }
 0xa51   :  { %v539_v60 = vadd.f32 %v537_v59, %v529_v57 }
 0xa52   :  { %1228 = vtanh.f32 %v515_v58 }
 0xa53   :  { %1230 = vtanh.f32 %v539_v60 }
 0xa5c   :  { %v1229_v61 = vpop.eup %1228 }
 0xa5d   :  { %v1231_v62 = vpop.eup %1230  ;;  %518 = vrot.lane.b32.xlu0 %v1229_v61, %s1374_s1 }
 0xa5e   :  { %542 = vrot.lane.b32.xlu1 %v1231_v62, %s1374_s1 }
 0xacf   :  { %v519_v63 = vpop.permute.xlu0 %518 }
 0xad0   :  { %v521_v9 = vmul.f32 %v1225_v47, %v519_v63  ;;  %v543_v10 = vpop.permute.xlu1 %542 }
 0xad1   :  { %v545_v11 = vmul.f32 %v1227_v49, %v543_v10  ;;  %v736_v10 = vld [vmem:[#allocation2 + $0xa] sm:$0x3] }
 0xad2   :  { %v553_v12 = vrot.slane %v521_v9, %v1481_v45  ;;  %v734_v9 = vld [vmem:[#allocation2 + $0x14] sm:$0x3] }
 0xad3   :  { %v564_v13 = vrot.slane %v545_v11, %v1481_v45 }
 0xad4   :  { %554 = vrot.lane.b32.xlu0 %v553_v12, %s1375_s6 }
 0xad5   :  { %565 = vrot.lane.b32.xlu1 %v564_v13, %s1374_s1 }
 0xb46   :  { %v1586_v14 = vpop.permute.xlu0 %554 }
 0xb47   :  { %v1588_v15 = vpop.permute.xlu1 %565 }
 0xb48   :  { %v568_v16 = vsel %vm207_vm0, %v1586_v14, %v1588_v15 }
 0xb49   :  { %v569_v17 = vpack.c.bf16 %v568_v16, %v568_v16 }
 0xb4b   :  { %1134 = vmatmul.mubr.msk.bf16.vlgmr.msra.gmra.mrb[8].mxu0 %vm88_vm1, %v569_v17 }
 0xb4c   :  { %814 = vmatpush1.bf16.msra.mxu0 %v1428_v2  ;;  %845 = vmatprep.mubr.bf16.mxu0 %v1372_v0 }
 0xb4d   :  { %815 = vmatprep.subr.bf16.mxu0 %v1431_v3 }
 0xb50   :  { %816 = vmatpush1.bf16.msra.mxu0 %v1435_v4 }
 0xb51   :  { %817 = vmatprep.subr.bf16.mxu0 %v1439_v5 }
 0xb54   :  { %818 = vmatpush1.bf16.msra.mxu0 %v1443_v6 }
 0xb55   :  { %819 = vmatprep.subr.bf16.mxu0 %v1447_v7 }
 0xb58   :  { %820 = vmatpush1.bf16.msra.mxu0 %v1451_v8 }
 0xc1e   :  { %v607_v20 = vpop.f32.mrb[8].mxu0 }
 0xc1f   :  { %v615_v21 = vadd.f32 %v614_v18, %v607_v20  ;;  %v609_v22 = vpop.f32.mrb[9].mxu0 }
 0xc20   :  { %v617_v23 = vadd.f32 %v616_v19, %v609_v22  ;;  %v611_v24 = vpop.f32.mrb[10].mxu0 }
 0xc21   :  { %1232 = vtanh.f32 %v615_v21  ;;  %v612_v27 = vpop.f32.mrb[11].mxu0  ;;  %v1135_v30 = vmul.f32 -1.442695, %v615_v21 }
 0xc22   :  { %1234 = vtanh.f32 %v617_v23  ;;  %v1136_v31 = vmul.f32 -1.442695, %v617_v23 }
 0xc23   :  { %1236 = vpow2.f32 %v1135_v30 }
 0xc24   :  { %1238 = vpow2.f32 %v1136_v31 }
 0xc2b   :  { %v1233_v28 = vpop.eup %1232 }
 0xc2c   :  { %v1235_v29 = vpop.eup %1234  ;;  %627 = vrot.lane.b32.xlu0 %v1233_v28, %s1374_s1 }
 0xc2d   :  { %651 = vrot.lane.b32.xlu1 %v1235_v29, %s1374_s1  ;;  %v1237_v32 = vpop.eup %1236 }
 0xc2e   :  { %v1239_v33 = vpop.eup %1238  ;;  %v621_v34 = vadd.f32 1.0, %v1237_v32 }
 0xc2f   :  { %v645_v35 = vadd.f32 1.0, %v1239_v33 }
 0xc30   :  { %1240 = vrcp.f32 %v621_v34 }
 0xc31   :  { %1242 = vrcp.f32 %v645_v35 }
 0xc3a   :  { %v1241_v36 = vpop.eup %1240 }
 0xc3b   :  { %v1243_v40 = vpop.eup %1242  ;;  %v625_v43 = vmul.f32 %v1241_v36, %v515_v58 }
 0xc3c   :  { %v649_v46 = vmul.f32 %v1243_v40, %v539_v60 }
 0xc9e   :  { %v628_v39 = vpop.permute.xlu0 %627 }
 0xc9f   :  { %v630_v41 = vmul.f32 %v1241_v36, %v628_v39  ;;  %v652_v42 = vpop.permute.xlu1 %651 }
 0xca0   :  { %v654_v1 = vmul.f32 %v1243_v40, %v652_v42 }
 0xca1   :  { %632 = vrot.lane.b32.xlu0 %v630_v41, %s1375_s6 }
 0xca2   :  { %656 = vrot.lane.b32.xlu1 %v654_v1, %s1375_s6 }
 0xd13   :  { %v633_v44 = vpop.permute.xlu0 %632 }
 0xd14   :  { %v635_v47 = vadd.f32 %v633_v44, %v625_v43  ;;  %v657_v48 = vpop.permute.xlu1 %656 }
 0xd15   :  { %v659_v49 = vadd.f32 %v657_v48, %v649_v46  ;;  %v856_v48 = vld [vmem:[#allocation2 + $0x6] sm:$0x3] }
 0xd16   :  { %1244 = vtanh.f32 %v635_v47 }
 0xd17   :  { %1246 = vtanh.f32 %v659_v49 }
 0xd20   :  { %v1245_v50 = vpop.eup %1244 }
 0xd21   :  { %v1247_v51 = vpop.eup %1246  ;;  %638 = vrot.lane.b32.xlu0 %v1245_v50, %s1374_s1 }
 0xd22   :  { %662 = vrot.lane.b32.xlu1 %v1247_v51, %s1374_s1 }
 0xd93   :  { %v639_v54 = vpop.permute.xlu0 %638 }
 0xd94   :  { %v641_v55 = vmul.f32 %v1241_v36, %v639_v54  ;;  %v663_v56 = vpop.permute.xlu1 %662 }
 0xd95   :  { %v665_v57 = vmul.f32 %v1243_v40, %v663_v56 }
 0xd96   :  { %v673_v59 = vrot.slane %v641_v55, %v1481_v45 }
 0xd97   :  { %v684_v58 = vrot.slane %v665_v57, %v1481_v45 }
 0xd98   :  { %674 = vrot.lane.b32.xlu0 %v673_v59, %s1375_s6 }
 0xd99   :  { %685 = vrot.lane.b32.xlu1 %v684_v58, %s1374_s1 }
 0xe0a   :  { %v1612_v60 = vpop.permute.xlu0 %674 }
 0xe0b   :  { %v1614_v61 = vpop.permute.xlu1 %685 }
 0xe0c   :  { %v688_v62 = vsel %vm207_vm0, %v1612_v60, %v1614_v61 }
 0xe0d   :  { %v689_v63 = vpack.c.bf16 %v688_v62, %v688_v62 }
 0xe0f   :  { %1137 = vmatmul.mubr.msk.bf16.vlgmr.msra.gmra.mrb[8].mxu1 %vm88_vm1, %v689_v63 }
 0xe10   :  { %934 = vmatpush1.bf16.msra.mxu1 %v1428_v2  ;;  %965 = vmatprep.mubr.bf16.mxu1 %v1372_v0 }
 0xe11   :  { %935 = vmatprep.subr.bf16.mxu1 %v1431_v3 }
 0xe14   :  { %936 = vmatpush1.bf16.msra.mxu1 %v1435_v4 }
 0xe15   :  { %937 = vmatprep.subr.bf16.mxu1 %v1439_v5 }
 0xe18   :  { %938 = vmatpush1.bf16.msra.mxu1 %v1443_v6 }
 0xe19   :  { %939 = vmatprep.subr.bf16.mxu1 %v1447_v7 }
 0xe1c   :  { %940 = vmatpush1.bf16.msra.mxu1 %v1451_v8 }
 0xee2   :  { %v727_v11 = vpop.f32.mrb[8].mxu1 }
 0xee3   :  { %v735_v12 = vadd.f32 %v734_v9, %v727_v11  ;;  %v729_v13 = vpop.f32.mrb[9].mxu1 }
 0xee4   :  { %v737_v2 = vadd.f32 %v736_v10, %v729_v13  ;;  %v731_v16 = vpop.f32.mrb[10].mxu1 }
 0xee5   :  { %1248 = vtanh.f32 %v735_v12  ;;  %v732_v0 = vpop.f32.mrb[11].mxu1  ;;  %v1138_v5 = vmul.f32 -1.442695, %v735_v12 }
 0xee6   :  { %1250 = vtanh.f32 %v737_v2  ;;  %v1139_v6 = vmul.f32 -1.442695, %v737_v2 }
 0xee7   :  { %1252 = vpow2.f32 %v1138_v5 }
 0xee8   :  { %1254 = vpow2.f32 %v1139_v6 }
 0xeef   :  { %v1249_v3 = vpop.eup %1248 }
 0xef0   :  { %v1251_v4 = vpop.eup %1250  ;;  %747 = vrot.lane.b32.xlu0 %v1249_v3, %s1374_s1 }
 0xef1   :  { %771 = vrot.lane.b32.xlu1 %v1251_v4, %s1374_s1  ;;  %v1253_v7 = vpop.eup %1252 }
 0xef2   :  { %v1255_v8 = vpop.eup %1254  ;;  %v741_v17 = vadd.f32 1.0, %v1253_v7 }
 0xef3   :  { %v765_v18 = vadd.f32 1.0, %v1255_v8 }
 0xef4   :  { %1256 = vrcp.f32 %v741_v17 }
 0xef5   :  { %1258 = vrcp.f32 %v765_v18 }
 0xefe   :  { %v1257_v19 = vpop.eup %1256 }
 0xeff   :  { %v1259_v21 = vpop.eup %1258  ;;  %v745_v27 = vmul.f32 %v1257_v19, %v635_v47  ;;  %v854_v47 = vld [vmem:[#allocation2 + $0x18] sm:$0x3] }
 0xf00   :  { %v769_v29 = vmul.f32 %v1259_v21, %v659_v49 }
 0xf62   :  { %v748_v20 = vpop.permute.xlu0 %747 }
 0xf63   :  { %v750_v22 = vmul.f32 %v1257_v19, %v748_v20  ;;  %v772_v23 = vpop.permute.xlu1 %771 }
 0xf64   :  { %v774_v24 = vmul.f32 %v1259_v21, %v772_v23 }
 0xf65   :  { %752 = vrot.lane.b32.xlu0 %v750_v22, %s1375_s6 }
 0xf66   :  { %776 = vrot.lane.b32.xlu1 %v774_v24, %s1375_s6 }
 0xfd7   :  { %v753_v28 = vpop.permute.xlu0 %752 }
 0xfd8   :  { %v755_v30 = vadd.f32 %v753_v28, %v745_v27  ;;  %v777_v31 = vpop.permute.xlu1 %776 }
 0xfd9   :  { %v779_v32 = vadd.f32 %v777_v31, %v769_v29 }
 0xfda   :  { %1260 = vtanh.f32 %v755_v30 }
 0xfdb   :  { %1262 = vtanh.f32 %v779_v32 }
 0xfe4   :  { %v1261_v33 = vpop.eup %1260 }
 0xfe5   :  { %v1263_v34 = vpop.eup %1262  ;;  %758 = vrot.lane.b32.xlu0 %v1261_v33, %s1374_s1  ;;  %v976_v33 = vld [vmem:[#allocation2 + $0x2] sm:$0x3] }
 0xfe6   :  { %782 = vrot.lane.b32.xlu1 %v1263_v34, %s1374_s1 }
0x1057   :  { %v759_v35 = vpop.permute.xlu0 %758 }
0x1058   :  { %v761_v36 = vmul.f32 %v1257_v19, %v759_v35  ;;  %v783_v39 = vpop.permute.xlu1 %782 }
0x1059   :  { %v785_v40 = vmul.f32 %v1259_v21, %v783_v39 }
0x105a   :  { %v793_v41 = vrot.slane %v761_v36, %v1481_v45 }
0x105b   :  { %v804_v42 = vrot.slane %v785_v40, %v1481_v45 }
0x105c   :  { %794 = vrot.lane.b32.xlu0 %v793_v41, %s1375_s6 }
0x105d   :  { %805 = vrot.lane.b32.xlu1 %v804_v42, %s1374_s1 }
0x10ce   :  { %v1638_v1 = vpop.permute.xlu0 %794 }
0x10cf   :  { %v1640_v43 = vpop.permute.xlu1 %805 }
0x10d0   :  { %v808_v44 = vsel %vm207_vm0, %v1638_v1, %v1640_v43 }
0x10d1   :  { %v809_v46 = vpack.c.bf16 %v808_v44, %v808_v44 }
0x10d3   :  { %1140 = vmatmul.mubr.msk.bf16.vlgmr.msra.gmra.mrb[12].mxu0 %vm88_vm1, %v809_v46 }
0x11a6   :  { %v847_v49 = vpop.f32.mrb[12].mxu0 }
0x11a7   :  { %v855_v50 = vadd.f32 %v854_v47, %v847_v49  ;;  %v849_v51 = vpop.f32.mrb[13].mxu0 }
0x11a8   :  { %v857_v54 = vadd.f32 %v856_v48, %v849_v51  ;;  %v851_v55 = vpop.f32.mrb[14].mxu0 }
0x11a9   :  { %1264 = vtanh.f32 %v855_v50  ;;  %v852_v56 = vpop.f32.mrb[15].mxu0  ;;  %v1141_v58 = vmul.f32 -1.442695, %v855_v50 }
0x11aa   :  { %1266 = vtanh.f32 %v857_v54  ;;  %v1142_v62 = vmul.f32 -1.442695, %v857_v54 }
0x11ab   :  { %1268 = vpow2.f32 %v1141_v58 }
0x11ac   :  { %1270 = vpow2.f32 %v1142_v62 }
0x11b3   :  { %v1265_v57 = vpop.eup %1264 }
0x11b4   :  { %v1267_v59 = vpop.eup %1266  ;;  %867 = vrot.lane.b32.xlu0 %v1265_v57, %s1374_s1 }
0x11b5   :  { %891 = vrot.lane.b32.xlu1 %v1267_v59, %s1374_s1  ;;  %v1269_v63 = vpop.eup %1268 }
0x11b6   :  { %v1271_v9 = vpop.eup %1270  ;;  %v861_v10 = vadd.f32 1.0, %v1269_v63 }
0x11b7   :  { %v885_v11 = vadd.f32 1.0, %v1271_v9 }
0x11b8   :  { %1272 = vrcp.f32 %v861_v10 }
0x11b9   :  { %1274 = vrcp.f32 %v885_v11 }
0x11c2   :  { %v1273_v12 = vpop.eup %1272 }
0x11c3   :  { %v1275_v2 = vpop.eup %1274  ;;  %v865_v4 = vmul.f32 %v1273_v12, %v755_v30 }
0x11c4   :  { %v889_v6 = vmul.f32 %v1275_v2, %v779_v32  ;;  %v974_v32 = vld [vmem:[#allocation2 + $0x1c] sm:$0x3] }
0x1226   :  { %v868_v13 = vpop.permute.xlu0 %867 }
0x1227   :  { %v870_v16 = vmul.f32 %v1273_v12, %v868_v13  ;;  %v892_v0 = vpop.permute.xlu1 %891 }
0x1228   :  { %v894_v3 = vmul.f32 %v1275_v2, %v892_v0 }
0x1229   :  { %872 = vrot.lane.b32.xlu0 %v870_v16, %s1375_s6  ;;  %v1040_v16 = vsel %vm207_vm0, %v1586_v14, %v1614_v61  ;;  %v1042_v14 = vsel %vm207_vm0, %v1638_v1, %v1559_v26  ;;  %v1039_v26 = vsel %vm207_vm0, %v1557_v25, %v1640_v43 }
0x122a   :  { %896 = vrot.lane.b32.xlu1 %v894_v3, %s1375_s6 }
0x129b   :  { %v873_v5 = vpop.permute.xlu0 %872 }
0x129c   :  { %v875_v7 = vadd.f32 %v873_v5, %v865_v4  ;;  %v897_v8 = vpop.permute.xlu1 %896 }
0x129d   :  { %v899_v17 = vadd.f32 %v897_v8, %v889_v6 }
0x129e   :  { %1276 = vtanh.f32 %v875_v7 }
0x129f   :  { %1278 = vtanh.f32 %v899_v17 }
0x12a8   :  { %v1277_v18 = vpop.eup %1276 }
0x12a9   :  { %v1279_v19 = vpop.eup %1278  ;;  %878 = vrot.lane.b32.xlu0 %v1277_v18, %s1374_s1 }
0x12aa   :  { %902 = vrot.lane.b32.xlu1 %v1279_v19, %s1374_s1 }
0x131b   :  { %v879_v20 = vpop.permute.xlu0 %878 }
0x131c   :  { %v881_v21 = vmul.f32 %v1273_v12, %v879_v20  ;;  %v903_v22 = vpop.permute.xlu1 %902 }
0x131d   :  { %v905_v23 = vmul.f32 %v1275_v2, %v903_v22 }
0x131e   :  { %v913_v24 = vrot.slane %v881_v21, %v1481_v45 }
0x131f   :  { %v924_v27 = vrot.slane %v905_v23, %v1481_v45 }
0x1320   :  { %914 = vrot.lane.b32.xlu0 %v913_v24, %s1375_s6 }
0x1321   :  { %925 = vrot.lane.b32.xlu1 %v924_v27, %s1374_s1 }
0x1392   :  { %v1656_v28 = vpop.permute.xlu0 %914 }
0x1393   :  { %v926_v29 = vpop.permute.xlu1 %925  ;;  %v1043_v23 = vsel %vm207_vm0, %v1656_v28, %v1524_v38 }
0x1394   :  { %v928_v30 = vsel %vm207_vm0, %v1656_v28, %v926_v29  ;;  %v1038_v8 = vsel %vm207_vm0, %v1522_v37, %v926_v29 }
0x1395   :  { %v929_v31 = vpack.c.bf16 %v928_v30, %v928_v30 }
0x1397   :  { %1143 = vmatmul.mubr.msk.bf16.vlgmr.msra.gmra.mrb[12].mxu1 %vm88_vm1, %v929_v31 }
0x146a   :  { %v967_v34 = vpop.f32.mrb[12].mxu1 }
0x146b   :  { %v975_v35 = vadd.f32 %v974_v32, %v967_v34  ;;  %v969_v36 = vpop.f32.mrb[13].mxu1 }
0x146c   :  { %v977_v39 = vadd.f32 %v976_v33, %v969_v36  ;;  %v971_v40 = vpop.f32.mrb[14].mxu1 }
0x146d   :  { %1280 = vtanh.f32 %v975_v35  ;;  %v972_v41 = vpop.f32.mrb[15].mxu1  ;;  %v1144_v46 = vmul.f32 -1.442695, %v975_v35 }
0x146e   :  { %1282 = vtanh.f32 %v977_v39  ;;  %v1145_v47 = vmul.f32 -1.442695, %v977_v39 }
0x146f   :  { %1284 = vpow2.f32 %v1144_v46 }
0x1470   :  { %1286 = vpow2.f32 %v1145_v47 }
0x1477   :  { %v1281_v42 = vpop.eup %1280 }
0x1478   :  { %v1283_v44 = vpop.eup %1282  ;;  %987 = vrot.lane.b32.xlu0 %v1281_v42, %s1374_s1 }
0x1479   :  { %1011 = vrot.lane.b32.xlu1 %v1283_v44, %s1374_s1  ;;  %v1285_v48 = vpop.eup %1284 }
0x147a   :  { %v1287_v49 = vpop.eup %1286  ;;  %v981_v50 = vadd.f32 1.0, %v1285_v48 }
0x147b   :  { %v1005_v51 = vadd.f32 1.0, %v1287_v49 }
0x147c   :  { %1288 = vrcp.f32 %v981_v50 }
0x147d   :  { %1290 = vrcp.f32 %v1005_v51 }
0x1486   :  { %v1289_v54 = vpop.eup %1288 }
0x1487   :  { %v1291_v56 = vpop.eup %1290  ;;  %v985_v62 = vmul.f32 %v1289_v54, %v875_v7 }
0x1488   :  { %v1009_v9 = vmul.f32 %v1291_v56, %v899_v17 }
0x14ea   :  { %v988_v55 = vpop.permute.xlu0 %987 }
0x14eb   :  { %v990_v57 = vmul.f32 %v1289_v54, %v988_v55  ;;  %v1012_v59 = vpop.permute.xlu1 %1011 }
0x14ec   :  { %v1014_v58 = vmul.f32 %v1291_v56, %v1012_v59 }
0x14ed   :  { %992 = vrot.lane.b32.xlu0 %v990_v57, %s1375_s6 }
0x14ee   :  { %1016 = vrot.lane.b32.xlu1 %v1014_v58, %s1375_s6 }
0x155f   :  { %v993_v63 = vpop.permute.xlu0 %992 }
0x1560   :  { %v995_v10 = vadd.f32 %v993_v63, %v985_v62  ;;  %v1017_v11 = vpop.permute.xlu1 %1016 }
0x1561   :  { %v1019_v12 = vadd.f32 %v1017_v11, %v1009_v9 }
0x1562   :  { %1292 = vtanh.f32 %v995_v10 }
0x1563   :  { %1294 = vtanh.f32 %v1019_v12 }
0x156c   :  { %v1293_v13 = vpop.eup %1292 }
0x156d   :  { %v1295_v2 = vpop.eup %1294  ;;  %998 = vrot.lane.b32.xlu0 %v1293_v13, %s1374_s1 }
0x156e   :  { %1022 = vrot.lane.b32.xlu1 %v1295_v2, %s1374_s1 }
0x1572   :  { %1061 = vrot.lane.b32.xlu1 %v1040_v16, %s1374_s1 }
0x15df   :  { %v999_v0 = vpop.permute.xlu0 %998 }
0x15e0   :  { %v1001_v3 = vmul.f32 %v1289_v54, %v999_v0  ;;  %v1023_v4 = vpop.permute.xlu1 %1022 }
0x15e1   :  { %v1025_v5 = vmul.f32 %v1291_v56, %v1023_v4 }
0x15e2   :  { %v1051_v6 = vrot.slane %v1001_v3, %v1481_v45 }
0x15e3   :  { %v1033_v7 = vrot.slane %v1025_v5, %v1481_v45 }
0x15e4   :  { %1052 = vrot.lane.b32.xlu0 %v1051_v6, %s1375_s6  ;;  %v1062_v18 = vpop.permute.xlu1 %1061 }
0x15e5   :  { %1034 = vrot.lane.b32.xlu1 %v1033_v7, %s1374_s1  ;;  %v1073_v22 = vsel %vm88_vm1, %v1039_v26, %v1062_v18 }
0x15e8   :  { %1057 = vrot.lane.b32.xlu0 %v1038_v8, %s1374_s1 }
0x15ec   :  { %1065 = vrot.lane.b32.xlu0 %v1042_v14, %s1374_s1 }
0x1656   :  { %v1053_v61 = vpop.permute.xlu0 %1052 }
0x1657   :  { %v1055_v17 = vsel %vm207_vm0, %v1053_v61, %v1489_v53  ;;  %v1035_v20 = vpop.permute.xlu1 %1034  ;;  %v1041_v53 = vsel %vm207_vm0, %v1612_v60, %v1588_v15 }
0x1658   :  { %1069 = vrot.lane.b32.xlu1 %v1055_v17, %s1374_s1  ;;  %v1037_v37 = vsel %vm207_vm0, %v1487_v52, %v1035_v20 }
0x165a   :  { %v1058_v19 = vpop.permute.xlu0 %1057 }
0x165b   :  { %v1072_v21 = vsel %vm88_vm1, %v1037_v37, %v1058_v19 }
0x165c   :  { %v1080_v24 = vcombine.low %v1072_v21, %v1073_v22 }
0x165e   :  { %v1066_v1 = vpop.permute.xlu0 %1065  ;;  %v1088_v25 = vrot.slane %v1080_v24, %v1481_v45 }
0x165f   :  { %v1074_v52 = vsel %vm88_vm1, %v1041_v53, %v1066_v1 }
0x16ca   :  { %v1070_v27 = vpop.permute.xlu1 %1069 }
0x16cb   :  { %v1075_v29 = vsel %vm88_vm1, %v1043_v23, %v1070_v27 }
0x16cc   :  { %v1081_v30 = vcombine.low %v1074_v52, %v1075_v29 }
0x16ce   :  { %v1095_v43 = vrot.slane %v1081_v30, %v1481_v45 }
0x16d0   :  { %v1096_v31 = vcombine.low %v1088_v25, %v1095_v43 }
0x16d2   :  { %1098 = vst [vmem:[#allocation7] sm:$0xff] %v1096_v31 }
0x16d3   :  { %1351 = shalt.err (!%p1348_p6)
}
0x16d4   :  { %s1352_s12 = scalar_lea.hbm %s1716_s2, 128 }
0x16d5   :  { %p1353_p7 = scmp.ne.s32.totalorder %s1716_s2, %s1352_s12  ;;  %p1356_p8 = scmp.lt.u32.totalorder %s1352_s12, %s1716_s2 }
0x16d7   :  { %p1358_p9 = pnand %p1356_p8, %p1353_p7 }
0x16d9   :  { %1361 = shalt.err (!%p1358_p9)
}
0x16da   :  { %1108 = dma.vmem_to_hbm [thread:$0]  %s1106_s8, 128, %s1716_s2, [#allocation4]  }
0x16db   :  { %1366 = dma.done.wait [#allocation4], 128  }
0x16dc   :  { %1367 = vsyncadd [#allocation4], 4294967168 }
0x16dd   :  { %1112 = vsyncpa [#allocation3], 1 }
0x16de   :  { %1113 = vsyncpa [#allocation6], 1 }
0x16df   :  { %1114 = vsyncpa [#allocation4], 1 }

</bundles_post_ra>
